<compile_context>
chip_gen: v7x
topology: tpu7x:2x2x1
jax: 0.10.0
libtpu: 0.0.40
codegen_flags: <defaults>
</compile_context>

<pallas_src>
import functools

import jax
import jax.numpy as jnp
from jax import lax
from jax.experimental import pallas as pl
from jax.experimental.pallas import tpu as pltpu


FEATURE_DIM = 16   # out_channels of CNNExtract (== LSTM input size)
HIDDEN_DIM = 32    # LSTM hidden size
C1 = 8             # first conv out channels
KH = KW = 3        # conv kernel


# ---------------------------------------------------------------------------
# Fused kernel: conv3x3 -> relu -> conv3x3 (im2col GEMM) -> relu -> spatial
#               mean -> LSTM (unrolled) -> Linear(hidden, 1)
# ---------------------------------------------------------------------------
def value_net_kernel(x_ref, mask_ref, w1_ref, b1_ref, w2_ref, b2_ref,
                     wih_ref, whh_ref, bg_ref, wfc_ref, bfc_ref,
                     out_ref, xcol_ref, *, batch, seq, height, width):
    # x_ref    : (1, NHW)  flattened frames, time-major, row-major (n, i, j)
    # mask_ref : (9, NHW)  per-tap zero-padding validity masks (0./1.)
    # w1_ref   : (C1, 9)       b1_ref : (C1, 1)
    # w2_ref   : (C2, 9*C1)    b2_ref : (C2, 1)
    # wih_ref  : (F, 4H)  whh_ref : (H, 4H)  bg_ref : (1, 4H)
    # wfc_ref  : (H, 1)   bfc_ref : (1, 1)
    # out_ref  : (batch, 1)
    # xcol_ref : (9*C1, NHW) VMEM scratch for the conv2 im2col
    n_frames = batch * seq
    hw = height * width
    nhw = x_ref.shape[1]
    c1 = w1_ref.shape[0]
    c2 = w2_ref.shape[0]
    hd = whh_ref.shape[0]

    x = x_ref[...]                                     # (1, NHW)

    def tap_shift(arr, di, dj, t):
        # arr[..., p] -> arr[..., p + off] within each frame, zero outside it.
        off = (di - 1) * width + (dj - 1)
        shifted = arr if off == 0 else jnp.roll(arr, -off, axis=1)
        return shifted * mask_ref[t:t + 1, :]

    # ---- conv1 (1 -> C1), padding=1: 9 broadcast multiply-adds on the VPU ----
    acc1 = jnp.zeros((c1, nhw), jnp.float32) + b1_ref[...]
    for di in range(KH):
        for dj in range(KW):
            t = di * KW + dj
            acc1 = acc1 + w1_ref[:, t:t + 1] * tap_shift(x, di, dj, t)
    h1 = jnp.maximum(acc1, 0.0)                        # (C1, NHW)

    # ---- conv2 (C1 -> C2): build im2col in VMEM, one K=72 GEMM on the MXU ----
    for di in range(KH):
        for dj in range(KW):
            t = di * KW + dj
            xcol_ref[t * c1:(t + 1) * c1, :] = tap_shift(h1, di, dj, t)
    h2 = jnp.maximum(
        jnp.dot(w2_ref[...], xcol_ref[...], preferred_element_type=jnp.float32)
        + b2_ref[...],
        0.0)                                           # (C2, NHW), lane-dense

    # ---- global spatial mean per frame (== feat.mean(dim=[2,3])) ----
    cols = []
    for n in range(n_frames):
        img = h2[:, n * hw:(n + 1) * hw]               # 128-aligned lane slice
        cols.append(jnp.sum(img, axis=1, keepdims=True))
    feat_cn = jnp.concatenate(cols, axis=1) * (1.0 / hw)   # (C2, n_frames)
    feat = feat_cn.T                                       # (n_frames, C2), rows (t, b)

    # ---- LSTM: hoisted input projection (one GEMM), then unrolled recurrence ----
    xg = jnp.dot(feat, wih_ref[...], preferred_element_type=jnp.float32) \
        + bg_ref[...]                                  # (n_frames, 4H)
    whh = whh_ref[...]

    h = jnp.zeros((batch, hd), jnp.float32)
    c = jnp.zeros((batch, hd), jnp.float32)
    for t in range(seq):                               # static, fully unrolled
        gates = xg[t * batch:(t + 1) * batch, :] + jnp.dot(
            h, whh, preferred_element_type=jnp.float32)            # (B, 4H)
        i_g = jax.nn.sigmoid(gates[:, 0 * hd:1 * hd])
        f_g = jax.nn.sigmoid(gates[:, 1 * hd:2 * hd])
        g_g = jnp.tanh(gates[:, 2 * hd:3 * hd])
        o_g = jax.nn.sigmoid(gates[:, 3 * hd:4 * hd])
        c = f_g * c + i_g * g_g
        h = o_g * jnp.tanh(c)

    # ---- value = fc(h_n[-1]) ----
    out_ref[...] = (jnp.dot(h, wfc_ref[...], preferred_element_type=jnp.float32)
                    + bfc_ref[...])


# ---------------------------------------------------------------------------
# Wrapper
# ---------------------------------------------------------------------------
_VMEM = pl.BlockSpec(memory_space=pltpu.MemorySpace.VMEM)


def _tap_masks(batch, seq, height, width):
    """(9, N*H*W) float32 validity masks for the 3x3 zero-padded taps."""
    nhw = batch * seq * height * width
    p = jnp.arange(nhw, dtype=jnp.int32).reshape(1, nhw)
    row = (p // width) % height
    col = p % width
    masks = []
    for di in range(KH):
        for dj in range(KW):
            si, sj = di - 1, dj - 1
            valid = ((row + si >= 0) & (row + si < height) &
                     (col + sj >= 0) & (col + sj < width))
            masks.append(valid.astype(jnp.float32))
    return jnp.concatenate(masks, axis=0)


@jax.jit
def value_network_forward(x, params):
    """x: (batch, seq, H, W) float32  ->  value: (batch, 1) float32."""
    batch, seq, H, W = x.shape
    nhw = batch * seq * H * W

    # Time-major frame ordering so per-timestep features are contiguous rows.
    x_flat = x.transpose(1, 0, 2, 3).reshape(1, nhw)
    masks = _tap_masks(batch, seq, H, W)               # constant-folded under jit

    kernel = functools.partial(value_net_kernel, batch=batch, seq=seq,
                               height=H, width=W)

    return pl.pallas_call(
        kernel,
        out_shape=jax.ShapeDtypeStruct((batch, 1), jnp.float32),
        in_specs=[_VMEM] * 11,
        out_specs=_VMEM,
        scratch_shapes=[pltpu.VMEM((KH * KW * C1, nhw), jnp.float32)],
    )(x_flat, masks,
      params["w1"], params["b1"], params["w2"], params["b2"],
      params["wih_t"], params["whh_t"], params["b_gates"],
      params["wfc_t"], params["bfc"])


# ---------------------------------------------------------------------------
# Deterministic synthetic parameters
# ---------------------------------------------------------------------------
def init_params(key):
    ks = jax.random.split(key, 8)
    scale = 0.1
    return {
        # conv1: PyTorch weight (C1, 1, 3, 3) stored as (C1, 9); bias (C1, 1)
        "w1": scale * jax.random.normal(ks[0], (C1, KH * KW), jnp.float32),
        "b1": scale * jax.random.normal(ks[1], (C1, 1), jnp.float32),
        # conv2: PyTorch weight (C2, C1, 3, 3) stored as (C2, 9*C1); bias (C2, 1)
        "w2": scale * jax.random.normal(ks[2], (FEATURE_DIM, KH * KW * C1), jnp.float32),
        "b2": scale * jax.random.normal(ks[3], (FEATURE_DIM, 1), jnp.float32),
        # LSTM: W_ih^T (F, 4H), W_hh^T (H, 4H), combined bias b_ih + b_hh (1, 4H)
        "wih_t": scale * jax.random.normal(ks[4], (FEATURE_DIM, 4 * HIDDEN_DIM), jnp.float32),
        "whh_t": scale * jax.random.normal(ks[5], (HIDDEN_DIM, 4 * HIDDEN_DIM), jnp.float32),
        "b_gates": scale * jax.random.normal(ks[6], (1, 4 * HIDDEN_DIM), jnp.float32),
        # fc: W^T (H, 1), bias (1, 1)
        "wfc_t": scale * jax.random.normal(ks[7], (HIDDEN_DIM, 1), jnp.float32),
        "bfc": jnp.zeros((1, 1), jnp.float32),
    }


# ---------------------------------------------------------------------------
# Pure-JAX reference (same math, no Pallas) for a correctness check
# ---------------------------------------------------------------------------
def reference_forward(x, p):
    batch, seq, H, W = x.shape
    N = batch * seq
    xi = x.reshape(N, H, W)
    xp = jnp.pad(xi, ((0, 0), (1, 1), (1, 1)))

    acc1 = jnp.zeros((N, H, W, C1), jnp.float32) + p["b1"][:, 0]
    for di in range(KH):
        for dj in range(KW):
            t = di * KW + dj
            acc1 = acc1 + xp[:, di:di + H, dj:dj + W, None] * p["w1"][:, t]
    h1 = jnp.maximum(acc1, 0.0)
    h1p = jnp.pad(h1, ((0, 0), (1, 1), (1, 1), (0, 0)))

    acc2 = jnp.zeros((N, H, W, FEATURE_DIM), jnp.float32) + p["b2"][:, 0]
    for di in range(KH):
        for dj in range(KW):
            t = di * KW + dj
            wblk = p["w2"][:, t * C1:(t + 1) * C1]            # (C2, C1)
            acc2 = acc2 + jnp.einsum("nhwc,oc->nhwo",
                                     h1p[:, di:di + H, dj:dj + W, :], wblk)
    h2 = jnp.maximum(acc2, 0.0)
    feat = h2.mean(axis=(1, 2)).reshape(batch, seq, FEATURE_DIM)

    def step(carry, x_t):
        h, c = carry
        g = x_t @ p["wih_t"] + h @ p["whh_t"] + p["b_gates"][0]
        i = jax.nn.sigmoid(g[:, :HIDDEN_DIM])
        f = jax.nn.sigmoid(g[:, HIDDEN_DIM:2 * HIDDEN_DIM])
        gg = jnp.tanh(g[:, 2 * HIDDEN_DIM:3 * HIDDEN_DIM])
        o = jax.nn.sigmoid(g[:, 3 * HIDDEN_DIM:])
        c = f * c + i * gg
        h = o * jnp.tanh(c)
        return (h, c), None

    h0 = jnp.zeros((batch, HIDDEN_DIM), jnp.float32)
    c0 = jnp.zeros((batch, HIDDEN_DIM), jnp.float32)
    (h_T, _), _ = lax.scan(step, (h0, c0), feat.transpose(1, 0, 2))
    return h_T @ p["wfc_t"] + p["bfc"]


if __name__ == "__main__":
    key = jax.random.PRNGKey(0)
    k_x, k_p = jax.random.split(key)

    batch, seq, H, W = 2, 8, 16, 16
    x = jax.random.normal(k_x, (batch, seq, H, W), jnp.float32)
    params = init_params(k_p)

    value = value_network_forward(x, params)
    value = jax.block_until_ready(value)

    ref = reference_forward(x, params)
    assert value.shape == (batch, 1), value.shape
    assert jnp.allclose(value, ref, rtol=5e-4, atol=5e-4), (value, ref)

    print("KERNEL_OK")
</pallas_src>

<mosaic_0001>
module attributes {stable_mosaic.version = 11 : i64} {
  func.func @value_net_kernel(%arg0: memref<1x4096xf32, #tpu.memory_space<vmem>>, %arg1: memref<9x4096xf32, #tpu.memory_space<vmem>>, %arg2: memref<8x9xf32, #tpu.memory_space<vmem>>, %arg3: memref<8x1xf32, #tpu.memory_space<vmem>>, %arg4: memref<16x72xf32, #tpu.memory_space<vmem>>, %arg5: memref<16x1xf32, #tpu.memory_space<vmem>>, %arg6: memref<16x128xf32, #tpu.memory_space<vmem>>, %arg7: memref<32x128xf32, #tpu.memory_space<vmem>>, %arg8: memref<1x128xf32, #tpu.memory_space<vmem>>, %arg9: memref<32x1xf32, #tpu.memory_space<vmem>>, %arg10: memref<1x1xf32, #tpu.memory_space<vmem>>, %arg11: memref<2x1xf32, #tpu.memory_space<vmem>>, %arg12: memref<72x4096xf32, #tpu.memory_space<vmem>>) attributes {dimension_semantics = [], scalar_prefetch = 0 : i64, scratch_operands = 1 : i64, tpu.core_type = #tpu.core_type<tc>} {
    %c0 = arith.constant 0 : index
    %c0_0 = arith.constant 0 : index
    %0 = vector.load %arg0[%c0, %c0_0] : memref<1x4096xf32, #tpu.memory_space<vmem>>, vector<1x4096xf32>
    %cst = arith.constant 0.000000e+00 : f32
    %1 = vector.broadcast %cst : f32 to vector<8x4096xf32>
    %c0_1 = arith.constant 0 : index
    %c0_2 = arith.constant 0 : index
    %2 = vector.load %arg3[%c0_1, %c0_2] : memref<8x1xf32, #tpu.memory_space<vmem>>, vector<8x1xf32>
    %3 = vector.broadcast %2 : vector<8x1xf32> to vector<8x4096xf32>
    %4 = arith.addf %1, %3 : vector<8x4096xf32>
    %c0_3 = arith.constant 0 : index
    %c0_4 = arith.constant 0 : index
    %5 = vector.load %arg2[%c0_3, %c0_4] : memref<8x9xf32, #tpu.memory_space<vmem>>, vector<8x1xf32>
    %6 = vector.extract_strided_slice %0 {offsets = [0, 4079], sizes = [1, 17], strides = [1, 1]} : vector<1x4096xf32> to vector<1x17xf32>
    %7 = vector.extract_strided_slice %0 {offsets = [0, 0], sizes = [1, 4079], strides = [1, 1]} : vector<1x4096xf32> to vector<1x4079xf32>
    %8 = tpu.concatenate %6, %7 in 1 : vector<1x17xf32>, vector<1x4079xf32> -> vector<1x4096xf32>
    %c0_5 = arith.constant 0 : index
    %c0_6 = arith.constant 0 : index
    %9 = vector.load %arg1[%c0_5, %c0_6] : memref<9x4096xf32, #tpu.memory_space<vmem>>, vector<1x4096xf32>
    %10 = arith.mulf %8, %9 : vector<1x4096xf32>
    %11 = vector.broadcast %5 : vector<8x1xf32> to vector<8x4096xf32>
    %12 = vector.broadcast %10 : vector<1x4096xf32> to vector<8x4096xf32>
    %13 = arith.mulf %11, %12 : vector<8x4096xf32>
    %14 = arith.addf %4, %13 : vector<8x4096xf32>
    %c0_7 = arith.constant 0 : index
    %c1 = arith.constant 1 : index
    %15 = vector.load %arg2[%c0_7, %c1] : memref<8x9xf32, #tpu.memory_space<vmem>>, vector<8x1xf32>
    %16 = vector.extract_strided_slice %0 {offsets = [0, 4080], sizes = [1, 16], strides = [1, 1]} : vector<1x4096xf32> to vector<1x16xf32>
    %17 = vector.extract_strided_slice %0 {offsets = [0, 0], sizes = [1, 4080], strides = [1, 1]} : vector<1x4096xf32> to vector<1x4080xf32>
    %18 = tpu.concatenate %16, %17 in 1 : vector<1x16xf32>, vector<1x4080xf32> -> vector<1x4096xf32>
    %c1_8 = arith.constant 1 : index
    %c0_9 = arith.constant 0 : index
    %19 = vector.load %arg1[%c1_8, %c0_9] : memref<9x4096xf32, #tpu.memory_space<vmem>>, vector<1x4096xf32>
    %20 = arith.mulf %18, %19 : vector<1x4096xf32>
    %21 = vector.broadcast %15 : vector<8x1xf32> to vector<8x4096xf32>
    %22 = vector.broadcast %20 : vector<1x4096xf32> to vector<8x4096xf32>
    %23 = arith.mulf %21, %22 : vector<8x4096xf32>
    %24 = arith.addf %14, %23 : vector<8x4096xf32>
    %c0_10 = arith.constant 0 : index
    %c2 = arith.constant 2 : index
    %25 = vector.load %arg2[%c0_10, %c2] : memref<8x9xf32, #tpu.memory_space<vmem>>, vector<8x1xf32>
    %26 = vector.extract_strided_slice %0 {offsets = [0, 4081], sizes = [1, 15], strides = [1, 1]} : vector<1x4096xf32> to vector<1x15xf32>
    %27 = vector.extract_strided_slice %0 {offsets = [0, 0], sizes = [1, 4081], strides = [1, 1]} : vector<1x4096xf32> to vector<1x4081xf32>
    %28 = tpu.concatenate %26, %27 in 1 : vector<1x15xf32>, vector<1x4081xf32> -> vector<1x4096xf32>
    %c2_11 = arith.constant 2 : index
    %c0_12 = arith.constant 0 : index
    %29 = vector.load %arg1[%c2_11, %c0_12] : memref<9x4096xf32, #tpu.memory_space<vmem>>, vector<1x4096xf32>
    %30 = arith.mulf %28, %29 : vector<1x4096xf32>
    %31 = vector.broadcast %25 : vector<8x1xf32> to vector<8x4096xf32>
    %32 = vector.broadcast %30 : vector<1x4096xf32> to vector<8x4096xf32>
    %33 = arith.mulf %31, %32 : vector<8x4096xf32>
    %34 = arith.addf %24, %33 : vector<8x4096xf32>
    %c0_13 = arith.constant 0 : index
    %c3 = arith.constant 3 : index
    %35 = vector.load %arg2[%c0_13, %c3] : memref<8x9xf32, #tpu.memory_space<vmem>>, vector<8x1xf32>
    %36 = vector.extract_strided_slice %0 {offsets = [0, 4095], sizes = [1, 1], strides = [1, 1]} : vector<1x4096xf32> to vector<1x1xf32>
    %37 = vector.extract_strided_slice %0 {offsets = [0, 0], sizes = [1, 4095], strides = [1, 1]} : vector<1x4096xf32> to vector<1x4095xf32>
    %38 = tpu.concatenate %36, %37 in 1 : vector<1x1xf32>, vector<1x4095xf32> -> vector<1x4096xf32>
    %c3_14 = arith.constant 3 : index
    %c0_15 = arith.constant 0 : index
    %39 = vector.load %arg1[%c3_14, %c0_15] : memref<9x4096xf32, #tpu.memory_space<vmem>>, vector<1x4096xf32>
    %40 = arith.mulf %38, %39 : vector<1x4096xf32>
    %41 = vector.broadcast %35 : vector<8x1xf32> to vector<8x4096xf32>
    %42 = vector.broadcast %40 : vector<1x4096xf32> to vector<8x4096xf32>
    %43 = arith.mulf %41, %42 : vector<8x4096xf32>
    %44 = arith.addf %34, %43 : vector<8x4096xf32>
    %c0_16 = arith.constant 0 : index
    %c4 = arith.constant 4 : index
    %45 = vector.load %arg2[%c0_16, %c4] : memref<8x9xf32, #tpu.memory_space<vmem>>, vector<8x1xf32>
    %c4_17 = arith.constant 4 : index
    %c0_18 = arith.constant 0 : index
    %46 = vector.load %arg1[%c4_17, %c0_18] : memref<9x4096xf32, #tpu.memory_space<vmem>>, vector<1x4096xf32>
    %47 = arith.mulf %0, %46 : vector<1x4096xf32>
    %48 = vector.broadcast %45 : vector<8x1xf32> to vector<8x4096xf32>
    %49 = vector.broadcast %47 : vector<1x4096xf32> to vector<8x4096xf32>
    %50 = arith.mulf %48, %49 : vector<8x4096xf32>
    %51 = arith.addf %44, %50 : vector<8x4096xf32>
    %c0_19 = arith.constant 0 : index
    %c5 = arith.constant 5 : index
    %52 = vector.load %arg2[%c0_19, %c5] : memref<8x9xf32, #tpu.memory_space<vmem>>, vector<8x1xf32>
    %53 = vector.extract_strided_slice %0 {offsets = [0, 1], sizes = [1, 4095], strides = [1, 1]} : vector<1x4096xf32> to vector<1x4095xf32>
    %54 = vector.extract_strided_slice %0 {offsets = [0, 0], sizes = [1, 1], strides = [1, 1]} : vector<1x4096xf32> to vector<1x1xf32>
    %55 = tpu.concatenate %53, %54 in 1 : vector<1x4095xf32>, vector<1x1xf32> -> vector<1x4096xf32>
    %c5_20 = arith.constant 5 : index
    %c0_21 = arith.constant 0 : index
    %56 = vector.load %arg1[%c5_20, %c0_21] : memref<9x4096xf32, #tpu.memory_space<vmem>>, vector<1x4096xf32>
    %57 = arith.mulf %55, %56 : vector<1x4096xf32>
    %58 = vector.broadcast %52 : vector<8x1xf32> to vector<8x4096xf32>
    %59 = vector.broadcast %57 : vector<1x4096xf32> to vector<8x4096xf32>
    %60 = arith.mulf %58, %59 : vector<8x4096xf32>
    %61 = arith.addf %51, %60 : vector<8x4096xf32>
    %c0_22 = arith.constant 0 : index
    %c6 = arith.constant 6 : index
    %62 = vector.load %arg2[%c0_22, %c6] : memref<8x9xf32, #tpu.memory_space<vmem>>, vector<8x1xf32>
    %63 = vector.extract_strided_slice %0 {offsets = [0, 15], sizes = [1, 4081], strides = [1, 1]} : vector<1x4096xf32> to vector<1x4081xf32>
    %64 = vector.extract_strided_slice %0 {offsets = [0, 0], sizes = [1, 15], strides = [1, 1]} : vector<1x4096xf32> to vector<1x15xf32>
    %65 = tpu.concatenate %63, %64 in 1 : vector<1x4081xf32>, vector<1x15xf32> -> vector<1x4096xf32>
    %c6_23 = arith.constant 6 : index
    %c0_24 = arith.constant 0 : index
    %66 = vector.load %arg1[%c6_23, %c0_24] : memref<9x4096xf32, #tpu.memory_space<vmem>>, vector<1x4096xf32>
    %67 = arith.mulf %65, %66 : vector<1x4096xf32>
    %68 = vector.broadcast %62 : vector<8x1xf32> to vector<8x4096xf32>
    %69 = vector.broadcast %67 : vector<1x4096xf32> to vector<8x4096xf32>
    %70 = arith.mulf %68, %69 : vector<8x4096xf32>
    %71 = arith.addf %61, %70 : vector<8x4096xf32>
    %c0_25 = arith.constant 0 : index
    %c7 = arith.constant 7 : index
    %72 = vector.load %arg2[%c0_25, %c7] : memref<8x9xf32, #tpu.memory_space<vmem>>, vector<8x1xf32>
    %73 = vector.extract_strided_slice %0 {offsets = [0, 16], sizes = [1, 4080], strides = [1, 1]} : vector<1x4096xf32> to vector<1x4080xf32>
    %74 = vector.extract_strided_slice %0 {offsets = [0, 0], sizes = [1, 16], strides = [1, 1]} : vector<1x4096xf32> to vector<1x16xf32>
    %75 = tpu.concatenate %73, %74 in 1 : vector<1x4080xf32>, vector<1x16xf32> -> vector<1x4096xf32>
    %c7_26 = arith.constant 7 : index
    %c0_27 = arith.constant 0 : index
    %76 = vector.load %arg1[%c7_26, %c0_27] : memref<9x4096xf32, #tpu.memory_space<vmem>>, vector<1x4096xf32>
    %77 = arith.mulf %75, %76 : vector<1x4096xf32>
    %78 = vector.broadcast %72 : vector<8x1xf32> to vector<8x4096xf32>
    %79 = vector.broadcast %77 : vector<1x4096xf32> to vector<8x4096xf32>
    %80 = arith.mulf %78, %79 : vector<8x4096xf32>
    %81 = arith.addf %71, %80 : vector<8x4096xf32>
    %c0_28 = arith.constant 0 : index
    %c8 = arith.constant 8 : index
    %82 = vector.load %arg2[%c0_28, %c8] : memref<8x9xf32, #tpu.memory_space<vmem>>, vector<8x1xf32>
    %83 = vector.extract_strided_slice %0 {offsets = [0, 17], sizes = [1, 4079], strides = [1, 1]} : vector<1x4096xf32> to vector<1x4079xf32>
    %84 = vector.extract_strided_slice %0 {offsets = [0, 0], sizes = [1, 17], strides = [1, 1]} : vector<1x4096xf32> to vector<1x17xf32>
    %85 = tpu.concatenate %83, %84 in 1 : vector<1x4079xf32>, vector<1x17xf32> -> vector<1x4096xf32>
    %c8_29 = arith.constant 8 : index
    %c0_30 = arith.constant 0 : index
    %86 = vector.load %arg1[%c8_29, %c0_30] : memref<9x4096xf32, #tpu.memory_space<vmem>>, vector<1x4096xf32>
    %87 = arith.mulf %85, %86 : vector<1x4096xf32>
    %88 = vector.broadcast %82 : vector<8x1xf32> to vector<8x4096xf32>
    %89 = vector.broadcast %87 : vector<1x4096xf32> to vector<8x4096xf32>
    %90 = arith.mulf %88, %89 : vector<8x4096xf32>
    %91 = arith.addf %81, %90 : vector<8x4096xf32>
    %cst_31 = arith.constant 0.000000e+00 : f32
    %92 = vector.broadcast %cst_31 : f32 to vector<8x4096xf32>
    %93 = arith.maximumf %91, %92 : vector<8x4096xf32>
    %94 = vector.extract_strided_slice %93 {offsets = [0, 4079], sizes = [8, 17], strides = [1, 1]} : vector<8x4096xf32> to vector<8x17xf32>
    %95 = vector.extract_strided_slice %93 {offsets = [0, 0], sizes = [8, 4079], strides = [1, 1]} : vector<8x4096xf32> to vector<8x4079xf32>
    %96 = tpu.concatenate %94, %95 in 1 : vector<8x17xf32>, vector<8x4079xf32> -> vector<8x4096xf32>
    %c0_32 = arith.constant 0 : index
    %c0_33 = arith.constant 0 : index
    %97 = vector.load %arg1[%c0_32, %c0_33] : memref<9x4096xf32, #tpu.memory_space<vmem>>, vector<1x4096xf32>
    %98 = vector.broadcast %97 : vector<1x4096xf32> to vector<8x4096xf32>
    %99 = arith.mulf %96, %98 : vector<8x4096xf32>
    %c0_34 = arith.constant 0 : index
    %c0_35 = arith.constant 0 : index
    %100 = vector.load %arg12[%c0_34, %c0_35] : memref<72x4096xf32, #tpu.memory_space<vmem>>, vector<8x4096xf32>
    tpu.vector_store %arg12[%c0_34, %c0_35], %99 {strides = array<i32>} : memref<72x4096xf32, #tpu.memory_space<vmem>>, vector<8x4096xf32>,
    %101 = vector.extract_strided_slice %93 {offsets = [0, 4080], sizes = [8, 16], strides = [1, 1]} : vector<8x4096xf32> to vector<8x16xf32>
    %102 = vector.extract_strided_slice %93 {offsets = [0, 0], sizes = [8, 4080], strides = [1, 1]} : vector<8x4096xf32> to vector<8x4080xf32>
    %103 = tpu.concatenate %101, %102 in 1 : vector<8x16xf32>, vector<8x4080xf32> -> vector<8x4096xf32>
    %c1_36 = arith.constant 1 : index
    %c0_37 = arith.constant 0 : index
    %104 = vector.load %arg1[%c1_36, %c0_37] : memref<9x4096xf32, #tpu.memory_space<vmem>>, vector<1x4096xf32>
    %105 = vector.broadcast %104 : vector<1x4096xf32> to vector<8x4096xf32>
    %106 = arith.mulf %103, %105 : vector<8x4096xf32>
    %c8_38 = arith.constant 8 : index
    %c0_39 = arith.constant 0 : index
    %107 = vector.load %arg12[%c8_38, %c0_39] : memref<72x4096xf32, #tpu.memory_space<vmem>>, vector<8x4096xf32>
    tpu.vector_store %arg12[%c8_38, %c0_39], %106 {strides = array<i32>} : memref<72x4096xf32, #tpu.memory_space<vmem>>, vector<8x4096xf32>,
    %108 = vector.extract_strided_slice %93 {offsets = [0, 4081], sizes = [8, 15], strides = [1, 1]} : vector<8x4096xf32> to vector<8x15xf32>
    %109 = vector.extract_strided_slice %93 {offsets = [0, 0], sizes = [8, 4081], strides = [1, 1]} : vector<8x4096xf32> to vector<8x4081xf32>
    %110 = tpu.concatenate %108, %109 in 1 : vector<8x15xf32>, vector<8x4081xf32> -> vector<8x4096xf32>
    %c2_40 = arith.constant 2 : index
    %c0_41 = arith.constant 0 : index
    %111 = vector.load %arg1[%c2_40, %c0_41] : memref<9x4096xf32, #tpu.memory_space<vmem>>, vector<1x4096xf32>
    %112 = vector.broadcast %111 : vector<1x4096xf32> to vector<8x4096xf32>
    %113 = arith.mulf %110, %112 : vector<8x4096xf32>
    %c16 = arith.constant 16 : index
    %c0_42 = arith.constant 0 : index
    %114 = vector.load %arg12[%c16, %c0_42] : memref<72x4096xf32, #tpu.memory_space<vmem>>, vector<8x4096xf32>
    tpu.vector_store %arg12[%c16, %c0_42], %113 {strides = array<i32>} : memref<72x4096xf32, #tpu.memory_space<vmem>>, vector<8x4096xf32>,
    %115 = vector.extract_strided_slice %93 {offsets = [0, 4095], sizes = [8, 1], strides = [1, 1]} : vector<8x4096xf32> to vector<8x1xf32>
    %116 = vector.extract_strided_slice %93 {offsets = [0, 0], sizes = [8, 4095], strides = [1, 1]} : vector<8x4096xf32> to vector<8x4095xf32>
    %117 = tpu.concatenate %115, %116 in 1 : vector<8x1xf32>, vector<8x4095xf32> -> vector<8x4096xf32>
    %c3_43 = arith.constant 3 : index
    %c0_44 = arith.constant 0 : index
    %118 = vector.load %arg1[%c3_43, %c0_44] : memref<9x4096xf32, #tpu.memory_space<vmem>>, vector<1x4096xf32>
    %119 = vector.broadcast %118 : vector<1x4096xf32> to vector<8x4096xf32>
    %120 = arith.mulf %117, %119 : vector<8x4096xf32>
    %c24 = arith.constant 24 : index
    %c0_45 = arith.constant 0 : index
    %121 = vector.load %arg12[%c24, %c0_45] : memref<72x4096xf32, #tpu.memory_space<vmem>>, vector<8x4096xf32>
    tpu.vector_store %arg12[%c24, %c0_45], %120 {strides = array<i32>} : memref<72x4096xf32, #tpu.memory_space<vmem>>, vector<8x4096xf32>,
    %c4_46 = arith.constant 4 : index
    %c0_47 = arith.constant 0 : index
    %122 = vector.load %arg1[%c4_46, %c0_47] : memref<9x4096xf32, #tpu.memory_space<vmem>>, vector<1x4096xf32>
    %123 = vector.broadcast %122 : vector<1x4096xf32> to vector<8x4096xf32>
    %124 = arith.mulf %93, %123 : vector<8x4096xf32>
    %c32 = arith.constant 32 : index
    %c0_48 = arith.constant 0 : index
    %125 = vector.load %arg12[%c32, %c0_48] : memref<72x4096xf32, #tpu.memory_space<vmem>>, vector<8x4096xf32>
    tpu.vector_store %arg12[%c32, %c0_48], %124 {strides = array<i32>} : memref<72x4096xf32, #tpu.memory_space<vmem>>, vector<8x4096xf32>,
    %126 = vector.extract_strided_slice %93 {offsets = [0, 1], sizes = [8, 4095], strides = [1, 1]} : vector<8x4096xf32> to vector<8x4095xf32>
    %127 = vector.extract_strided_slice %93 {offsets = [0, 0], sizes = [8, 1], strides = [1, 1]} : vector<8x4096xf32> to vector<8x1xf32>
    %128 = tpu.concatenate %126, %127 in 1 : vector<8x4095xf32>, vector<8x1xf32> -> vector<8x4096xf32>
    %c5_49 = arith.constant 5 : index
    %c0_50 = arith.constant 0 : index
    %129 = vector.load %arg1[%c5_49, %c0_50] : memref<9x4096xf32, #tpu.memory_space<vmem>>, vector<1x4096xf32>
    %130 = vector.broadcast %129 : vector<1x4096xf32> to vector<8x4096xf32>
    %131 = arith.mulf %128, %130 : vector<8x4096xf32>
    %c40 = arith.constant 40 : index
    %c0_51 = arith.constant 0 : index
    %132 = vector.load %arg12[%c40, %c0_51] : memref<72x4096xf32, #tpu.memory_space<vmem>>, vector<8x4096xf32>
    tpu.vector_store %arg12[%c40, %c0_51], %131 {strides = array<i32>} : memref<72x4096xf32, #tpu.memory_space<vmem>>, vector<8x4096xf32>,
    %133 = vector.extract_strided_slice %93 {offsets = [0, 15], sizes = [8, 4081], strides = [1, 1]} : vector<8x4096xf32> to vector<8x4081xf32>
    %134 = vector.extract_strided_slice %93 {offsets = [0, 0], sizes = [8, 15], strides = [1, 1]} : vector<8x4096xf32> to vector<8x15xf32>
    %135 = tpu.concatenate %133, %134 in 1 : vector<8x4081xf32>, vector<8x15xf32> -> vector<8x4096xf32>
    %c6_52 = arith.constant 6 : index
    %c0_53 = arith.constant 0 : index
    %136 = vector.load %arg1[%c6_52, %c0_53] : memref<9x4096xf32, #tpu.memory_space<vmem>>, vector<1x4096xf32>
    %137 = vector.broadcast %136 : vector<1x4096xf32> to vector<8x4096xf32>
    %138 = arith.mulf %135, %137 : vector<8x4096xf32>
    %c48 = arith.constant 48 : index
    %c0_54 = arith.constant 0 : index
    %139 = vector.load %arg12[%c48, %c0_54] : memref<72x4096xf32, #tpu.memory_space<vmem>>, vector<8x4096xf32>
    tpu.vector_store %arg12[%c48, %c0_54], %138 {strides = array<i32>} : memref<72x4096xf32, #tpu.memory_space<vmem>>, vector<8x4096xf32>,
    %140 = vector.extract_strided_slice %93 {offsets = [0, 16], sizes = [8, 4080], strides = [1, 1]} : vector<8x4096xf32> to vector<8x4080xf32>
    %141 = vector.extract_strided_slice %93 {offsets = [0, 0], sizes = [8, 16], strides = [1, 1]} : vector<8x4096xf32> to vector<8x16xf32>
    %142 = tpu.concatenate %140, %141 in 1 : vector<8x4080xf32>, vector<8x16xf32> -> vector<8x4096xf32>
    %c7_55 = arith.constant 7 : index
    %c0_56 = arith.constant 0 : index
    %143 = vector.load %arg1[%c7_55, %c0_56] : memref<9x4096xf32, #tpu.memory_space<vmem>>, vector<1x4096xf32>
    %144 = vector.broadcast %143 : vector<1x4096xf32> to vector<8x4096xf32>
    %145 = arith.mulf %142, %144 : vector<8x4096xf32>
    %c56 = arith.constant 56 : index
    %c0_57 = arith.constant 0 : index
    %146 = vector.load %arg12[%c56, %c0_57] : memref<72x4096xf32, #tpu.memory_space<vmem>>, vector<8x4096xf32>
    tpu.vector_store %arg12[%c56, %c0_57], %145 {strides = array<i32>} : memref<72x4096xf32, #tpu.memory_space<vmem>>, vector<8x4096xf32>,
    %147 = vector.extract_strided_slice %93 {offsets = [0, 17], sizes = [8, 4079], strides = [1, 1]} : vector<8x4096xf32> to vector<8x4079xf32>
    %148 = vector.extract_strided_slice %93 {offsets = [0, 0], sizes = [8, 17], strides = [1, 1]} : vector<8x4096xf32> to vector<8x17xf32>
    %149 = tpu.concatenate %147, %148 in 1 : vector<8x4079xf32>, vector<8x17xf32> -> vector<8x4096xf32>
    %c8_58 = arith.constant 8 : index
    %c0_59 = arith.constant 0 : index
    %150 = vector.load %arg1[%c8_58, %c0_59] : memref<9x4096xf32, #tpu.memory_space<vmem>>, vector<1x4096xf32>
    %151 = vector.broadcast %150 : vector<1x4096xf32> to vector<8x4096xf32>
    %152 = arith.mulf %149, %151 : vector<8x4096xf32>
    %c64 = arith.constant 64 : index
    %c0_60 = arith.constant 0 : index
    %153 = vector.load %arg12[%c64, %c0_60] : memref<72x4096xf32, #tpu.memory_space<vmem>>, vector<8x4096xf32>
    tpu.vector_store %arg12[%c64, %c0_60], %152 {strides = array<i32>} : memref<72x4096xf32, #tpu.memory_space<vmem>>, vector<8x4096xf32>,
    %c0_61 = arith.constant 0 : index
    %c0_62 = arith.constant 0 : index
    %154 = vector.load %arg4[%c0_61, %c0_62] : memref<16x72xf32, #tpu.memory_space<vmem>>, vector<16x72xf32>
    %c0_63 = arith.constant 0 : index
    %c0_64 = arith.constant 0 : index
    %155 = vector.load %arg12[%c0_63, %c0_64] : memref<72x4096xf32, #tpu.memory_space<vmem>>, vector<72x4096xf32>
    %cst_65 = arith.constant dense<0.000000e+00> : vector<16x4096xf32>
    %156 = tpu.matmul %154, %155, %cst_65 {dimension_numbers = #tpu.dot_dimension_numbers<[1], [0], [0], [1], [0, 0, 1, 1], [], []>} : vector<16x72xf32>, vector<72x4096xf32>, vector<16x4096xf32> -> vector<16x4096xf32>
    %c0_66 = arith.constant 0 : index
    %c0_67 = arith.constant 0 : index
    %157 = vector.load %arg5[%c0_66, %c0_67] : memref<16x1xf32, #tpu.memory_space<vmem>>, vector<16x1xf32>
    %158 = vector.broadcast %157 : vector<16x1xf32> to vector<16x4096xf32>
    %159 = arith.addf %156, %158 : vector<16x4096xf32>
    %cst_68 = arith.constant 0.000000e+00 : f32
    %160 = vector.broadcast %cst_68 : f32 to vector<16x4096xf32>
    %161 = arith.maximumf %159, %160 : vector<16x4096xf32>
    %162 = vector.extract_strided_slice %161 {offsets = [0, 0], sizes = [16, 256], strides = [1, 1]} : vector<16x4096xf32> to vector<16x256xf32>
    %cst_69 = arith.constant dense<0.000000e+00> : vector<16xf32>
    %163 = vector.multi_reduction <add>, %162, %cst_69 [1] : vector<16x256xf32> to vector<16xf32>
    %164 = vector.shape_cast %163 : vector<16xf32> to vector<16x1xf32>
    %165 = vector.extract_strided_slice %161 {offsets = [0, 256], sizes = [16, 256], strides = [1, 1]} : vector<16x4096xf32> to vector<16x256xf32>
    %cst_70 = arith.constant dense<0.000000e+00> : vector<16xf32>
    %166 = vector.multi_reduction <add>, %165, %cst_70 [1] : vector<16x256xf32> to vector<16xf32>
    %167 = vector.shape_cast %166 : vector<16xf32> to vector<16x1xf32>
    %168 = vector.extract_strided_slice %161 {offsets = [0, 512], sizes = [16, 256], strides = [1, 1]} : vector<16x4096xf32> to vector<16x256xf32>
    %cst_71 = arith.constant dense<0.000000e+00> : vector<16xf32>
    %169 = vector.multi_reduction <add>, %168, %cst_71 [1] : vector<16x256xf32> to vector<16xf32>
    %170 = vector.shape_cast %169 : vector<16xf32> to vector<16x1xf32>
    %171 = vector.extract_strided_slice %161 {offsets = [0, 768], sizes = [16, 256], strides = [1, 1]} : vector<16x4096xf32> to vector<16x256xf32>
    %cst_72 = arith.constant dense<0.000000e+00> : vector<16xf32>
    %172 = vector.multi_reduction <add>, %171, %cst_72 [1] : vector<16x256xf32> to vector<16xf32>
    %173 = vector.shape_cast %172 : vector<16xf32> to vector<16x1xf32>
    %174 = vector.extract_strided_slice %161 {offsets = [0, 1024], sizes = [16, 256], strides = [1, 1]} : vector<16x4096xf32> to vector<16x256xf32>
    %cst_73 = arith.constant dense<0.000000e+00> : vector<16xf32>
    %175 = vector.multi_reduction <add>, %174, %cst_73 [1] : vector<16x256xf32> to vector<16xf32>
    %176 = vector.shape_cast %175 : vector<16xf32> to vector<16x1xf32>
    %177 = vector.extract_strided_slice %161 {offsets = [0, 1280], sizes = [16, 256], strides = [1, 1]} : vector<16x4096xf32> to vector<16x256xf32>
    %cst_74 = arith.constant dense<0.000000e+00> : vector<16xf32>
    %178 = vector.multi_reduction <add>, %177, %cst_74 [1] : vector<16x256xf32> to vector<16xf32>
    %179 = vector.shape_cast %178 : vector<16xf32> to vector<16x1xf32>
    %180 = vector.extract_strided_slice %161 {offsets = [0, 1536], sizes = [16, 256], strides = [1, 1]} : vector<16x4096xf32> to vector<16x256xf32>
    %cst_75 = arith.constant dense<0.000000e+00> : vector<16xf32>
    %181 = vector.multi_reduction <add>, %180, %cst_75 [1] : vector<16x256xf32> to vector<16xf32>
    %182 = vector.shape_cast %181 : vector<16xf32> to vector<16x1xf32>
    %183 = vector.extract_strided_slice %161 {offsets = [0, 1792], sizes = [16, 256], strides = [1, 1]} : vector<16x4096xf32> to vector<16x256xf32>
    %cst_76 = arith.constant dense<0.000000e+00> : vector<16xf32>
    %184 = vector.multi_reduction <add>, %183, %cst_76 [1] : vector<16x256xf32> to vector<16xf32>
    %185 = vector.shape_cast %184 : vector<16xf32> to vector<16x1xf32>
    %186 = vector.extract_strided_slice %161 {offsets = [0, 2048], sizes = [16, 256], strides = [1, 1]} : vector<16x4096xf32> to vector<16x256xf32>
    %cst_77 = arith.constant dense<0.000000e+00> : vector<16xf32>
    %187 = vector.multi_reduction <add>, %186, %cst_77 [1] : vector<16x256xf32> to vector<16xf32>
    %188 = vector.shape_cast %187 : vector<16xf32> to vector<16x1xf32>
    %189 = vector.extract_strided_slice %161 {offsets = [0, 2304], sizes = [16, 256], strides = [1, 1]} : vector<16x4096xf32> to vector<16x256xf32>
    %cst_78 = arith.constant dense<0.000000e+00> : vector<16xf32>
    %190 = vector.multi_reduction <add>, %189, %cst_78 [1] : vector<16x256xf32> to vector<16xf32>
    %191 = vector.shape_cast %190 : vector<16xf32> to vector<16x1xf32>
    %192 = vector.extract_strided_slice %161 {offsets = [0, 2560], sizes = [16, 256], strides = [1, 1]} : vector<16x4096xf32> to vector<16x256xf32>
    %cst_79 = arith.constant dense<0.000000e+00> : vector<16xf32>
    %193 = vector.multi_reduction <add>, %192, %cst_79 [1] : vector<16x256xf32> to vector<16xf32>
    %194 = vector.shape_cast %193 : vector<16xf32> to vector<16x1xf32>
    %195 = vector.extract_strided_slice %161 {offsets = [0, 2816], sizes = [16, 256], strides = [1, 1]} : vector<16x4096xf32> to vector<16x256xf32>
    %cst_80 = arith.constant dense<0.000000e+00> : vector<16xf32>
    %196 = vector.multi_reduction <add>, %195, %cst_80 [1] : vector<16x256xf32> to vector<16xf32>
    %197 = vector.shape_cast %196 : vector<16xf32> to vector<16x1xf32>
    %198 = vector.extract_strided_slice %161 {offsets = [0, 3072], sizes = [16, 256], strides = [1, 1]} : vector<16x4096xf32> to vector<16x256xf32>
    %cst_81 = arith.constant dense<0.000000e+00> : vector<16xf32>
    %199 = vector.multi_reduction <add>, %198, %cst_81 [1] : vector<16x256xf32> to vector<16xf32>
    %200 = vector.shape_cast %199 : vector<16xf32> to vector<16x1xf32>
    %201 = vector.extract_strided_slice %161 {offsets = [0, 3328], sizes = [16, 256], strides = [1, 1]} : vector<16x4096xf32> to vector<16x256xf32>
    %cst_82 = arith.constant dense<0.000000e+00> : vector<16xf32>
    %202 = vector.multi_reduction <add>, %201, %cst_82 [1] : vector<16x256xf32> to vector<16xf32>
    %203 = vector.shape_cast %202 : vector<16xf32> to vector<16x1xf32>
    %204 = vector.extract_strided_slice %161 {offsets = [0, 3584], sizes = [16, 256], strides = [1, 1]} : vector<16x4096xf32> to vector<16x256xf32>
    %cst_83 = arith.constant dense<0.000000e+00> : vector<16xf32>
    %205 = vector.multi_reduction <add>, %204, %cst_83 [1] : vector<16x256xf32> to vector<16xf32>
    %206 = vector.shape_cast %205 : vector<16xf32> to vector<16x1xf32>
    %207 = vector.extract_strided_slice %161 {offsets = [0, 3840], sizes = [16, 256], strides = [1, 1]} : vector<16x4096xf32> to vector<16x256xf32>
    %cst_84 = arith.constant dense<0.000000e+00> : vector<16xf32>
    %208 = vector.multi_reduction <add>, %207, %cst_84 [1] : vector<16x256xf32> to vector<16xf32>
    %209 = vector.shape_cast %208 : vector<16xf32> to vector<16x1xf32>
    %210 = tpu.concatenate %164, %167, %170, %173, %176, %179, %182, %185, %188, %191, %194, %197, %200, %203, %206, %209 in 1 : vector<16x1xf32>, vector<16x1xf32>, vector<16x1xf32>, vector<16x1xf32>, vector<16x1xf32>, vector<16x1xf32>, vector<16x1xf32>, vector<16x1xf32>, vector<16x1xf32>, vector<16x1xf32>, vector<16x1xf32>, vector<16x1xf32>, vector<16x1xf32>, vector<16x1xf32>, vector<16x1xf32>, vector<16x1xf32> -> vector<16x16xf32>
    %cst_85 = arith.constant 3.906250e-03 : f32
    %211 = vector.broadcast %cst_85 : f32 to vector<16x16xf32>
    %212 = arith.mulf %210, %211 : vector<16x16xf32>
    %213 = tpu.transpose %212, [1, 0] : vector<16x16xf32> -> vector<16x16xf32>
    %c0_86 = arith.constant 0 : index
    %c0_87 = arith.constant 0 : index
    %214 = vector.load %arg6[%c0_86, %c0_87] : memref<16x128xf32, #tpu.memory_space<vmem>>, vector<16x128xf32>
    %cst_88 = arith.constant dense<0.000000e+00> : vector<16x128xf32>
    %215 = tpu.matmul %213, %214, %cst_88 {dimension_numbers = #tpu.dot_dimension_numbers<[1], [0], [0], [1], [0, 0, 1, 1], [], []>} : vector<16x16xf32>, vector<16x128xf32>, vector<16x128xf32> -> vector<16x128xf32>
    %c0_89 = arith.constant 0 : index
    %c0_90 = arith.constant 0 : index
    %216 = vector.load %arg8[%c0_89, %c0_90] : memref<1x128xf32, #tpu.memory_space<vmem>>, vector<1x128xf32>
    %217 = vector.broadcast %216 : vector<1x128xf32> to vector<16x128xf32>
    %218 = arith.addf %215, %217 : vector<16x128xf32>
    %c0_91 = arith.constant 0 : index
    %c0_92 = arith.constant 0 : index
    %219 = vector.load %arg7[%c0_91, %c0_92] : memref<32x128xf32, #tpu.memory_space<vmem>>, vector<32x128xf32>
    %cst_93 = arith.constant 0.000000e+00 : f32
    %220 = vector.broadcast %cst_93 : f32 to vector<2x32xf32>
    %cst_94 = arith.constant 0.000000e+00 : f32
    %221 = vector.broadcast %cst_94 : f32 to vector<2x32xf32>
    %222 = vector.extract_strided_slice %218 {offsets = [0, 0], sizes = [2, 128], strides = [1, 1]} : vector<16x128xf32> to vector<2x128xf32>
    %cst_95 = arith.constant dense<0.000000e+00> : vector<2x128xf32>
    %223 = tpu.matmul %220, %219, %cst_95 {dimension_numbers = #tpu.dot_dimension_numbers<[1], [0], [0], [1], [0, 0, 1, 1], [], []>} : vector<2x32xf32>, vector<32x128xf32>, vector<2x128xf32> -> vector<2x128xf32>
    %224 = arith.addf %222, %223 : vector<2x128xf32>
    %225 = vector.extract_strided_slice %224 {offsets = [0, 0], sizes = [2, 32], strides = [1, 1]} : vector<2x128xf32> to vector<2x32xf32>
    %226 = arith.negf %225 : vector<2x32xf32>
    %227 = math.exp %226 : vector<2x32xf32>
    %cst_96 = arith.constant 1.000000e+00 : f32
    %228 = vector.broadcast %cst_96 : f32 to vector<2x32xf32>
    %229 = arith.addf %228, %227 : vector<2x32xf32>
    %230 = arith.divf %228, %229 : vector<2x32xf32>
    %231 = vector.extract_strided_slice %224 {offsets = [0, 32], sizes = [2, 32], strides = [1, 1]} : vector<2x128xf32> to vector<2x32xf32>
    %232 = arith.negf %231 : vector<2x32xf32>
    %233 = math.exp %232 : vector<2x32xf32>
    %cst_97 = arith.constant 1.000000e+00 : f32
    %234 = vector.broadcast %cst_97 : f32 to vector<2x32xf32>
    %235 = arith.addf %234, %233 : vector<2x32xf32>
    %236 = arith.divf %234, %235 : vector<2x32xf32>
    %237 = vector.extract_strided_slice %224 {offsets = [0, 64], sizes = [2, 32], strides = [1, 1]} : vector<2x128xf32> to vector<2x32xf32>
    %238 = math.tanh %237 : vector<2x32xf32>
    %239 = vector.extract_strided_slice %224 {offsets = [0, 96], sizes = [2, 32], strides = [1, 1]} : vector<2x128xf32> to vector<2x32xf32>
    %240 = arith.negf %239 : vector<2x32xf32>
    %241 = math.exp %240 : vector<2x32xf32>
    %cst_98 = arith.constant 1.000000e+00 : f32
    %242 = vector.broadcast %cst_98 : f32 to vector<2x32xf32>
    %243 = arith.addf %242, %241 : vector<2x32xf32>
    %244 = arith.divf %242, %243 : vector<2x32xf32>
    %245 = arith.mulf %236, %221 : vector<2x32xf32>
    %246 = arith.mulf %230, %238 : vector<2x32xf32>
    %247 = arith.addf %245, %246 : vector<2x32xf32>
    %248 = math.tanh %247 : vector<2x32xf32>
    %249 = arith.mulf %244, %248 : vector<2x32xf32>
    %250 = vector.extract_strided_slice %218 {offsets = [2, 0], sizes = [2, 128], strides = [1, 1]} : vector<16x128xf32> to vector<2x128xf32>
    %cst_99 = arith.constant dense<0.000000e+00> : vector<2x128xf32>
    %251 = tpu.matmul %249, %219, %cst_99 {dimension_numbers = #tpu.dot_dimension_numbers<[1], [0], [0], [1], [0, 0, 1, 1], [], []>} : vector<2x32xf32>, vector<32x128xf32>, vector<2x128xf32> -> vector<2x128xf32>
    %252 = arith.addf %250, %251 : vector<2x128xf32>
    %253 = vector.extract_strided_slice %252 {offsets = [0, 0], sizes = [2, 32], strides = [1, 1]} : vector<2x128xf32> to vector<2x32xf32>
    %254 = arith.negf %253 : vector<2x32xf32>
    %255 = math.exp %254 : vector<2x32xf32>
    %cst_100 = arith.constant 1.000000e+00 : f32
    %256 = vector.broadcast %cst_100 : f32 to vector<2x32xf32>
    %257 = arith.addf %256, %255 : vector<2x32xf32>
    %258 = arith.divf %256, %257 : vector<2x32xf32>
    %259 = vector.extract_strided_slice %252 {offsets = [0, 32], sizes = [2, 32], strides = [1, 1]} : vector<2x128xf32> to vector<2x32xf32>
    %260 = arith.negf %259 : vector<2x32xf32>
    %261 = math.exp %260 : vector<2x32xf32>
    %cst_101 = arith.constant 1.000000e+00 : f32
    %262 = vector.broadcast %cst_101 : f32 to vector<2x32xf32>
    %263 = arith.addf %262, %261 : vector<2x32xf32>
    %264 = arith.divf %262, %263 : vector<2x32xf32>
    %265 = vector.extract_strided_slice %252 {offsets = [0, 64], sizes = [2, 32], strides = [1, 1]} : vector<2x128xf32> to vector<2x32xf32>
    %266 = math.tanh %265 : vector<2x32xf32>
    %267 = vector.extract_strided_slice %252 {offsets = [0, 96], sizes = [2, 32], strides = [1, 1]} : vector<2x128xf32> to vector<2x32xf32>
    %268 = arith.negf %267 : vector<2x32xf32>
    %269 = math.exp %268 : vector<2x32xf32>
    %cst_102 = arith.constant 1.000000e+00 : f32
    %270 = vector.broadcast %cst_102 : f32 to vector<2x32xf32>
    %271 = arith.addf %270, %269 : vector<2x32xf32>
    %272 = arith.divf %270, %271 : vector<2x32xf32>
    %273 = arith.mulf %264, %247 : vector<2x32xf32>
    %274 = arith.mulf %258, %266 : vector<2x32xf32>
    %275 = arith.addf %273, %274 : vector<2x32xf32>
    %276 = math.tanh %275 : vector<2x32xf32>
    %277 = arith.mulf %272, %276 : vector<2x32xf32>
    %278 = vector.extract_strided_slice %218 {offsets = [4, 0], sizes = [2, 128], strides = [1, 1]} : vector<16x128xf32> to vector<2x128xf32>
    %cst_103 = arith.constant dense<0.000000e+00> : vector<2x128xf32>
    %279 = tpu.matmul %277, %219, %cst_103 {dimension_numbers = #tpu.dot_dimension_numbers<[1], [0], [0], [1], [0, 0, 1, 1], [], []>} : vector<2x32xf32>, vector<32x128xf32>, vector<2x128xf32> -> vector<2x128xf32>
    %280 = arith.addf %278, %279 : vector<2x128xf32>
    %281 = vector.extract_strided_slice %280 {offsets = [0, 0], sizes = [2, 32], strides = [1, 1]} : vector<2x128xf32> to vector<2x32xf32>
    %282 = arith.negf %281 : vector<2x32xf32>
    %283 = math.exp %282 : vector<2x32xf32>
    %cst_104 = arith.constant 1.000000e+00 : f32
    %284 = vector.broadcast %cst_104 : f32 to vector<2x32xf32>
    %285 = arith.addf %284, %283 : vector<2x32xf32>
    %286 = arith.divf %284, %285 : vector<2x32xf32>
    %287 = vector.extract_strided_slice %280 {offsets = [0, 32], sizes = [2, 32], strides = [1, 1]} : vector<2x128xf32> to vector<2x32xf32>
    %288 = arith.negf %287 : vector<2x32xf32>
    %289 = math.exp %288 : vector<2x32xf32>
    %cst_105 = arith.constant 1.000000e+00 : f32
    %290 = vector.broadcast %cst_105 : f32 to vector<2x32xf32>
    %291 = arith.addf %290, %289 : vector<2x32xf32>
    %292 = arith.divf %290, %291 : vector<2x32xf32>
    %293 = vector.extract_strided_slice %280 {offsets = [0, 64], sizes = [2, 32], strides = [1, 1]} : vector<2x128xf32> to vector<2x32xf32>
    %294 = math.tanh %293 : vector<2x32xf32>
    %295 = vector.extract_strided_slice %280 {offsets = [0, 96], sizes = [2, 32], strides = [1, 1]} : vector<2x128xf32> to vector<2x32xf32>
    %296 = arith.negf %295 : vector<2x32xf32>
    %297 = math.exp %296 : vector<2x32xf32>
    %cst_106 = arith.constant 1.000000e+00 : f32
    %298 = vector.broadcast %cst_106 : f32 to vector<2x32xf32>
    %299 = arith.addf %298, %297 : vector<2x32xf32>
    %300 = arith.divf %298, %299 : vector<2x32xf32>
    %301 = arith.mulf %292, %275 : vector<2x32xf32>
    %302 = arith.mulf %286, %294 : vector<2x32xf32>
    %303 = arith.addf %301, %302 : vector<2x32xf32>
    %304 = math.tanh %303 : vector<2x32xf32>
    %305 = arith.mulf %300, %304 : vector<2x32xf32>
    %306 = vector.extract_strided_slice %218 {offsets = [6, 0], sizes = [2, 128], strides = [1, 1]} : vector<16x128xf32> to vector<2x128xf32>
    %cst_107 = arith.constant dense<0.000000e+00> : vector<2x128xf32>
    %307 = tpu.matmul %305, %219, %cst_107 {dimension_numbers = #tpu.dot_dimension_numbers<[1], [0], [0], [1], [0, 0, 1, 1], [], []>} : vector<2x32xf32>, vector<32x128xf32>, vector<2x128xf32> -> vector<2x128xf32>
    %308 = arith.addf %306, %307 : vector<2x128xf32>
    %309 = vector.extract_strided_slice %308 {offsets = [0, 0], sizes = [2, 32], strides = [1, 1]} : vector<2x128xf32> to vector<2x32xf32>
    %310 = arith.negf %309 : vector<2x32xf32>
    %311 = math.exp %310 : vector<2x32xf32>
    %cst_108 = arith.constant 1.000000e+00 : f32
    %312 = vector.broadcast %cst_108 : f32 to vector<2x32xf32>
    %313 = arith.addf %312, %311 : vector<2x32xf32>
    %314 = arith.divf %312, %313 : vector<2x32xf32>
    %315 = vector.extract_strided_slice %308 {offsets = [0, 32], sizes = [2, 32], strides = [1, 1]} : vector<2x128xf32> to vector<2x32xf32>
    %316 = arith.negf %315 : vector<2x32xf32>
    %317 = math.exp %316 : vector<2x32xf32>
    %cst_109 = arith.constant 1.000000e+00 : f32
    %318 = vector.broadcast %cst_109 : f32 to vector<2x32xf32>
    %319 = arith.addf %318, %317 : vector<2x32xf32>
    %320 = arith.divf %318, %319 : vector<2x32xf32>
    %321 = vector.extract_strided_slice %308 {offsets = [0, 64], sizes = [2, 32], strides = [1, 1]} : vector<2x128xf32> to vector<2x32xf32>
    %322 = math.tanh %321 : vector<2x32xf32>
    %323 = vector.extract_strided_slice %308 {offsets = [0, 96], sizes = [2, 32], strides = [1, 1]} : vector<2x128xf32> to vector<2x32xf32>
    %324 = arith.negf %323 : vector<2x32xf32>
    %325 = math.exp %324 : vector<2x32xf32>
    %cst_110 = arith.constant 1.000000e+00 : f32
    %326 = vector.broadcast %cst_110 : f32 to vector<2x32xf32>
    %327 = arith.addf %326, %325 : vector<2x32xf32>
    %328 = arith.divf %326, %327 : vector<2x32xf32>
    %329 = arith.mulf %320, %303 : vector<2x32xf32>
    %330 = arith.mulf %314, %322 : vector<2x32xf32>
    %331 = arith.addf %329, %330 : vector<2x32xf32>
    %332 = math.tanh %331 : vector<2x32xf32>
    %333 = arith.mulf %328, %332 : vector<2x32xf32>
    %334 = vector.extract_strided_slice %218 {offsets = [8, 0], sizes = [2, 128], strides = [1, 1]} : vector<16x128xf32> to vector<2x128xf32>
    %cst_111 = arith.constant dense<0.000000e+00> : vector<2x128xf32>
    %335 = tpu.matmul %333, %219, %cst_111 {dimension_numbers = #tpu.dot_dimension_numbers<[1], [0], [0], [1], [0, 0, 1, 1], [], []>} : vector<2x32xf32>, vector<32x128xf32>, vector<2x128xf32> -> vector<2x128xf32>
    %336 = arith.addf %334, %335 : vector<2x128xf32>
    %337 = vector.extract_strided_slice %336 {offsets = [0, 0], sizes = [2, 32], strides = [1, 1]} : vector<2x128xf32> to vector<2x32xf32>
    %338 = arith.negf %337 : vector<2x32xf32>
    %339 = math.exp %338 : vector<2x32xf32>
    %cst_112 = arith.constant 1.000000e+00 : f32
    %340 = vector.broadcast %cst_112 : f32 to vector<2x32xf32>
    %341 = arith.addf %340, %339 : vector<2x32xf32>
    %342 = arith.divf %340, %341 : vector<2x32xf32>
    %343 = vector.extract_strided_slice %336 {offsets = [0, 32], sizes = [2, 32], strides = [1, 1]} : vector<2x128xf32> to vector<2x32xf32>
    %344 = arith.negf %343 : vector<2x32xf32>
    %345 = math.exp %344 : vector<2x32xf32>
    %cst_113 = arith.constant 1.000000e+00 : f32
    %346 = vector.broadcast %cst_113 : f32 to vector<2x32xf32>
    %347 = arith.addf %346, %345 : vector<2x32xf32>
    %348 = arith.divf %346, %347 : vector<2x32xf32>
    %349 = vector.extract_strided_slice %336 {offsets = [0, 64], sizes = [2, 32], strides = [1, 1]} : vector<2x128xf32> to vector<2x32xf32>
    %350 = math.tanh %349 : vector<2x32xf32>
    %351 = vector.extract_strided_slice %336 {offsets = [0, 96], sizes = [2, 32], strides = [1, 1]} : vector<2x128xf32> to vector<2x32xf32>
    %352 = arith.negf %351 : vector<2x32xf32>
    %353 = math.exp %352 : vector<2x32xf32>
    %cst_114 = arith.constant 1.000000e+00 : f32
    %354 = vector.broadcast %cst_114 : f32 to vector<2x32xf32>
    %355 = arith.addf %354, %353 : vector<2x32xf32>
    %356 = arith.divf %354, %355 : vector<2x32xf32>
    %357 = arith.mulf %348, %331 : vector<2x32xf32>
    %358 = arith.mulf %342, %350 : vector<2x32xf32>
    %359 = arith.addf %357, %358 : vector<2x32xf32>
    %360 = math.tanh %359 : vector<2x32xf32>
    %361 = arith.mulf %356, %360 : vector<2x32xf32>
    %362 = vector.extract_strided_slice %218 {offsets = [10, 0], sizes = [2, 128], strides = [1, 1]} : vector<16x128xf32> to vector<2x128xf32>
    %cst_115 = arith.constant dense<0.000000e+00> : vector<2x128xf32>
    %363 = tpu.matmul %361, %219, %cst_115 {dimension_numbers = #tpu.dot_dimension_numbers<[1], [0], [0], [1], [0, 0, 1, 1], [], []>} : vector<2x32xf32>, vector<32x128xf32>, vector<2x128xf32> -> vector<2x128xf32>
    %364 = arith.addf %362, %363 : vector<2x128xf32>
    %365 = vector.extract_strided_slice %364 {offsets = [0, 0], sizes = [2, 32], strides = [1, 1]} : vector<2x128xf32> to vector<2x32xf32>
    %366 = arith.negf %365 : vector<2x32xf32>
    %367 = math.exp %366 : vector<2x32xf32>
    %cst_116 = arith.constant 1.000000e+00 : f32
    %368 = vector.broadcast %cst_116 : f32 to vector<2x32xf32>
    %369 = arith.addf %368, %367 : vector<2x32xf32>
    %370 = arith.divf %368, %369 : vector<2x32xf32>
    %371 = vector.extract_strided_slice %364 {offsets = [0, 32], sizes = [2, 32], strides = [1, 1]} : vector<2x128xf32> to vector<2x32xf32>
    %372 = arith.negf %371 : vector<2x32xf32>
    %373 = math.exp %372 : vector<2x32xf32>
    %cst_117 = arith.constant 1.000000e+00 : f32
    %374 = vector.broadcast %cst_117 : f32 to vector<2x32xf32>
    %375 = arith.addf %374, %373 : vector<2x32xf32>
    %376 = arith.divf %374, %375 : vector<2x32xf32>
    %377 = vector.extract_strided_slice %364 {offsets = [0, 64], sizes = [2, 32], strides = [1, 1]} : vector<2x128xf32> to vector<2x32xf32>
    %378 = math.tanh %377 : vector<2x32xf32>
    %379 = vector.extract_strided_slice %364 {offsets = [0, 96], sizes = [2, 32], strides = [1, 1]} : vector<2x128xf32> to vector<2x32xf32>
    %380 = arith.negf %379 : vector<2x32xf32>
    %381 = math.exp %380 : vector<2x32xf32>
    %cst_118 = arith.constant 1.000000e+00 : f32
    %382 = vector.broadcast %cst_118 : f32 to vector<2x32xf32>
    %383 = arith.addf %382, %381 : vector<2x32xf32>
    %384 = arith.divf %382, %383 : vector<2x32xf32>
    %385 = arith.mulf %376, %359 : vector<2x32xf32>
    %386 = arith.mulf %370, %378 : vector<2x32xf32>
    %387 = arith.addf %385, %386 : vector<2x32xf32>
    %388 = math.tanh %387 : vector<2x32xf32>
    %389 = arith.mulf %384, %388 : vector<2x32xf32>
    %390 = vector.extract_strided_slice %218 {offsets = [12, 0], sizes = [2, 128], strides = [1, 1]} : vector<16x128xf32> to vector<2x128xf32>
    %cst_119 = arith.constant dense<0.000000e+00> : vector<2x128xf32>
    %391 = tpu.matmul %389, %219, %cst_119 {dimension_numbers = #tpu.dot_dimension_numbers<[1], [0], [0], [1], [0, 0, 1, 1], [], []>} : vector<2x32xf32>, vector<32x128xf32>, vector<2x128xf32> -> vector<2x128xf32>
    %392 = arith.addf %390, %391 : vector<2x128xf32>
    %393 = vector.extract_strided_slice %392 {offsets = [0, 0], sizes = [2, 32], strides = [1, 1]} : vector<2x128xf32> to vector<2x32xf32>
    %394 = arith.negf %393 : vector<2x32xf32>
    %395 = math.exp %394 : vector<2x32xf32>
    %cst_120 = arith.constant 1.000000e+00 : f32
    %396 = vector.broadcast %cst_120 : f32 to vector<2x32xf32>
    %397 = arith.addf %396, %395 : vector<2x32xf32>
    %398 = arith.divf %396, %397 : vector<2x32xf32>
    %399 = vector.extract_strided_slice %392 {offsets = [0, 32], sizes = [2, 32], strides = [1, 1]} : vector<2x128xf32> to vector<2x32xf32>
    %400 = arith.negf %399 : vector<2x32xf32>
    %401 = math.exp %400 : vector<2x32xf32>
    %cst_121 = arith.constant 1.000000e+00 : f32
    %402 = vector.broadcast %cst_121 : f32 to vector<2x32xf32>
    %403 = arith.addf %402, %401 : vector<2x32xf32>
    %404 = arith.divf %402, %403 : vector<2x32xf32>
    %405 = vector.extract_strided_slice %392 {offsets = [0, 64], sizes = [2, 32], strides = [1, 1]} : vector<2x128xf32> to vector<2x32xf32>
    %406 = math.tanh %405 : vector<2x32xf32>
    %407 = vector.extract_strided_slice %392 {offsets = [0, 96], sizes = [2, 32], strides = [1, 1]} : vector<2x128xf32> to vector<2x32xf32>
    %408 = arith.negf %407 : vector<2x32xf32>
    %409 = math.exp %408 : vector<2x32xf32>
    %cst_122 = arith.constant 1.000000e+00 : f32
    %410 = vector.broadcast %cst_122 : f32 to vector<2x32xf32>
    %411 = arith.addf %410, %409 : vector<2x32xf32>
    %412 = arith.divf %410, %411 : vector<2x32xf32>
    %413 = arith.mulf %404, %387 : vector<2x32xf32>
    %414 = arith.mulf %398, %406 : vector<2x32xf32>
    %415 = arith.addf %413, %414 : vector<2x32xf32>
    %416 = math.tanh %415 : vector<2x32xf32>
    %417 = arith.mulf %412, %416 : vector<2x32xf32>
    %418 = vector.extract_strided_slice %218 {offsets = [14, 0], sizes = [2, 128], strides = [1, 1]} : vector<16x128xf32> to vector<2x128xf32>
    %cst_123 = arith.constant dense<0.000000e+00> : vector<2x128xf32>
    %419 = tpu.matmul %417, %219, %cst_123 {dimension_numbers = #tpu.dot_dimension_numbers<[1], [0], [0], [1], [0, 0, 1, 1], [], []>} : vector<2x32xf32>, vector<32x128xf32>, vector<2x128xf32> -> vector<2x128xf32>
    %420 = arith.addf %418, %419 : vector<2x128xf32>
    %421 = vector.extract_strided_slice %420 {offsets = [0, 0], sizes = [2, 32], strides = [1, 1]} : vector<2x128xf32> to vector<2x32xf32>
    %422 = arith.negf %421 : vector<2x32xf32>
    %423 = math.exp %422 : vector<2x32xf32>
    %cst_124 = arith.constant 1.000000e+00 : f32
    %424 = vector.broadcast %cst_124 : f32 to vector<2x32xf32>
    %425 = arith.addf %424, %423 : vector<2x32xf32>
    %426 = arith.divf %424, %425 : vector<2x32xf32>
    %427 = vector.extract_strided_slice %420 {offsets = [0, 32], sizes = [2, 32], strides = [1, 1]} : vector<2x128xf32> to vector<2x32xf32>
    %428 = arith.negf %427 : vector<2x32xf32>
    %429 = math.exp %428 : vector<2x32xf32>
    %cst_125 = arith.constant 1.000000e+00 : f32
    %430 = vector.broadcast %cst_125 : f32 to vector<2x32xf32>
    %431 = arith.addf %430, %429 : vector<2x32xf32>
    %432 = arith.divf %430, %431 : vector<2x32xf32>
    %433 = vector.extract_strided_slice %420 {offsets = [0, 64], sizes = [2, 32], strides = [1, 1]} : vector<2x128xf32> to vector<2x32xf32>
    %434 = math.tanh %433 : vector<2x32xf32>
    %435 = vector.extract_strided_slice %420 {offsets = [0, 96], sizes = [2, 32], strides = [1, 1]} : vector<2x128xf32> to vector<2x32xf32>
    %436 = arith.negf %435 : vector<2x32xf32>
    %437 = math.exp %436 : vector<2x32xf32>
    %cst_126 = arith.constant 1.000000e+00 : f32
    %438 = vector.broadcast %cst_126 : f32 to vector<2x32xf32>
    %439 = arith.addf %438, %437 : vector<2x32xf32>
    %440 = arith.divf %438, %439 : vector<2x32xf32>
    %441 = arith.mulf %432, %415 : vector<2x32xf32>
    %442 = arith.mulf %426, %434 : vector<2x32xf32>
    %443 = arith.addf %441, %442 : vector<2x32xf32>
    %444 = math.tanh %443 : vector<2x32xf32>
    %445 = arith.mulf %440, %444 : vector<2x32xf32>
    %c0_127 = arith.constant 0 : index
    %c0_128 = arith.constant 0 : index
    %446 = vector.load %arg9[%c0_127, %c0_128] : memref<32x1xf32, #tpu.memory_space<vmem>>, vector<32x1xf32>
    %cst_129 = arith.constant dense<0.000000e+00> : vector<2x1xf32>
    %447 = tpu.matmul %445, %446, %cst_129 {dimension_numbers = #tpu.dot_dimension_numbers<[1], [0], [0], [1], [0, 0, 1, 1], [], []>} : vector<2x32xf32>, vector<32x1xf32>, vector<2x1xf32> -> vector<2x1xf32>
    %c0_130 = arith.constant 0 : index
    %c0_131 = arith.constant 0 : index
    %448 = vector.load %arg10[%c0_130, %c0_131] : memref<1x1xf32, #tpu.memory_space<vmem>>, vector<1x1xf32>
    %449 = vector.broadcast %448 : vector<1x1xf32> to vector<2x1xf32>
    %450 = arith.addf %447, %449 : vector<2x1xf32>
    %c0_132 = arith.constant 0 : index
    %c0_133 = arith.constant 0 : index
    %451 = vector.load %arg11[%c0_132, %c0_133] : memref<2x1xf32, #tpu.memory_space<vmem>>, vector<2x1xf32>
    tpu.vector_store %arg11[%c0_132, %c0_133], %450 {strides = array<i32>} : memref<2x1xf32, #tpu.memory_space<vmem>>, vector<2x1xf32>,
    return
  }
}

</mosaic_0001>

<bundles_post_ra>
// kernel: value_network_forward.1
= control target key start
LH: loop header
LB: loop body
LE: loop exit
PB: predicated region body
PF: predicated region fallthrough
CT: control target
= control target key end

     0   :  { %v53_v0 = vlaneseq  ;;  %v11391_v1 = vmov 1   ;;  %v11392_v3 = vmov 2   ;;  %v11393_v13 = vmov 5   ;;  %s11395_s23 = smov 16   ;;  %s11397_s24 = smov 15   ;;  %s18632_s2 = inlined_call_operand.vmem [shape: f32[8,9], index: 2, kind: input, shape index: {}]   ;;  %s18633_s0 = inlined_call_operand.vmem [shape: f32[1,4096], index: 0, kind: input, shape index: {}]   ;;  %s18634_s3 = inlined_call_operand.vmem [shape: f32[8,1], index: 3, kind: input, shape index: {}]   ;;  %s18635_s1 = inlined_call_operand.vmem [shape: f32[9,4096], index: 1, kind: input, shape index: {}]   ;;  %s18636_s4 = inlined_call_operand.vmem [shape: f32[16,72], index: 4, kind: input, shape index: {}]   ;;  %s18637_s5 = inlined_call_operand.vmem [shape: f32[16,1], index: 5, kind: input, shape index: {}]   ;;  %s18638_s6 = inlined_call_operand.vmem [shape: f32[16,128], index: 6, kind: input, shape index: {}]   ;;  %s18639_s7 = inlined_call_operand.vmem [shape: f32[32,128], index: 7, kind: input, shape index: {}]   ;;  %s18640_s8 = inlined_call_operand.vmem [shape: f32[1,128], index: 8, kind: input, shape index: {}]   ;;  %s18641_s9 = inlined_call_operand.vmem [shape: f32[32,1], index: 9, kind: input, shape index: {}]   ;;  %s18642_s10 = inlined_call_operand.<no memory space> [shape: f32[1,1], index: 10, kind: input, shape index: {}]   ;;  %s18643_s11 = inlined_call_operand.vmem [shape: f32[2,1], index: 11, kind: output, shape index: {}]  }
   0x1   :  { %11305 = vset.pattern.permute.xlu1 %v11391_v1  ;;  %v11476_v2 = vld [vmem:[%s18632_s2] sm:$0xff]  ;;  %11306 = vset.pattern.permute.xlu0 %v11392_v3  ;;  %v11484_v5 = vld [vmem:[%s18633_s0 + $0x18] sm:$0xff]  ;;  %s11394_s2 = smov 17   ;;  %v11396_v20 = vmov 3   ;;  %v11398_v21 = vmov 4   ;;  %s11399_s25 = smov 1  }
   0x2   :  { %1065 = vperm.xlu1 %11305, %v11476_v2   ;;  %v11479_v4 = vshrl.u32 %v53_v0, 7  ;;  %v11489_v6 = vld [vmem:[%s18633_s0] sm:$0xff]  ;;  %v11400_v24 = vmov 6   ;;  %s11401_s26 = smov 127   ;;  %v11402_v25 = vmov 0   ;;  %v11403_v27 = vmov 7  }
   0x3   :  { %v44_v26 = vld [vmem:[%s18634_s3] sm:$0xff]  ;;  %s11404_s29 = smov 113   ;;  %s11405_s3 = smov 112   ;;  %v11406_v28 = vmov 8   ;;  %v11693_v43 = vld [vmem:[%s18633_s0 + $0x8] sm:$0xff]  ;;  %vm787_vm0 = vcmask 130048  }
   0x4   :  { %v11492_v7 = vsub.s32 7, %v11479_v4  ;;  %v11495_v8 = vsub.s32 0, %v11479_v4  ;;  %v11498_v9 = vsub.s32 1, %v11479_v4  ;;  %v11501_v10 = vsub.s32 2, %v11479_v4  ;;  %s11407_s30 = smov 111  }
   0x5   :  { %v11524_v16 = vsub.s32 6, %v11479_v4  ;;  %v11527_v17 = vsub.s32 3, %v11479_v4  ;;  %v11575_v22 = vsub.s32 4, %v11479_v4  ;;  %v11637_v29 = vsub.s32 5, %v11479_v4 }
   0x6   :  { %19164 = vst [vmem:[#allocation4_spill] sm:$0xff] %v11492_v7  ;;  %19165 = vst [vmem:[#allocation5_spill] sm:$0xff] %v11498_v9  ;;  %v11505_v11 = vrot.slane %v11484_v5, %v11492_v7  ;;  %v11509_v12 = vrot.slane %v11489_v6, %v11498_v9  ;;  %11309 = vset.pattern.permute.xlu1 %v11393_v13  ;;  %v11517_v14 = vrot.slane %v11489_v6, %v11501_v10  ;;  %vm249_vm1 = vcmask 138240  }
   0x7   :  { %19166 = vst [vmem:[#allocation6_spill] sm:$0xff] %v11501_v10  ;;  %v11521_v15 = vrot.slane %v11489_v6, %v11495_v8  ;;  %19167 = vst [vmem:[#allocation7_spill] sm:$0xff] %v11524_v16  ;;  %v11535_v18 = vrot.slane %v11484_v5, %v11524_v16  ;;  %v11539_v19 = vrot.slane %v11489_v6, %v11527_v17  ;;  %vm1325_vm2 = vcmask 121856  }
   0x8   :  { %57 = vrot.lane.b32.xlu1 %v11505_v11, %s11394_s2  ;;  %189 = vrot.lane.b32.xlu0 %v11509_v12, %s11394_s2  ;;  %19169 = vst [vmem:[#allocation9_spill] sm:$0xff] %v11575_v22  ;;  %v82_v23 = vrot.slane %v11489_v6, %v11575_v22  ;;  %19170 = vst [vmem:[#allocation10_spill] sm:$0xff] %v11637_v29  ;;  %v86_v30 = vrot.slane %v11489_v6, %v11637_v29  ;;  %vm1863_vm3 = vcmask 7168   ;;  %vm2652_vm4 = vcmask 1039360  }
   0x9   :  { %19168 = vst [vmem:[#allocation8_spill] sm:$0xff] %v11535_v18  ;;  %v11649_v31 = vrot.slane %v11489_v6, %v11492_v7  ;;  %v90_v34 = vrot.slane %v11489_v6, %v11524_v16  ;;  %v98_v46 = vrot.slane %v11693_v43, %v11495_v8  ;;  %v102_v63 = vrot.slane %v11693_v43, %v11498_v9 }
   0xa   :  { %v11764_v1 = vrot.slane %v11693_v43, %v11527_v17  ;;  %vm3190_vm5 = vcmask 924672   ;;  %vm3728_vm6 = vcmask 916480   ;;  %vm4266_vm7 = vcmask 908288  }
   0xb   :  { %vm8122_vm8 = vcmask 588800   ;;  %vm9523_vm9 = vcmask 15360   ;;  %vm9526_vm10 = vcmask 23552   ;;  %vm9529_vm11 = vcmask 31744  }
   0xc   :  { %191 = vrot.lane.b32.xlu0 %v11517_v14, %s11394_s2  ;;  %187 = vrot.lane.b32.xlu1 %v11521_v15, %s11394_s2  ;;  %vm9532_vm12 = vcmask 39936   ;;  %vm9535_vm13 = vcmask 48128   ;;  %vm9538_vm14 = vcmask 56320   ;;  %vm9541_vm15 = vcmask 64512  }
  0x10   :  { %247 = vrot.lane.b32.xlu0 %v11535_v18, %s11394_s2  ;;  %193 = vrot.lane.b32.xlu1 %v11539_v19, %s11394_s2 }
  0x14   :  { %725 = vrot.lane.b32.xlu0 %v11521_v15, %s11395_s23  ;;  %722 = vrot.lane.b32.xlu1 %v11505_v11, %s11395_s23 }
  0x18   :  { %1603 = vperm.xlu0 %11306, %v11476_v2   ;;  %727 = vrot.lane.b32.xlu1 %v11509_v12, %s11395_s23 }
  0x1c   :  { %785 = vrot.lane.b32.xlu0 %v11535_v18, %s11395_s23  ;;  %729 = vrot.lane.b32.xlu1 %v11517_v14, %s11395_s23 }
  0x1d   :  { %11307 = vset.pattern.permute.xlu0 %v11396_v20 }
  0x20   :  { %1263 = vrot.lane.b32.xlu0 %v11521_v15, %s11397_s24  ;;  %731 = vrot.lane.b32.xlu1 %v11539_v19, %s11395_s23 }
  0x24   :  { %2141 = vperm.xlu0 %11307, %v11476_v2   ;;  %1260 = vrot.lane.b32.xlu1 %v11505_v11, %s11397_s24 }
  0x28   :  { %1323 = vrot.lane.b32.xlu0 %v11535_v18, %s11397_s24  ;;  %1265 = vrot.lane.b32.xlu1 %v11509_v12, %s11397_s24 }
  0x29   :  { %11308 = vset.pattern.permute.xlu0 %v11398_v21 }
  0x2c   :  { %1801 = vrot.lane.b32.xlu0 %v11521_v15, %s11399_s25  ;;  %1267 = vrot.lane.b32.xlu1 %v11517_v14, %s11397_s24 }
  0x30   :  { %2357 = vperm.xlu0 %11308, %v11476_v2   ;;  %1269 = vrot.lane.b32.xlu1 %v11539_v19, %s11397_s24 }
  0x34   :  { %1861 = vrot.lane.b32.xlu0 %v11535_v18, %s11399_s25  ;;  %1798 = vrot.lane.b32.xlu1 %v11505_v11, %s11399_s25 }
  0x35   :  { %11310 = vset.pattern.permute.xlu0 %v11400_v24 }
  0x38   :  { %195 = vrot.lane.b32.xlu0 %v82_v23, %s11394_s2  ;;  %1803 = vrot.lane.b32.xlu1 %v11509_v12, %s11399_s25 }
  0x3c   :  { %2590 = vrot.lane.b32.xlu0 %v11509_v12, %s11401_s26  ;;  %1805 = vrot.lane.b32.xlu1 %v11517_v14, %s11399_s25 }
  0x40   :  { %3469 = vperm.xlu0 %11310, %v11476_v2   ;;  %1807 = vrot.lane.b32.xlu1 %v11539_v19, %s11399_s25 }
  0x44   :  { %11311 = vset.pattern.permute.xlu0 %v11402_v25  ;;  %2931 = vperm.xlu1 %11309, %v11476_v2  }
  0x45   :  { %527 = vperm.xlu0 %11311, %v11476_v2  }
  0x48   :  { %2588 = vrot.lane.b32.xlu1 %v11521_v15, %s11401_s26 }
  0x49   :  { %47 = vperm.xlu0 %11311, %v44_v26   ;;  %11312 = vset.pattern.permute.xlu1 %v11403_v27  ;;  %v114_v27 = vrot.slane %v11693_v43, %v11575_v22  ;;  %v10664_v22 = vld [vmem:[%s18635_s1 + $0xc4] ss:$8 sm:$0xf] }
  0x4c   :  { %2592 = vrot.lane.b32.xlu1 %v11517_v14, %s11401_s26 }
  0x4d   :  { %2596 = vrot.lane.b32.xlu0 %v82_v23, %s11401_s26 }
  0x50   :  { %733 = vrot.lane.b32.xlu1 %v82_v23, %s11395_s23 }
  0x51   :  { %3126 = vrot.lane.b32.xlu0 %v11521_v15, %s11404_s29 }
  0x54   :  { %2594 = vrot.lane.b32.xlu1 %v11539_v19, %s11401_s26 }
  0x55   :  { %3130 = vrot.lane.b32.xlu0 %v11517_v14, %s11404_s29 }
  0x58   :  { %2650 = vrot.lane.b32.xlu1 %v11505_v11, %s11401_s26 }
  0x59   :  { %1271 = vrot.lane.b32.xlu0 %v82_v23, %s11397_s24 }
  0x5c   :  { %3128 = vrot.lane.b32.xlu1 %v11509_v12, %s11404_s29 }
  0x5d   :  { %3134 = vrot.lane.b32.xlu0 %v82_v23, %s11404_s29 }
  0x60   :  { %4007 = vperm.xlu1 %11312, %v11476_v2  }
  0x61   :  { %3664 = vrot.lane.b32.xlu0 %v11521_v15, %s11405_s3 }
  0x64   :  { %3132 = vrot.lane.b32.xlu1 %v11539_v19, %s11404_s29 }
  0x65   :  { %3668 = vrot.lane.b32.xlu0 %v11517_v14, %s11405_s3  ;;  %11313 = vset.pattern.permute.xlu1 %v11406_v28 }
  0x68   :  { %3188 = vrot.lane.b32.xlu1 %v11505_v11, %s11404_s29 }
  0x69   :  { %1809 = vrot.lane.b32.xlu0 %v82_v23, %s11399_s25 }
  0x6c   :  { %3666 = vrot.lane.b32.xlu1 %v11509_v12, %s11405_s3 }
  0x6d   :  { %3672 = vrot.lane.b32.xlu0 %v82_v23, %s11405_s3 }
  0x70   :  { %4545 = vperm.xlu1 %11313, %v11476_v2  }
  0x71   :  { %4202 = vrot.lane.b32.xlu0 %v11521_v15, %s11407_s30 }
  0x74   :  { %3670 = vrot.lane.b32.xlu1 %v11539_v19, %s11405_s3 }
  0x75   :  { %4206 = vrot.lane.b32.xlu0 %v11517_v14, %s11407_s30  ;;  %11314 = vset.pattern.permute.xlu1 %v11402_v25 }
  0x78   :  { %3726 = vrot.lane.b32.xlu1 %v11505_v11, %s11405_s3 }
  0x79   :  { %4210 = vrot.lane.b32.xlu0 %v82_v23, %s11407_s30 }
  0x7a   :  { %v11657_v33 = vpop.permute.xlu0 %189 }
  0x7c   :  { %4204 = vrot.lane.b32.xlu1 %v11509_v12, %s11407_s30  ;;  %v106_v12 = vrot.slane %v11693_v43, %v11501_v10 }
  0x7d   :  { %197 = vrot.lane.b32.xlu0 %v86_v30, %s11394_s2 }
  0x7e   :  { %v11667_v36 = vpop.permute.xlu0 %191 }
  0x80   :  { %4208 = vrot.lane.b32.xlu1 %v11539_v19, %s11407_s30 }
  0x81   :  { %v11653_v32 = vpop.permute.xlu1 %1065  ;;  %201 = vrot.lane.b32.xlu0 %v11649_v31, %s11394_s2 }
  0x82   :  { %19171 = vst [vmem:[#allocation11_spill] sm:$0xff] %v11653_v32  ;;  %v11677_v39 = vpop.permute.xlu0 %247 }
  0x83   :  { %19173 = vst [vmem:[#allocation13_spill] sm:$0xff] %v11677_v39 }
  0x84   :  { %4264 = vrot.lane.b32.xlu1 %v11505_v11, %s11407_s30 }
  0x85   :  { %v11663_v35 = vpop.permute.xlu1 %57  ;;  %735 = vrot.lane.b32.xlu0 %v86_v30, %s11395_s23 }
  0x86   :  { %v11684_v41 = vpop.permute.xlu0 %725 }
  0x88   :  { %199 = vrot.lane.b32.xlu1 %v90_v34, %s11394_s2 }
  0x89   :  { %739 = vrot.lane.b32.xlu0 %v11649_v31, %s11395_s23  ;;  %v11671_v37 = vpop.permute.xlu1 %187 }
  0x8c   :  { %2598 = vrot.lane.b32.xlu1 %v86_v30, %s11401_s26 }
  0x8d   :  { %1273 = vrot.lane.b32.xlu0 %v86_v30, %s11397_s24  ;;  %v11675_v38 = vpop.permute.xlu1 %193 }
  0x8e   :  { %19172 = vst [vmem:[#allocation12_spill] sm:$0xff] %v11675_v38 }
  0x90   :  { %737 = vrot.lane.b32.xlu1 %v90_v34, %s11395_s23 }
  0x91   :  { %1277 = vrot.lane.b32.xlu0 %v11649_v31, %s11397_s24  ;;  %v11682_v40 = vpop.permute.xlu1 %722 }
  0x94   :  { %3136 = vrot.lane.b32.xlu1 %v86_v30, %s11404_s29 }
  0x95   :  { %1811 = vrot.lane.b32.xlu0 %v86_v30, %s11399_s25  ;;  %v11688_v42 = vpop.permute.xlu1 %727 }
  0x97   :  { %v11695_v44 = vpop.permute.xlu0 %1603 }
  0x98   :  { %19174 = vst [vmem:[#allocation14_spill] sm:$0xff] %v11695_v44  ;;  %1275 = vrot.lane.b32.xlu1 %v90_v34, %s11397_s24 }
  0x99   :  { %1815 = vrot.lane.b32.xlu0 %v11649_v31, %s11399_s25  ;;  %v11700_v45 = vpop.permute.xlu1 %729 }
  0x9b   :  { %v11704_v47 = vpop.permute.xlu0 %785 }
  0x9c   :  { %19175 = vst [vmem:[#allocation15_spill] sm:$0xff] %v11704_v47  ;;  %3674 = vrot.lane.b32.xlu1 %v86_v30, %s11405_s3 }
  0x9d   :  { %203 = vrot.lane.b32.xlu0 %v98_v46, %s11394_s2  ;;  %v11708_v48 = vpop.permute.xlu1 %731 }
  0x9f   :  { %v11710_v49 = vpop.permute.xlu0 %1263 }
  0xa0   :  { %1813 = vrot.lane.b32.xlu1 %v90_v34, %s11399_s25 }
  0xa1   :  { %741 = vrot.lane.b32.xlu0 %v98_v46, %s11395_s23  ;;  %v11714_v50 = vpop.permute.xlu1 %1260 }
  0xa3   :  { %v11716_v51 = vpop.permute.xlu0 %2141 }
  0xa4   :  { %19176 = vst [vmem:[#allocation16_spill] sm:$0xff] %v11716_v51  ;;  %4212 = vrot.lane.b32.xlu1 %v86_v30, %s11407_s30 }
  0xa5   :  { %2604 = vrot.lane.b32.xlu0 %v98_v46, %s11401_s26  ;;  %v11720_v52 = vpop.permute.xlu1 %1265 }
  0xa7   :  { %v11722_v53 = vpop.permute.xlu0 %1323 }
  0xa8   :  { %19177 = vst [vmem:[#allocation17_spill] sm:$0xff] %v11722_v53  ;;  %2600 = vrot.lane.b32.xlu1 %v90_v34, %s11401_s26 }
  0xa9   :  { %1279 = vrot.lane.b32.xlu0 %v98_v46, %s11397_s24  ;;  %v11726_v54 = vpop.permute.xlu1 %1267 }
  0xab   :  { %v11728_v55 = vpop.permute.xlu0 %1801 }
  0xac   :  { %2602 = vrot.lane.b32.xlu1 %v11649_v31, %s11401_s26 }
  0xad   :  { %3142 = vrot.lane.b32.xlu0 %v98_v46, %s11404_s29  ;;  %v11733_v56 = vpop.permute.xlu1 %1269 }
  0xaf   :  { %v11735_v57 = vpop.permute.xlu0 %2357 }
  0xb0   :  { %19178 = vst [vmem:[#allocation18_spill] sm:$0xff] %v11735_v57  ;;  %3138 = vrot.lane.b32.xlu1 %v90_v34, %s11404_s29 }
  0xb1   :  { %1817 = vrot.lane.b32.xlu0 %v98_v46, %s11399_s25  ;;  %v11739_v58 = vpop.permute.xlu1 %1798 }
  0xb3   :  { %v11741_v59 = vpop.permute.xlu0 %1861 }
  0xb4   :  { %19179 = vst [vmem:[#allocation19_spill] sm:$0xff] %v11741_v59  ;;  %3140 = vrot.lane.b32.xlu1 %v11649_v31, %s11404_s29 }
  0xb5   :  { %3680 = vrot.lane.b32.xlu0 %v98_v46, %s11405_s3  ;;  %v11746_v60 = vpop.permute.xlu1 %1803 }
  0xb7   :  { %v11748_v61 = vpop.permute.xlu0 %195 }
  0xb8   :  { %19180 = vst [vmem:[#allocation20_spill] sm:$0xff] %v11748_v61  ;;  %3676 = vrot.lane.b32.xlu1 %v90_v34, %s11405_s3 }
  0xb9   :  { %4216 = vrot.lane.b32.xlu0 %v11649_v31, %s11407_s30  ;;  %v11753_v62 = vpop.permute.xlu1 %1805 }
  0xba   :  { %19181 = vst [vmem:[#allocation21_spill] sm:$0xff] %v11753_v62 }
  0xbb   :  { %v11757_v0 = vpop.permute.xlu0 %2590 }
  0xbc   :  { %19182 = vst [vmem:[#allocation22_spill] sm:$0xff] %v11757_v0  ;;  %3678 = vrot.lane.b32.xlu1 %v11649_v31, %s11405_s3 }
  0xbd   :  { %205 = vrot.lane.b32.xlu0 %v102_v63, %s11394_s2  ;;  %v11766_v2 = vpop.permute.xlu1 %1807 }
  0xbe   :  { %19183 = vst [vmem:[#allocation23_spill] sm:$0xff] %v11766_v2  ;;  %v10691_v2 = vld [vmem:[%s18635_s1 + $0x100] ss:$8 sm:$0xf0] }
  0xbf   :  { %v11768_v3 = vpop.permute.xlu0 %3469 }
  0xc0   :  { %19184 = vst [vmem:[#allocation24_spill] sm:$0xff] %v11768_v3  ;;  %4214 = vrot.lane.b32.xlu1 %v90_v34, %s11407_s30 }
  0xc1   :  { %209 = vrot.lane.b32.xlu0 %v11764_v1, %s11394_s2 }
  0xc3   :  { %v11773_v4 = vpop.permute.xlu1 %2931 }
  0xc4   :  { %19185 = vst [vmem:[#allocation25_spill] sm:$0xff] %v11773_v4  ;;  %v11775_v11 = vpop.permute.xlu0 %527  ;;  %4218 = vrot.lane.b32.xlu1 %v98_v46, %s11407_s30  ;;  %v10649_v4 = vld [vmem:[%s18635_s1 + $0xc2] ss:$8 sm:$0xf0] }
  0xc5   :  { %19186 = vst [vmem:[#allocation26_spill] sm:$0xff] %v11775_v11  ;;  %743 = vrot.lane.b32.xlu0 %v102_v63, %s11395_s23 }
  0xc7   :  { %v11781_v13 = vpop.permute.xlu1 %2588 }
  0xc8   :  { %19187 = vst [vmem:[#allocation27_spill] sm:$0xff] %v11781_v13  ;;  %v11783_v14 = vpop.permute.xlu0 %47  ;;  %207 = vrot.lane.b32.xlu1 %v106_v12, %s11394_s2 }
  0xc9   :  { %19188 = vst [vmem:[#allocation28_spill] sm:$0xff] %v11783_v14  ;;  %747 = vrot.lane.b32.xlu0 %v11764_v1, %s11395_s23 }
  0xcb   :  { %v11788_v15 = vpop.permute.xlu1 %2592 }
  0xcc   :  { %19189 = vst [vmem:[#allocation29_spill] sm:$0xff] %v11788_v15  ;;  %v11790_v19 = vpop.permute.xlu0 %2596  ;;  %2606 = vrot.lane.b32.xlu1 %v102_v63, %s11401_s26 }
  0xcd   :  { %19190 = vst [vmem:[#allocation30_spill] sm:$0xff] %v11790_v19  ;;  %1281 = vrot.lane.b32.xlu0 %v102_v63, %s11397_s24  ;;  %v10642_v19 = vld [vmem:[%s18635_s1 + $0x2] ss:$8 sm:$0xf] }
  0xcf   :  { %v11794_v20 = vpop.permute.xlu1 %733 }
  0xd0   :  { %19191 = vst [vmem:[#allocation31_spill] sm:$0xff] %v11794_v20  ;;  %v11796_v21 = vpop.permute.xlu0 %3126  ;;  %745 = vrot.lane.b32.xlu1 %v106_v12, %s11395_s23 }
  0xd1   :  { %19192 = vst [vmem:[#allocation32_spill] sm:$0xff] %v11796_v21  ;;  %1285 = vrot.lane.b32.xlu0 %v11764_v1, %s11397_s24  ;;  %v10643_v21 = vld [vmem:[%s18635_s1 + $0x2] ss:$8 sm:$0xf0] }
  0xd2   :  { %v12062_v15 = vor.u32 %v10643_v21, %v10642_v19  ;;  %v10667_v19 = vld [vmem:[%s18635_s1 + $0x5] ss:$8 sm:$0xf0] }
  0xd3   :  { %v11801_v23 = vpop.permute.xlu1 %2594 }
  0xd4   :  { %19193 = vst [vmem:[#allocation33_spill] sm:$0xff] %v11801_v23  ;;  %v11803_v24 = vpop.permute.xlu0 %3130  ;;  %3144 = vrot.lane.b32.xlu1 %v102_v63, %s11404_s29 }
  0xd5   :  { %19194 = vst [vmem:[#allocation34_spill] sm:$0xff] %v11803_v24  ;;  %1819 = vrot.lane.b32.xlu0 %v102_v63, %s11399_s25 }
  0xd7   :  { %v11807_v25 = vpop.permute.xlu1 %2650 }
  0xd8   :  { %19195 = vst [vmem:[#allocation35_spill] sm:$0xff] %v11807_v25  ;;  %v11809_v26 = vpop.permute.xlu0 %1271  ;;  %1283 = vrot.lane.b32.xlu1 %v106_v12, %s11397_s24  ;;  %v10648_v25 = vld [vmem:[%s18635_s1 + $0xc2] ss:$8 sm:$0xf] }
  0xd9   :  { %19196 = vst [vmem:[#allocation36_spill] sm:$0xff] %v11809_v26  ;;  %1823 = vrot.lane.b32.xlu0 %v11764_v1, %s11399_s25 }
  0xdb   :  { %v11816_v28 = vpop.permute.xlu1 %3128 }
  0xdc   :  { %19197 = vst [vmem:[#allocation37_spill] sm:$0xff] %v11816_v28  ;;  %v11818_v30 = vpop.permute.xlu0 %3134  ;;  %3682 = vrot.lane.b32.xlu1 %v102_v63, %s11405_s3  ;;  %v10665_v28 = vld [vmem:[%s18635_s1 + $0xc4] ss:$8 sm:$0xf0] }
  0xdd   :  { %19198 = vst [vmem:[#allocation38_spill] sm:$0xff] %v11818_v30  ;;  %211 = vrot.lane.b32.xlu0 %v114_v27, %s11394_s2  ;;  %v2351_v13 = vor.u32 %v10665_v28, %v10664_v22 }
  0xdf   :  { %v11822_v31 = vpop.permute.xlu1 %4007 }
  0xe0   :  { %19199 = vst [vmem:[#allocation39_spill] sm:$0xff] %v11822_v31  ;;  %v11824_v34 = vpop.permute.xlu0 %3664  ;;  %1821 = vrot.lane.b32.xlu1 %v106_v12, %s11399_s25 }
  0xe1   :  { %19200 = vst [vmem:[#allocation40_spill] sm:$0xff] %v11824_v34  ;;  %749 = vrot.lane.b32.xlu0 %v114_v27, %s11395_s23 }
  0xe3   :  { %v11828_v46 = vpop.permute.xlu1 %3132 }
  0xe4   :  { %19201 = vst [vmem:[#allocation41_spill] sm:$0xff] %v11828_v46  ;;  %v11830_v18 = vpop.permute.xlu0 %3668  ;;  %4220 = vrot.lane.b32.xlu1 %v102_v63, %s11407_s30 }
  0xe5   :  { %19202 = vst [vmem:[#allocation42_spill] sm:$0xff] %v11830_v18  ;;  %2612 = vrot.lane.b32.xlu0 %v114_v27, %s11401_s26 }
  0xe7   :  { %v11834_v26 = vpop.permute.xlu1 %3188 }
  0xe8   :  { %19203 = vst [vmem:[#allocation43_spill] sm:$0xff] %v11834_v26  ;;  %v11836_v61 = vpop.permute.xlu0 %1809  ;;  %2608 = vrot.lane.b32.xlu1 %v106_v12, %s11401_s26  ;;  %v10641_v26 = vld [vmem:[%s18635_s1 + $0xc1] ss:$8 sm:$0xf0] }
  0xe9   :  { %19204 = vst [vmem:[#allocation44_spill] sm:$0xff] %v11836_v61  ;;  %1287 = vrot.lane.b32.xlu0 %v114_v27, %s11397_s24 }
  0xeb   :  { %v11840_v20 = vpop.permute.xlu1 %3666 }
  0xec   :  { %19205 = vst [vmem:[#allocation45_spill] sm:$0xff] %v11840_v20  ;;  %v11842_v31 = vpop.permute.xlu0 %3672  ;;  %2610 = vrot.lane.b32.xlu1 %v11764_v1, %s11401_s26 }
  0xed   :  { %19206 = vst [vmem:[#allocation46_spill] sm:$0xff] %v11842_v31  ;;  %3150 = vrot.lane.b32.xlu0 %v114_v27, %s11404_s29 }
  0xef   :  { %v11847_v63 = vpop.permute.xlu1 %4545 }
  0xf0   :  { %19207 = vst [vmem:[#allocation47_spill] sm:$0xff] %v11847_v63  ;;  %v11849_v46 = vpop.permute.xlu0 %4202  ;;  %3146 = vrot.lane.b32.xlu1 %v106_v12, %s11404_s29  ;;  %v118_v63 = vrot.slane %v11693_v43, %v11637_v29 }
  0xf1   :  { %19208 = vst [vmem:[#allocation48_spill] sm:$0xff] %v11849_v46  ;;  %1825 = vrot.lane.b32.xlu0 %v114_v27, %s11399_s25 }
  0xf3   :  { %v11853_v61 = vpop.permute.xlu1 %3670 }
  0xf4   :  { %19209 = vst [vmem:[#allocation49_spill] sm:$0xff] %v11853_v61  ;;  %v11855_v30 = vpop.permute.xlu0 %4206  ;;  %3148 = vrot.lane.b32.xlu1 %v11764_v1, %s11404_s29 }
  0xf5   :  { %19210 = vst [vmem:[#allocation50_spill] sm:$0xff] %v11855_v30  ;;  %3688 = vrot.lane.b32.xlu0 %v114_v27, %s11405_s3 }
  0xf7   :  { %v11860_v31 = vpop.permute.xlu1 %3726 }
  0xf8   :  { %19211 = vst [vmem:[#allocation51_spill] sm:$0xff] %v11860_v31  ;;  %v11862_v3 = vpop.permute.xlu0 %4210  ;;  %3684 = vrot.lane.b32.xlu1 %v106_v12, %s11405_s3 }
  0xf9   :  { %19212 = vst [vmem:[#allocation52_spill] sm:$0xff] %v11862_v3  ;;  %4224 = vrot.lane.b32.xlu0 %v11764_v1, %s11407_s30  ;;  %v11878_v3 = vrot.slane %v11693_v43, %v11492_v7 }
  0xfb   :  { %v11869_v61 = vpop.permute.xlu1 %4204 }
  0xfc   :  { %19213 = vst [vmem:[#allocation53_spill] sm:$0xff] %v11869_v61  ;;  %v11871_v46 = vpop.permute.xlu0 %197  ;;  %3686 = vrot.lane.b32.xlu1 %v11764_v1, %s11405_s3  ;;  %v11894_v1 = vrot.slane %v11693_v43, %v11524_v16  ;;  %v10659_v61 = vld [vmem:[%s18635_s1 + $0x4] ss:$8 sm:$0xf0] }
  0xfd   :  { %19214 = vst [vmem:[#allocation54_spill] sm:$0xff] %v11871_v46  ;;  %213 = vrot.lane.b32.xlu0 %v118_v63, %s11394_s2 }
  0xff   :  { %v11880_v31 = vpop.permute.xlu1 %4208 }
 0x100   :  { %19215 = vst [vmem:[#allocation55_spill] sm:$0xff] %v11880_v31  ;;  %v11882_v34 = vpop.permute.xlu0 %201  ;;  %4222 = vrot.lane.b32.xlu1 %v106_v12, %s11407_s30 }
 0x101   :  { %19216 = vst [vmem:[#allocation56_spill] sm:$0xff] %v11882_v34  ;;  %217 = vrot.lane.b32.xlu0 %v11878_v3, %s11394_s2 }
 0x103   :  { %v11887_v29 = vpop.permute.xlu1 %4264 }
 0x104   :  { %19217 = vst [vmem:[#allocation57_spill] sm:$0xff] %v11887_v29  ;;  %v11889_v46 = vpop.permute.xlu0 %735  ;;  %4226 = vrot.lane.b32.xlu1 %v114_v27, %s11407_s30 }
 0x105   :  { %19218 = vst [vmem:[#allocation58_spill] sm:$0xff] %v11889_v46  ;;  %751 = vrot.lane.b32.xlu0 %v118_v63, %s11395_s23 }
 0x107   :  { %v11897_v31 = vpop.permute.xlu1 %199 }
 0x108   :  { %19219 = vst [vmem:[#allocation59_spill] sm:$0xff] %v11897_v31  ;;  %v11899_v34 = vpop.permute.xlu0 %739  ;;  %215 = vrot.lane.b32.xlu1 %v11894_v1, %s11394_s2 }
 0x109   :  { %19220 = vst [vmem:[#allocation60_spill] sm:$0xff] %v11899_v34  ;;  %755 = vrot.lane.b32.xlu0 %v11878_v3, %s11395_s23 }
 0x10b   :  { %v11905_v12 = vpop.permute.xlu1 %2598 }
 0x10c   :  { %19221 = vst [vmem:[#allocation61_spill] sm:$0xff] %v11905_v12  ;;  %v11907_v46 = vpop.permute.xlu0 %1273  ;;  %2614 = vrot.lane.b32.xlu1 %v118_v63, %s11401_s26 }
 0x10d   :  { %19222 = vst [vmem:[#allocation62_spill] sm:$0xff] %v11907_v46  ;;  %1289 = vrot.lane.b32.xlu0 %v118_v63, %s11397_s24 }
 0x10f   :  { %v11911_v43 = vpop.permute.xlu1 %737 }
 0x110   :  { %19223 = vst [vmem:[#allocation63_spill] sm:$0xff] %v11911_v43  ;;  %v11913_v27 = vpop.permute.xlu0 %1277  ;;  %753 = vrot.lane.b32.xlu1 %v11894_v1, %s11395_s23 }
 0x111   :  { %19224 = vst [vmem:[#allocation64_spill] sm:$0xff] %v11913_v27  ;;  %1293 = vrot.lane.b32.xlu0 %v11878_v3, %s11397_s24  ;;  %v11934_v27 = vld [vmem:[%s18633_s0 + $0x10] sm:$0xff] }
 0x112   :  { %v11940_v43 = vrot.slane %v11934_v27, %v11495_v8 }
 0x113   :  { %v11919_v34 = vpop.permute.xlu1 %3136 }
 0x114   :  { %19225 = vst [vmem:[#allocation65_spill] sm:$0xff] %v11919_v34  ;;  %v11921_v31 = vpop.permute.xlu0 %1811  ;;  %3152 = vrot.lane.b32.xlu1 %v118_v63, %s11404_s29 }
 0x115   :  { %19226 = vst [vmem:[#allocation66_spill] sm:$0xff] %v11921_v31  ;;  %1827 = vrot.lane.b32.xlu0 %v118_v63, %s11399_s25 }
 0x117   :  { %v11925_v46 = vpop.permute.xlu1 %1275 }
 0x118   :  { %19227 = vst [vmem:[#allocation67_spill] sm:$0xff] %v11925_v46  ;;  %v11927_v12 = vpop.permute.xlu0 %1815  ;;  %1291 = vrot.lane.b32.xlu1 %v11894_v1, %s11397_s24 }
 0x119   :  { %19228 = vst [vmem:[#allocation68_spill] sm:$0xff] %v11927_v12  ;;  %1831 = vrot.lane.b32.xlu0 %v11878_v3, %s11399_s25 }
 0x11b   :  { %v11942_v31 = vpop.permute.xlu1 %3674 }
 0x11c   :  { %19229 = vst [vmem:[#allocation69_spill] sm:$0xff] %v11942_v31  ;;  %v11944_v46 = vpop.permute.xlu0 %203  ;;  %3690 = vrot.lane.b32.xlu1 %v118_v63, %s11405_s3 }
 0x11d   :  { %19230 = vst [vmem:[#allocation70_spill] sm:$0xff] %v11944_v46  ;;  %219 = vrot.lane.b32.xlu0 %v11940_v43, %s11394_s2 }
 0x11f   :  { %v11949_v12 = vpop.permute.xlu1 %1813 }
 0x120   :  { %19231 = vst [vmem:[#allocation71_spill] sm:$0xff] %v11949_v12  ;;  %v11951_v34 = vpop.permute.xlu0 %741  ;;  %1829 = vrot.lane.b32.xlu1 %v11894_v1, %s11399_s25  ;;  %v315_v12 = vld [vmem:[%s18635_s1] ss:$8 sm:$0xf0] }
 0x121   :  { %19232 = vst [vmem:[#allocation72_spill] sm:$0xff] %v11951_v34  ;;  %757 = vrot.lane.b32.xlu0 %v11940_v43, %s11395_s23  ;;  %v314_v34 = vld [vmem:[%s18635_s1] ss:$8 sm:$0xf] }
 0x122   :  { %v12020_v20 = vor.u32 %v315_v12, %v314_v34  ;;  %v10656_v12 = vld [vmem:[%s18635_s1 + $0xc3] ss:$8 sm:$0xf] }
 0x123   :  { %v11957_v16 = vpop.permute.xlu1 %4212 }
 0x124   :  { %19233 = vst [vmem:[#allocation73_spill] sm:$0xff] %v11957_v16  ;;  %v11959_v31 = vpop.permute.xlu0 %2604  ;;  %4228 = vrot.lane.b32.xlu1 %v118_v63, %s11407_s30  ;;  %v10632_v63 = vld [vmem:[%s18635_s1 + $0xc0] ss:$8 sm:$0xf]  ;;  %19239 = vst [vmem:[#allocation79_spill] sm:$0xff] %v12020_v20  ;;  %v12074_v22 = vrot.slane %v12020_v20, %v11498_v9  ;;  %v12088_v21 = vrot.slane %v12020_v20, %v11527_v17 }
 0x125   :  { %19234 = vst [vmem:[#allocation74_spill] sm:$0xff] %v11959_v31  ;;  %2620 = vrot.lane.b32.xlu0 %v11940_v43, %s11401_s26  ;;  %v10633_v31 = vld [vmem:[%s18635_s1 + $0xc0] ss:$8 sm:$0xf0] }
 0x126   :  { %v10640_v16 = vld [vmem:[%s18635_s1 + $0xc1] ss:$8 sm:$0xf]  ;;  %v12022_v18 = vor.u32 %v10633_v31, %v10632_v63  ;;  %v10651_v31 = vld [vmem:[%s18635_s1 + $0x3] ss:$8 sm:$0xf0] }
 0x127   :  { %v11964_v46 = vpop.permute.xlu1 %2600  ;;  %v10657_v63 = vld [vmem:[%s18635_s1 + $0xc3] ss:$8 sm:$0xf0]  ;;  %v12048_v51 = vor.u32 %v10641_v26, %v10640_v16  ;;  %v12070_v16 = vrot.slane %v12020_v20, %v11495_v8  ;;  %19248 = vst [vmem:[#allocation88_spill] sm:$0xff] %v12074_v22  ;;  %19250 = vst [vmem:[#allocation90_spill] sm:$0xff] %v12088_v21 }
 0x128   :  { %19235 = vst [vmem:[#allocation75_spill] sm:$0xff] %v11964_v46  ;;  %v11972_v29 = vpop.permute.xlu0 %1279  ;;  %2616 = vrot.lane.b32.xlu1 %v11894_v1, %s11401_s26  ;;  %v10634_v46 = vld [vmem:[%s18635_s1 + $0x1] ss:$8 sm:$0xf]  ;;  %19240 = vst [vmem:[#allocation80_spill] sm:$0xff] %v12022_v18  ;;  %v12078_v26 = vor.u32 %v10657_v63, %v10656_v12 }
 0x129   :  { %19236 = vst [vmem:[#allocation76_spill] sm:$0xff] %v11972_v29  ;;  %1295 = vrot.lane.b32.xlu0 %v11940_v43, %s11397_s24  ;;  %v10635_v29 = vld [vmem:[%s18635_s1 + $0x1] ss:$8 sm:$0xf0]  ;;  %19242 = vst [vmem:[#allocation82_spill] sm:$0xff] %v12048_v51 }
 0x12a   :  { %v12038_v34 = vor.u32 %v10635_v29, %v10634_v46  ;;  %v12056_v29 = vrot.slane %v12020_v20, %v11501_v10  ;;  %v12060_v46 = vrot.slane %v12022_v18, %v11492_v7  ;;  %19247 = vst [vmem:[#allocation87_spill] sm:$0xff] %v12070_v16  ;;  %19249 = vst [vmem:[#allocation89_spill] sm:$0xff] %v12078_v26  ;;  %v10673_v12 = vld [vmem:[%s18635_s1 + $0xc5] ss:$8 sm:$0xf0] }
 0x12b   :  { %v11996_v23 = vpop.permute.xlu1 %2602  ;;  %v10674_v18 = vld [vmem:[%s18635_s1 + $0x6] ss:$8 sm:$0xf]  ;;  %v10683_v20 = vld [vmem:[%s18635_s1 + $0x7] ss:$8 sm:$0xf0] }
 0x12c   :  { %19237 = vst [vmem:[#allocation77_spill] sm:$0xff] %v11996_v23  ;;  %v10658_v23 = vld [vmem:[%s18635_s1 + $0x4] ss:$8 sm:$0xf]  ;;  %v12016_v30 = vpop.permute.xlu0 %3142  ;;  %2618 = vrot.lane.b32.xlu1 %v11878_v3, %s11401_s26  ;;  %19244 = vst [vmem:[#allocation84_spill] sm:$0xff] %v12056_v29 }
 0x12d   :  { %19238 = vst [vmem:[#allocation78_spill] sm:$0xff] %v12016_v30  ;;  %3158 = vrot.lane.b32.xlu0 %v11940_v43, %s11404_s29  ;;  %v10650_v30 = vld [vmem:[%s18635_s1 + $0x3] ss:$8 sm:$0xf]  ;;  %v2339_v24 = vor.u32 %v10659_v61, %v10658_v23  ;;  %19245 = vst [vmem:[#allocation85_spill] sm:$0xff] %v12060_v46  ;;  %v12064_v61 = vor.u32 %v10649_v4, %v10648_v25 }
 0x12e   :  { %v12076_v23 = vor.u32 %v10651_v31, %v10650_v30  ;;  %v10666_v4 = vld [vmem:[%s18635_s1 + $0x5] ss:$8 sm:$0xf]  ;;  %v10680_v25 = vld [vmem:[%s18635_s1 + $0xc6] ss:$8 sm:$0xf] }
 0x12f   :  { %v12046_v57 = vpop.permute.xlu1 %3138  ;;  %19246 = vst [vmem:[#allocation86_spill] sm:$0xff] %v12064_v61  ;;  %v12095_v30 = vmul.f32 %v2339_v24, %v11489_v6  ;;  %v10672_v31 = vld [vmem:[%s18635_s1 + $0xc5] ss:$8 sm:$0xf]  ;;  %v12112_v24 = vmul.f32 %v2351_v13, %v11484_v5  ;;  %v12146_v6 = vor.u32 %v10667_v19, %v10666_v4 }
 0x130   :  { %19241 = vst [vmem:[#allocation81_spill] sm:$0xff] %v12046_v57  ;;  %v12050_v0 = vpop.permute.xlu0 %1817  ;;  %3154 = vrot.lane.b32.xlu1 %v11894_v1, %s11404_s29  ;;  %v10682_v57 = vld [vmem:[%s18635_s1 + $0x7] ss:$8 sm:$0xf]  ;;  %v12160_v28 = vor.u32 %v10673_v12, %v10672_v31 }
 0x131   :  { %19243 = vst [vmem:[#allocation83_spill] sm:$0xff] %v12050_v0  ;;  %1833 = vrot.lane.b32.xlu0 %v11940_v43, %s11399_s25  ;;  %19251 = vst [vmem:[#allocation91_spill] sm:$0xff] %v12095_v30  ;;  %v10675_v0 = vld [vmem:[%s18635_s1 + $0x6] ss:$8 sm:$0xf0] }
 0x132   :  { %19253 = vst [vmem:[#allocation93_spill] sm:$0xff] %v12112_v24  ;;  %19255 = vst [vmem:[#allocation95_spill] sm:$0xff] %v12160_v28  ;;  %v10688_v4 = vld [vmem:[%s18635_s1 + $0xc7] ss:$8 sm:$0xf]  ;;  %v12176_v12 = vor.u32 %v10675_v0, %v10674_v18  ;;  %v12192_v18 = vor.u32 %v10683_v20, %v10682_v57  ;;  %v12198_v0 = vrot.slane %v11934_v27, %v11498_v9 }
 0x133   :  { %v12103_v63 = vpop.permute.xlu1 %3140  ;;  %v10689_v19 = vld [vmem:[%s18635_s1 + $0xc7] ss:$8 sm:$0xf0]  ;;  %v10690_v13 = vld [vmem:[%s18635_s1 + $0x100] ss:$8 sm:$0xf]  ;;  %v788_v57 = vsel %vm787_vm0, %v11684_v41, %v11688_v42  ;;  %v280_v20 = vsel %vm249_vm1, %v11677_v39, %v11663_v35 }
 0x134   :  { %19252 = vst [vmem:[#allocation92_spill] sm:$0xff] %v12103_v63  ;;  %v12120_v63 = vpop.permute.xlu0 %3680  ;;  %3156 = vrot.lane.b32.xlu1 %v11878_v3, %s11404_s29  ;;  %v12214_v24 = vor.u32 %v10691_v2, %v10690_v13  ;;  %v251_v2 = vsel %vm249_vm1, %v11657_v33, %v11667_v36  ;;  %v818_v13 = vsel %vm787_vm0, %v11704_v47, %v11682_v40  ;;  %v10697_v5 = vld [vmem:[%s18635_s1 + $0x1c0] ss:$8 sm:$0xf0] }
 0x135   :  { %19254 = vst [vmem:[#allocation94_spill] sm:$0xff] %v12120_v63  ;;  %v10681_v63 = vld [vmem:[%s18635_s1 + $0xc6] ss:$8 sm:$0xf0]  ;;  %3696 = vrot.lane.b32.xlu0 %v11940_v43, %s11405_s3  ;;  %v19264_v47 = vrot.slane %v12038_v34, %v11495_v8 }
 0x136   :  { %v12190_v62 = vor.u32 %v10681_v63, %v10680_v25  ;;  %v12212_v63 = vor.u32 %v10689_v19, %v10688_v4  ;;  %v12240_v19 = vrot.slane %v11934_v27, %v11527_v17  ;;  %v1389_v25 = vsel %vm1325_vm2, %v11714_v50, %v11710_v49 }
 0x137   :  { %v12168_v26 = vpop.permute.xlu1 %3676 }
 0x138   :  { %19256 = vst [vmem:[#allocation96_spill] sm:$0xff] %v12168_v26  ;;  %v12184_v26 = vpop.permute.xlu0 %4216  ;;  %3692 = vrot.lane.b32.xlu1 %v11894_v1, %s11405_s3  ;;  %19258 = vst [vmem:[#allocation98_spill] sm:$0xff] %v12190_v62 }
 0x139   :  { %19257 = vst [vmem:[#allocation97_spill] sm:$0xff] %v12184_v26  ;;  %4232 = vrot.lane.b32.xlu0 %v11878_v3, %s11407_s30  ;;  %19259 = vst [vmem:[#allocation99_spill] sm:$0xff] %v12212_v63  ;;  %v789_v26 = vsel %vm787_vm0, %v11688_v42, %v11700_v45  ;;  %v790_v42 = vsel %vm787_vm0, %v11700_v45, %v11708_v48  ;;  %v313_v45 = vsel %vm249_vm1, %v11663_v35, %v11671_v37 }
 0x13a   :  { %v19266_v35 = vrot.slane %v12038_v34, %v11501_v10 }
 0x13b   :  { %v12216_v31 = vpop.permute.xlu1 %3678 }
 0x13c   :  { %19260 = vst [vmem:[#allocation100_spill] sm:$0xff] %v12216_v31  ;;  %v12226_v30 = vpop.permute.xlu0 %205  ;;  %3694 = vrot.lane.b32.xlu1 %v11878_v3, %s11405_s3  ;;  %v851_v3 = vsel %vm787_vm0, %v11682_v40, %v11684_v41  ;;  %v10696_v41 = vld [vmem:[%s18635_s1 + $0x1c0] ss:$8 sm:$0xf]  ;;  %v250_v40 = vsel %vm249_vm1, %v11671_v37, %v11657_v33  ;;  %v19265_v31 = vrot.slane %v12038_v34, %v11498_v9 }
 0x13d   :  { %19261 = vst [vmem:[#allocation101_spill] sm:$0xff] %v12226_v30  ;;  %221 = vrot.lane.b32.xlu0 %v12198_v0, %s11394_s2  ;;  %v1032_v30 = vmul.f32 %v19264_v47, %v851_v3  ;;  %v252_v33 = vsel %vm249_vm1, %v11667_v36, %v11675_v38  ;;  %v1034_v37 = vmul.f32 %v19266_v35, %v789_v26 }
 0x13e   :  { %v19268_v3 = vrot.slane %v12038_v34, %v11527_v17  ;;  %v12320_v36 = vor.u32 %v10697_v5, %v10696_v41  ;;  %v524_v26 = vmul.f32 %v12060_v46, %v280_v20  ;;  %v493_v35 = vmul.f32 %v12070_v16, %v313_v45 }
 0x13f   :  { %v12262_v4 = vpop.permute.xlu1 %4214  ;;  %v494_v47 = vmul.f32 %v12074_v22, %v250_v40  ;;  %v1071_v5 = vrot.slane %v1032_v30, %v11495_v8  ;;  %v1328_v20 = vsel %vm1325_vm2, %v11726_v54, %v11733_v56  ;;  %v1327_v46 = vsel %vm1325_vm2, %v11720_v52, %v11726_v54  ;;  %v19314_v22 = vld [vmem:[#allocation53_spill] sm:$0xff] }
 0x140   :  { %19262 = vst [vmem:[#allocation102_spill] sm:$0xff] %v12262_v4  ;;  %v12282_v39 = vpop.permute.xlu0 %209  ;;  %4230 = vrot.lane.b32.xlu1 %v11894_v1, %s11407_s30  ;;  %v1033_v4 = vmul.f32 %v19265_v31, %v788_v57  ;;  %v12301_v1 = vmul.f32 %v12056_v29, %v251_v2  ;;  %v19267_v31 = vrot.slane %v12048_v51, %v11492_v7  ;;  %19270 = vst [vmem:[#allocation104_spill] sm:$0xff] %v12320_v36 }
 0x141   :  { %19263 = vst [vmem:[#allocation103_spill] sm:$0xff] %v12282_v39  ;;  %225 = vrot.lane.b32.xlu0 %v12240_v19, %s11394_s2  ;;  %v1035_v2 = vmul.f32 %v19268_v3, %v790_v42  ;;  %v19269_v39 = vrot.slane %v12062_v15, %v11495_v8  ;;  %v1326_v42 = vsel %vm1325_vm2, %v11710_v49, %v11720_v52 }
 0x142   :  { %v1063_v57 = vmul.f32 %v19267_v31, %v818_v13  ;;  %v12333_v13 = vrot.slane %v11934_v27, %v11501_v10  ;;  %v541_v41 = vrot.slane %v12301_v1, %v11495_v8  ;;  %v657_v1 = vrot.slane %v524_v26, %v11495_v8 }
 0x143   :  { %v1570_v29 = vmul.f32 %v19269_v39, %v1389_v25  ;;  %v12322_v38 = vpop.permute.xlu1 %4218  ;;  %v496_v39 = vmul.f32 %v12088_v21, %v252_v33  ;;  %v1075_v25 = vrot.slane %v1033_v4, %v11495_v8  ;;  %v1083_v40 = vrot.slane %v1035_v2, %v11495_v8 }
 0x144   :  { %19271 = vst [vmem:[#allocation105_spill] sm:$0xff] %v12322_v38  ;;  %v12327_v51 = vpop.permute.xlu0 %743  ;;  %4234 = vrot.lane.b32.xlu1 %v11940_v43, %s11407_s30  ;;  %v1079_v43 = vrot.slane %v1034_v37, %v11495_v8  ;;  %v1195_v4 = vrot.slane %v1063_v57, %v11495_v8  ;;  %v533_v37 = vrot.slane %v493_v35, %v11495_v8 }
 0x145   :  { %19272 = vst [vmem:[#allocation106_spill] sm:$0xff] %v12327_v51  ;;  %759 = vrot.lane.b32.xlu0 %v12198_v0, %s11395_s23  ;;  %v1609_v45 = vrot.slane %v1570_v29, %v11495_v8  ;;  %v537_v49 = vrot.slane %v494_v47, %v11495_v8  ;;  %v1356_v3 = vsel %vm1325_vm2, %v11722_v53, %v11714_v50 }
 0x146   :  { %v545_v29 = vrot.slane %v496_v39, %v11495_v8  ;;  %v1196_v2 = vmul.f32 %v1071_v5, %v11653_v32  ;;  %v1197_v26 = vmul.f32 %v1075_v25, %v11653_v32  ;;  %v19275_v35 = vrot.slane %v12062_v15, %v11498_v9 }
 0x147   :  { %v12355_v31 = vpop.permute.xlu1 %207  ;;  %v12376_v50 = vmul.f32 %v1079_v43, %v11653_v32  ;;  %v1864_v39 = vsel %vm1863_vm3, %v11728_v55, %v11746_v60  ;;  %v659_v5 = vmul.f32 %v537_v49, %v11775_v11  ;;  %v1227_v25 = vmul.f32 %v1195_v4, %v11653_v32 }
 0x148   :  { %19273 = vst [vmem:[#allocation107_spill] sm:$0xff] %v12355_v31  ;;  %v12363_v57 = vpop.permute.xlu0 %747  ;;  %223 = vrot.lane.b32.xlu1 %v12333_v13, %s11394_s2  ;;  %v1571_v47 = vmul.f32 %v19275_v35, %v1326_v42  ;;  %v1199_v42 = vmul.f32 %v1083_v40, %v11653_v32  ;;  %v1734_v35 = vmul.f32 %v1609_v45, %v11695_v44 }
 0x149   :  { %19274 = vst [vmem:[#allocation108_spill] sm:$0xff] %v12363_v57  ;;  %763 = vrot.lane.b32.xlu0 %v12240_v19, %s11395_s23  ;;  %v19276_v43 = vrot.slane %v12064_v61, %v11492_v7  ;;  %v1927_v49 = vsel %vm1863_vm3, %v11739_v58, %v11728_v55  ;;  %v691_v4 = vadd.f32 %v659_v5, %v11783_v14  ;;  %v19282_v5 = vld [vmem:[#allocation21_spill] sm:$0xff] }
 0x14a   :  { %v658_v40 = vmul.f32 %v533_v37, %v11775_v11  ;;  %v1613_v45 = vrot.slane %v1571_v47, %v11495_v8  ;;  %v1894_v52 = vsel %vm1863_vm3, %v11741_v59, %v11739_v58  ;;  %v19280_v54 = vrot.slane %v12076_v23, %v11498_v9  ;;  %v19281_v37 = vld [vmem:[#allocation23_spill] sm:$0xff] }
 0x14b   :  { %v1601_v30 = vmul.f32 %v19276_v43, %v1356_v3  ;;  %v12391_v33 = vpop.permute.xlu1 %2606  ;;  %v19279_v3 = vrot.slane %v12062_v15, %v11527_v17  ;;  %v1866_v47 = vsel %vm1863_vm3, %v19282_v5, %v19281_v37  ;;  %v661_v61 = vmul.f32 %v545_v29, %v11775_v11 }
 0x14c   :  { %19277 = vst [vmem:[#allocation109_spill] sm:$0xff] %v12391_v33  ;;  %v12401_v53 = vpop.permute.xlu0 %1281  ;;  %2622 = vrot.lane.b32.xlu1 %v12198_v0, %s11401_s26  ;;  %v2109_v55 = vmul.f32 %v19280_v54, %v1864_v39  ;;  %v19283_v59 = vrot.slane %v12062_v15, %v11501_v10  ;;  %v19284_v54 = vrot.slane %v12076_v23, %v11495_v8 }
 0x14d   :  { %19278 = vst [vmem:[#allocation110_spill] sm:$0xff] %v12401_v53  ;;  %v1573_v43 = vmul.f32 %v19279_v3, %v1328_v20  ;;  %1297 = vrot.lane.b32.xlu0 %v12198_v0, %s11397_s24  ;;  %v689_v20 = vmul.f32 %v657_v1, %v11775_v11  ;;  %v690_v3 = vadd.f32 %v658_v40, %v11783_v14 }
 0x14e   :  { %v1733_v58 = vrot.slane %v1601_v30, %v11495_v8  ;;  %v1572_v39 = vmul.f32 %v19283_v59, %v1327_v46  ;;  %v2108_v57 = vmul.f32 %v19284_v54, %v1927_v49  ;;  %v1865_v31 = vsel %vm1863_vm3, %v11746_v60, %v19282_v5  ;;  %v19287_v60 = vld [vmem:[#allocation89_spill] sm:$0xff] }
 0x14f   :  { %v12433_v29 = vpop.permute.xlu1 %745  ;;  %v1229_v1 = vadd.f32 %v1197_v26, %v691_v4  ;;  %v660_v40 = vmul.f32 %v541_v41, %v11775_v11  ;;  %v693_v30 = vadd.f32 %v661_v61, %v11783_v14  ;;  %v721_v53 = vadd.f32 %v689_v20, %v11783_v14  ;;  %v19290_v4 = vld [vmem:[#allocation29_spill] sm:$0xff]  ;;  %v19291_v20 = vld [vmem:[#allocation22_spill] sm:$0xff] }
 0x150   :  { %19285 = vst [vmem:[#allocation23_spill] sm:$0xff] %v12433_v29  ;;  %v12438_v51 = vpop.permute.xlu0 %1285  ;;  %761 = vrot.lane.b32.xlu1 %v12333_v13, %s11395_s23  ;;  %v1735_v59 = vmul.f32 %v1613_v45, %v11695_v44  ;;  %v1621_v46 = vrot.slane %v1573_v43, %v11495_v8  ;;  %v19288_v49 = vrot.slane %v19287_v60, %v11492_v7 }
 0x151   :  { %19286 = vst [vmem:[#allocation21_spill] sm:$0xff] %v12438_v51  ;;  %v19289_v41 = vrot.slane %v12076_v23, %v11527_v17  ;;  %1301 = vrot.lane.b32.xlu0 %v12240_v19, %s11397_s24  ;;  %v2151_v61 = vrot.slane %v2109_v55, %v11495_v8  ;;  %v2654_v45 = vsel %vm2652_vm4, %v19291_v20, %v19290_v4 }
 0x152   :  { %v2139_v5 = vmul.f32 %v19288_v49, %v1894_v52  ;;  %v692_v43 = vadd.f32 %v660_v40, %v11783_v14  ;;  %v1228_v54 = vadd.f32 %v1196_v2, %v690_v3  ;;  %v1617_v60 = vrot.slane %v1572_v39, %v11495_v8 }
 0x153   :  { %v2111_v26 = vmul.f32 %v19289_v41, %v1866_v47  ;;  %v2147_v52 = vrot.slane %v2108_v57, %v11495_v8  ;;  %v19292_v47 = vrot.slane %v12076_v23, %v11501_v10  ;;  %v19293_v41 = vld [vmem:[#allocation27_spill] sm:$0xff]  ;;  %v12465_v55 = vpop.permute.xlu1 %3144  ;;  %v1765_v29 = vmul.f32 %v1733_v58, %v11695_v44 }
 0x154   :  { %v2653_v51 = vsel %vm2652_vm4, %v19293_v41, %v19291_v20  ;;  %19294 = vst [vmem:[#allocation29_spill] sm:$0xff] %v12465_v55  ;;  %v1767_v33 = vadd.f32 %v1735_v59, %v1229_v1  ;;  %v1231_v21 = vadd.f32 %v1199_v42, %v693_v30  ;;  %v1259_v40 = vadd.f32 %v1227_v25, %v721_v53  ;;  %v12468_v2 = vpop.permute.xlu0 %1819  ;;  %v19297_v42 = vld [vmem:[#allocation16_spill] sm:$0xff] }
 0x155   :  { %v2110_v49 = vmul.f32 %v19292_v47, %v1865_v31  ;;  %19295 = vst [vmem:[#allocation22_spill] sm:$0xff] %v12468_v2  ;;  %3160 = vrot.lane.b32.xlu1 %v12198_v0, %s11404_s29  ;;  %v1737_v57 = vmul.f32 %v1621_v46, %v11695_v44  ;;  %v2271_v31 = vrot.slane %v2139_v5, %v11495_v8 }
 0x156   :  { %v2159_v3 = vrot.slane %v2111_v26, %v11495_v8  ;;  %v19296_v39 = vrot.slane %v12146_v6, %v11498_v9  ;;  %1835 = vrot.lane.b32.xlu0 %v12198_v0, %s11399_s25  ;;  %v2273_v53 = vmul.f32 %v2151_v61, %v19297_v42  ;;  %v19298_v25 = vrot.slane %v12146_v6, %v11495_v8  ;;  %v19299_v26 = vld [vmem:[#allocation18_spill] sm:$0xff] }
 0x157   :  { %v1230_v1 = vadd.f32 %v12376_v50, %v692_v43  ;;  %v1766_v30 = vadd.f32 %v1734_v35, %v1228_v54  ;;  %v1736_v59 = vmul.f32 %v1617_v60, %v11695_v44  ;;  %v2272_v46 = vmul.f32 %v2147_v52, %v19297_v42  ;;  %v12492_v2 = vpop.permute.xlu1 %1283  ;;  %v19317_v44 = vld [vmem:[#allocation35_spill] sm:$0xff] }
 0x158   :  { %v2899_v20 = vmul.f32 %v19296_v39, %v2654_v45  ;;  %v2898_v58 = vmul.f32 %v19298_v25, %v2653_v51  ;;  %v2155_v5 = vrot.slane %v2110_v49, %v11495_v8  ;;  %v19300_v45 = vld [vmem:[#allocation91_spill] sm:$0xff]  ;;  %19302 = vst [vmem:[#allocation27_spill] sm:$0xff] %v12492_v2  ;;  %v2305_v61 = vadd.f32 %v2273_v53, %v1767_v33  ;;  %v19303_v51 = vld [vmem:[#allocation34_spill] sm:$0xff]  ;;  %v19304_v25 = vld [vmem:[#allocation37_spill] sm:$0xff]  ;;  %v12497_v35 = vpop.permute.xlu0 %1823 }
 0x159   :  { %v19301_v47 = vrot.slane %v19300_v45, %v11498_v9  ;;  %v1769_v55 = vadd.f32 %v1737_v57, %v1231_v21  ;;  %v1797_v16 = vadd.f32 %v1765_v29, %v1259_v40  ;;  %v3192_v50 = vsel %vm3190_vm5, %v19304_v25, %v19303_v51  ;;  %19305 = vst [vmem:[#allocation18_spill] sm:$0xff] %v12497_v35  ;;  %v19306_v21 = vld [vmem:[#allocation9_spill] sm:$0xff]  ;;  %v19307_v40 = vld [vmem:[#allocation42_spill] sm:$0xff] }
 0x15a   :  { %1299 = vrot.lane.b32.xlu1 %v12333_v13, %s11397_s24  ;;  %v2303_v60 = vmul.f32 %v2271_v31, %v19297_v42  ;;  %v2275_v43 = vmul.f32 %v2159_v3, %v19297_v42  ;;  %v2941_v54 = vrot.slane %v2899_v20, %v11495_v8  ;;  %1839 = vrot.lane.b32.xlu0 %v12240_v19, %s11399_s25  ;;  %v19308_v57 = vld [vmem:[#allocation45_spill] sm:$0xff] }
 0x15b   :  { %v2525_v39 = vmul.f32 %v19301_v47, %v19299_v26  ;;  %v12508_v33 = vrot.slane %v11934_v27, %v19306_v21  ;;  %v2937_v29 = vrot.slane %v2898_v58, %v11495_v8  ;;  %v1768_v52 = vadd.f32 %v1736_v59, %v1230_v1 }
 0x15c   :  { %v2304_v49 = vadd.f32 %v2272_v46, %v1766_v30  ;;  %v3730_v53 = vsel %vm3728_vm6, %v19308_v57, %v19307_v40  ;;  %v2274_v31 = vmul.f32 %v2155_v5, %v19297_v42  ;;  %v19309_v3 = vrot.slane %v19300_v45, %v11527_v17  ;;  %v12526_v30 = vpop.permute.xlu1 %3682  ;;  %v19313_v5 = vld [vmem:[#allocation50_spill] sm:$0xff]  ;;  %v12531_v42 = vpop.permute.xlu0 %211 }
 0x15d   :  { %v19310_v47 = vrot.slane %v19300_v45, %v11495_v8  ;;  %v19311_v58 = vrot.slane %v12176_v12, %v11498_v9  ;;  %19312 = vst [vmem:[#allocation91_spill] sm:$0xff] %v12526_v30  ;;  %v2557_v59 = vadd.f32 %v2525_v39, %v2305_v61  ;;  %v2307_v46 = vadd.f32 %v2275_v43, %v1769_v55  ;;  %v19320_v43 = vld [vmem:[#allocation93_spill] sm:$0xff] }
 0x15e   :  { %v2527_v20 = vmul.f32 %v19309_v3, %v19299_v26  ;;  %v2335_v2 = vadd.f32 %v2303_v60, %v1797_v16  ;;  %v4268_v38 = vsel %vm4266_vm7, %v19314_v22, %v19313_v5  ;;  %19315 = vst [vmem:[#allocation34_spill] sm:$0xff] %v12531_v42  ;;  %3698 = vrot.lane.b32.xlu1 %v12198_v0, %s11405_s3  ;;  %v19316_v3 = vld [vmem:[#allocation25_spill] sm:$0xff]  ;;  %v19322_v42 = vld [vmem:[#allocation30_spill] sm:$0xff] }
 0x15f   :  { %v2524_v35 = vmul.f32 %v19310_v47, %v19299_v26  ;;  %v3437_v1 = vmul.f32 %v19311_v58, %v3192_v50  ;;  %v3063_v47 = vmul.f32 %v2941_v54, %v19316_v3  ;;  %v2717_v50 = vsel %vm2652_vm4, %v19317_v44, %v19293_v41  ;;  %v19318_v58 = vld [vmem:[#allocation32_spill] sm:$0xff]  ;;  %227 = vrot.lane.b32.xlu0 %v12508_v33, %s11394_s2  ;;  %v19323_v30 = vld [vmem:[#allocation33_spill] sm:$0xff] }
 0x160   :  { %v3191_v55 = vsel %vm3190_vm5, %v19318_v58, %v19304_v25  ;;  %v19319_v16 = vrot.slane %v12192_v18, %v11498_v9  ;;  %v3062_v61 = vmul.f32 %v2937_v29, %v19316_v3  ;;  %v12548_v60 = vadd.f32 %v2274_v31, %v1768_v52  ;;  %v12564_v31 = vpop.permute.xlu1 %1821  ;;  %v12574_v11 = vpop.permute.xlu0 %749 }
 0x161   :  { %v19321_v54 = vrot.slane %v19320_v43, %v11492_v7  ;;  %v2556_v44 = vadd.f32 %v2524_v35, %v2304_v49  ;;  %v2656_v25 = vsel %vm2652_vm4, %v19323_v30, %v19322_v42  ;;  %v3479_v14 = vrot.slane %v3437_v1, %v11495_v8  ;;  %19326 = vst [vmem:[#allocation37_spill] sm:$0xff] %v12564_v31 }
 0x162   :  { %v3975_v39 = vmul.f32 %v19319_v16, %v3730_v53  ;;  %v19324_v53 = vld [vmem:[#allocation43_spill] sm:$0xff]  ;;  %v19325_v29 = vrot.slane %v12214_v24, %v11498_v9  ;;  %v12566_v32 = vadd.f32 %v2527_v20, %v2307_v46  ;;  %v19327_v35 = vrot.slane %v12160_v28, %v11492_v7  ;;  %19329 = vst [vmem:[#allocation42_spill] sm:$0xff] %v12574_v11  ;;  %v19352_v9 = vld [vmem:[#allocation52_spill] sm:$0xff] }
 0x163   :  { %v2555_v41 = vmul.f32 %v19321_v54, %v19299_v26  ;;  %v3255_v16 = vsel %vm3190_vm5, %v19324_v53, %v19318_v58  ;;  %v19328_v1 = vrot.slane %v12176_v12, %v11495_v8  ;;  %1837 = vrot.lane.b32.xlu1 %v12333_v13, %s11399_s25  ;;  %v3095_v58 = vadd.f32 %v3063_v47, %v2557_v59  ;;  %v19337_v53 = vld [vmem:[#allocation48_spill] sm:$0xff] }
 0x164   :  { %v4513_v52 = vmul.f32 %v19325_v29, %v4268_v38  ;;  %v2929_v49 = vmul.f32 %v19327_v35, %v2717_v50  ;;  %v2655_v38 = vsel %vm2652_vm4, %v19290_v4, %v19323_v30  ;;  %v4017_v46 = vrot.slane %v3975_v39, %v11495_v8  ;;  %765 = vrot.lane.b32.xlu0 %v12508_v33, %s11395_s23  ;;  %v19333_v4 = vld [vmem:[#allocation51_spill] sm:$0xff]  ;;  %v19334_v29 = vld [vmem:[#allocation24_spill] sm:$0xff]  ;;  %v19335_v35 = vld [vmem:[#allocation38_spill] sm:$0xff] }
 0x165   :  { %v2587_v54 = vadd.f32 %v2555_v41, %v2335_v2  ;;  %v3436_v43 = vmul.f32 %v19328_v1, %v3191_v55  ;;  %v19330_v2 = vld [vmem:[#allocation40_spill] sm:$0xff]  ;;  %v19331_v50 = vrot.slane %v12146_v6, %v11527_v17  ;;  %v3094_v41 = vadd.f32 %v3062_v61, %v2556_v44  ;;  %v19336_v39 = vld [vmem:[#allocation41_spill] sm:$0xff]  ;;  %v12604_v61 = vpop.permute.xlu1 %4220 }
 0x166   :  { %v3729_v20 = vsel %vm3728_vm6, %v19330_v2, %v19308_v57  ;;  %v19332_v59 = vrot.slane %v12190_v62, %v11492_v7  ;;  %v3793_v30 = vsel %vm3728_vm6, %v19333_v4, %v19330_v2  ;;  %v3601_v57 = vmul.f32 %v3479_v14, %v19334_v29  ;;  %19338 = vst [vmem:[#allocation45_spill] sm:$0xff] %v12604_v61  ;;  %v12614_v4 = vpop.permute.xlu0 %2612 }
 0x167   :  { %v2901_v55 = vmul.f32 %v19331_v50, %v2656_v25  ;;  %v3194_v1 = vsel %vm3190_vm5, %v19336_v39, %v19335_v35  ;;  %v4267_v28 = vsel %vm4266_vm7, %v19337_v53, %v19314_v22  ;;  %v4555_v44 = vrot.slane %v4513_v52, %v11495_v8  ;;  %v19340_v50 = vld [vmem:[#allocation57_spill] sm:$0xff]  ;;  %19341 = vst [vmem:[#allocation50_spill] sm:$0xff] %v12614_v4 }
 0x168   :  { %v3467_v47 = vmul.f32 %v19332_v59, %v3255_v16  ;;  %v3061_v25 = vrot.slane %v2929_v49, %v11495_v8  ;;  %v3475_v16 = vrot.slane %v3436_v43, %v11495_v8  ;;  %v19339_v2 = vrot.slane %v12192_v18, %v11495_v8  ;;  %4236 = vrot.lane.b32.xlu1 %v12198_v0, %s11407_s30  ;;  %v19343_v49 = vld [vmem:[#allocation39_spill] sm:$0xff] }
 0x169   :  { %v4331_v59 = vsel %vm4266_vm7, %v19340_v50, %v19337_v53  ;;  %v19342_v22 = vrot.slane %v12146_v6, %v11501_v10  ;;  %v3193_v43 = vsel %vm3190_vm5, %v19303_v51, %v19336_v39  ;;  %v4139_v62 = vmul.f32 %v4017_v46, %v19343_v49  ;;  %2628 = vrot.lane.b32.xlu0 %v12508_v33, %s11401_s26 }
 0x16a   :  { %v3974_v14 = vmul.f32 %v19339_v2, %v3729_v20  ;;  %v19344_v20 = vrot.slane %v12212_v63, %v11492_v7  ;;  %v19345_v0 = vrot.slane %v12176_v12, %v11527_v17  ;;  %v3599_v50 = vrot.slane %v3467_v47, %v11495_v8 }
 0x16b   :  { %v2900_v52 = vmul.f32 %v19342_v22, %v2655_v38  ;;  %v19346_v38 = vld [vmem:[#allocation46_spill] sm:$0xff]  ;;  %v19347_v22 = vld [vmem:[#allocation49_spill] sm:$0xff]  ;;  %v19348_v51 = vrot.slane %v12214_v24, %v11495_v8  ;;  %v2949_v39 = vrot.slane %v2901_v55, %v11495_v8  ;;  %v19350_v4 = vrot.slane %v12320_v36, %v11492_v7  ;;  %v12653_v55 = vpop.permute.xlu0 %1287 }
 0x16c   :  { %v4005_v2 = vmul.f32 %v19344_v20, %v3793_v30  ;;  %v3439_v53 = vmul.f32 %v19345_v0, %v3194_v1  ;;  %v3732_v11 = vsel %vm3728_vm6, %v19347_v22, %v19346_v38  ;;  %v3633_v30 = vadd.f32 %v3601_v57, %v3095_v58  ;;  %v19349_v20 = vld [vmem:[#allocation47_spill] sm:$0xff]  ;;  %v12645_v1 = vpop.permute.xlu1 %2608  ;;  %19354 = vst [vmem:[#allocation32_spill] sm:$0xff] %v12653_v55  ;;  %v19414_v55 = vld [vmem:[#allocation14_spill] sm:$0xff] }
 0x16d   :  { %v4512_v46 = vmul.f32 %v19348_v51, %v4267_v28  ;;  %v4677_v63 = vmul.f32 %v4555_v44, %v19349_v20  ;;  %v4543_v31 = vmul.f32 %v19350_v4, %v4331_v59  ;;  %19351 = vst [vmem:[#allocation53_spill] sm:$0xff] %v12645_v1  ;;  %v3093_v47 = vmul.f32 %v3061_v25, %v19316_v3  ;;  %v19353_v38 = vld [vmem:[#allocation55_spill] sm:$0xff] }
 0x16e   :  { %v3600_v0 = vmul.f32 %v3475_v16, %v19334_v29  ;;  %v4013_v61 = vrot.slane %v3974_v14, %v11495_v8  ;;  %v4270_v28 = vsel %vm4266_vm7, %v19353_v38, %v19352_v9  ;;  %2624 = vrot.lane.b32.xlu1 %v12333_v13, %s11401_s26  ;;  %v19355_v58 = vrot.slane %v12176_v12, %v11501_v10 }
 0x16f   :  { %v4171_v57 = vadd.f32 %v4139_v62, %v3633_v30  ;;  %v19356_v44 = vrot.slane %v12192_v18, %v11527_v17  ;;  %v4137_v16 = vrot.slane %v4005_v2, %v11495_v8  ;;  %1303 = vrot.lane.b32.xlu0 %v12508_v33, %s11397_s24  ;;  %v3487_v14 = vrot.slane %v3439_v53, %v11495_v8 }
 0x170   :  { %v3438_v4 = vmul.f32 %v19355_v58, %v3193_v43  ;;  %v3631_v59 = vmul.f32 %v3599_v50, %v19334_v29  ;;  %v3731_v51 = vsel %vm3728_vm6, %v19307_v40, %v19347_v22  ;;  %v4551_v43 = vrot.slane %v4512_v46, %v11495_v8  ;;  %v12684_v22 = vpop.permute.xlu0 %3150 }
 0x171   :  { %v3977_v25 = vmul.f32 %v19356_v44, %v3732_v11  ;;  %v2945_v62 = vrot.slane %v2900_v52, %v11495_v8  ;;  %v4709_v30 = vadd.f32 %v4677_v63, %v4171_v57  ;;  %v19357_v11 = vrot.slane %v12214_v24, %v11527_v17  ;;  %v12677_v44 = vpop.permute.xlu1 %2610  ;;  %19359 = vst [vmem:[#allocation33_spill] sm:$0xff] %v12684_v22  ;;  %v19417_v22 = vld [vmem:[#allocation46_spill] sm:$0xff] }
 0x172   :  { %v4675_v58 = vrot.slane %v4543_v31, %v11495_v8  ;;  %19358 = vst [vmem:[#allocation30_spill] sm:$0xff] %v12677_v44  ;;  %v3065_v53 = vmul.f32 %v2949_v39, %v19316_v3  ;;  %v3125_v50 = vadd.f32 %v3093_v47, %v2587_v54  ;;  %v4138_v36 = vmul.f32 %v4013_v61, %v19343_v49 }
 0x173   :  { %v4515_v2 = vmul.f32 %v19357_v11, %v4270_v28  ;;  %v4269_v40 = vsel %vm4266_vm7, %v19313_v5, %v19353_v38  ;;  %2626 = vrot.lane.b32.xlu1 %v12240_v19, %s11401_s26  ;;  %v3632_v63 = vadd.f32 %v3600_v0, %v3094_v41  ;;  %v19360_v31 = vrot.slane %v12192_v18, %v11501_v10 }
 0x174   :  { %v4025_v46 = vrot.slane %v3977_v25, %v11495_v8  ;;  %v4169_v54 = vmul.f32 %v4137_v16, %v19343_v49  ;;  %3166 = vrot.lane.b32.xlu0 %v12508_v33, %s11404_s29  ;;  %v3483_v61 = vrot.slane %v3438_v4, %v11495_v8  ;;  %v3603_v5 = vmul.f32 %v3487_v14, %v19334_v29 }
 0x175   :  { %v3976_v52 = vmul.f32 %v19360_v31, %v3731_v51  ;;  %v3663_v38 = vadd.f32 %v3631_v59, %v3125_v50  ;;  %v4676_v39 = vmul.f32 %v4551_v43, %v19349_v20  ;;  %v12698_v47 = vmax.f32 %v4709_v30, 0.0  ;;  %v12705_v25 = vpop.permute.xlu1 %3146  ;;  %v12712_v51 = vpop.permute.xlu0 %1825 }
 0x176   :  { %v19361_v41 = vrot.slane %v12214_v24, %v11501_v10  ;;  %v4563_v28 = vrot.slane %v4515_v2, %v11495_v8  ;;  %v4707_v57 = vmul.f32 %v4675_v58, %v19349_v20  ;;  %19362 = vst [vmem:[#allocation40_spill] sm:$0xff] %v12705_v25  ;;  %v19363_v4 = vrot.slane %v19300_v45, %v11501_v10 }
 0x177   :  { %v3064_v14 = vmul.f32 %v2945_v62, %v19316_v3  ;;  %v4170_v59 = vadd.f32 %v4138_v36, %v3632_v63  ;;  %19364 = vst [vmem:[#allocation38_spill] sm:$0xff] %v12712_v51  ;;  %3162 = vrot.lane.b32.xlu1 %v12333_v13, %s11404_s29  ;;  %v3097_v43 = vadd.f32 %v3065_v53, %v12566_v32  ;;  %v19413_v51 = vld [vmem:[#allocation28_spill] sm:$0xff] }
 0x178   :  { %v4514_v0 = vmul.f32 %v19361_v41, %v4269_v40  ;;  %v2526_v16 = vmul.f32 %v19363_v4, %v19299_v26  ;;  %v4021_v30 = vrot.slane %v3976_v52, %v11495_v8  ;;  %v4141_v11 = vmul.f32 %v4025_v46, %v19343_v49  ;;  %4809 = vrot.lane.b32.xlu0 %v12698_v47, %s11394_s2 }
 0x179   :  { %v4201_v2 = vadd.f32 %v4169_v54, %v3663_v38  ;;  %v3602_v62 = vmul.f32 %v3483_v61, %v19334_v29  ;;  %v4708_v36 = vadd.f32 %v4676_v39, %v4170_v59  ;;  %v3635_v50 = vadd.f32 %v3603_v5, %v3097_v43  ;;  %v12725_v32 = vpop.permute.xlu1 %3148  ;;  %v12727_v53 = vpop.permute.xlu0 %3688 }
 0x17a   :  { %v2558_v58 = vadd.f32 %v2526_v16, %v12548_v60  ;;  %v4559_v40 = vrot.slane %v4514_v0, %v11495_v8  ;;  %v4679_v63 = vmul.f32 %v4563_v28, %v19349_v20  ;;  %19365 = vst [vmem:[#allocation41_spill] sm:$0xff] %v12725_v32  ;;  %19366 = vst [vmem:[#allocation48_spill] sm:$0xff] %v12727_v53 }
 0x17b   :  { %v4739_v31 = vadd.f32 %v4707_v57, %v4201_v2  ;;  %3164 = vrot.lane.b32.xlu1 %v12240_v19, %s11404_s29  ;;  %v4140_v46 = vmul.f32 %v4021_v30, %v19343_v49  ;;  %v4173_v60 = vadd.f32 %v4141_v11, %v3635_v50  ;;  %v12734_v54 = vmax.f32 %v4708_v36, 0.0 }
 0x17c   :  { %v3096_v52 = vadd.f32 %v3064_v14, %v2558_v58  ;;  %5002 = vrot.lane.b32.xlu0 %v12698_v47, %s11395_s23  ;;  %v4678_v5 = vmul.f32 %v4559_v40, %v19349_v20 }
 0x17d   :  { %19367 = vst [vmem:[#allocation49_spill] sm:$0xff] %v12734_v54  ;;  %v4711_v38 = vadd.f32 %v4679_v63, %v4173_v60  ;;  %v12737_v39 = vmax.f32 %v4739_v31, 0.0  ;;  %v12739_v41 = vpop.permute.xlu1 %3684  ;;  %v12741_v0 = vpop.permute.xlu0 %4224 }
 0x17e   :  { %v3634_v61 = vadd.f32 %v3602_v62, %v3096_v52  ;;  %19369 = vst [vmem:[#allocation55_spill] sm:$0xff] %v12739_v41  ;;  %19370 = vst [vmem:[#allocation111_spill] sm:$0xff] %v12741_v0 }
 0x17f   :  { %19368 = vst [vmem:[#allocation52_spill] sm:$0xff] %v12737_v39  ;;  %4807 = vrot.lane.b32.xlu1 %v12734_v54, %s11394_s2  ;;  %v12747_v4 = vmax.f32 %v4711_v38, 0.0 }
 0x180   :  { %v4172_v28 = vadd.f32 %v4140_v46, %v3634_v61  ;;  %4773 = vrot.lane.b32.xlu0 %v12737_v39, %s11394_s2  ;;  %v19387_v46 = vld [vmem:[#allocation10_spill] sm:$0xff] }
 0x181   :  { %19371 = vst [vmem:[#allocation112_spill] sm:$0xff] %v12747_v4  ;;  %v12749_v16 = vpop.permute.xlu1 %3686  ;;  %v12751_v14 = vpop.permute.xlu0 %213  ;;  %v12809_v60 = vrot.slane %v11934_v27, %v19387_v46  ;;  %v3299_v25 = vrot.slane %v12176_v12, %v19387_v46 }
 0x182   :  { %v4710_v57 = vadd.f32 %v4678_v5, %v4172_v28  ;;  %19372 = vst [vmem:[#allocation113_spill] sm:$0xff] %v12749_v16  ;;  %19373 = vst [vmem:[#allocation114_spill] sm:$0xff] %v12751_v14 }
 0x183   :  { %5000 = vrot.lane.b32.xlu1 %v12734_v54, %s11395_s23 }
 0x184   :  { %4813 = vrot.lane.b32.xlu0 %v12747_v4, %s11394_s2  ;;  %v12757_v59 = vmax.f32 %v4710_v57, 0.0  ;;  %v19394_v57 = vld [vmem:[#allocation31_spill] sm:$0xff] }
 0x185   :  { %v12759_v43 = vpop.permute.xlu1 %4222  ;;  %v12761_v30 = vpop.permute.xlu0 %217 }
 0x186   :  { %19374 = vst [vmem:[#allocation115_spill] sm:$0xff] %v12757_v59  ;;  %19375 = vst [vmem:[#allocation116_spill] sm:$0xff] %v12759_v43 }
 0x187   :  { %19376 = vst [vmem:[#allocation117_spill] sm:$0xff] %v12761_v30  ;;  %3700 = vrot.lane.b32.xlu1 %v12333_v13, %s11405_s3 }
 0x188   :  { %5004 = vrot.lane.b32.xlu0 %v12757_v59, %s11395_s23 }
 0x189   :  { %v12767_v11 = vpop.permute.xlu1 %4226  ;;  %v12769_v2 = vpop.permute.xlu0 %751 }
 0x18a   :  { %19377 = vst [vmem:[#allocation118_spill] sm:$0xff] %v12767_v11  ;;  %19378 = vst [vmem:[#allocation119_spill] sm:$0xff] %v12769_v2  ;;  %v19411_v2 = vld [vmem:[#allocation65_spill] sm:$0xff] }
 0x18b   :  { %4811 = vrot.lane.b32.xlu1 %v12757_v59, %s11394_s2 }
 0x18c   :  { %1841 = vrot.lane.b32.xlu0 %v12508_v33, %s11399_s25 }
 0x18d   :  { %v12775_v58 = vpop.permute.xlu1 %215  ;;  %v12777_v62 = vpop.permute.xlu0 %755 }
 0x18e   :  { %19379 = vst [vmem:[#allocation120_spill] sm:$0xff] %v12775_v58  ;;  %19380 = vst [vmem:[#allocation121_spill] sm:$0xff] %v12777_v62  ;;  %v19401_v62 = vld [vmem:[#allocation36_spill] sm:$0xff] }
 0x18f   :  { %4997 = vrot.lane.b32.xlu1 %v12737_v39, %s11395_s23 }
 0x190   :  { %3704 = vrot.lane.b32.xlu0 %v12508_v33, %s11405_s3 }
 0x191   :  { %v12783_v36 = vpop.permute.xlu1 %2614  ;;  %v12785_v50 = vpop.permute.xlu0 %1289 }
 0x192   :  { %19381 = vst [vmem:[#allocation122_spill] sm:$0xff] %v12783_v36  ;;  %19382 = vst [vmem:[#allocation123_spill] sm:$0xff] %v12785_v50 }
 0x193   :  { %5006 = vrot.lane.b32.xlu1 %v12747_v4, %s11395_s23 }
 0x194   :  { %4240 = vrot.lane.b32.xlu0 %v12240_v19, %s11407_s30 }
 0x195   :  { %v12791_v40 = vpop.permute.xlu1 %753  ;;  %v12793_v63 = vpop.permute.xlu0 %1293 }
 0x196   :  { %19383 = vst [vmem:[#allocation124_spill] sm:$0xff] %v12791_v40  ;;  %19384 = vst [vmem:[#allocation125_spill] sm:$0xff] %v12793_v63  ;;  %v19396_v63 = vld [vmem:[#allocation79_spill] sm:$0xff] }
 0x197   :  { %3702 = vrot.lane.b32.xlu1 %v12240_v19, %s11405_s3 }
 0x198   :  { %5369 = vrot.lane.b32.xlu0 %v12734_v54, %s11397_s24 }
 0x199   :  { %v12799_v31 = vpop.permute.xlu1 %3152  ;;  %v12801_v52 = vpop.permute.xlu0 %1827 }
 0x19a   :  { %19385 = vst [vmem:[#allocation126_spill] sm:$0xff] %v12799_v31  ;;  %19386 = vst [vmem:[#allocation127_spill] sm:$0xff] %v12801_v52  ;;  %v19400_v52 = vld [vmem:[#allocation12_spill] sm:$0xff] }
 0x19b   :  { %4238 = vrot.lane.b32.xlu1 %v12333_v13, %s11407_s30 }
 0x19c   :  { %5738 = vrot.lane.b32.xlu0 %v12734_v54, %s11399_s25 }
 0x19d   :  { %v12811_v61 = vpop.permute.xlu1 %1291  ;;  %v12813_v19 = vpop.permute.xlu0 %1831 }
 0x19e   :  { %19388 = vst [vmem:[#allocation128_spill] sm:$0xff] %v12811_v61  ;;  %19389 = vst [vmem:[#allocation129_spill] sm:$0xff] %v12813_v19  ;;  %v791_v19 = vsel %vm787_vm0, %v11708_v48, %v19394_v57  ;;  %v1329_v48 = vsel %vm1325_vm2, %v11733_v56, %v19401_v62 }
 0x19f   :  { %4242 = vrot.lane.b32.xlu1 %v12508_v33, %s11407_s30  ;;  %v891_v33 = vrot.slane %v12038_v34, %v19306_v21 }
 0x1a0   :  { %229 = vrot.lane.b32.xlu0 %v12809_v60, %s11394_s2 }
 0x1a1   :  { %v12819_v5 = vpop.permute.xlu1 %3690  ;;  %v12821_v13 = vpop.permute.xlu0 %219  ;;  %v1036_v40 = vmul.f32 %v891_v33, %v791_v19 }
 0x1a2   :  { %19390 = vst [vmem:[#allocation130_spill] sm:$0xff] %v12819_v5  ;;  %19391 = vst [vmem:[#allocation131_spill] sm:$0xff] %v12821_v13  ;;  %v19399_v5 = vld [vmem:[#allocation20_spill] sm:$0xff] }
 0x1a3   :  { %5371 = vrot.lane.b32.xlu1 %v12698_v47, %s11397_s24  ;;  %v253_v31 = vsel %vm249_vm1, %v19400_v52, %v19399_v5  ;;  %v1087_v19 = vrot.slane %v1036_v40, %v11495_v8  ;;  %v19408_v40 = vld [vmem:[#allocation61_spill] sm:$0xff] }
 0x1a4   :  { %5373 = vrot.lane.b32.xlu0 %v12757_v59, %s11397_s24 }
 0x1a5   :  { %v12827_v38 = vpop.permute.xlu1 %1829  ;;  %v12829_v28 = vpop.permute.xlu0 %757 }
 0x1a6   :  { %19392 = vst [vmem:[#allocation132_spill] sm:$0xff] %v12827_v38  ;;  %19393 = vst [vmem:[#allocation133_spill] sm:$0xff] %v12829_v28  ;;  %v12844_v38 = vrot.slane %v19396_v63, %v19306_v21  ;;  %v1429_v28 = vrot.slane %v12062_v15, %v19306_v21 }
 0x1a7   :  { %5740 = vrot.lane.b32.xlu1 %v12698_v47, %s11399_s25 }
 0x1a8   :  { %5735 = vrot.lane.b32.xlu0 %v12737_v39, %s11399_s25  ;;  %19397 = vst [vmem:[#allocation79_spill] sm:$0xff] %v12844_v38  ;;  %v497_v36 = vmul.f32 %v12844_v38, %v253_v31  ;;  %v1574_v56 = vmul.f32 %v1429_v28, %v1329_v48  ;;  %v2757_v31 = vrot.slane %v12146_v6, %v19306_v21  ;;  %v19407_v48 = vld [vmem:[#allocation7_spill] sm:$0xff] }
 0x1a9   :  { %v12840_v13 = vpop.permute.xlu1 %4228  ;;  %v12848_v61 = vpop.permute.xlu0 %2620  ;;  %v3295_v38 = vrot.slane %v12176_v12, %v19306_v21 }
 0x1aa   :  { %19395 = vst [vmem:[#allocation31_spill] sm:$0xff] %v12840_v13  ;;  %19398 = vst [vmem:[#allocation134_spill] sm:$0xff] %v12848_v61  ;;  %v12862_v13 = vrot.slane %v11934_v27, %v11492_v7  ;;  %v1967_v61 = vrot.slane %v12076_v23, %v19306_v21 }
 0x1ab   :  { %5366 = vrot.lane.b32.xlu1 %v12737_v39, %s11397_s24  ;;  %v19402_v39 = vld [vmem:[#allocation44_spill] sm:$0xff] }
 0x1ac   :  { %5744 = vrot.lane.b32.xlu0 %v12747_v4, %s11399_s25  ;;  %v1867_v50 = vsel %vm1863_vm3, %v19281_v37, %v19402_v39  ;;  %v549_v37 = vrot.slane %v497_v36, %v11495_v8  ;;  %v19409_v36 = vld [vmem:[#allocation26_spill] sm:$0xff] }
 0x1ad   :  { %v12869_v52 = vpop.permute.xlu1 %2616  ;;  %v12872_v30 = vpop.permute.xlu0 %1295  ;;  %v2112_v33 = vmul.f32 %v1967_v61, %v1867_v50  ;;  %v2657_v50 = vsel %vm2652_vm4, %v19322_v42, %v19408_v40 }
 0x1ae   :  { %19403 = vst [vmem:[#allocation20_spill] sm:$0xff] %v12869_v52  ;;  %19404 = vst [vmem:[#allocation12_spill] sm:$0xff] %v12872_v30  ;;  %v1625_v52 = vrot.slane %v1574_v56, %v11495_v8  ;;  %v12891_v30 = vrot.slane %v11934_v27, %v19407_v48  ;;  %v662_v61 = vmul.f32 %v549_v37, %v19409_v36  ;;  %v19410_v56 = vld [vmem:[#allocation11_spill] sm:$0xff] }
 0x1af   :  { %5375 = vrot.lane.b32.xlu1 %v12747_v4, %s11397_s24  ;;  %v3195_v27 = vsel %vm3190_vm5, %v19335_v35, %v19411_v2  ;;  %v2902_v53 = vmul.f32 %v2757_v31, %v2657_v50  ;;  %v3833_v37 = vrot.slane %v12192_v18, %v19306_v21  ;;  %v4371_v31 = vrot.slane %v12214_v24, %v19306_v21  ;;  %v19419_v50 = vld [vmem:[#allocation73_spill] sm:$0xff] }
 0x1b0   :  { %233 = vrot.lane.b32.xlu0 %v12862_v13, %s11394_s2  ;;  %v694_v42 = vadd.f32 %v662_v61, %v19413_v51  ;;  %v1738_v11 = vmul.f32 %v1625_v52, %v19414_v55  ;;  %v19418_v61 = vld [vmem:[#allocation16_spill] sm:$0xff]  ;;  %v3440_v52 = vmul.f32 %v3295_v38, %v3195_v27 }
 0x1b1   :  { %v12879_v58 = vpop.permute.xlu1 %2618  ;;  %v12885_v28 = vpop.permute.xlu0 %3158  ;;  %v2953_v44 = vrot.slane %v2902_v53, %v11495_v8 }
 0x1b2   :  { %19405 = vst [vmem:[#allocation36_spill] sm:$0xff] %v12879_v58  ;;  %19406 = vst [vmem:[#allocation44_spill] sm:$0xff] %v12885_v28  ;;  %v1200_v58 = vmul.f32 %v1087_v19, %v19410_v56  ;;  %v2163_v28 = vrot.slane %v2112_v33, %v11495_v8  ;;  %v19416_v33 = vld [vmem:[#allocation69_spill] sm:$0xff] }
 0x1b3   :  { %5742 = vrot.lane.b32.xlu1 %v12757_v59, %s11399_s25  ;;  %v3733_v0 = vsel %vm3728_vm6, %v19417_v22, %v19416_v33  ;;  %v2383_v22 = vrot.slane %v19300_v45, %v19306_v21 }
 0x1b4   :  { %767 = vrot.lane.b32.xlu0 %v12809_v60, %s11395_s23  ;;  %v1232_v35 = vadd.f32 %v1200_v58, %v694_v42  ;;  %v3978_v43 = vmul.f32 %v3833_v37, %v3733_v0  ;;  %v3066_v42 = vmul.f32 %v2953_v44, %v19316_v3 }
 0x1b5   :  { %v12906_v14 = vpop.permute.xlu1 %3154  ;;  %v12912_v19 = vpop.permute.xlu0 %1833 }
 0x1b6   :  { %19412 = vst [vmem:[#allocation61_spill] sm:$0xff] %v12906_v14  ;;  %19415 = vst [vmem:[#allocation65_spill] sm:$0xff] %v12912_v19  ;;  %v2276_v14 = vmul.f32 %v2163_v28, %v19418_v61  ;;  %v4271_v19 = vsel %vm4266_vm7, %v19352_v9, %v19419_v50  ;;  %v1770_v32 = vadd.f32 %v1738_v11, %v1232_v35 }
 0x1b7   :  { %231 = vrot.lane.b32.xlu1 %v12891_v30, %s11394_s2  ;;  %v3491_v9 = vrot.slane %v3440_v52, %v11495_v8  ;;  %v4516_v28 = vmul.f32 %v4371_v31, %v4271_v19  ;;  %v2528_v11 = vmul.f32 %v2383_v22, %v19299_v26  ;;  %v4029_v53 = vrot.slane %v3978_v43, %v11495_v8 }
 0x1b8   :  { %771 = vrot.lane.b32.xlu0 %v12862_v13, %s11395_s23  ;;  %v2308_v38 = vadd.f32 %v2276_v14, %v1770_v32 }
 0x1b9   :  { %v12927_v16 = vpop.permute.xlu1 %3156  ;;  %v12932_v58 = vpop.permute.xlu0 %3696  ;;  %v3604_v14 = vmul.f32 %v3491_v9, %v19334_v29  ;;  %v4567_v37 = vrot.slane %v4516_v28, %v11495_v8  ;;  %v4142_v44 = vmul.f32 %v4029_v53, %v19343_v49 }
 0x1ba   :  { %19420 = vst [vmem:[#allocation69_spill] sm:$0xff] %v12927_v16  ;;  %19421 = vst [vmem:[#allocation46_spill] sm:$0xff] %v12932_v58  ;;  %v2560_v32 = vadd.f32 %v2528_v11, %v2308_v38  ;;  %v2761_v58 = vrot.slane %v12146_v6, %v19387_v46 }
 0x1bb   :  { %2630 = vrot.lane.b32.xlu1 %v12809_v60, %s11401_s26  ;;  %v4680_v31 = vmul.f32 %v4567_v37, %v19349_v20 }
 0x1bc   :  { %6346 = vrot.lane.b32.xlu0 %v12698_v47, %s11401_s26  ;;  %v3098_v35 = vadd.f32 %v3066_v42, %v2560_v32 }
 0x1bd   :  { %v12939_v27 = vpop.permute.xlu1 %3692  ;;  %v12944_v0 = vpop.permute.xlu0 %4232 }
 0x1be   :  { %19422 = vst [vmem:[#allocation73_spill] sm:$0xff] %v12939_v27  ;;  %19423 = vst [vmem:[#allocation135_spill] sm:$0xff] %v12944_v0  ;;  %v3636_v43 = vadd.f32 %v3604_v14, %v3098_v35  ;;  %v903_v0 = vrot.slane %v12038_v34, %v11492_v7 }
 0x1bf   :  { %769 = vrot.lane.b32.xlu1 %v12891_v30, %s11395_s23 }
 0x1c0   :  { %1305 = vrot.lane.b32.xlu0 %v12809_v60, %s11397_s24  ;;  %v4174_v38 = vadd.f32 %v4142_v44, %v3636_v43 }
 0x1c1   :  { %v12952_v19 = vpop.permute.xlu1 %3694  ;;  %v12955_v52 = vpop.permute.xlu0 %221 }
 0x1c2   :  { %19424 = vst [vmem:[#allocation136_spill] sm:$0xff] %v12952_v19  ;;  %19425 = vst [vmem:[#allocation137_spill] sm:$0xff] %v12955_v52  ;;  %v4712_v28 = vadd.f32 %v4680_v31, %v4174_v38  ;;  %v13006_v31 = vrot.slane %v19396_v63, %v19387_v46 }
 0x1c3   :  { %3168 = vrot.lane.b32.xlu1 %v12809_v60, %s11404_s29 }
 0x1c4   :  { %6350 = vrot.lane.b32.xlu0 %v12747_v4, %s11401_s26  ;;  %v12978_v53 = vmax.f32 %v4712_v28, 0.0  ;;  %19437 = vst [vmem:[#allocation149_spill] sm:$0xff] %v13006_v31  ;;  %v19439_v28 = vld [vmem:[#allocation54_spill] sm:$0xff] }
 0x1c5   :  { %v12962_v22 = vpop.permute.xlu1 %4230  ;;  %v12964_v9 = vpop.permute.xlu0 %225 }
 0x1c6   :  { %19426 = vst [vmem:[#allocation138_spill] sm:$0xff] %v12962_v22  ;;  %19427 = vst [vmem:[#allocation139_spill] sm:$0xff] %v12964_v9  ;;  %v19445_v9 = vld [vmem:[#allocation59_spill] sm:$0xff] }
 0x1c7   :  { %6348 = vrot.lane.b32.xlu1 %v12757_v59, %s11401_s26  ;;  %19430 = vst [vmem:[#allocation142_spill] sm:$0xff] %v12978_v53 }
 0x1c8   :  { %1307 = vrot.lane.b32.xlu0 %v12891_v30, %s11397_s24 }
 0x1c9   :  { %v12970_v11 = vpop.permute.xlu1 %4234  ;;  %v12972_v42 = vpop.permute.xlu0 %759 }
 0x1ca   :  { %19428 = vst [vmem:[#allocation140_spill] sm:$0xff] %v12970_v11  ;;  %19429 = vst [vmem:[#allocation141_spill] sm:$0xff] %v12972_v42  ;;  %v1433_v42 = vrot.slane %v12062_v15, %v19387_v46  ;;  %v19447_v11 = vld [vmem:[#allocation62_spill] sm:$0xff] }
 0x1cb   :  { %6344 = vrot.lane.b32.xlu1 %v12734_v54, %s11401_s26  ;;  %v1330_v22 = vsel %vm1325_vm2, %v19401_v62, %v19447_v11 }
 0x1cc   :  { %3706 = vrot.lane.b32.xlu0 %v12809_v60, %s11405_s3 }
 0x1cd   :  { %v12980_v32 = vpop.permute.xlu1 %223  ;;  %v12982_v14 = vpop.permute.xlu0 %763 }
 0x1ce   :  { %19431 = vst [vmem:[#allocation143_spill] sm:$0xff] %v12980_v32  ;;  %19432 = vst [vmem:[#allocation144_spill] sm:$0xff] %v12982_v14  ;;  %v254_v14 = vsel %vm249_vm1, %v19399_v5, %v19439_v28  ;;  %v13029_v5 = vrot.slane %v19396_v63, %v19407_v48  ;;  %v255_v32 = vsel %vm249_vm1, %v19439_v28, %v19445_v9 }
 0x1cf   :  { %6352 = vrot.lane.b32.xlu1 %v12978_v53, %s11401_s26  ;;  %v899_v28 = vrot.slane %v12038_v34, %v19407_v48 }
 0x1d0   :  { %1845 = vrot.lane.b32.xlu0 %v12891_v30, %s11399_s25  ;;  %19443 = vst [vmem:[#allocation151_spill] sm:$0xff] %v13029_v5 }
 0x1d1   :  { %v12988_v37 = vpop.permute.xlu1 %2622  ;;  %v12990_v35 = vpop.permute.xlu0 %1297 }
 0x1d2   :  { %19433 = vst [vmem:[#allocation145_spill] sm:$0xff] %v12988_v37  ;;  %19434 = vst [vmem:[#allocation146_spill] sm:$0xff] %v12990_v35 }
 0x1d3   :  { %1309 = vrot.lane.b32.xlu1 %v12862_v13, %s11397_s24 }
 0x1d4   :  { %4244 = vrot.lane.b32.xlu0 %v12809_v60, %s11407_s30 }
 0x1d5   :  { %v12996_v44 = vpop.permute.xlu1 %761  ;;  %v12998_v43 = vpop.permute.xlu0 %1301 }
 0x1d6   :  { %19435 = vst [vmem:[#allocation147_spill] sm:$0xff] %v12996_v44  ;;  %19436 = vst [vmem:[#allocation148_spill] sm:$0xff] %v12998_v43  ;;  %v498_v43 = vmul.f32 %v13006_v31, %v254_v14  ;;  %v19441_v44 = vld [vmem:[#allocation58_spill] sm:$0xff]  ;;  %v2387_v14 = vrot.slane %v19300_v45, %v19387_v46 }
 0x1d7   :  { %1843 = vrot.lane.b32.xlu1 %v12809_v60, %s11399_s25  ;;  %v895_v60 = vrot.slane %v12038_v34, %v19387_v46  ;;  %v19450_v34 = vld [vmem:[#allocation56_spill] sm:$0xff]  ;;  %v19451_v31 = vld [vmem:[#allocation66_spill] sm:$0xff] }
 0x1d8   :  { %6717 = vrot.lane.b32.xlu0 %v12757_v59, %s11404_s29  ;;  %v553_v52 = vrot.slane %v498_v43, %v11495_v8  ;;  %v1441_v43 = vrot.slane %v12062_v15, %v11492_v7  ;;  %v13086_v16 = vmul.f32 %v2387_v14, %v19299_v26  ;;  %v1868_v41 = vsel %vm1863_vm3, %v19402_v39, %v19451_v31  ;;  %v19453_v14 = vld [vmem:[#allocation63_spill] sm:$0xff] }
 0x1d9   :  { %v13008_v38 = vpop.permute.xlu1 %3160  ;;  %v13013_v35 = vpop.permute.xlu0 %1835 }
 0x1da   :  { %19438 = vst [vmem:[#allocation150_spill] sm:$0xff] %v13008_v38  ;;  %19440 = vst [vmem:[#allocation54_spill] sm:$0xff] %v13013_v35  ;;  %v792_v38 = vsel %vm787_vm0, %v19394_v57, %v19441_v44  ;;  %v2395_v57 = vrot.slane %v19300_v45, %v11492_v7 }
 0x1db   :  { %1847 = vrot.lane.b32.xlu1 %v12862_v13, %s11399_s25 }
 0x1dc   :  { %7086 = vrot.lane.b32.xlu0 %v12757_v59, %s11405_s3  ;;  %v13095_v27 = vmul.f32 %v2395_v57, %v19299_v26 }
 0x1dd   :  { %v13025_v37 = vpop.permute.xlu1 %1299  ;;  %v13031_v35 = vpop.permute.xlu0 %1839 }
 0x1de   :  { %19442 = vst [vmem:[#allocation58_spill] sm:$0xff] %v13025_v37  ;;  %19444 = vst [vmem:[#allocation152_spill] sm:$0xff] %v13031_v35  ;;  %v1037_v37 = vmul.f32 %v895_v60, %v792_v38  ;;  %v13046_v35 = vrot.slane %v19396_v63, %v11492_v7  ;;  %v1971_v38 = vrot.slane %v12076_v23, %v19387_v46 }
 0x1df   :  { %6715 = vrot.lane.b32.xlu1 %v12698_v47, %s11404_s29  ;;  %v499_v60 = vmul.f32 %v13029_v5, %v255_v32  ;;  %v1979_v32 = vrot.slane %v12076_v23, %v11492_v7  ;;  %v663_v5 = vmul.f32 %v553_v52, %v19409_v36  ;;  %v793_v52 = vsel %vm787_vm0, %v19441_v44, %v19453_v14 }
 0x1e0   :  { %6719 = vrot.lane.b32.xlu0 %v12747_v4, %s11404_s29  ;;  %19446 = vst [vmem:[#allocation59_spill] sm:$0xff] %v13046_v35  ;;  %v1091_v19 = vrot.slane %v1037_v37, %v11495_v8  ;;  %v1038_v21 = vmul.f32 %v899_v28, %v793_v52  ;;  %v4375_v44 = vrot.slane %v12214_v24, %v19387_v46  ;;  %v19462_v52 = vld [vmem:[#allocation75_spill] sm:$0xff] }
 0x1e1   :  { %v13060_v63 = vpop.permute.xlu1 %3698  ;;  %v13069_v62 = vpop.permute.xlu0 %227  ;;  %v695_v10 = vadd.f32 %v663_v5, %v19413_v51 }
 0x1e2   :  { %19448 = vst [vmem:[#allocation62_spill] sm:$0xff] %v13060_v63  ;;  %19449 = vst [vmem:[#allocation153_spill] sm:$0xff] %v13069_v62  ;;  %v256_v63 = vsel %vm249_vm1, %v19445_v9, %v19450_v34  ;;  %v1575_v62 = vmul.f32 %v1433_v42, %v1330_v22  ;;  %v557_v42 = vrot.slane %v499_v60, %v11495_v8  ;;  %v19454_v9 = vld [vmem:[#allocation60_spill] sm:$0xff] }
 0x1e3   :  { %7084 = vrot.lane.b32.xlu1 %v12698_v47, %s11405_s3  ;;  %v500_v22 = vmul.f32 %v13046_v35, %v256_v63  ;;  %v794_v39 = vsel %vm787_vm0, %v19453_v14, %v19454_v9  ;;  %v3837_v60 = vrot.slane %v12192_v18, %v19387_v46  ;;  %v1201_v14 = vmul.f32 %v1091_v19, %v19410_v56  ;;  %v19456_v35 = vld [vmem:[#allocation64_spill] sm:$0xff]  ;;  %v19457_v9 = vld [vmem:[#allocation67_spill] sm:$0xff] }
 0x1e4   :  { %7082 = vrot.lane.b32.xlu0 %v12734_v54, %s11405_s3  ;;  %v1332_v57 = vsel %vm1325_vm2, %v19457_v9, %v19456_v35  ;;  %v1039_v63 = vmul.f32 %v903_v0, %v794_v39  ;;  %v2658_v39 = vsel %vm2652_vm4, %v19408_v40, %v19462_v52  ;;  %v1095_v40 = vrot.slane %v1038_v21, %v11495_v8  ;;  %v13174_v21 = vld [vmem:[%s18633_s0 + $0x18] sm:$0xff] }
 0x1e5   :  { %v13099_v37 = vpop.permute.xlu1 %1837  ;;  %v13109_v1 = vpop.permute.xlu0 %765  ;;  %v561_v19 = vrot.slane %v500_v22, %v11495_v8  ;;  %v1577_v0 = vmul.f32 %v1441_v43, %v1332_v57  ;;  %v1331_v43 = vsel %vm1325_vm2, %v19447_v11, %v19457_v9  ;;  %v19466_v11 = vrot.slane %v12062_v15, %v19407_v48  ;;  %v19467_v9 = vld [vmem:[#allocation96_spill] sm:$0xff] }
 0x1e6   :  { %19452 = vst [vmem:[#allocation66_spill] sm:$0xff] %v13099_v37  ;;  %19455 = vst [vmem:[#allocation63_spill] sm:$0xff] %v13109_v1  ;;  %v1629_v1 = vrot.slane %v1575_v62, %v11495_v8  ;;  %v2113_v37 = vmul.f32 %v1971_v38, %v1868_v41  ;;  %v664_v41 = vmul.f32 %v557_v42, %v19409_v36  ;;  %v19459_v38 = vld [vmem:[#allocation68_spill] sm:$0xff]  ;;  %v19460_v62 = vld [vmem:[#allocation71_spill] sm:$0xff] }
 0x1e7   :  { %6713 = vrot.lane.b32.xlu1 %v12734_v54, %s11404_s29  ;;  %v1870_v35 = vsel %vm1863_vm3, %v19460_v62, %v19459_v38  ;;  %v1233_v42 = vadd.f32 %v1201_v14, %v695_v10  ;;  %v1099_v57 = vrot.slane %v1039_v63, %v11495_v8  ;;  %v665_v10 = vmul.f32 %v561_v19, %v19409_v36  ;;  %v19482_v36 = vld [vmem:[#allocation97_spill] sm:$0xff] }
 0x1e8   :  { %7090 = vrot.lane.b32.xlu0 %v12978_v53, %s11405_s3  ;;  %v1739_v34 = vmul.f32 %v1629_v1, %v19414_v55  ;;  %v2115_v5 = vmul.f32 %v1979_v32, %v1870_v35  ;;  %v696_v1 = vadd.f32 %v664_v41, %v19413_v51  ;;  %v1576_v35 = vmul.f32 %v19466_v11, %v1331_v43 }
 0x1e9   :  { %v13132_v54 = vpop.permute.xlu1 %4236  ;;  %v13140_v28 = vpop.permute.xlu0 %2628  ;;  %v1869_v32 = vsel %vm1863_vm3, %v19451_v31, %v19460_v62  ;;  %v3734_v63 = vsel %vm3728_vm6, %v19416_v33, %v19467_v9  ;;  %v1203_v11 = vmul.f32 %v1099_v57, %v19410_v56  ;;  %v19470_v62 = vld [vmem:[#allocation102_spill] sm:$0xff] }
 0x1ea   :  { %19458 = vst [vmem:[#allocation67_spill] sm:$0xff] %v13132_v54  ;;  %19461 = vst [vmem:[#allocation71_spill] sm:$0xff] %v13140_v28  ;;  %v2167_v28 = vrot.slane %v2113_v37, %v11495_v8  ;;  %v19463_v54 = vld [vmem:[#allocation81_spill] sm:$0xff]  ;;  %v2903_v37 = vmul.f32 %v2761_v58, %v2658_v39  ;;  %v1637_v58 = vrot.slane %v1577_v0, %v11495_v8  ;;  %v19468_v39 = vld [vmem:[#allocation74_spill] sm:$0xff] }
 0x1eb   :  { %6721 = vrot.lane.b32.xlu1 %v12978_v53, %s11404_s29  ;;  %v3196_v22 = vsel %vm3190_vm5, %v19411_v2, %v19463_v54  ;;  %v13178_v2 = vrot.slane %v13174_v21, %v11495_v8  ;;  %v1771_v19 = vadd.f32 %v1739_v34, %v1233_v42  ;;  %v1202_v0 = vmul.f32 %v1095_v40, %v19410_v56 }
 0x1ec   :  { %2632 = vrot.lane.b32.xlu0 %v12891_v30, %s11401_s26  ;;  %v2277_v41 = vmul.f32 %v2167_v28, %v19418_v61  ;;  %v3441_v43 = vmul.f32 %v3299_v25, %v3196_v22  ;;  %v2175_v31 = vrot.slane %v2115_v5, %v11495_v8  ;;  %v4272_v33 = vsel %vm4266_vm7, %v19419_v50, %v19470_v62  ;;  %v19474_v25 = vld [vmem:[#allocation92_spill] sm:$0xff] }
 0x1ed   :  { %v13163_v38 = vpop.permute.xlu1 %2624  ;;  %v13167_v14 = vpop.permute.xlu0 %1303  ;;  %v19472_v34 = vrot.slane %v12076_v23, %v19407_v48  ;;  %v2957_v42 = vrot.slane %v2903_v37, %v11495_v8  ;;  %v3979_v40 = vmul.f32 %v3837_v60, %v3734_v63  ;;  %v697_v50 = vadd.f32 %v665_v10, %v19413_v51  ;;  %v19477_v63 = vld [vmem:[#allocation94_spill] sm:$0xff] }
 0x1ee   :  { %19464 = vst [vmem:[#allocation75_spill] sm:$0xff] %v13163_v38  ;;  %19465 = vst [vmem:[#allocation81_spill] sm:$0xff] %v13167_v14  ;;  %v19469_v14 = vld [vmem:[#allocation77_spill] sm:$0xff]  ;;  %v1633_v5 = vrot.slane %v1576_v35, %v11495_v8  ;;  %v19476_v23 = vrot.slane %v12146_v6, %v11492_v7  ;;  %v3495_v60 = vrot.slane %v3441_v43, %v11495_v8 }
 0x1ef   :  { %7088 = vrot.lane.b32.xlu1 %v12747_v4, %s11405_s3  ;;  %v2660_v15 = vsel %vm2652_vm4, %v19469_v14, %v19468_v39  ;;  %v2114_v28 = vmul.f32 %v19472_v34, %v1869_v32  ;;  %v19473_v39 = vld [vmem:[#allocation78_spill] sm:$0xff]  ;;  %v2309_v32 = vadd.f32 %v2277_v41, %v1771_v19  ;;  %v19478_v34 = vld [vmem:[#allocation100_spill] sm:$0xff]  ;;  %v1234_v10 = vadd.f32 %v1202_v0, %v696_v1  ;;  %v19481_v43 = vld [vmem:[#allocation105_spill] sm:$0xff] }
 0x1f0   :  { %2634 = vrot.lane.b32.xlu0 %v12862_v13, %s11401_s26  ;;  %v3198_v22 = vsel %vm3190_vm5, %v19474_v25, %v19473_v39  ;;  %v2905_v37 = vmul.f32 %v19476_v23, %v2660_v15  ;;  %v4517_v39 = vmul.f32 %v4375_v44, %v4272_v33  ;;  %v1235_v51 = vadd.f32 %v1203_v11, %v697_v50 }
 0x1f1   :  { %v13202_v38 = vpop.permute.xlu1 %2626  ;;  %v13211_v57 = vpop.permute.xlu0 %3166  ;;  %v2279_v35 = vmul.f32 %v2175_v31, %v19418_v61  ;;  %v2171_v23 = vrot.slane %v2114_v28, %v11495_v8  ;;  %v3067_v19 = vmul.f32 %v2957_v42, %v19316_v3  ;;  %v4033_v41 = vrot.slane %v3979_v40, %v11495_v8 }
 0x1f2   :  { %19471 = vst [vmem:[#allocation96_spill] sm:$0xff] %v13202_v38  ;;  %19475 = vst [vmem:[#allocation77_spill] sm:$0xff] %v13211_v57  ;;  %v1741_v38 = vmul.f32 %v1637_v58, %v19414_v55  ;;  %v3736_v57 = vsel %vm3728_vm6, %v19478_v34, %v19477_v63  ;;  %v19479_v58 = vrot.slane %v12176_v12, %v11492_v7 }
 0x1f3   :  { %235 = vrot.lane.b32.xlu1 %v13178_v2, %s11394_s2  ;;  %v4274_v44 = vsel %vm4266_vm7, %v19482_v36, %v19481_v43  ;;  %v2659_v11 = vsel %vm2652_vm4, %v19462_v52, %v19469_v14  ;;  %v2965_v31 = vrot.slane %v2905_v37, %v11495_v8  ;;  %v19483_v33 = vrot.slane %v12192_v18, %v11492_v7  ;;  %v10699_v52 = vld [vmem:[%s18635_s1 + $0x1] ss:$8 sm:$0xf0] }
 0x1f4   :  { %3170 = vrot.lane.b32.xlu0 %v12891_v30, %s11404_s29  ;;  %v3443_v56 = vmul.f32 %v19479_v58, %v3198_v22  ;;  %v1773_v0 = vadd.f32 %v1741_v38, %v1235_v51  ;;  %v1740_v42 = vmul.f32 %v1633_v5, %v19414_v55  ;;  %v2561_v22 = vadd.f32 %v13086_v16, %v2309_v32  ;;  %v10698_v38 = vld [vmem:[%s18635_s1 + $0x1] ss:$8 sm:$0xf] }
 0x1f5   :  { %v13231_v15 = vpop.permute.xlu1 %3162  ;;  %v13239_v1 = vpop.permute.xlu0 %4809  ;;  %v3981_v28 = vmul.f32 %v19483_v33, %v3736_v57  ;;  %v3605_v40 = vmul.f32 %v3495_v60, %v19334_v29  ;;  %v4571_v51 = vrot.slane %v4517_v39, %v11495_v8  ;;  %v3197_v57 = vsel %vm3190_vm5, %v19463_v54, %v19474_v25 }
 0x1f6   :  { %19480 = vst [vmem:[#allocation102_spill] sm:$0xff] %v13231_v15  ;;  %v2311_v14 = vadd.f32 %v2279_v35, %v1773_v0  ;;  %v3503_v50 = vrot.slane %v3443_v56, %v11495_v8  ;;  %v19484_v16 = vrot.slane %v12214_v24, %v11492_v7  ;;  %v2278_v37 = vmul.f32 %v2171_v23, %v19418_v61 }
 0x1f7   :  { %773 = vrot.lane.b32.xlu1 %v13178_v2, %s11395_s23  ;;  %v3099_v32 = vadd.f32 %v3067_v19, %v2561_v22  ;;  %v19486_v60 = vrot.slane %v12146_v6, %v19407_v48  ;;  %v4143_v35 = vmul.f32 %v4033_v41, %v19343_v49  ;;  %v3069_v54 = vmul.f32 %v2965_v31, %v19316_v3 }
 0x1f8   :  { %3172 = vrot.lane.b32.xlu0 %v12862_v13, %s11404_s29  ;;  %v4519_v5 = vmul.f32 %v19484_v16, %v4274_v44  ;;  %v3735_v56 = vsel %vm3728_vm6, %v19467_v9, %v19478_v34  ;;  %v4041_v25 = vrot.slane %v3981_v28, %v11495_v8  ;;  %v13287_v6 = vor.u32 %v10699_v52, %v10698_v38 }
 0x1f9   :  { %v13269_v39 = vpop.permute.xlu1 %3164  ;;  %v2904_v58 = vmul.f32 %v19486_v60, %v2659_v11  ;;  %v13276_v0 = vpop.permute.xlu0 %5002  ;;  %v1772_v23 = vadd.f32 %v1740_v42, %v1234_v10  ;;  %v3637_v19 = vadd.f32 %v3605_v40, %v3099_v32  ;;  %v19488_v41 = vrot.slane %v12176_v12, %v19407_v48 }
 0x1fa   :  { %19485 = vst [vmem:[#allocation92_spill] sm:$0xff] %v13269_v39  ;;  %19487 = vst [vmem:[#allocation94_spill] sm:$0xff] %v13287_v6  ;;  %v4681_v11 = vmul.f32 %v4571_v51, %v19349_v20  ;;  %v2563_v31 = vadd.f32 %v13095_v27, %v2311_v14  ;;  %v3607_v33 = vmul.f32 %v3503_v50, %v19334_v29 }
 0x1fb   :  { %2636 = vrot.lane.b32.xlu1 %v13178_v2, %s11401_s26  ;;  %v3442_v44 = vmul.f32 %v19488_v41, %v3197_v57  ;;  %v4273_v9 = vsel %vm4266_vm7, %v19470_v62, %v19482_v36  ;;  %v4579_v34 = vrot.slane %v4519_v5, %v11495_v8  ;;  %v2391_v10 = vrot.slane %v19300_v45, %v19407_v48  ;;  %v19491_v45 = vld [vmem:[#allocation5_spill] sm:$0xff] }
 0x1fc   :  { %4815 = vrot.lane.b32.xlu0 %v12978_v53, %s11394_s2  ;;  %v2961_v42 = vrot.slane %v2904_v58, %v11495_v8  ;;  %v4175_v12 = vadd.f32 %v4143_v35, %v3637_v19  ;;  %v19489_v22 = vrot.slane %v12192_v18, %v19407_v48  ;;  %v2310_v51 = vadd.f32 %v2278_v37, %v1772_v23 }
 0x1fd   :  { %v4808_v28 = vpop.permute.xlu1 %4807  ;;  %v13305_v27 = vpop.permute.xlu0 %4773  ;;  %v3101_v36 = vadd.f32 %v3069_v54, %v2563_v31  ;;  %v4145_v62 = vmul.f32 %v4041_v25, %v19343_v49  ;;  %v5149_v38 = vrot.slane %v13287_v6, %v19491_v45  ;;  %v3499_v52 = vrot.slane %v3442_v44, %v11495_v8 }
 0x1fe   :  { %v3980_v40 = vmul.f32 %v19489_v22, %v3735_v56  ;;  %19490 = vst [vmem:[#allocation100_spill] sm:$0xff] %v13305_v27  ;;  %v19492_v18 = vrot.slane %v12214_v24, %v19407_v48  ;;  %v4713_v57 = vadd.f32 %v4681_v11, %v4175_v12  ;;  %v4869_v50 = vsel %vm249_vm1, %v4808_v28, %v13239_v1  ;;  %v19494_v56 = vld [vmem:[#allocation88_spill] sm:$0xff] }
 0x1ff   :  { %1311 = vrot.lane.b32.xlu1 %v13178_v2, %s11397_s24  ;;  %v3639_v16 = vadd.f32 %v3607_v33, %v3101_v36  ;;  %v4683_v5 = vmul.f32 %v4579_v34, %v19349_v20  ;;  %v2530_v32 = vmul.f32 %v2391_v10, %v19299_v26  ;;  %v3068_v60 = vmul.f32 %v2961_v42, %v19316_v3 }
 0x200   :  { %5008 = vrot.lane.b32.xlu0 %v12978_v53, %s11395_s23  ;;  %v4518_v14 = vmul.f32 %v19492_v18, %v4273_v9  ;;  %v4037_v58 = vrot.slane %v3980_v40, %v11495_v8  ;;  %v4934_v25 = vmul.f32 %v4869_v50, %v19494_v56  ;;  %v3606_v41 = vmul.f32 %v3499_v52, %v19334_v29 }
 0x201   :  { %v5001_v37 = vpop.permute.xlu1 %5000  ;;  %v13324_v35 = vpop.permute.xlu0 %4813  ;;  %v4177_v54 = vadd.f32 %v4145_v62, %v3639_v16  ;;  %v2562_v19 = vadd.f32 %v2530_v32, %v2310_v51  ;;  %v13335_v11 = vmax.f32 %v4713_v57, 0.0  ;;  %v4932_v18 = vsel %vm249_vm1, %v13305_v27, %v4808_v28  ;;  %v10669_v27 = vld [vmem:[%s18635_s1 + $0x45] ss:$8 sm:$0xf0] }
 0x202   :  { %19493 = vst [vmem:[#allocation105_spill] sm:$0xff] %v13324_v35  ;;  %v5062_v24 = vsel %vm787_vm0, %v5001_v37, %v13276_v0  ;;  %v4575_v44 = vrot.slane %v4518_v14, %v11495_v8  ;;  %v4144_v10 = vmul.f32 %v4037_v58, %v19343_v49  ;;  %v5157_v28 = vrot.slane %v13287_v6, %v11527_v17 }
 0x203   :  { %3174 = vrot.lane.b32.xlu1 %v13178_v2, %s11404_s29  ;;  %v5303_v23 = vmul.f32 %v5149_v38, %v5062_v24  ;;  %19495 = vst [vmem:[#allocation97_spill] sm:$0xff] %v13335_v11  ;;  %v4715_v31 = vadd.f32 %v4683_v5, %v4177_v54  ;;  %v3100_v34 = vadd.f32 %v3068_v60, %v2562_v19  ;;  %v19500_v5 = vld [vmem:[#allocation87_spill] sm:$0xff]  ;;  %v19501_v24 = vld [vmem:[#allocation6_spill] sm:$0xff] }
 0x204   :  { %7453 = vrot.lane.b32.xlu0 %v12698_v47, %s11407_s30  ;;  %v4682_v22 = vmul.f32 %v4575_v44, %v19349_v20  ;;  %v5145_v38 = vrot.slane %v13287_v6, %v11495_v8  ;;  %v4933_v32 = vmul.f32 %v4932_v18, %v19500_v5  ;;  %v5153_v54 = vrot.slane %v13287_v6, %v19501_v24  ;;  %v10663_v18 = vld [vmem:[%s18635_s1 + $0x84] ss:$8 sm:$0xf0]  ;;  %v10629_v5 = vld [vmem:[%s18635_s1 + $0x40] ss:$8 sm:$0xf0] }
 0x205   :  { %v13337_v33 = vpop.permute.xlu1 %3700  ;;  %v10969_v9 = vpack.c.bf16 %v5303_v23, %v4934_v25  ;;  %v5005_v42 = vpop.permute.xlu0 %5004  ;;  %v3638_v12 = vadd.f32 %v3606_v41, %v3100_v34  ;;  %v13345_v40 = vmax.f32 %v4715_v31, 0.0  ;;  %v19504_v41 = vld [vmem:[#allocation84_spill] sm:$0xff]  ;;  %v19505_v31 = vld [vmem:[#allocation90_spill] sm:$0xff] }
 0x206   :  { %19496 = vst [vmem:[#allocation88_spill] sm:$0xff] %v13337_v33 }
 0x207   :  { %4817 = vrot.lane.b32.xlu1 %v13335_v11, %s11394_s2  ;;  %10970 = vmatprep.subr.bf16.mxu0 %v10969_v9  ;;  %v4176_v36 = vadd.f32 %v4144_v10, %v3638_v12 }
 0x208   :  { %3708 = vrot.lane.b32.xlu0 %v12891_v30, %s11405_s3 }
 0x209   :  { %v4812_v51 = vpop.permute.xlu1 %4811  ;;  %v13347_v62 = vpop.permute.xlu0 %1841  ;;  %v4714_v52 = vadd.f32 %v4682_v22, %v4176_v36  ;;  %v10660_v22 = vld [vmem:[%s18635_s1 + $0x44] ss:$8 sm:$0xf] }
 0x20a   :  { %19497 = vst [vmem:[#allocation154_spill] sm:$0xff] %v13347_v62  ;;  %v4870_v16 = vsel %vm249_vm1, %v13239_v1, %v4812_v51  ;;  %v5063_v1 = vsel %vm787_vm0, %v13276_v0, %v5005_v42 }
 0x20b   :  { %5010 = vrot.lane.b32.xlu1 %v13335_v11, %s11395_s23  ;;  %v13372_v58 = vmax.f32 %v4714_v52, 0.0  ;;  %v4935_v44 = vmul.f32 %v4870_v16, %v19504_v41  ;;  %v5304_v34 = vmul.f32 %v5153_v54, %v5063_v1  ;;  %v10662_v52 = vld [vmem:[%s18635_s1 + $0x84] ss:$8 sm:$0xf] }
 0x20c   :  { %4821 = vrot.lane.b32.xlu0 %v13345_v40, %s11394_s2  ;;  %v10628_v16 = vld [vmem:[%s18635_s1 + $0x40] ss:$8 sm:$0xf]  ;;  %v10707_v54 = vld [vmem:[%s18635_s1 + $0x2] ss:$8 sm:$0xf0]  ;;  %v2347_v1 = vor.u32 %v10663_v18, %v10662_v52 }
 0x20d   :  { %v13357_v14 = vpop.permute.xlu1 %4997  ;;  %v13361_v50 = vpop.permute.xlu0 %3704  ;;  %v10987_v36 = vpack.c.bf16 %v5304_v34, %v4935_v44  ;;  %v13441_v41 = vor.u32 %v10629_v5, %v10628_v16  ;;  %v10637_v44 = vld [vmem:[%s18635_s1 + $0x41] ss:$8 sm:$0xf0]  ;;  %v18864_v16 = vmov 0.0  }
 0x20e   :  { %19498 = vst [vmem:[#allocation155_spill] sm:$0xff] %v13357_v14  ;;  %v5125_v57 = vsel %vm787_vm0, %v13357_v14, %v5001_v37  ;;  %19499 = vst [vmem:[#allocation156_spill] sm:$0xff] %v13361_v50  ;;  %v4871_v37 = vsel %vm249_vm1, %v4812_v51, %v13324_v35  ;;  %v11381_v52 = vld [vmem:[%s18633_s0 + $0x10] sm:$0xff]  ;;  %8193 = vmatprep.mubr.f32.mxu0 %v18864_v16  ;;  %8270 = vmatprep.mubr.f32.mxu1 %v18864_v16  ;;  %v19519_v50 = vld [vmem:[#allocation60_spill] sm:$0xff] }
 0x20f   :  { %7455 = vrot.lane.b32.xlu1 %v12757_v59, %s11407_s30  ;;  %v5302_v60 = vmul.f32 %v5145_v38, %v5125_v57  ;;  %v4936_v9 = vmul.f32 %v4871_v37, %v19505_v31  ;;  %v10706_v37 = vld [vmem:[%s18635_s1 + $0x2] ss:$8 sm:$0xf]  ;;  %v13474_v18 = vmul.f32 %v11381_v52, %v2347_v1  ;;  %v10652_v16 = vld [vmem:[%s18635_s1 + $0x43] ss:$8 sm:$0xf] }
 0x210   :  { %5014 = vrot.lane.b32.xlu0 %v13345_v40, %s11395_s23  ;;  %v10644_v31 = vld [vmem:[%s18635_s1 + $0x42] ss:$8 sm:$0xf] }
 0x211   :  { %v13380_v56 = vpop.permute.xlu1 %5006  ;;  %v10971_v25 = vpack.c.bf16 %v5302_v60, %v4933_v32  ;;  %v13382_v23 = vpop.permute.xlu0 %4240  ;;  %v19508_v60 = vld [vmem:[#allocation49_spill] sm:$0xff] }
 0x212   :  { %19502 = vst [vmem:[#allocation87_spill] sm:$0xff] %v13380_v56  ;;  %19503 = vst [vmem:[#allocation157_spill] sm:$0xff] %v13382_v23  ;;  %v5064_v19 = vsel %vm787_vm0, %v5005_v42, %v13380_v56  ;;  %v10661_v42 = vld [vmem:[%s18635_s1 + $0x44] ss:$8 sm:$0xf0] }
 0x213   :  { %4819 = vrot.lane.b32.xlu1 %v13372_v58, %s11394_s2  ;;  %10972 = vmatpush1.bf16.msra.mxu0 %v10971_v25  ;;  %v5305_v0 = vmul.f32 %v5157_v28, %v5064_v19  ;;  %v2343_v38 = vor.u32 %v10661_v42, %v10660_v22  ;;  %v10636_v28 = vld [vmem:[%s18635_s1 + $0x41] ss:$8 sm:$0xf]  ;;  %v10714_v25 = vld [vmem:[%s18635_s1 + $0x3] ss:$8 sm:$0xf]  ;;  %v13465_v42 = vor.u32 %v10707_v54, %v10706_v37 }
 0x214   :  { %7457 = vrot.lane.b32.xlu0 %v12747_v4, %s11407_s30  ;;  %v10715_v19 = vld [vmem:[%s18635_s1 + $0x3] ss:$8 sm:$0xf0]  ;;  %v13482_v37 = vrot.slane %v13441_v41, %v11495_v8 }
 0x215   :  { %v13392_v10 = vpop.permute.xlu1 %3702  ;;  %v10985_v12 = vpack.c.bf16 %v5305_v0, %v4936_v9  ;;  %v13400_v51 = vpop.permute.xlu0 %5369  ;;  %v11380_v9 = vld [vmem:[%s18633_s0 + $0x8] sm:$0xff]  ;;  %19511 = vst [vmem:[#allocation160_spill] sm:$0xff] %v13465_v42 }
 0x216   :  { %19506 = vst [vmem:[#allocation84_spill] sm:$0xff] %v13392_v10  ;;  %v13452_v0 = vmul.f32 %v11380_v9, %v2343_v38  ;;  %v13469_v38 = vor.u32 %v10637_v44, %v10636_v28  ;;  %v19513_v5 = vld [vmem:[#allocation93_spill] sm:$0xff]  ;;  %v19516_v44 = vld [vmem:[#allocation56_spill] sm:$0xff] }
 0x217   :  { %5012 = vrot.lane.b32.xlu1 %v13372_v58, %s11395_s23  ;;  %10986 = vmatprep.subr.bf16.mxu1 %v10985_v12  ;;  %v10645_v12 = vld [vmem:[%s18635_s1 + $0x42] ss:$8 sm:$0xf0]  ;;  %19514 = vst [vmem:[#allocation93_spill] sm:$0xff] %v13482_v37 }
 0x218   :  { %1849 = vrot.lane.b32.xlu0 %v13178_v2, %s11399_s25  ;;  %10988 = vmatpush1.bf16.msra.mxu1 %v10987_v36  ;;  %v13467_v36 = vor.u32 %v10715_v19, %v10714_v25  ;;  %v13484_v28 = vor.u32 %v10645_v12, %v10644_v31  ;;  %v19515_v19 = vld [vmem:[#allocation70_spill] sm:$0xff]  ;;  %v5518_v12 = vrot.slane %v13465_v42, %v19491_v45 }
 0x219   :  { %v13412_v57 = vpop.permute.xlu1 %4238  ;;  %v13420_v32 = vpop.permute.xlu0 %5738  ;;  %v257_v52 = vsel %vm249_vm1, %v19516_v44, %v19515_v19  ;;  %v10653_v31 = vld [vmem:[%s18635_s1 + $0x43] ss:$8 sm:$0xf0]  ;;  %v907_v9 = vrot.slane %v13469_v38, %v11495_v8 }
 0x21a   :  { %19507 = vst [vmem:[#allocation90_spill] sm:$0xff] %v13412_v57  ;;  %19512 = vst [vmem:[#allocation161_spill] sm:$0xff] %v13467_v36  ;;  %v19517_v44 = vld [vmem:[#allocation9_spill] sm:$0xff]  ;;  %v5887_v1 = vrot.slane %v13467_v36, %v19491_v45  ;;  %v1445_v23 = vrot.slane %v13484_v28, %v11495_v8  ;;  %v13536_v10 = vor.u32 %v10653_v31, %v10652_v16 }
 0x21b   :  { %7451 = vrot.lane.b32.xlu1 %v19508_v60, %s11407_s30  ;;  %v10677_v16 = vld [vmem:[%s18635_s1 + $0x46] ss:$8 sm:$0xf0]  ;;  %v5883_v39 = vrot.slane %v13467_v36, %v11495_v8  ;;  %v10685_v31 = vld [vmem:[%s18635_s1 + $0x47] ss:$8 sm:$0xf0] }
 0x21c   :  { %3712 = vrot.lane.b32.xlu0 %v13178_v2, %s11405_s3  ;;  %19520 = vst [vmem:[#allocation56_spill] sm:$0xff] %v13536_v10  ;;  %v19526_v60 = vld [vmem:[#allocation83_spill] sm:$0xff] }
 0x21d   :  { %v13454_v34 = vpop.permute.xlu1 %4242  ;;  %v13459_v22 = vpop.permute.xlu0 %229 }
 0x21e   :  { %19509 = vst [vmem:[#allocation158_spill] sm:$0xff] %v13454_v34  ;;  %19510 = vst [vmem:[#allocation159_spill] sm:$0xff] %v13459_v22  ;;  %v501_v22 = vmul.f32 %v13482_v37, %v257_v52  ;;  %v19518_v34 = vld [vmem:[#allocation72_spill] sm:$0xff] }
 0x21f   :  { %7459 = vrot.lane.b32.xlu1 %v12978_v53, %s11407_s30  ;;  %v795_v57 = vsel %vm787_vm0, %v19519_v50, %v19518_v34  ;;  %v19521_v52 = vld [vmem:[#allocation76_spill] sm:$0xff]  ;;  %v13578_v34 = vrot.slane %v13174_v21, %v19491_v45 }
 0x220   :  { %4248 = vrot.lane.b32.xlu0 %v12862_v13, %s11407_s30  ;;  %v19522_v37 = vld [vmem:[#allocation64_spill] sm:$0xff] }
 0x221   :  { %v13488_v25 = vpop.permute.xlu1 %5371  ;;  %v13507_v54 = vpop.permute.xlu0 %5373  ;;  %v1333_v33 = vsel %vm1325_vm2, %v19522_v37, %v19521_v52  ;;  %v10676_v50 = vld [vmem:[%s18635_s1 + $0x46] ss:$8 sm:$0xf]  ;;  %v10684_v37 = vld [vmem:[%s18635_s1 + $0x47] ss:$8 sm:$0xf]  ;;  %v5514_v52 = vrot.slane %v13465_v42, %v11495_v8 }
 0x222   :  { %v5431_v14 = vsel %vm1325_vm2, %v13400_v51, %v13488_v25 }
 0x223   :  { %3710 = vrot.lane.b32.xlu1 %v12862_v13, %s11405_s3  ;;  %v10668_v13 = vld [vmem:[%s18635_s1 + $0x45] ss:$8 sm:$0xf]  ;;  %v5672_v56 = vmul.f32 %v5518_v12, %v5431_v14  ;;  %v565_v14 = vrot.slane %v501_v22, %v11495_v8  ;;  %v1983_v12 = vrot.slane %v13536_v10, %v11495_v8 }
 0x224   :  { %5377 = vrot.lane.b32.xlu0 %v12978_v53, %s11397_s24  ;;  %v13580_v19 = vor.u32 %v10669_v27, %v10668_v13  ;;  %v13597_v13 = vor.u32 %v10685_v31, %v10684_v37  ;;  %v10693_v37 = vld [vmem:[%s18635_s1 + $0x140] ss:$8 sm:$0xf0] }
 0x225   :  { %v13544_v62 = vpop.permute.xlu1 %5740  ;;  %v13562_v35 = vpop.permute.xlu0 %5735 }
 0x226   :  { %v5800_v15 = vsel %vm1863_vm3, %v13420_v32, %v13544_v62  ;;  %19523 = vst [vmem:[#allocation9_spill] sm:$0xff] %v13562_v35  ;;  %19524 = vst [vmem:[#allocation60_spill] sm:$0xff] %v13580_v19 }
 0x227   :  { %4246 = vrot.lane.b32.xlu1 %v12891_v30, %s11407_s30  ;;  %v6041_v6 = vmul.f32 %v5887_v1, %v5800_v15  ;;  %v1040_v30 = vmul.f32 %v907_v9, %v795_v57  ;;  %v5863_v15 = vsel %vm1863_vm3, %v13562_v35, %v13420_v32  ;;  %v1578_v1 = vmul.f32 %v1445_v23, %v1333_v33  ;;  %v19527_v57 = vld [vmem:[#allocation68_spill] sm:$0xff] }
 0x228   :  { %5746 = vrot.lane.b32.xlu0 %v12978_v53, %s11399_s25  ;;  %v1871_v27 = vsel %vm1863_vm3, %v19527_v57, %v19526_v60  ;;  %v13595_v9 = vor.u32 %v10677_v16, %v10676_v50  ;;  %19529 = vst [vmem:[#allocation162_spill] sm:$0xff] %v13597_v13  ;;  %v6040_v33 = vmul.f32 %v5883_v39, %v5863_v15  ;;  %v19531_v16 = vld [vmem:[#allocation26_spill] sm:$0xff]  ;;  %v19533_v57 = vld [vmem:[#allocation109_spill] sm:$0xff] }
 0x229   :  { %v13590_v53 = vpop.permute.xlu1 %5366  ;;  %v10973_v4 = vpack.c.bf16 %v6041_v6, %v5672_v56  ;;  %v13602_v22 = vpop.permute.xlu0 %5744  ;;  %v1103_v23 = vrot.slane %v1040_v30, %v11495_v8  ;;  %v2773_v50 = vrot.slane %v13580_v19, %v11495_v8  ;;  %v666_v31 = vmul.f32 %v565_v14, %v19531_v16  ;;  %v19539_v16 = vld [vmem:[#allocation29_spill] sm:$0xff] }
 0x22a   :  { %19525 = vst [vmem:[#allocation64_spill] sm:$0xff] %v13590_v53  ;;  %19528 = vst [vmem:[#allocation68_spill] sm:$0xff] %v13595_v9  ;;  %v5494_v32 = vsel %vm1325_vm2, %v13590_v53, %v13400_v51  ;;  %v1641_v39 = vrot.slane %v1578_v1, %v11495_v8  ;;  %v3311_v14 = vrot.slane %v13595_v9, %v11495_v8  ;;  %v19536_v51 = vld [vmem:[#allocation11_spill] sm:$0xff] }
 0x22b   :  { %19530 = vst [vmem:[#allocation163_spill] sm:$0xff] %v13602_v22  ;;  %4250 = vrot.lane.b32.xlu1 %v13178_v2, %s11407_s30  ;;  %v5671_v56 = vmul.f32 %v5514_v52, %v5494_v32  ;;  %10974 = vmatprep.subr.bf16.mxu0 %v10973_v4  ;;  %v2116_v52 = vmul.f32 %v1983_v12, %v1871_v27  ;;  %v10692_v4 = vld [vmem:[%s18635_s1 + $0x140] ss:$8 sm:$0xf] }
 0x22c   :  { %237 = vrot.lane.b32.xlu0 %v13578_v34, %s11394_s2  ;;  %v19534_v32 = vld [vmem:[#allocation74_spill] sm:$0xff]  ;;  %v3849_v1 = vrot.slane %v13597_v13, %v11495_v8  ;;  %v5522_v12 = vrot.slane %v13465_v42, %v19501_v24  ;;  %v1204_v6 = vmul.f32 %v1103_v23, %v19536_v51  ;;  %v13649_v59 = vor.u32 %v10693_v37, %v10692_v4 }
 0x22d   :  { %v13625_v30 = vpop.permute.xlu1 %5375  ;;  %v10975_v15 = vpack.c.bf16 %v6040_v33, %v5671_v56  ;;  %v2661_v2 = vsel %vm2652_vm4, %v19534_v32, %v19533_v57  ;;  %v13636_v27 = vpop.permute.xlu0 %233  ;;  %v5526_v33 = vrot.slane %v13465_v42, %v11527_v17  ;;  %v5891_v56 = vrot.slane %v13467_v36, %v19501_v24  ;;  %v19540_v23 = vld [vmem:[#allocation78_spill] sm:$0xff] }
 0x22e   :  { %19532 = vst [vmem:[#allocation164_spill] sm:$0xff] %v13625_v30  ;;  %19535 = vst [vmem:[#allocation74_spill] sm:$0xff] %v13636_v27  ;;  %v5895_v32 = vrot.slane %v13467_v36, %v11527_v17  ;;  %v5432_v35 = vsel %vm1325_vm2, %v13488_v25, %v13507_v54  ;;  %v5433_v53 = vsel %vm1325_vm2, %v13507_v54, %v13625_v30  ;;  %v19538_v27 = vld [vmem:[#allocation28_spill] sm:$0xff] }
 0x22f   :  { %5379 = vrot.lane.b32.xlu1 %v13335_v11, %s11397_s24  ;;  %10976 = vmatpush1.bf16.msra.mxu0 %v10975_v15  ;;  %19537 = vst [vmem:[#allocation165_spill] sm:$0xff] %v13649_v59  ;;  %v698_v15 = vadd.f32 %v666_v31, %v19538_v27  ;;  %v1742_v42 = vmul.f32 %v1641_v39, %v19414_v55 }
 0x230   :  { %5383 = vrot.lane.b32.xlu0 %v13345_v40, %s11397_s24  ;;  %v2179_v57 = vrot.slane %v2116_v52, %v11495_v8  ;;  %v2906_v60 = vmul.f32 %v2773_v50, %v2661_v2  ;;  %v3199_v4 = vsel %vm3190_vm5, %v19540_v23, %v19539_v16  ;;  %v13673_v54 = vrot.slane %v13174_v21, %v11527_v17  ;;  %v19543_v23 = vld [vmem:[#allocation91_spill] sm:$0xff] }
 0x231   :  { %v5743_v36 = vpop.permute.xlu1 %5742  ;;  %v13667_v51 = vpop.permute.xlu0 %767  ;;  %v5673_v50 = vmul.f32 %v5522_v12, %v5432_v35  ;;  %v5674_v2 = vmul.f32 %v5526_v33, %v5433_v53  ;;  %v1236_v52 = vadd.f32 %v1204_v6, %v698_v15  ;;  %v4387_v53 = vrot.slane %v13649_v59, %v11495_v8 }
 0x232   :  { %v5801_v37 = vsel %vm1863_vm3, %v13544_v62, %v5743_v36  ;;  %v5802_v25 = vsel %vm1863_vm3, %v5743_v36, %v13602_v22  ;;  %19541 = vst [vmem:[#allocation29_spill] sm:$0xff] %v13667_v51  ;;  %19542 = vst [vmem:[#allocation78_spill] sm:$0xff] %v13673_v54  ;;  %v10722_v62 = vld [vmem:[%s18635_s1 + $0x4] ss:$8 sm:$0xf]  ;;  %v3737_v51 = vsel %vm3728_vm6, %v19477_v63, %v19543_v23 }
 0x233   :  { %5748 = vrot.lane.b32.xlu1 %v13335_v11, %s11399_s25  ;;  %v6042_v31 = vmul.f32 %v5891_v56, %v5801_v37  ;;  %v6043_v39 = vmul.f32 %v5895_v32, %v5802_v25  ;;  %v10723_v36 = vld [vmem:[%s18635_s1 + $0x4] ss:$8 sm:$0xf0]  ;;  %v2451_v35 = vrot.slane %v13474_v18, %v19387_v46  ;;  %v2280_v12 = vmul.f32 %v2179_v57, %v19418_v61 }
 0x234   :  { %5752 = vrot.lane.b32.xlu0 %v13345_v40, %s11399_s25  ;;  %v3444_v33 = vmul.f32 %v3311_v14, %v3199_v4  ;;  %v19545_v25 = vld [vmem:[#allocation45_spill] sm:$0xff]  ;;  %v13700_v63 = vor.u32 %v10723_v36, %v10722_v62  ;;  %v2455_v30 = vrot.slane %v13474_v18, %v19407_v48  ;;  %v2459_v57 = vrot.slane %v13474_v18, %v11492_v7 }
 0x235   :  { %v13691_v56 = vpop.permute.xlu1 %231  ;;  %v10989_v32 = vpack.c.bf16 %v6043_v39, %v5674_v2  ;;  %v10991_v37 = vpack.c.bf16 %v6042_v31, %v5673_v50  ;;  %v4275_v6 = vsel %vm4266_vm7, %v19481_v43, %v19545_v25  ;;  %v13696_v15 = vpop.permute.xlu0 %771  ;;  %v1774_v14 = vadd.f32 %v1742_v42, %v1236_v52 }
 0x236   :  { %19544 = vst [vmem:[#allocation91_spill] sm:$0xff] %v13691_v56  ;;  %19546 = vst [vmem:[#allocation45_spill] sm:$0xff] %v13696_v15  ;;  %v2969_v4 = vrot.slane %v2906_v60, %v11495_v8  ;;  %v3982_v50 = vmul.f32 %v3849_v1, %v3737_v51  ;;  %v2471_v43 = vrot.slane %v19513_v5, %v19501_v24 }
 0x237   :  { %5381 = vrot.lane.b32.xlu1 %v13372_v58, %s11397_s24  ;;  %19547 = vst [vmem:[#allocation166_spill] sm:$0xff] %v13700_v63  ;;  %10990 = vmatprep.subr.bf16.mxu1 %v10989_v32  ;;  %v2475_v2 = vrot.slane %v19513_v5, %v11527_v17  ;;  %v2479_v31 = vrot.slane %v19513_v5, %v19517_v44 }
 0x238   :  { %241 = vrot.lane.b32.xlu0 %v13673_v54, %s11394_s2  ;;  %10992 = vmatpush1.bf16.msra.mxu1 %v10991_v37  ;;  %v2483_v42 = vrot.slane %v19513_v5, %v19387_v46  ;;  %v2312_v39 = vadd.f32 %v2280_v12, %v1774_v14  ;;  %v3507_v60 = vrot.slane %v3444_v33, %v11495_v8 }
 0x239   :  { %v4520_v51 = vmul.f32 %v4387_v53, %v4275_v6  ;;  %v13718_v1 = vpop.permute.xlu1 %2630  ;;  %v2487_v62 = vrot.slane %v19513_v5, %v19407_v48  ;;  %v13722_v36 = vpop.permute.xlu0 %6346  ;;  %v13728_v52 = vrot.slane %v13174_v21, %v19501_v24  ;;  %v19550_v32 = vrot.slane %v13452_v0, %v11495_v8 }
 0x23a   :  { %19548 = vst [vmem:[#allocation167_spill] sm:$0xff] %v13718_v1  ;;  %v3070_v6 = vmul.f32 %v2969_v4, %v19316_v3  ;;  %v4045_v14 = vrot.slane %v3982_v50, %v11495_v8  ;;  %v19551_v53 = vrot.slane %v13452_v0, %v19491_v45  ;;  %v19554_v4 = vrot.slane %v13452_v0, %v11527_v17 }
 0x23b   :  { %5750 = vrot.lane.b32.xlu1 %v13372_v58, %s11399_s25  ;;  %19549 = vst [vmem:[#allocation168_spill] sm:$0xff] %v13728_v52  ;;  %v2532_v37 = vmul.f32 %v19550_v32, %v19299_v26  ;;  %v19552_v32 = vrot.slane %v13452_v0, %v19501_v24  ;;  %v19556_v21 = vrot.slane %v13452_v0, %v19517_v44 }
 0x23c   :  { %775 = vrot.lane.b32.xlu0 %v13578_v34, %s11395_s23  ;;  %v13750_v33 = vmul.f32 %v19551_v53, %v19299_v26  ;;  %v13762_v50 = vmul.f32 %v19554_v4, %v19299_v26  ;;  %v10730_v53 = vld [vmem:[%s18635_s1 + $0x5] ss:$8 sm:$0xf]  ;;  %v3608_v56 = vmul.f32 %v3507_v60, %v19334_v29  ;;  %v4583_v4 = vrot.slane %v4520_v51, %v11495_v8 }
 0x23d   :  { %v13756_v12 = vmul.f32 %v19552_v32, %v19299_v26  ;;  %v13768_v15 = vmul.f32 %v19556_v21, %v19299_v26  ;;  %v10731_v32 = vld [vmem:[%s18635_s1 + $0x5] ss:$8 sm:$0xf0]  ;;  %v2564_v1 = vadd.f32 %v2532_v37, %v2312_v39  ;;  %v19558_v22 = vrot.slane %v13452_v0, %v19387_v46  ;;  %v13784_v21 = vpop.permute.xlu1 %769 }
 0x23e   :  { %19555 = vst [vmem:[#allocation170_spill] sm:$0xff] %v13762_v50  ;;  %19560 = vst [vmem:[#allocation173_spill] sm:$0xff] %v13784_v21  ;;  %v19563_v39 = vrot.slane %v13452_v0, %v11492_v7  ;;  %v19565_v51 = vrot.slane %v13474_v18, %v11495_v8  ;;  %v19567_v37 = vrot.slane %v13474_v18, %v19491_v45 }
 0x23f   :  { %19553 = vst [vmem:[#allocation169_spill] sm:$0xff] %v13756_v12  ;;  %19557 = vst [vmem:[#allocation171_spill] sm:$0xff] %v13768_v15  ;;  %v13782_v50 = vmul.f32 %v19558_v22, %v19299_v26  ;;  %v19561_v15 = vrot.slane %v13452_v0, %v19407_v48  ;;  %239 = vrot.lane.b32.xlu1 %v13728_v52, %s11394_s2  ;;  %v3102_v0 = vadd.f32 %v3070_v6, %v2564_v1 }
 0x240   :  { %v13796_v60 = vmul.f32 %v19563_v39, %v19299_v26  ;;  %v13802_v22 = vmul.f32 %v19565_v51, %v19299_v26  ;;  %v13808_v21 = vmul.f32 %v19567_v37, %v19299_v26  ;;  %v4146_v39 = vmul.f32 %v4045_v14, %v19343_v49  ;;  %779 = vrot.lane.b32.xlu0 %v13673_v54, %s11395_s23 }
 0x241   :  { %19559 = vst [vmem:[#allocation172_spill] sm:$0xff] %v13782_v50  ;;  %v13790_v12 = vmul.f32 %v19561_v15, %v19299_v26  ;;  %v13810_v15 = vpop.permute.xlu0 %1305  ;;  %v19573_v37 = vrot.slane %v13474_v18, %v11527_v17  ;;  %v19575_v1 = vrot.slane %v13474_v18, %v19517_v44  ;;  %v13838_v14 = vmul.f32 %v2451_v35, %v19299_v26 }
 0x242   :  { %19564 = vst [vmem:[#allocation175_spill] sm:$0xff] %v13796_v60  ;;  %19566 = vst [vmem:[#allocation176_spill] sm:$0xff] %v13802_v22  ;;  %v19570_v60 = vrot.slane %v13474_v18, %v19501_v24  ;;  %v13823_v22 = vor.u32 %v10731_v32, %v10730_v53  ;;  %v13845_v53 = vrot.slane %v13441_v41, %v19491_v45 }
 0x243   :  { %19562 = vst [vmem:[#allocation174_spill] sm:$0xff] %v13790_v12  ;;  %19568 = vst [vmem:[#allocation177_spill] sm:$0xff] %v13808_v21  ;;  %v13835_v6 = vmul.f32 %v19575_v1, %v19299_v26  ;;  %v3640_v32 = vadd.f32 %v3608_v56, %v3102_v0  ;;  %2638 = vrot.lane.b32.xlu1 %v13578_v34, %s11401_s26  ;;  %v13872_v0 = vmul.f32 %v2471_v43, %v19299_v26  ;;  %v19624_v12 = vld [vmem:[#allocation76_spill] sm:$0xff] }
 0x244   :  { %19569 = vst [vmem:[#allocation178_spill] sm:$0xff] %v13810_v15  ;;  %v13819_v51 = vmul.f32 %v19570_v60, %v19299_v26  ;;  %19572 = vst [vmem:[#allocation180_spill] sm:$0xff] %v13823_v22  ;;  %v13829_v15 = vmul.f32 %v19573_v37, %v19299_v26  ;;  %v13841_v60 = vmul.f32 %v2455_v30, %v19299_v26  ;;  %6354 = vrot.lane.b32.xlu0 %v13335_v11, %s11401_s26 }
 0x245   :  { %19576 = vst [vmem:[#allocation182_spill] sm:$0xff] %v13835_v6  ;;  %19577 = vst [vmem:[#allocation183_spill] sm:$0xff] %v13838_v14  ;;  %v4684_v37 = vmul.f32 %v4583_v4, %v19349_v20  ;;  %v13853_v18 = vpop.permute.xlu0 %6350  ;;  %v19582_v30 = vrot.slane %v19513_v5, %v11495_v8  ;;  %v19584_v4 = vrot.slane %v19513_v5, %v19491_v45 }
 0x246   :  { %19571 = vst [vmem:[#allocation179_spill] sm:$0xff] %v13819_v51  ;;  %19574 = vst [vmem:[#allocation181_spill] sm:$0xff] %v13829_v15  ;;  %v13848_v15 = vpop.permute.xlu1 %3168  ;;  %v13851_v51 = vmul.f32 %v2459_v57, %v19299_v26  ;;  %v4178_v1 = vadd.f32 %v4146_v39, %v3640_v32  ;;  %v13882_v56 = vmul.f32 %v2479_v31, %v19299_v26 }
 0x247   :  { %19578 = vst [vmem:[#allocation184_spill] sm:$0xff] %v13841_v60  ;;  %19579 = vst [vmem:[#allocation185_spill] sm:$0xff] %v13845_v53  ;;  %v13861_v35 = vmul.f32 %v19582_v30, %v19299_v26  ;;  %v13869_v57 = vmul.f32 %v19584_v4, %v19299_v26  ;;  %v6496_v30 = vrot.slane %v13823_v22, %v19491_v45  ;;  %777 = vrot.lane.b32.xlu1 %v13728_v52, %s11395_s23 }
 0x248   :  { %19580 = vst [vmem:[#allocation186_spill] sm:$0xff] %v13848_v15  ;;  %19581 = vst [vmem:[#allocation187_spill] sm:$0xff] %v13851_v51  ;;  %v13888_v43 = vrot.slane %v13441_v41, %v19501_v24  ;;  %v13891_v39 = vmul.f32 %v2483_v42, %v19299_v26  ;;  %v13894_v32 = vmul.f32 %v2487_v62, %v19299_v26  ;;  %1313 = vrot.lane.b32.xlu0 %v13578_v34, %s11397_s24 }
 0x249   :  { %19583 = vst [vmem:[#allocation188_spill] sm:$0xff] %v13861_v35  ;;  %19585 = vst [vmem:[#allocation189_spill] sm:$0xff] %v13869_v57  ;;  %v13879_v35 = vmul.f32 %v2475_v2, %v19299_v26  ;;  %v13898_v2 = vrot.slane %v13441_v41, %v11527_v17  ;;  %v4716_v5 = vadd.f32 %v4684_v37, %v4178_v1  ;;  %v13910_v62 = vpop.permute.xlu0 %1307 }
 0x24a   :  { %19586 = vst [vmem:[#allocation190_spill] sm:$0xff] %v13872_v0  ;;  %19588 = vst [vmem:[#allocation192_spill] sm:$0xff] %v13882_v56  ;;  %v6349_v56 = vpop.permute.xlu1 %6348  ;;  %v6492_v37 = vrot.slane %v13823_v22, %v11495_v8  ;;  %v19594_v1 = vrot.slane %v13700_v63, %v19491_v45  ;;  %v6500_v31 = vrot.slane %v13823_v22, %v19501_v24 }
 0x24b   :  { %19587 = vst [vmem:[#allocation191_spill] sm:$0xff] %v13879_v35  ;;  %19589 = vst [vmem:[#allocation193_spill] sm:$0xff] %v13888_v43  ;;  %v6409_v26 = vsel %vm2652_vm4, %v13722_v36, %v6349_v56  ;;  %v13946_v0 = vmax.f32 %v4716_v5, 0.0  ;;  %3176 = vrot.lane.b32.xlu1 %v13578_v34, %s11404_s29  ;;  %v19599_v5 = vrot.slane %v13700_v63, %v11495_v8 }
 0x24c   :  { %19590 = vst [vmem:[#allocation194_spill] sm:$0xff] %v13891_v39  ;;  %19591 = vst [vmem:[#allocation195_spill] sm:$0xff] %v13894_v32  ;;  %v6650_v4 = vmul.f32 %v6496_v30, %v6409_v26  ;;  %v6281_v35 = vmul.f32 %v19594_v1, %v12698_v47  ;;  %v10724_v32 = vld [vmem:[%s18635_s1 + $0x44] ss:$8 sm:$0xf]  ;;  %v13938_v47 = vrot.slane %v13441_v41, %v19517_v44 }
 0x24d   :  { %19592 = vst [vmem:[#allocation196_spill] sm:$0xff] %v13898_v2  ;;  %19593 = vst [vmem:[#allocation197_spill] sm:$0xff] %v13910_v62  ;;  %v10725_v30 = vld [vmem:[%s18635_s1 + $0x44] ss:$8 sm:$0xf0]  ;;  %v13955_v60 = vpop.permute.xlu0 %3706  ;;  %6360 = vrot.lane.b32.xlu0 %v13946_v0, %s11401_s26  ;;  %v19631_v50 = vrot.slane %v13700_v63, %v19517_v44 }
 0x24e   :  { %19595 = vst [vmem:[#allocation198_spill] sm:$0xff] %v13938_v47  ;;  %v13948_v57 = vpop.permute.xlu1 %6344  ;;  %v10977_v26 = vpack.c.bf16 %v6650_v4, %v6281_v35  ;;  %19597 = vst [vmem:[#allocation200_spill] sm:$0xff] %v13955_v60  ;;  %v19598_v1 = vld [vmem:[#allocation49_spill] sm:$0xff]  ;;  %v13963_v42 = vor.u32 %v10725_v30, %v10724_v32  ;;  %v6410_v35 = vsel %vm2652_vm4, %v6349_v56, %v13853_v18  ;;  %v19635_v47 = vld [vmem:[#allocation83_spill] sm:$0xff] }
 0x24f   :  { %19596 = vst [vmem:[#allocation199_spill] sm:$0xff] %v13948_v57  ;;  %v6408_v51 = vsel %vm2652_vm4, %v13948_v57, %v13722_v36  ;;  %v6280_v39 = vmul.f32 %v19599_v5, %v19598_v1  ;;  %v6504_v36 = vrot.slane %v13823_v22, %v11527_v17  ;;  %v6651_v57 = vmul.f32 %v6500_v31, %v6410_v35  ;;  %v10630_v35 = vld [vmem:[%s18635_s1 + $0x80] ss:$8 sm:$0xf] }
 0x250   :  { %19600 = vst [vmem:[#allocation49_spill] sm:$0xff] %v13963_v42  ;;  %v6649_v4 = vmul.f32 %v6492_v37, %v6408_v51  ;;  %10978 = vmatprep.subr.bf16.mxu0 %v10977_v26  ;;  %6356 = vrot.lane.b32.xlu1 %v13372_v58, %s11401_s26  ;;  %v19610_v37 = vld [vmem:[#allocation70_spill] sm:$0xff] }
 0x251   :  { %v13994_v56 = vpop.permute.xlu0 %1845  ;;  %1317 = vrot.lane.b32.xlu0 %v13673_v54, %s11397_s24  ;;  %v10639_v60 = vld [vmem:[%s18635_s1 + $0x81] ss:$8 sm:$0xf0] }
 0x252   :  { %v13985_v26 = vpop.permute.xlu1 %6352  ;;  %v10979_v1 = vpack.c.bf16 %v6649_v4, %v6280_v39  ;;  %19602 = vst [vmem:[#allocation202_spill] sm:$0xff] %v13994_v56  ;;  %v19603_v39 = vld [vmem:[#allocation112_spill] sm:$0xff]  ;;  %v19604_v4 = vrot.slane %v13700_v63, %v11527_v17 }
 0x253   :  { %19601 = vst [vmem:[#allocation201_spill] sm:$0xff] %v13985_v26  ;;  %v6411_v51 = vsel %vm2652_vm4, %v13853_v18, %v13985_v26  ;;  %v10638_v56 = vld [vmem:[%s18635_s1 + $0x81] ss:$8 sm:$0xf]  ;;  %v19622_v26 = vrot.slane %v13469_v38, %v19491_v45 }
 0x254   :  { %v6652_v30 = vmul.f32 %v6504_v36, %v6411_v51  ;;  %10980 = vmatpush1.bf16.msra.mxu0 %v10979_v1  ;;  %v6283_v32 = vmul.f32 %v19604_v4, %v19603_v39  ;;  %v19605_v51 = vld [vmem:[#allocation115_spill] sm:$0xff]  ;;  %v19606_v1 = vrot.slane %v13700_v63, %v19501_v24  ;;  %v14018_v39 = vrot.slane %v13441_v41, %v19387_v46 }
 0x255   :  { %v10631_v36 = vld [vmem:[%s18635_s1 + $0x80] ss:$8 sm:$0xf0]  ;;  %6358 = vrot.lane.b32.xlu1 %v13345_v40, %s11401_s26  ;;  %v10646_v4 = vld [vmem:[%s18635_s1 + $0x82] ss:$8 sm:$0xf]  ;;  %1851 = vrot.lane.b32.xlu0 %v13578_v34, %s11399_s25  ;;  %v14076_v15 = vor.u32 %v10639_v60, %v10638_v56 }
 0x256   :  { %v6282_v5 = vmul.f32 %v19606_v1, %v19605_v51  ;;  %19607 = vst [vmem:[#allocation112_spill] sm:$0xff] %v14018_v39  ;;  %v14030_v18 = vpop.permute.xlu1 %1309  ;;  %v10993_v51 = vpack.c.bf16 %v6652_v30, %v6283_v32  ;;  %v19609_v1 = vld [vmem:[#allocation101_spill] sm:$0xff]  ;;  %v14055_v30 = vrot.slane %v13441_v41, %v11492_v7  ;;  %v14073_v31 = vor.u32 %v10631_v36, %v10630_v35  ;;  %v19617_v36 = vld [vmem:[#allocation106_spill] sm:$0xff] }
 0x257   :  { %19608 = vst [vmem:[#allocation115_spill] sm:$0xff] %v14030_v18  ;;  %v258_v14 = vsel %vm249_vm1, %v19610_v37, %v19609_v1  ;;  %v14045_v18 = vpop.permute.xlu0 %4244  ;;  %v14051_v37 = vrot.slane %v13441_v41, %v19407_v48  ;;  %19615 = vst [vmem:[#allocation205_spill] sm:$0xff] %v14076_v15  ;;  %v10747_v35 = vld [vmem:[%s18635_s1 + $0x7] ss:$8 sm:$0xf0] }
 0x258   :  { %19611 = vst [vmem:[#allocation101_spill] sm:$0xff] %v14045_v18  ;;  %v10995_v32 = vpack.c.bf16 %v6651_v57, %v6282_v5  ;;  %19613 = vst [vmem:[#allocation203_spill] sm:$0xff] %v14055_v30  ;;  %v10647_v18 = vld [vmem:[%s18635_s1 + $0x82] ss:$8 sm:$0xf0]  ;;  %10994 = vmatprep.subr.bf16.mxu1 %v10993_v51  ;;  %v502_v62 = vmul.f32 %v13845_v53, %v258_v14  ;;  %v14121_v5 = vrot.slane %v14073_v31, %v11495_v8 }
 0x259   :  { %19612 = vst [vmem:[#allocation70_spill] sm:$0xff] %v14051_v37  ;;  %19614 = vst [vmem:[#allocation204_spill] sm:$0xff] %v14073_v31  ;;  %v10654_v51 = vld [vmem:[%s18635_s1 + $0x83] ss:$8 sm:$0xf]  ;;  %v14097_v41 = vor.u32 %v10647_v18, %v10646_v4  ;;  %1315 = vrot.lane.b32.xlu1 %v13728_v52, %s11397_s24  ;;  %1855 = vrot.lane.b32.xlu0 %v13673_v54, %s11399_s25 }
 0x25a   :  { %10996 = vmatpush1.bf16.msra.mxu1 %v10995_v32  ;;  %v10655_v57 = vld [vmem:[%s18635_s1 + $0x83] ss:$8 sm:$0xf0]  ;;  %v14084_v6 = vpop.permute.xlu1 %1843  ;;  %v10738_v18 = vld [vmem:[%s18635_s1 + $0x6] ss:$8 sm:$0xf]  ;;  %v569_v21 = vrot.slane %v502_v62, %v11495_v8 }
 0x25b   :  { %19616 = vst [vmem:[#allocation206_spill] sm:$0xff] %v14084_v6  ;;  %v19618_v14 = vld [vmem:[#allocation72_spill] sm:$0xff]  ;;  %19619 = vst [vmem:[#allocation106_spill] sm:$0xff] %v14097_v41  ;;  %v14099_v53 = vpop.permute.xlu0 %6717  ;;  %v14127_v56 = vor.u32 %v10655_v57, %v10654_v51  ;;  %v19630_v37 = vld [vmem:[#allocation142_spill] sm:$0xff] }
 0x25c   :  { %v796_v60 = vsel %vm787_vm0, %v19618_v14, %v19617_v36  ;;  %v10739_v4 = vld [vmem:[%s18635_s1 + $0x6] ss:$8 sm:$0xf0]  ;;  %19620 = vst [vmem:[#allocation72_spill] sm:$0xff] %v14121_v5  ;;  %v14180_v39 = vmul.f32 %v19631_v50, %v19630_v37 }
 0x25d   :  { %19621 = vst [vmem:[#allocation207_spill] sm:$0xff] %v14127_v56  ;;  %v10746_v6 = vld [vmem:[%s18635_s1 + $0x7] ss:$8 sm:$0xf]  ;;  %v1041_v22 = vmul.f32 %v19622_v26, %v796_v60  ;;  %3714 = vrot.lane.b32.xlu1 %v13578_v34, %s11405_s3  ;;  %6723 = vrot.lane.b32.xlu0 %v13335_v11, %s11404_s29  ;;  %v14165_v5 = vor.u32 %v10739_v4, %v10738_v18 }
 0x25e   :  { %v19623_v14 = vld [vmem:[#allocation110_spill] sm:$0xff]  ;;  %v14144_v51 = vpop.permute.xlu1 %1847  ;;  %v14167_v62 = vor.u32 %v10747_v35, %v10746_v6  ;;  %v19629_v26 = vrot.slane %v13484_v28, %v19491_v45  ;;  %19632 = vst [vmem:[#allocation142_spill] sm:$0xff] %v14180_v39  ;;  %v19638_v39 = vld [vmem:[#allocation11_spill] sm:$0xff]  ;;  %v19641_v54 = vld [vmem:[#allocation53_spill] sm:$0xff] }
 0x25f   :  { %v1334_v32 = vsel %vm1325_vm2, %v19624_v12, %v19623_v14  ;;  %19625 = vst [vmem:[#allocation110_spill] sm:$0xff] %v14144_v51  ;;  %v14154_v60 = vpop.permute.xlu0 %7086  ;;  %v19626_v12 = vld [vmem:[#allocation107_spill] sm:$0xff]  ;;  %19627 = vst [vmem:[#allocation76_spill] sm:$0xff] %v14165_v5  ;;  %v19633_v18 = vld [vmem:[#allocation26_spill] sm:$0xff]  ;;  %v1107_v6 = vrot.slane %v1041_v22, %v11495_v8  ;;  %v14216_v22 = vrot.slane %v14073_v31, %v19491_v45 }
 0x260   :  { %v259_v57 = vsel %vm249_vm1, %v19609_v1, %v19626_v12  ;;  %19628 = vst [vmem:[#allocation107_spill] sm:$0xff] %v14167_v62  ;;  %v1579_v51 = vmul.f32 %v19629_v26, %v1334_v32  ;;  %v667_v4 = vmul.f32 %v569_v21, %v19633_v18  ;;  %v19634_v35 = vld [vmem:[#allocation22_spill] sm:$0xff]  ;;  %v7234_v50 = vrot.slane %v14167_v62, %v19491_v45  ;;  %v19639_v41 = vld [vmem:[#allocation23_spill] sm:$0xff]  ;;  %v19642_v31 = vld [vmem:[#allocation109_spill] sm:$0xff] }
 0x261   :  { %v1872_v32 = vsel %vm1863_vm3, %v19635_v47, %v19634_v35  ;;  %v503_v1 = vmul.f32 %v13888_v43, %v259_v57  ;;  %1853 = vrot.lane.b32.xlu1 %v13728_v52, %s11399_s25  ;;  %v6865_v57 = vrot.slane %v14165_v5, %v19491_v45  ;;  %7092 = vrot.lane.b32.xlu0 %v13335_v11, %s11405_s3 }
 0x262   :  { %v6716_v30 = vpop.permute.xlu1 %6715  ;;  %v1645_v56 = vrot.slane %v1579_v51, %v11495_v8  ;;  %v19636_v21 = vrot.slane %v13536_v10, %v19491_v45  ;;  %19637 = vst [vmem:[#allocation22_spill] sm:$0xff] %v14216_v22  ;;  %v699_v43 = vadd.f32 %v667_v4, %v19538_v27  ;;  %v1205_v42 = vmul.f32 %v1107_v6, %v19638_v39 }
 0x263   :  { %v14194_v37 = vpop.permute.xlu0 %6719  ;;  %v6778_v47 = vsel %vm3190_vm5, %v6716_v30, %v14099_v53  ;;  %v797_v11 = vsel %vm787_vm0, %v19617_v36, %v19639_v41  ;;  %v573_v22 = vrot.slane %v503_v1, %v11495_v8  ;;  %v2662_v4 = vsel %vm2652_vm4, %v19642_v31, %v19641_v54 }
 0x264   :  { %v2117_v26 = vmul.f32 %v19636_v21, %v1872_v32  ;;  %v19640_v32 = vld [vmem:[#allocation103_spill] sm:$0xff]  ;;  %v7019_v36 = vmul.f32 %v6865_v57, %v6778_v47  ;;  %v7230_v46 = vrot.slane %v14167_v62, %v11495_v8  ;;  %v1743_v31 = vmul.f32 %v1645_v56, %v19414_v55 }
 0x265   :  { %v260_v21 = vsel %vm249_vm1, %v19626_v12, %v19640_v32  ;;  %4252 = vrot.lane.b32.xlu1 %v13578_v34, %s11407_s30  ;;  %6727 = vrot.lane.b32.xlu0 %v13345_v40, %s11404_s29  ;;  %v6861_v12 = vrot.slane %v14165_v5, %v11495_v8  ;;  %v19644_v1 = vrot.slane %v13469_v38, %v19501_v24  ;;  %v19645_v57 = vld [vmem:[#allocation27_spill] sm:$0xff] }
 0x266   :  { %v7085_v63 = vpop.permute.xlu1 %7084  ;;  %v2183_v7 = vrot.slane %v2117_v26, %v11495_v8  ;;  %v14254_v47 = vmul.f32 %v13898_v2, %v260_v21  ;;  %v19647_v52 = vrot.slane %v13580_v19, %v19491_v45 }
 0x267   :  { %v7147_v6 = vsel %vm3728_vm6, %v7085_v63, %v14154_v60  ;;  %v14236_v15 = vpop.permute.xlu0 %7082  ;;  %v1042_v32 = vmul.f32 %v19644_v1, %v797_v11  ;;  %v19648_v1 = vld [vmem:[#allocation40_spill] sm:$0xff] }
 0x268   :  { %19643 = vst [vmem:[#allocation83_spill] sm:$0xff] %v14236_v15  ;;  %v7388_v51 = vmul.f32 %v7234_v50, %v7147_v6  ;;  %v7146_v34 = vsel %vm3728_vm6, %v14236_v15, %v7085_v63  ;;  %v1237_v50 = vadd.f32 %v1205_v42, %v699_v43  ;;  %v1335_v6 = vsel %vm1325_vm2, %v19623_v14, %v19645_v57  ;;  %v19649_v63 = vld [vmem:[#allocation55_spill] sm:$0xff] }
 0x269   :  { %v2907_v11 = vmul.f32 %v19647_v52, %v2662_v4  ;;  %v3200_v26 = vsel %vm3190_vm5, %v19539_v16, %v19648_v1  ;;  %v3738_v43 = vsel %vm3728_vm6, %v19543_v23, %v19649_v63  ;;  %6725 = vrot.lane.b32.xlu1 %v13372_v58, %s11404_s29  ;;  %v7387_v14 = vmul.f32 %v7230_v46, %v7146_v34  ;;  %v14281_v16 = vld [vmem:[%s18633_s0 + $0x18] sm:$0xff]  ;;  %v19654_v34 = vld [vmem:[#allocation37_spill] sm:$0xff] }
 0x26a   :  { %v14259_v48 = vpop.permute.xlu1 %6713  ;;  %v10981_v56 = vpack.c.bf16 %v7388_v51, %v7019_v36  ;;  %7096 = vrot.lane.b32.xlu0 %v13345_v40, %s11405_s3  ;;  %19651 = vst [vmem:[#allocation109_spill] sm:$0xff] %v14281_v16  ;;  %v14285_v23 = vrot.slane %v14281_v16, %v19517_v44  ;;  %v668_v52 = vmul.f32 %v573_v22, %v19633_v18  ;;  %v19704_v16 = vld [vmem:[#allocation48_spill] sm:$0xff] }
 0x26b   :  { %19646 = vst [vmem:[#allocation23_spill] sm:$0xff] %v14259_v48  ;;  %v6777_v42 = vsel %vm3190_vm5, %v14259_v48, %v6716_v30  ;;  %v14272_v21 = vpop.permute.xlu0 %7090  ;;  %v1775_v30 = vadd.f32 %v1743_v31, %v1237_v50  ;;  %v1111_v4 = vrot.slane %v1042_v32, %v11495_v8  ;;  %v2281_v46 = vmul.f32 %v2183_v7, %v19418_v61  ;;  %v19658_v50 = vld [vmem:[#allocation116_spill] sm:$0xff] }
 0x26c   :  { %19650 = vst [vmem:[#allocation53_spill] sm:$0xff] %v14272_v21  ;;  %v7018_v51 = vmul.f32 %v6861_v12, %v6777_v42  ;;  %10982 = vmatprep.subr.bf16.mxu0 %v10981_v56  ;;  %19652 = vst [vmem:[#allocation27_spill] sm:$0xff] %v14285_v23  ;;  %v19653_v36 = vrot.slane %v13484_v28, %v19501_v24  ;;  %v1873_v56 = vsel %vm1863_vm3, %v19634_v35, %v19654_v34 }
 0x26d   :  { %v19655_v42 = vrot.slane %v13595_v9, %v19491_v45  ;;  %v2973_v31 = vrot.slane %v2907_v11, %v11495_v8  ;;  %v19657_v7 = vrot.slane %v13597_v13, %v19491_v45  ;;  %v6869_v35 = vrot.slane %v14165_v5, %v19501_v24  ;;  %7094 = vrot.lane.b32.xlu1 %v13372_v58, %s11405_s3 }
 0x26e   :  { %v1580_v12 = vmul.f32 %v19653_v36, %v1335_v6  ;;  %v14299_v15 = vpop.permute.xlu1 %6721  ;;  %v10983_v22 = vpack.c.bf16 %v7387_v14, %v7018_v51  ;;  %v4276_v6 = vsel %vm4266_vm7, %v19545_v25, %v19658_v50  ;;  %243 = vrot.lane.b32.xlu0 %v14285_v23, %s11394_s2  ;;  %v7238_v11 = vrot.slane %v14167_v62, %v19501_v24 }
 0x26f   :  { %v3445_v48 = vmul.f32 %v19655_v42, %v3200_v26  ;;  %19656 = vst [vmem:[#allocation40_spill] sm:$0xff] %v14299_v15  ;;  %v3983_v32 = vmul.f32 %v19657_v7, %v3738_v43  ;;  %v14310_v36 = vpop.permute.xlu0 %2632  ;;  %v6873_v26 = vrot.slane %v14165_v5, %v11527_v17  ;;  %v7242_v25 = vrot.slane %v14167_v62, %v11527_v17 }
 0x270   :  { %19659 = vst [vmem:[#allocation55_spill] sm:$0xff] %v14310_v36  ;;  %10984 = vmatpush1.bf16.msra.mxu0 %v10983_v22  ;;  %v2313_v43 = vadd.f32 %v2281_v46, %v1775_v30  ;;  %v19660_v14 = vrot.slane %v13536_v10, %v19501_v24  ;;  %v6779_v42 = vsel %vm3190_vm5, %v14099_v53, %v14194_v37  ;;  %v19661_v22 = vld [vmem:[#allocation108_spill] sm:$0xff] }
 0x271   :  { %v6780_v7 = vsel %vm3190_vm5, %v14194_v37, %v14299_v15  ;;  %v798_v36 = vsel %vm787_vm0, %v19639_v41, %v19661_v22  ;;  %v1649_v2 = vrot.slane %v1580_v12, %v11495_v8  ;;  %v3511_v30 = vrot.slane %v3445_v48, %v11495_v8  ;;  %6729 = vrot.lane.b32.xlu1 %v13946_v0, %s11404_s29 }
 0x272   :  { %v2118_v51 = vmul.f32 %v19660_v14, %v1873_v56  ;;  %v19662_v46 = vrot.slane %v13649_v59, %v19491_v45  ;;  %v7089_v14 = vpop.permute.xlu1 %7088  ;;  %v3071_v5 = vmul.f32 %v2973_v31, %v19316_v3  ;;  %v4049_v53 = vrot.slane %v3983_v32, %v11495_v8  ;;  %781 = vrot.lane.b32.xlu0 %v14285_v23, %s11395_s23 }
 0x273   :  { %v7148_v37 = vsel %vm3728_vm6, %v14154_v60, %v7089_v14  ;;  %v7149_v15 = vsel %vm3728_vm6, %v7089_v14, %v14272_v21  ;;  %v14345_v41 = vpop.permute.xlu0 %2634  ;;  %v7020_v48 = vmul.f32 %v6869_v35, %v6779_v42  ;;  %v7021_v12 = vmul.f32 %v6873_v26, %v6780_v7  ;;  %v19666_v42 = vld [vmem:[#allocation21_spill] sm:$0xff]  ;;  %v19694_v21 = vld [vmem:[#allocation166_spill] sm:$0xff] }
 0x274   :  { %v4521_v56 = vmul.f32 %v19662_v46, %v4276_v6  ;;  %19663 = vst [vmem:[#allocation37_spill] sm:$0xff] %v14345_v41  ;;  %v7389_v62 = vmul.f32 %v7238_v11, %v7148_v37  ;;  %v7390_v6 = vmul.f32 %v7242_v25, %v7149_v15  ;;  %v1206_v31 = vmul.f32 %v1111_v4, %v19638_v39  ;;  %v19664_v46 = vld [vmem:[#allocation30_spill] sm:$0xff]  ;;  %v19671_v37 = vld [vmem:[#allocation113_spill] sm:$0xff] }
 0x275   :  { %v2187_v32 = vrot.slane %v2118_v51, %v11495_v8  ;;  %v2565_v60 = vadd.f32 %v13750_v33, %v2313_v43  ;;  %v2663_v14 = vsel %vm2652_vm4, %v19641_v54, %v19664_v46  ;;  %v3609_v41 = vmul.f32 %v3511_v30, %v19334_v29  ;;  %v19667_v43 = vld [vmem:[#allocation41_spill] sm:$0xff]  ;;  %7098 = vrot.lane.b32.xlu1 %v13946_v0, %s11405_s3 }
 0x276   :  { %v4587_v35 = vrot.slane %v4521_v56, %v11495_v8  ;;  %v14359_v26 = vpop.permute.xlu1 %235  ;;  %v10997_v15 = vpack.c.bf16 %v7390_v6, %v7021_v12  ;;  %v10999_v11 = vpack.c.bf16 %v7389_v62, %v7020_v48  ;;  %v700_v25 = vadd.f32 %v668_v52, %v19538_v27  ;;  %2644 = vrot.lane.b32.xlu0 %v14285_v23, %s11401_s26  ;;  %v19672_v48 = vld [vmem:[#allocation18_spill] sm:$0xff] }
 0x277   :  { %19665 = vst [vmem:[#allocation116_spill] sm:$0xff] %v14359_v26  ;;  %v1336_v4 = vsel %vm1325_vm2, %v19645_v57, %v19666_v42  ;;  %v1744_v33 = vmul.f32 %v1649_v2, %v19414_v55  ;;  %v3201_v54 = vsel %vm3190_vm5, %v19648_v1, %v19667_v43  ;;  %v14369_v51 = vpop.permute.xlu0 %3170  ;;  %v3103_v7 = vadd.f32 %v3071_v5, %v2565_v60 }
 0x278   :  { %19668 = vst [vmem:[#allocation108_spill] sm:$0xff] %v14369_v51  ;;  %v19669_v62 = vrot.slane %v13580_v19, %v19501_v24  ;;  %v4147_v30 = vmul.f32 %v4049_v53, %v19343_v49  ;;  %10998 = vmatprep.subr.bf16.mxu1 %v10997_v15  ;;  %v19670_v2 = vrot.slane %v13469_v38, %v11527_v17  ;;  %v19693_v51 = vld [vmem:[#allocation169_spill] sm:$0xff] }
 0x279   :  { %v1238_v1 = vadd.f32 %v1206_v31, %v700_v25  ;;  %v2282_v56 = vmul.f32 %v2187_v32, %v19418_v61  ;;  %v3739_v5 = vsel %vm3728_vm6, %v19649_v63, %v19671_v37  ;;  %11000 = vmatpush1.bf16.msra.mxu1 %v10999_v11  ;;  %v1874_v53 = vsel %vm1863_vm3, %v19654_v34, %v19672_v48  ;;  %v19676_v11 = vld [vmem:[#allocation111_spill] sm:$0xff]  ;;  %v19678_v25 = vld [vmem:[#allocation168_spill] sm:$0xff] }
 0x27a   :  { %v2908_v52 = vmul.f32 %v19669_v62, %v2663_v14  ;;  %v1043_v57 = vmul.f32 %v19670_v2, %v798_v36  ;;  %v3641_v12 = vadd.f32 %v3609_v41, %v3103_v7  ;;  %v19673_v6 = vrot.slane %v13595_v9, %v19501_v24  ;;  %v14393_v36 = vpop.permute.xlu1 %773  ;;  %2640 = vrot.lane.b32.xlu1 %v19678_v25, %s11401_s26  ;;  %v19680_v62 = vld [vmem:[#allocation7_spill] sm:$0xff] }
 0x27b   :  { %v4685_v14 = vmul.f32 %v4587_v35, %v19349_v20  ;;  %19674 = vst [vmem:[#allocation30_spill] sm:$0xff] %v14393_v36  ;;  %v577_v31 = vrot.slane %v14254_v47, %v11495_v8  ;;  %v19675_v63 = vrot.slane %v13484_v28, %v11527_v17  ;;  %v1776_v15 = vadd.f32 %v1744_v33, %v1238_v1  ;;  %v14403_v41 = vpop.permute.xlu0 %3172 }
 0x27c   :  { %v3446_v60 = vmul.f32 %v19673_v6, %v3201_v54  ;;  %v4277_v34 = vsel %vm4266_vm7, %v19658_v50, %v19676_v11  ;;  %19677 = vst [vmem:[#allocation21_spill] sm:$0xff] %v14403_v41  ;;  %v2977_v35 = vrot.slane %v2908_v52, %v11495_v8  ;;  %v4179_v54 = vadd.f32 %v4147_v30, %v3641_v12  ;;  %v19682_v6 = vld [vmem:[#allocation4_spill] sm:$0xff] }
 0x27d   :  { %v1581_v32 = vmul.f32 %v19675_v63, %v1336_v4  ;;  %v19679_v47 = vrot.slane %v13597_v13, %v19501_v24  ;;  %1319 = vrot.lane.b32.xlu0 %v14285_v23, %s11397_s24  ;;  %v1115_v50 = vrot.slane %v1043_v57, %v11495_v8  ;;  %v19681_v33 = vrot.slane %v13536_v10, %v11527_v17  ;;  %v10670_v30 = vld [vmem:[%s18635_s1 + $0x85] ss:$8 sm:$0xf] }
 0x27e   :  { %v2314_v1 = vadd.f32 %v2282_v56, %v1776_v15  ;;  %v3515_v12 = vrot.slane %v3446_v60, %v11495_v8  ;;  %v19683_v57 = vrot.slane %v13649_v59, %v19501_v24  ;;  %v14433_v15 = vpop.permute.xlu1 %2636  ;;  %v19686_v4 = vld [vmem:[#allocation204_spill] sm:$0xff]  ;;  %v19750_v56 = vld [vmem:[#allocation203_spill] sm:$0xff] }
 0x27f   :  { %v3984_v7 = vmul.f32 %v19679_v47, %v3739_v5  ;;  %v2119_v2 = vmul.f32 %v19681_v33, %v1874_v53  ;;  %v10671_v5 = vld [vmem:[%s18635_s1 + $0x85] ss:$8 sm:$0xf0]  ;;  %v4717_v47 = vadd.f32 %v4685_v14, %v4179_v54  ;;  %19685 = vst [vmem:[#allocation41_spill] sm:$0xff] %v14433_v15  ;;  %v669_v33 = vmul.f32 %v577_v31, %v19633_v18  ;;  %v14445_v36 = vpop.permute.xlu0 %4815 }
 0x280   :  { %v4522_v63 = vmul.f32 %v19683_v57, %v4277_v34  ;;  %v1653_v52 = vrot.slane %v1581_v32, %v11495_v8  ;;  %v14439_v41 = vrot.slane %v19686_v4, %v19501_v24  ;;  %v14443_v60 = vrot.slane %v19686_v4, %v11527_v17  ;;  %19689 = vst [vmem:[#allocation111_spill] sm:$0xff] %v14445_v36  ;;  %v19690_v14 = vld [vmem:[#allocation78_spill] sm:$0xff] }
 0x281   :  { %2642 = vrot.lane.b32.xlu1 %v19690_v14, %s11401_s26  ;;  %v19691_v34 = vld [vmem:[#allocation50_spill] sm:$0xff]  ;;  %v3072_v31 = vmul.f32 %v2977_v35, %v19316_v3  ;;  %v4053_v32 = vrot.slane %v3984_v7, %v11495_v8  ;;  %v14454_v57 = vor.u32 %v10671_v5, %v10670_v30  ;;  %3182 = vrot.lane.b32.xlu0 %v14285_v23, %s11404_s29  ;;  %v19697_v35 = vld [vmem:[#allocation33_spill] sm:$0xff] }
 0x282   :  { %19687 = vst [vmem:[#allocation113_spill] sm:$0xff] %v14439_v41  ;;  %19688 = vst [vmem:[#allocation18_spill] sm:$0xff] %v14443_v60  ;;  %v2664_v54 = vsel %vm2652_vm4, %v19664_v46, %v19691_v34  ;;  %v1207_v53 = vmul.f32 %v1115_v50, %v19638_v39  ;;  %v2191_v15 = vrot.slane %v2119_v2, %v11495_v8  ;;  %v14472_v41 = vmax.f32 %v4717_v47, 0.0  ;;  %v14474_v50 = vpop.permute.xlu1 %1311 }
 0x283   :  { %19692 = vst [vmem:[#allocation168_spill] sm:$0xff] %v14454_v57  ;;  %v2566_v26 = vadd.f32 %v19693_v51, %v2314_v1  ;;  %v19695_v60 = vrot.slane %v19694_v21, %v19680_v62  ;;  %v3202_v7 = vsel %vm3190_vm5, %v19667_v43, %v19697_v35  ;;  %v3610_v30 = vmul.f32 %v3515_v12, %v19334_v29  ;;  %v19700_v43 = vld [vmem:[#allocation97_spill] sm:$0xff]  ;;  %v19701_v12 = vld [vmem:[#allocation10_spill] sm:$0xff] }
 0x284   :  { %v4591_v5 = vrot.slane %v4522_v63, %v11495_v8  ;;  %19698 = vst [vmem:[#allocation78_spill] sm:$0xff] %v14474_v50  ;;  %v701_v51 = vadd.f32 %v669_v33, %v19538_v27  ;;  %v1745_v2 = vmul.f32 %v1653_v52, %v19414_v55  ;;  %v19699_v1 = vrot.slane %v13580_v19, %v11527_v17  ;;  %v19705_v35 = vld [vmem:[#allocation34_spill] sm:$0xff]  ;;  %v19706_v19 = vld [vmem:[#allocation103_spill] sm:$0xff] }
 0x285   :  { %v14465_v46 = vmul.f32 %v19695_v60, %v13372_v58  ;;  %3178 = vrot.lane.b32.xlu1 %v19678_v25, %s11404_s29  ;;  %v19702_v63 = vrot.slane %v19694_v21, %v19701_v12  ;;  %v3104_v50 = vadd.f32 %v3072_v31, %v2566_v26  ;;  %v3740_v52 = vsel %vm3728_vm6, %v19671_v37, %v19704_v16  ;;  %v10678_v37 = vld [vmem:[%s18635_s1 + $0x86] ss:$8 sm:$0xf] }
 0x286   :  { %v2909_v60 = vmul.f32 %v19699_v1, %v2664_v54  ;;  %v4148_v33 = vmul.f32 %v4053_v32, %v19343_v49  ;;  %4825 = vrot.lane.b32.xlu0 %v14472_v41, %s11394_s2  ;;  %v1239_v1 = vadd.f32 %v1207_v53, %v701_v51  ;;  %v261_v23 = vsel %vm249_vm1, %v19706_v19, %v19705_v35  ;;  %v10679_v32 = vld [vmem:[%s18635_s1 + $0x86] ss:$8 sm:$0xf0]  ;;  %v14518_v16 = vpop.permute.xlu1 %3174 }
 0x287   :  { %19696 = vst [vmem:[#allocation7_spill] sm:$0xff] %v14465_v46  ;;  %v14481_v46 = vpop.permute.xlu0 %5008  ;;  %v14489_v47 = vmul.f32 %v19702_v63, %v19700_v43  ;;  %v2283_v63 = vmul.f32 %v2191_v15, %v19418_v61  ;;  %v19707_v26 = vrot.slane %v13595_v9, %v11527_v17  ;;  %v3642_v54 = vadd.f32 %v3610_v30, %v3104_v50  ;;  %v19708_v51 = vld [vmem:[#allocation118_spill] sm:$0xff] }
 0x288   :  { %v4686_v53 = vmul.f32 %v4591_v5, %v19349_v20  ;;  %v4278_v19 = vsel %vm4266_vm7, %v19676_v11, %v19708_v51  ;;  %19710 = vst [vmem:[#allocation169_spill] sm:$0xff] %v14518_v16  ;;  %v2981_v36 = vrot.slane %v2909_v60, %v11495_v8  ;;  %v19712_v30 = vrot.slane %v13597_v13, %v11527_v17  ;;  %v19713_v11 = vld [vmem:[#allocation198_spill] sm:$0xff] }
 0x289   :  { %19703 = vst [vmem:[#allocation50_spill] sm:$0xff] %v14489_v47  ;;  %v3447_v31 = vmul.f32 %v19707_v26, %v3202_v7  ;;  %v1777_v7 = vadd.f32 %v1745_v2, %v1239_v1  ;;  %v19711_v26 = vld [vmem:[#allocation42_spill] sm:$0xff]  ;;  %3180 = vrot.lane.b32.xlu1 %v19690_v14, %s11404_s29  ;;  %v505_v47 = vmul.f32 %v19713_v11, %v261_v23 }
 0x28a   :  { %v799_v9 = vsel %vm787_vm0, %v19661_v22, %v19711_v26  ;;  %v3985_v5 = vmul.f32 %v19712_v30, %v3740_v52  ;;  %v4180_v51 = vadd.f32 %v4148_v33, %v3642_v54  ;;  %v14532_v16 = vor.u32 %v10679_v32, %v10678_v37  ;;  %5018 = vrot.lane.b32.xlu0 %v14472_v41, %s11395_s23  ;;  %v19717_v52 = vld [vmem:[#allocation32_spill] sm:$0xff]  ;;  %v19723_v11 = vld [vmem:[#allocation38_spill] sm:$0xff] }
 0x28b   :  { %v14527_v50 = vpop.permute.xlu0 %7453  ;;  %v19715_v22 = vrot.slane %v19694_v21, %v19682_v6  ;;  %v2315_v60 = vadd.f32 %v2283_v63, %v1777_v7  ;;  %v1337_v1 = vsel %vm1325_vm2, %v19666_v42, %v19717_v52  ;;  %v3519_v30 = vrot.slane %v3447_v31, %v11495_v8  ;;  %v10754_v54 = vld [vmem:[%s18635_s1 + $0x100] ss:$8 sm:$0xf] }
 0x28c   :  { %19714 = vst [vmem:[#allocation166_spill] sm:$0xff] %v14532_v16  ;;  %v19718_v23 = vrot.slane %v13649_v59, %v11527_v17  ;;  %v10755_v21 = vld [vmem:[%s18635_s1 + $0x100] ss:$8 sm:$0xf0]  ;;  %v19719_v63 = vrot.slane %v13469_v38, %v19517_v44  ;;  %v4718_v32 = vadd.f32 %v4686_v53, %v4180_v51  ;;  %v3073_v7 = vmul.f32 %v2981_v36, %v19316_v3 }
 0x28d   :  { %v14540_v2 = vmul.f32 %v19715_v22, %v13345_v40  ;;  %v4057_v22 = vrot.slane %v3985_v5, %v11495_v8  ;;  %4823 = vrot.lane.b32.xlu1 %v13946_v0, %s11394_s2  ;;  %v19721_v51 = vld [vmem:[#allocation49_spill] sm:$0xff]  ;;  %v581_v5 = vrot.slane %v505_v47, %v11495_v8  ;;  %v19722_v31 = vrot.slane %v13484_v28, %v19517_v44  ;;  %v19725_v59 = vld [vmem:[#allocation170_spill] sm:$0xff] }
 0x28e   :  { %v4523_v33 = vmul.f32 %v19718_v23, %v4278_v19  ;;  %v1044_v37 = vmul.f32 %v19719_v63, %v799_v9  ;;  %v14562_v19 = vpop.permute.xlu1 %4817  ;;  %v10686_v23 = vld [vmem:[%s18635_s1 + $0x87] ss:$8 sm:$0xf]  ;;  %7463 = vrot.lane.b32.xlu0 %v13372_v58, %s11407_s30  ;;  %v2567_v63 = vadd.f32 %v19725_v59, %v2315_v60  ;;  %v3611_v13 = vmul.f32 %v3519_v30, %v19334_v29  ;;  %v10695_v59 = vld [vmem:[%s18635_s1 + $0x180] ss:$8 sm:$0xf0] }
 0x28f   :  { %19716 = vst [vmem:[#allocation97_spill] sm:$0xff] %v14540_v2  ;;  %v10687_v9 = vld [vmem:[%s18635_s1 + $0x87] ss:$8 sm:$0xf0]  ;;  %v14572_v53 = vpop.permute.xlu0 %3708  ;;  %v1582_v42 = vmul.f32 %v19722_v31, %v1337_v1  ;;  %v1875_v2 = vsel %vm1863_vm3, %v19672_v48, %v19723_v11  ;;  %v14600_v31 = vmax.f32 %v4718_v32, 0.0 }
 0x290   :  { %19720 = vst [vmem:[#allocation34_spill] sm:$0xff] %v14572_v53  ;;  %v14589_v53 = vor.u32 %v10755_v21, %v10754_v54  ;;  %v4595_v36 = vrot.slane %v4523_v33, %v11495_v8  ;;  %v10694_v1 = vld [vmem:[%s18635_s1 + $0x180] ss:$8 sm:$0xf]  ;;  %v1119_v48 = vrot.slane %v1044_v37, %v11495_v8  ;;  %v14604_v21 = vor.u32 %v10687_v9, %v10686_v23 }
 0x291   :  { %v19726_v58 = vld [vmem:[#allocation207_spill] sm:$0xff]  ;;  %v3105_v30 = vadd.f32 %v3073_v7, %v2567_v63  ;;  %v19728_v33 = vrot.slane %v13536_v10, %v19517_v44  ;;  %v4149_v37 = vmul.f32 %v4057_v22, %v19343_v49  ;;  %5016 = vrot.lane.b32.xlu1 %v13946_v0, %s11395_s23  ;;  %v670_v9 = vmul.f32 %v581_v5, %v19633_v18  ;;  %v19730_v29 = vld [vmem:[#allocation114_spill] sm:$0xff] }
 0x292   :  { %19724 = vst [vmem:[#allocation103_spill] sm:$0xff] %v14589_v53  ;;  %19727 = vst [vmem:[#allocation42_spill] sm:$0xff] %v14604_v21  ;;  %v14609_v60 = vpop.permute.xlu1 %5010  ;;  %v1657_v54 = vrot.slane %v1582_v42, %v11495_v8  ;;  %v262_v7 = vsel %vm249_vm1, %v19705_v35, %v19730_v29  ;;  %4827 = vrot.lane.b32.xlu0 %v14600_v31, %s11394_s2  ;;  %v4687_v63 = vmul.f32 %v4595_v36, %v19349_v20  ;;  %v19808_v21 = vld [vmem:[#allocation165_spill] sm:$0xff] }
 0x293   :  { %v2120_v47 = vmul.f32 %v19728_v33, %v1875_v2  ;;  %v14615_v32 = vpop.permute.xlu0 %4821  ;;  %v7603_v2 = vrot.slane %v14589_v53, %v19491_v45  ;;  %v3643_v22 = vadd.f32 %v3611_v13, %v3105_v30  ;;  %v14633_v23 = vor.u32 %v10695_v59, %v10694_v1  ;;  %v19733_v33 = vld [vmem:[#allocation112_spill] sm:$0xff] }
 0x294   :  { %19729 = vst [vmem:[#allocation32_spill] sm:$0xff] %v14615_v32  ;;  %v1208_v42 = vmul.f32 %v1119_v48, %v19638_v39  ;;  %v14642_v49 = vrot.slane %v19686_v4, %v19517_v44  ;;  %v506_v1 = vmul.f32 %v19733_v33, %v262_v7  ;;  %v702_v35 = vadd.f32 %v670_v9, %v19538_v27  ;;  %v10727_v7 = vld [vmem:[%s18635_s1 + $0x84] ss:$8 sm:$0xf0] }
 0x295   :  { %19731 = vst [vmem:[#allocation38_spill] sm:$0xff] %v14633_v23  ;;  %v2195_v36 = vrot.slane %v2120_v47, %v11495_v8  ;;  %v4181_v30 = vadd.f32 %v4149_v37, %v3643_v22  ;;  %7461 = vrot.lane.b32.xlu1 %v19700_v43, %s11407_s30  ;;  %v1746_v5 = vmul.f32 %v1657_v54, %v19414_v55  ;;  %v10726_v37 = vld [vmem:[%s18635_s1 + $0x84] ss:$8 sm:$0xf] }
 0x296   :  { %19732 = vst [vmem:[#allocation170_spill] sm:$0xff] %v14642_v49  ;;  %v14644_v13 = vpop.permute.xlu1 %7455  ;;  %5020 = vrot.lane.b32.xlu0 %v14600_v31, %s11395_s23  ;;  %v1240_v49 = vadd.f32 %v1208_v42, %v702_v35  ;;  %v585_v54 = vrot.slane %v506_v1, %v11495_v8  ;;  %v14689_v35 = vor.u32 %v10727_v7, %v10726_v37  ;;  %v19739_v37 = vld [vmem:[#allocation119_spill] sm:$0xff]  ;;  %v19740_v7 = vld [vmem:[#allocation94_spill] sm:$0xff]  ;;  %v19741_v33 = vld [vmem:[#allocation120_spill] sm:$0xff] }
 0x297   :  { %v7516_v48 = vsel %vm4266_vm7, %v14527_v50, %v14644_v13  ;;  %v14651_v59 = vpop.permute.xlu0 %5014  ;;  %v4719_v43 = vadd.f32 %v4687_v63, %v4181_v30  ;;  %v2284_v30 = vmul.f32 %v2195_v36, %v19418_v61  ;;  %v19736_v36 = vrot.slane %v19721_v51, %v11495_v8  ;;  %v19753_v61 = vld [vmem:[#allocation123_spill] sm:$0xff]  ;;  %v19754_v23 = vld [vmem:[#allocation105_spill] sm:$0xff] }
 0x298   :  { %19734 = vst [vmem:[#allocation114_spill] sm:$0xff] %v14651_v59  ;;  %v7757_v47 = vmul.f32 %v7603_v2, %v7516_v48  ;;  %19735 = vst [vmem:[#allocation208_spill] sm:$0xff] %v14689_v35  ;;  %v1778_v48 = vadd.f32 %v1746_v5, %v1240_v49  ;;  %v800_v49 = vsel %vm787_vm0, %v19711_v26, %v19739_v37  ;;  %v19742_v2 = vld [vmem:[#allocation117_spill] sm:$0xff] }
 0x299   :  { %3716 = vrot.lane.b32.xlu1 %v19678_v25, %s11405_s3  ;;  %v14701_v1 = vmul.f32 %v19736_v36, %v13946_v0  ;;  %v14703_v22 = vmax.f32 %v4719_v43, 0.0  ;;  %v264_v36 = vsel %vm249_vm1, %v19741_v33, %v19742_v2  ;;  %v19743_v43 = vld [vmem:[#allocation122_spill] sm:$0xff]  ;;  %v5066_v26 = vsel %vm787_vm0, %v14481_v46, %v14609_v60 }
 0x29a   :  { %8145 = vmatprep.subr.mxu0 %v7757_v47  ;;  %v14679_v63 = vpop.permute.xlu1 %4819  ;;  %7465 = vrot.lane.b32.xlu0 %v13345_v40, %s11407_s30  ;;  %v5165_v47 = vrot.slane %v19740_v7, %v19701_v12  ;;  %v263_v40 = vsel %vm249_vm1, %v19730_v29, %v19741_v33  ;;  %v2665_v9 = vsel %vm2652_vm4, %v19691_v34, %v19743_v43  ;;  %v19749_v34 = vld [vmem:[#allocation70_spill] sm:$0xff] }
 0x29b   :  { %v14685_v42 = vpop.permute.xlu0 %7457  ;;  %19737 = vst [vmem:[#allocation209_spill] sm:$0xff] %v14701_v1  ;;  %19738 = vst [vmem:[#allocation210_spill] sm:$0xff] %v14703_v22  ;;  %v14724_v1 = vadd.f32 %v2284_v30, %v1778_v48  ;;  %v14727_v16 = vmul.f32 %v585_v54, %v19633_v18  ;;  %v5161_v29 = vrot.slane %v19740_v7, %v19517_v44  ;;  %v19746_v48 = vld [vmem:[#allocation87_spill] sm:$0xff] }
 0x29c   :  { %v19745_v33 = vrot.slane %v13469_v38, %v19701_v12  ;;  %v5065_v54 = vsel %vm787_vm0, %v19746_v48, %v14481_v46  ;;  %v19747_v30 = vld [vmem:[#allocation111_spill] sm:$0xff]  ;;  %v7599_v20 = vrot.slane %v14589_v53, %v11495_v8  ;;  %v14753_v35 = vmul.f32 %v19749_v34, %v263_v40 }
 0x29d   :  { %4829 = vrot.lane.b32.xlu1 %v14703_v22, %s11394_s2  ;;  %v4873_v15 = vsel %vm249_vm1, %v19747_v30, %v14562_v19  ;;  %v5307_v48 = vmul.f32 %v5165_v47, %v5066_v26  ;;  %v1338_v2 = vsel %vm1325_vm2, %v19717_v52, %v19753_v61  ;;  %v4872_v10 = vsel %vm249_vm1, %v19754_v23, %v19747_v30 }
 0x29e   :  { %v5013_v5 = vpop.permute.xlu1 %5012  ;;  %v14740_v4 = vmul.f32 %v19745_v33, %v800_v49  ;;  %v14756_v49 = vmul.f32 %v19750_v56, %v264_v36  ;;  %v19751_v33 = vld [vmem:[#allocation60_spill] sm:$0xff]  ;;  %v5169_v40 = vrot.slane %v19740_v7, %v19680_v62  ;;  %v5173_v36 = vrot.slane %v19740_v7, %v19682_v6 }
 0x29f   :  { %v14731_v57 = vpop.permute.xlu0 %1849  ;;  %v19752_v43 = vrot.slane %v19751_v33, %v19517_v44  ;;  %v5306_v56 = vmul.f32 %v5161_v29, %v5065_v54  ;;  %v5068_v47 = vsel %vm787_vm0, %v5013_v5, %v14651_v59  ;;  %v7607_v7 = vrot.slane %v14589_v53, %v19501_v24  ;;  %v19758_v29 = vld [vmem:[#allocation79_spill] sm:$0xff]  ;;  %v19807_v59 = vld [vmem:[#allocation132_spill] sm:$0xff] }
 0x2a0   :  { %19744 = vst [vmem:[#allocation119_spill] sm:$0xff] %v14731_v57  ;;  %v19748_v57 = vld [vmem:[#allocation27_spill] sm:$0xff]  ;;  %v4937_v54 = vmul.f32 %v4872_v10, %v19758_v29  ;;  %v5067_v30 = vsel %vm787_vm0, %v14609_v60, %v5013_v5  ;;  %v7517_v29 = vsel %vm4266_vm7, %v14644_v13, %v14685_v42 }
 0x2a1   :  { %1857 = vrot.lane.b32.xlu0 %v19748_v57, %s11399_s25  ;;  %v14761_v46 = vmul.f32 %v19752_v43, %v2665_v9  ;;  %v19756_v9 = vld [vmem:[#allocation149_spill] sm:$0xff]  ;;  %5022 = vrot.lane.b32.xlu1 %v14703_v22, %s11395_s23  ;;  %v19763_v13 = vld [vmem:[#allocation59_spill] sm:$0xff] }
 0x2a2   :  { %v14773_v34 = vpop.permute.xlu1 %7451  ;;  %v4938_v43 = vmul.f32 %v4873_v15, %v19756_v9  ;;  %v7611_v15 = vrot.slane %v14589_v53, %v11527_v17  ;;  %v11003_v5 = vpack.c.bf16 %v5306_v56, %v4937_v54  ;;  %v19765_v54 = vmov 0.0  }
 0x2a3   :  { %19755 = vst [vmem:[#allocation94_spill] sm:$0xff] %v14773_v34  ;;  %v7515_v52 = vsel %vm4266_vm7, %v14773_v34, %v14527_v50  ;;  %v14781_v26 = vpop.permute.xlu0 %3712  ;;  %v4875_v50 = vsel %vm249_vm1, %v14679_v63, %v14615_v32  ;;  %v5309_v32 = vmul.f32 %v5173_v36, %v5068_v47  ;;  %v5308_v47 = vmul.f32 %v5169_v40, %v5067_v30 }
 0x2a4   :  { %19757 = vst [vmem:[#allocation120_spill] sm:$0xff] %v14781_v26  ;;  %v7756_v23 = vmul.f32 %v7599_v20, %v7515_v52  ;;  %v11001_v9 = vpack.c.bf16 %v5307_v48, %v4938_v43  ;;  %v7820_v20 = vld [vmem:[%s18636_s4] sm:$0xff]  ;;  %v19760_v26 = vld [vmem:[#allocation121_spill] sm:$0xff]  ;;  %v4874_v48 = vsel %vm249_vm1, %v14562_v19, %v14679_v63  ;;  %v4940_v36 = vmul.f32 %v4875_v50, %v19763_v13 }
 0x2a5   :  { %3720 = vrot.lane.b32.xlu0 %v19748_v57, %s11405_s3  ;;  %v19759_v52 = vld [vmem:[#allocation124_spill] sm:$0xff]  ;;  %7467 = vrot.lane.b32.xlu1 %v13946_v0, %s11407_s30  ;;  %v1123_v19 = vrot.slane %v14740_v4, %v11495_v8  ;;  %v19764_v63 = vrot.slane %v13484_v28, %v19701_v12  ;;  %v19766_v40 = vrot.slane %v13469_v38, %v19680_v62 }
 0x2a6   :  { %v801_v34 = vsel %vm787_vm0, %v19739_v37, %v19759_v52  ;;  %v802_v10 = vsel %vm787_vm0, %v19759_v52, %v19760_v26  ;;  %8146 = vmatpush1.msra.mxu0 %v7756_v23  ;;  %v14809_v60 = vpop.permute.xlu1 %7459  ;;  %v7758_v23 = vmul.f32 %v7607_v7, %v7517_v29  ;;  %v19767_v30 = vrot.slane %v13469_v38, %v19682_v6  ;;  %v19770_v29 = vld [vmem:[#allocation171_spill] sm:$0xff] }
 0x2a7   :  { %19761 = vst [vmem:[#allocation87_spill] sm:$0xff] %v14809_v60  ;;  %v7518_v37 = vsel %vm4266_vm7, %v14685_v42, %v14809_v60  ;;  %v14817_v43 = vpop.permute.xlu0 %4248  ;;  %11002 = vmatprep.subr.bf16.mxu0 %v11001_v9  ;;  %10762 = vmatmul.mubr.msk.f32.vlgmr.msra.gmra.mrb[0].mxu0 %vm8122_vm8, %v7820_v20  ;;  %v1583_v42 = vmul.f32 %v19764_v63, %v1338_v2  ;;  %v7821_v2 = vld [vmem:[%s18636_s4 + $0x8] sm:$0xff] }
 0x2a8   :  { %19762 = vst [vmem:[#allocation111_spill] sm:$0xff] %v14817_v43  ;;  %v7759_v56 = vmul.f32 %v7611_v15, %v7518_v37  ;;  %11004 = vmatpush1.bf16.msra.mxu0 %v11003_v5  ;;  %8199 = vmatprep.mubr.f32.mxu0 %v19765_v54  ;;  %v1046_v50 = vmul.f32 %v19766_v40, %v801_v34  ;;  %v19768_v15 = vld [vmem:[#allocation151_spill] sm:$0xff]  ;;  %v19771_v5 = vld [vmem:[#allocation126_spill] sm:$0xff]  ;;  %v19774_v63 = vld [vmem:[#allocation68_spill] sm:$0xff] }
 0x2a9   :  { %4256 = vrot.lane.b32.xlu0 %v19690_v14, %s11407_s30  ;;  %v1047_v9 = vmul.f32 %v19767_v30, %v802_v10  ;;  %v4939_v52 = vmul.f32 %v4874_v48, %v19768_v15  ;;  %v11017_v37 = vpack.c.bf16 %v5309_v32, %v4940_v36  ;;  %v589_v7 = vrot.slane %v14753_v35, %v11495_v8  ;;  %v19772_v48 = vld [vmem:[#allocation33_spill] sm:$0xff] }
 0x2aa   :  { %8222 = vmatprep.subr.mxu1 %v7759_v56  ;;  %v14838_v4 = vpop.permute.xlu1 %3710  ;;  %v593_v34 = vrot.slane %v14756_v49, %v11495_v8  ;;  %v2568_v38 = vadd.f32 %v19770_v29, %v14724_v1  ;;  %3718 = vrot.lane.b32.xlu1 %v19690_v14, %s11405_s3  ;;  %v2985_v32 = vrot.slane %v14761_v46, %v11495_v8  ;;  %v19777_v15 = vld [vmem:[#allocation109_spill] sm:$0xff] }
 0x2ab   :  { %19769 = vst [vmem:[#allocation27_spill] sm:$0xff] %v14838_v4  ;;  %v14849_v10 = vpop.permute.xlu0 %5377  ;;  %8223 = vmatpush1.msra.mxu1 %v7758_v23  ;;  %v3203_v13 = vsel %vm3190_vm5, %v19772_v48, %v19771_v5  ;;  %v11019_v35 = vpack.c.bf16 %v5308_v47, %v4939_v52  ;;  %v1209_v1 = vmul.f32 %v1123_v19, %v19638_v39  ;;  %v19776_v23 = vld [vmem:[#allocation127_spill] sm:$0xff]  ;;  %v19782_v48 = vld [vmem:[#allocation56_spill] sm:$0xff] }
 0x2ac   :  { %11018 = vmatprep.subr.bf16.mxu1 %v11017_v37  ;;  %v1661_v49 = vrot.slane %v1583_v42, %v11495_v8  ;;  %10764 = vmatmul.mubr.msk.f32.vlgmr.msra.gmra.mrb[0].mxu1 %vm8122_vm8, %v7820_v20  ;;  %v703_v46 = vadd.f32 %v14727_v16, %v19538_v27  ;;  %v1127_v36 = vrot.slane %v1046_v50, %v11495_v8 }
 0x2ad   :  { %5385 = vrot.lane.b32.xlu0 %v13946_v0, %s11397_s24  ;;  %10763 = vmatmul.mubr.msk.f32.gmra.mrb[2].mxu0 %vm8122_vm8, %v7821_v2  ;;  %v1131_v47 = vrot.slane %v1047_v9, %v11495_v8  ;;  %v672_v19 = vmul.f32 %v589_v7, %v19633_v18  ;;  %v19775_v42 = vrot.slane %v19774_v63, %v19517_v44 }
 0x2ae   :  { %11020 = vmatpush1.bf16.msra.mxu1 %v11019_v35  ;;  %v14870_v56 = vpop.permute.xlu1 %4246  ;;  %8347 = vmatprep.mubr.f32.mxu0 %v19765_v54  ;;  %v1876_v40 = vsel %vm1863_vm3, %v19723_v11, %v19776_v23  ;;  %v673_v50 = vmul.f32 %v593_v34, %v19633_v18  ;;  %v3074_v30 = vmul.f32 %v2985_v32, %v19316_v3  ;;  %v19784_v35 = vld [vmem:[#allocation130_spill] sm:$0xff] }
 0x2af   :  { %19773 = vst [vmem:[#allocation60_spill] sm:$0xff] %v14870_v56  ;;  %v3448_v20 = vmul.f32 %v19775_v42, %v3203_v13  ;;  %v14880_v16 = vpop.permute.xlu0 %5746  ;;  %4254 = vrot.lane.b32.xlu1 %v19678_v25, %s11407_s30  ;;  %8276 = vmatprep.mubr.f32.mxu1 %v19765_v54  ;;  %v14893_v11 = vrot.slane %v19777_v15, %v19701_v12  ;;  %v19803_v56 = vld [vmem:[#allocation163_spill] sm:$0xff] }
 0x2b0   :  { %v1241_v52 = vadd.f32 %v1209_v1, %v703_v46  ;;  %v1747_v37 = vmul.f32 %v1661_v49, %v19414_v55  ;;  %10765 = vmatmul.mubr.msk.f32.gmra.mrb[2].mxu1 %vm8122_vm8, %v7821_v2  ;;  %v19778_v25 = vrot.slane %v19721_v51, %v19501_v24  ;;  %v19780_v34 = vrot.slane %v19721_v51, %v19491_v45  ;;  %v19785_v1 = vld [vmem:[#allocation48_spill] sm:$0xff] }
 0x2b1   :  { %5754 = vrot.lane.b32.xlu0 %v13946_v0, %s11399_s25  ;;  %v1210_v29 = vmul.f32 %v1127_v36, %v19638_v39  ;;  %v1211_v32 = vmul.f32 %v1131_v47, %v19638_v39  ;;  %v19783_v13 = vrot.slane %v19782_v48, %v19701_v12  ;;  %v3741_v49 = vsel %vm3728_vm6, %v19785_v1, %v19784_v35  ;;  %v19791_v36 = vld [vmem:[#allocation162_spill] sm:$0xff]  ;;  %v19812_v35 = vld [vmem:[#allocation129_spill] sm:$0xff] }
 0x2b2   :  { %v14901_v7 = vmul.f32 %v19778_v25, %v14600_v31  ;;  %v14907_v0 = vmul.f32 %v19780_v34, %v14472_v41  ;;  %v14917_v46 = vpop.permute.xlu1 %4250  ;;  %8424 = vmatprep.mubr.f32.mxu1 %v19765_v54  ;;  %v704_v42 = vadd.f32 %v672_v19, %v19538_v27  ;;  %v3523_v15 = vrot.slane %v3448_v20, %v11495_v8  ;;  %v19806_v54 = vld [vmem:[#allocation16_spill] sm:$0xff] }
 0x2b3   :  { %v2121_v2 = vmul.f32 %v19783_v13, %v1876_v40  ;;  %19786 = vst [vmem:[#allocation149_spill] sm:$0xff] %v14917_v46  ;;  %v14926_v25 = vpop.permute.xlu0 %237  ;;  %4258 = vrot.lane.b32.xlu1 %v19748_v57, %s11407_s30  ;;  %v705_v40 = vadd.f32 %v673_v50, %v19538_v27  ;;  %v3106_v34 = vadd.f32 %v3074_v30, %v2568_v38  ;;  %v19788_v13 = vld [vmem:[#allocation128_spill] sm:$0xff]  ;;  %v19797_v30 = vld [vmem:[#allocation31_spill] sm:$0xff] }
 0x2b4   :  { %19779 = vst [vmem:[#allocation123_spill] sm:$0xff] %v14901_v7  ;;  %19781 = vst [vmem:[#allocation105_spill] sm:$0xff] %v14907_v0  ;;  %v1339_v19 = vsel %vm1325_vm2, %v19753_v61, %v19788_v13  ;;  %v19789_v20 = vrot.slane %v19721_v51, %v11527_v17  ;;  %v14942_v47 = vadd.f32 %v1747_v37, %v1241_v52  ;;  %v19795_v46 = vld [vmem:[#allocation24_spill] sm:$0xff]  ;;  %v19798_v61 = vld [vmem:[#allocation118_spill] sm:$0xff] }
 0x2b5   :  { %19787 = vst [vmem:[#allocation79_spill] sm:$0xff] %v14926_v25  ;;  %245 = vrot.lane.b32.xlu0 %v14893_v11, %s11394_s2  ;;  %v19792_v57 = vrot.slane %v19791_v36, %v19517_v44  ;;  %v14951_v9 = vadd.f32 %v1210_v29, %v704_v42  ;;  %v14953_v14 = vadd.f32 %v1211_v32, %v705_v40  ;;  %v19799_v32 = vld [vmem:[#allocation161_spill] sm:$0xff]  ;;  %v19801_v40 = vld [vmem:[#allocation131_spill] sm:$0xff]  ;;  %v19873_v38 = vld [vmem:[#allocation140_spill] sm:$0xff] }
 0x2b6   :  { %v14940_v1 = vmul.f32 %v19789_v20, %v14703_v22  ;;  %v2199_v25 = vrot.slane %v2121_v2, %v11495_v8  ;;  %v19794_v20 = vld [vmem:[#allocation125_spill] sm:$0xff]  ;;  %v5380_v37 = vpop.permute.xlu1 %5379  ;;  %v3612_v43 = vmul.f32 %v3523_v15, %v19795_v46  ;;  %v4279_v29 = vsel %vm4266_vm7, %v19798_v61, %v19797_v30  ;;  %v19811_v30 = vld [vmem:[#allocation72_spill] sm:$0xff] }
 0x2b7   :  { %v3986_v50 = vmul.f32 %v19792_v57, %v3741_v49  ;;  %v1340_v52 = vsel %vm1325_vm2, %v19788_v13, %v19794_v20  ;;  %v19796_v49 = vrot.slane %v13484_v28, %v19680_v62  ;;  %v5899_v42 = vrot.slane %v19799_v32, %v19517_v44  ;;  %v14970_v2 = vpop.permute.xlu0 %5383  ;;  %5387 = vrot.lane.b32.xlu1 %v14472_v41, %s11397_s24  ;;  %v19802_v13 = vld [vmem:[#allocation117_spill] sm:$0xff] }
 0x2b8   :  { %19790 = vst [vmem:[#allocation124_spill] sm:$0xff] %v14940_v1  ;;  %19800 = vst [vmem:[#allocation121_spill] sm:$0xff] %v14970_v2  ;;  %v265_v15 = vsel %vm249_vm1, %v19802_v13, %v19801_v40  ;;  %v5903_v61 = vrot.slane %v19799_v32, %v19701_v12  ;;  %v19805_v1 = vrot.slane %v13484_v28, %v19682_v6 }
 0x2b9   :  { %v14963_v57 = vmul.f32 %v19796_v49, %v1339_v19  ;;  %v5803_v19 = vsel %vm1863_vm3, %v19803_v56, %v14880_v16  ;;  %v19804_v49 = vld [vmem:[#allocation160_spill] sm:$0xff]  ;;  %5391 = vrot.lane.b32.xlu0 %v14703_v22, %s11397_s24  ;;  %v4061_v13 = vrot.slane %v3986_v50, %v11495_v8  ;;  %v5435_v56 = vsel %vm1325_vm2, %v14849_v10, %v5380_v37 }
 0x2ba   :  { %v5534_v4 = vrot.slane %v19804_v49, %v19701_v12  ;;  %v14989_v7 = vmul.f32 %v19805_v1, %v1340_v52  ;;  %v5530_v0 = vrot.slane %v19804_v49, %v19517_v44  ;;  %v14997_v60 = vmul.f32 %v2199_v25, %v19806_v54  ;;  %v19810_v52 = vld [vmem:[#allocation164_spill] sm:$0xff]  ;;  %v5749_v40 = vpop.permute.xlu1 %5748 }
 0x2bb   :  { %v1877_v53 = vsel %vm1863_vm3, %v19776_v23, %v19807_v59  ;;  %v19809_v28 = vrot.slane %v19808_v21, %v19517_v44  ;;  %v5434_v50 = vsel %vm1325_vm2, %v19810_v52, %v14849_v10  ;;  %v15009_v36 = vmul.f32 %v19811_v30, %v265_v15  ;;  %v15016_v51 = vpop.permute.xlu0 %5752  ;;  %5756 = vrot.lane.b32.xlu1 %v14472_v41, %s11399_s25 }
 0x2bc   :  { %v1878_v25 = vsel %vm1863_vm3, %v19807_v59, %v19812_v35  ;;  %v6044_v46 = vmul.f32 %v5899_v42, %v5803_v19  ;;  %v5804_v23 = vsel %vm1863_vm3, %v14880_v16, %v5749_v40  ;;  %19813 = vst [vmem:[#allocation59_spill] sm:$0xff] %v15016_v51  ;;  %v1665_v10 = vrot.slane %v14963_v57, %v11495_v8  ;;  %v19814_v42 = vld [vmem:[#allocation39_spill] sm:$0xff]  ;;  %v19817_v57 = vld [vmem:[#allocation133_spill] sm:$0xff] }
 0x2bd   :  { %v4524_v1 = vmul.f32 %v19809_v28, %v4279_v29  ;;  %v3644_v29 = vadd.f32 %v3612_v43, %v3106_v34  ;;  %v5676_v28 = vmul.f32 %v5534_v4, %v5435_v56  ;;  %v6045_v15 = vmul.f32 %v5903_v61, %v5804_v23  ;;  %5760 = vrot.lane.b32.xlu0 %v14703_v22, %s11399_s25 }
 0x2be   :  { %v1669_v59 = vrot.slane %v14989_v7, %v11495_v8  ;;  %v4150_v19 = vmul.f32 %v4061_v13, %v19814_v42  ;;  %v19815_v16 = vrot.slane %v19782_v48, %v19680_v62  ;;  %v5675_v30 = vmul.f32 %v5530_v0, %v5434_v50  ;;  %v5382_v56 = vpop.permute.xlu1 %5381  ;;  %v19818_v13 = vld [vmem:[#allocation20_spill] sm:$0xff]  ;;  %v19819_v42 = vld [vmem:[#allocation122_spill] sm:$0xff] }
 0x2bf   :  { %v19816_v43 = vrot.slane %v19782_v48, %v19682_v6  ;;  %v803_v4 = vsel %vm787_vm0, %v19760_v26, %v19817_v57  ;;  %v4599_v61 = vrot.slane %v4524_v1, %v11495_v8  ;;  %v11005_v23 = vpack.c.bf16 %v6045_v15, %v5676_v28  ;;  %v15044_v50 = vpop.permute.xlu0 %241  ;;  %5389 = vrot.lane.b32.xlu1 %v14600_v31, %s11397_s24  ;;  %v19821_v1 = vld [vmem:[#allocation205_spill] sm:$0xff] }
 0x2c0   :  { %v2122_v52 = vmul.f32 %v19815_v16, %v1877_v53  ;;  %v597_v7 = vrot.slane %v15009_v36, %v11495_v8  ;;  %v2666_v53 = vsel %vm2652_vm4, %v19819_v42, %v19818_v13  ;;  %v11007_v0 = vpack.c.bf16 %v6044_v46, %v5675_v30  ;;  %19820 = vst [vmem:[#allocation151_spill] sm:$0xff] %v15044_v50  ;;  %v19824_v50 = vld [vmem:[#allocation12_spill] sm:$0xff] }
 0x2c1   :  { %v2123_v34 = vmul.f32 %v19816_v43, %v1878_v25  ;;  %v5538_v48 = vrot.slane %v19804_v49, %v19680_v62  ;;  %v5542_v26 = vrot.slane %v19804_v49, %v19682_v6  ;;  %783 = vrot.lane.b32.xlu0 %v14893_v11, %s11395_s23  ;;  %11006 = vmatprep.subr.bf16.mxu0 %v11005_v23  ;;  %v19823_v43 = vld [vmem:[#allocation47_spill] sm:$0xff] }
 0x2c2   :  { %v5907_v36 = vrot.slane %v19799_v32, %v19680_v62  ;;  %v5911_v46 = vrot.slane %v19799_v32, %v19682_v6  ;;  %v4182_v30 = vadd.f32 %v4150_v19, %v3644_v29  ;;  %v19822_v25 = vrot.slane %v19821_v1, %v11495_v8  ;;  %11008 = vmatpush1.bf16.msra.mxu0 %v11007_v0  ;;  %v5751_v29 = vpop.permute.xlu1 %5750 }
 0x2c3   :  { %v5436_v15 = vsel %vm1325_vm2, %v5380_v37, %v5382_v56  ;;  %v5437_v49 = vsel %vm1325_vm2, %v5382_v56, %v14970_v2  ;;  %v2203_v42 = vrot.slane %v2122_v52, %v11495_v8  ;;  %v2207_v16 = vrot.slane %v2123_v34, %v11495_v8  ;;  %v19826_v37 = vld [vmem:[#allocation36_spill] sm:$0xff]  ;;  %v15077_v34 = vpop.permute.xlu0 %775  ;;  %5758 = vrot.lane.b32.xlu1 %v14600_v31, %s11399_s25 }
 0x2c4   :  { %v1048_v28 = vmul.f32 %v19822_v25, %v803_v4  ;;  %v4688_v23 = vmul.f32 %v4599_v61, %v19823_v43  ;;  %v1341_v32 = vsel %vm1325_vm2, %v19794_v20, %v19824_v50  ;;  %v19825_v19 = vrot.slane %v19751_v33, %v19701_v12  ;;  %19827 = vst [vmem:[#allocation171_spill] sm:$0xff] %v15077_v34  ;;  %v19830_v50 = vld [vmem:[#allocation134_spill] sm:$0xff] }
 0x2c5   :  { %v2667_v56 = vsel %vm2652_vm4, %v19818_v13, %v19826_v37  ;;  %v5805_v0 = vsel %vm1863_vm3, %v5749_v40, %v5751_v29  ;;  %v5806_v52 = vsel %vm1863_vm3, %v5751_v29, %v15016_v51  ;;  %v5677_v20 = vmul.f32 %v5538_v48, %v5436_v15  ;;  %6362 = vrot.lane.b32.xlu0 %v14472_v41, %s11401_s26 }
 0x2c6   :  { %v2911_v4 = vmul.f32 %v19825_v19, %v2666_v53  ;;  %v5678_v61 = vmul.f32 %v5542_v26, %v5437_v49  ;;  %v6046_v25 = vmul.f32 %v5907_v36, %v5805_v0  ;;  %v6047_v2 = vmul.f32 %v5911_v46, %v5806_v52  ;;  %v19828_v19 = vld [vmem:[#allocation106_spill] sm:$0xff]  ;;  %v15092_v36 = vpop.permute.xlu1 %239  ;;  %v19833_v49 = vld [vmem:[#allocation61_spill] sm:$0xff] }
 0x2c7   :  { %v1748_v53 = vmul.f32 %v1665_v10, %v19414_v55  ;;  %v1749_v13 = vmul.f32 %v1669_v59, %v19414_v55  ;;  %v1135_v40 = vrot.slane %v1048_v28, %v11495_v8  ;;  %v19829_v29 = vrot.slane %v19828_v19, %v11495_v8  ;;  %19831 = vst [vmem:[#allocation126_spill] sm:$0xff] %v15092_v36 }
 0x2c8   :  { %v4720_v51 = vadd.f32 %v4688_v23, %v4182_v30  ;;  %v2668_v48 = vsel %vm2652_vm4, %v19826_v37, %v19830_v50  ;;  %v11023_v26 = vpack.c.bf16 %v6046_v25, %v5677_v20  ;;  %v11021_v46 = vpack.c.bf16 %v6047_v2, %v5678_v61  ;;  %v15102_v23 = vpop.permute.xlu0 %779  ;;  %2646 = vrot.lane.b32.xlu1 %v14893_v11, %s11401_s26 }
 0x2c9   :  { %v1586_v34 = vmul.f32 %v19829_v29, %v1341_v32  ;;  %v2286_v15 = vmul.f32 %v2203_v42, %v19806_v54  ;;  %v2287_v10 = vmul.f32 %v2207_v16, %v19806_v54  ;;  %v19832_v59 = vrot.slane %v19751_v33, %v19680_v62  ;;  %19834 = vst [vmem:[#allocation33_spill] sm:$0xff] %v15102_v23  ;;  %v19840_v29 = vld [vmem:[#allocation204_spill] sm:$0xff]  ;;  %v19867_v23 = vld [vmem:[#allocation162_spill] sm:$0xff] }
 0x2ca   :  { %v3204_v30 = vsel %vm3190_vm5, %v19771_v5, %v19833_v49  ;;  %v2317_v2 = vadd.f32 %v14997_v60, %v14942_v47  ;;  %v674_v42 = vmul.f32 %v597_v7, %v19633_v18  ;;  %v2989_v16 = vrot.slane %v2911_v4, %v11495_v8  ;;  %1321 = vrot.lane.b32.xlu0 %v14893_v11, %s11397_s24  ;;  %v15126_v52 = vpop.permute.xlu1 %2638 }
 0x2cb   :  { %v2912_v28 = vmul.f32 %v19832_v59, %v2667_v56  ;;  %11022 = vmatprep.subr.bf16.mxu1 %v11021_v46  ;;  %v1780_v32 = vadd.f32 %v1748_v53, %v14951_v9  ;;  %v1781_v5 = vadd.f32 %v1749_v13, %v14953_v14  ;;  %v1673_v37 = vrot.slane %v1586_v34, %v11495_v8  ;;  %v19839_v53 = vld [vmem:[#allocation172_spill] sm:$0xff]  ;;  %v19842_v46 = vld [vmem:[#allocation69_spill] sm:$0xff] }
 0x2cc   :  { %v19835_v56 = vrot.slane %v19751_v33, %v19682_v6  ;;  %11024 = vmatpush1.bf16.msra.mxu1 %v11023_v26  ;;  %v1212_v60 = vmul.f32 %v1135_v40, %v19638_v39  ;;  %v15119_v47 = vmax.f32 %v4720_v51, 0.0  ;;  %v19836_v7 = vrot.slane %v19774_v63, %v19701_v12  ;;  %19837 = vst [vmem:[#allocation68_spill] sm:$0xff] %v15126_v52  ;;  %v19838_v33 = vld [vmem:[#allocation65_spill] sm:$0xff]  ;;  %v6355_v25 = vpop.permute.xlu0 %6354 }
 0x2cd   :  { %v2318_v14 = vadd.f32 %v2286_v15, %v1780_v32  ;;  %v2319_v34 = vadd.f32 %v2287_v10, %v1781_v5  ;;  %v2993_v20 = vrot.slane %v2912_v28, %v11495_v8  ;;  %v1879_v61 = vsel %vm1863_vm3, %v19812_v35, %v19838_v33  ;;  %3184 = vrot.lane.b32.xlu1 %v14893_v11, %s11404_s29  ;;  %v19856_v59 = vld [vmem:[#allocation73_spill] sm:$0xff] }
 0x2ce   :  { %v2913_v0 = vmul.f32 %v19835_v56, %v2668_v48  ;;  %v3449_v4 = vmul.f32 %v19836_v7, %v3204_v30  ;;  %v706_v51 = vadd.f32 %v674_v42, %v19538_v27  ;;  %v2569_v13 = vadd.f32 %v19839_v53, %v2317_v2  ;;  %6368 = vrot.lane.b32.xlu0 %v15119_v47, %s11401_s26  ;;  %v19845_v42 = vld [vmem:[#allocation44_spill] sm:$0xff]  ;;  %v15157_v32 = vpop.permute.xlu1 %777 }
 0x2cf   :  { %v3075_v40 = vmul.f32 %v2989_v16, %v19316_v3  ;;  %v15139_v48 = vrot.slane %v19840_v29, %v19701_v12  ;;  %v1750_v26 = vmul.f32 %v1673_v37, %v19414_v55  ;;  %v3205_v15 = vsel %vm3190_vm5, %v19833_v49, %v19842_v46  ;;  %19846 = vst [vmem:[#allocation109_spill] sm:$0xff] %v15157_v32  ;;  %v19847_v49 = vld [vmem:[#allocation174_spill] sm:$0xff] }
 0x2d0   :  { %v2997_v35 = vrot.slane %v2913_v0, %v11495_v8  ;;  %v3527_v28 = vrot.slane %v3449_v4, %v11495_v8  ;;  %v19844_v30 = vrot.slane %v19726_v58, %v11495_v8  ;;  %v3206_v16 = vsel %vm3190_vm5, %v19842_v46, %v19845_v42  ;;  %v19848_v0 = vld [vmem:[#allocation175_spill] sm:$0xff]  ;;  %v15164_v53 = vpop.permute.xlu0 %1313 }
 0x2d1   :  { %19841 = vst [vmem:[#allocation127_spill] sm:$0xff] %v15139_v48  ;;  %v1244_v37 = vadd.f32 %v1212_v60, %v706_v51  ;;  %v2570_v56 = vadd.f32 %v19847_v49, %v2318_v14  ;;  %v2571_v7 = vadd.f32 %v19848_v0, %v2319_v34  ;;  %v3076_v4 = vmul.f32 %v2993_v20, %v19316_v3  ;;  %v19855_v49 = vld [vmem:[#allocation24_spill] sm:$0xff]  ;;  %v19857_v60 = vld [vmem:[#allocation130_spill] sm:$0xff] }
 0x2d2   :  { %v2124_v2 = vmul.f32 %v19844_v30, %v1879_v61  ;;  %19849 = vst [vmem:[#allocation56_spill] sm:$0xff] %v15164_v53  ;;  %6364 = vrot.lane.b32.xlu1 %v14600_v31, %s11401_s26  ;;  %v3107_v61 = vadd.f32 %v3075_v40, %v2569_v13  ;;  %v19850_v46 = vrot.slane %v19774_v63, %v19680_v62  ;;  %v19852_v13 = vld [vmem:[#allocation49_spill] sm:$0xff] }
 0x2d3   :  { %1859 = vrot.lane.b32.xlu0 %v14893_v11, %s11399_s25  ;;  %v15177_v14 = vadd.f32 %v1750_v26, %v1244_v37  ;;  %v3077_v34 = vmul.f32 %v2997_v35, %v19316_v3  ;;  %v19851_v20 = vrot.slane %v19774_v63, %v19682_v6  ;;  %v19853_v40 = vrot.slane %v19852_v13, %v19517_v44  ;;  %v19858_v37 = vld [vmem:[#allocation136_spill] sm:$0xff]  ;;  %v15197_v63 = vpop.permute.xlu1 %3176 }
 0x2d4   :  { %v3450_v30 = vmul.f32 %v19850_v46, %v3205_v15  ;;  %v3613_v0 = vmul.f32 %v3527_v28, %v19855_v49  ;;  %v2211_v46 = vrot.slane %v2124_v2, %v11495_v8  ;;  %v3742_v26 = vsel %vm3728_vm6, %v19857_v60, %v19856_v59  ;;  %19859 = vst [vmem:[#allocation128_spill] sm:$0xff] %v15197_v63  ;;  %v19862_v2 = vld [vmem:[#allocation180_spill] sm:$0xff]  ;;  %v15208_v9 = vpop.permute.xlu0 %6360  ;;  %v19864_v60 = vld [vmem:[#allocation135_spill] sm:$0xff] }
 0x2d5   :  { %v3451_v51 = vmul.f32 %v19851_v20, %v3206_v16  ;;  %v15187_v15 = vmul.f32 %v19853_v40, %v15119_v47  ;;  %v3743_v35 = vsel %vm3728_vm6, %v19856_v59, %v19858_v37  ;;  %v3108_v16 = vadd.f32 %v3076_v4, %v2570_v56  ;;  %v19860_v20 = vld [vmem:[#allocation46_spill] sm:$0xff]  ;;  %19863 = vst [vmem:[#allocation118_spill] sm:$0xff] %v15208_v9 }
 0x2d6   :  { %v3744_v40 = vsel %vm3728_vm6, %v19858_v37, %v19860_v20  ;;  %v15204_v28 = vrot.slane %v19840_v29, %v19680_v62  ;;  %v6508_v5 = vrot.slane %v19862_v2, %v19517_v44  ;;  %6366 = vrot.lane.b32.xlu1 %v14703_v22, %s11401_s26  ;;  %v3531_v59 = vrot.slane %v3450_v30, %v11495_v8  ;;  %v19865_v56 = vld [vmem:[#allocation138_spill] sm:$0xff] }
 0x2d7   :  { %19854 = vst [vmem:[#allocation48_spill] sm:$0xff] %v15187_v15  ;;  %v4281_v4 = vsel %vm4266_vm7, %v19865_v56, %v19864_v60  ;;  %v19866_v15 = vld [vmem:[#allocation201_spill] sm:$0xff]  ;;  %6731 = vrot.lane.b32.xlu0 %v14472_v41, %s11404_s29  ;;  %v6512_v63 = vrot.slane %v19862_v2, %v19701_v12  ;;  %v3535_v53 = vrot.slane %v3451_v51, %v11495_v8  ;;  %v6357_v55 = vpop.permute.xlu1 %6356 }
 0x2d8   :  { %19861 = vst [vmem:[#allocation125_spill] sm:$0xff] %v15204_v28  ;;  %v6412_v37 = vsel %vm2652_vm4, %v19866_v15, %v6355_v25  ;;  %v19868_v32 = vrot.slane %v19867_v23, %v19701_v12  ;;  %v19869_v30 = vrot.slane %v19867_v23, %v19680_v62  ;;  %v19870_v28 = vld [vmem:[#allocation31_spill] sm:$0xff]  ;;  %v3109_v48 = vadd.f32 %v3077_v34, %v2571_v7  ;;  %v15243_v7 = vpop.permute.xlu0 %1317 }
 0x2d9   :  { %v4280_v15 = vsel %vm4266_vm7, %v19870_v28, %v19865_v56  ;;  %v3645_v10 = vadd.f32 %v3613_v0, %v3107_v61  ;;  %v2288_v20 = vmul.f32 %v2211_v46, %v19806_v54  ;;  %v19871_v58 = vrot.slane %v19867_v23, %v19682_v6  ;;  %19874 = vst [vmem:[#allocation161_spill] sm:$0xff] %v15243_v7  ;;  %v19877_v56 = vld [vmem:[#allocation131_spill] sm:$0xff]  ;;  %v19894_v7 = vld [vmem:[#allocation145_spill] sm:$0xff] }
 0x2da   :  { %v3987_v52 = vmul.f32 %v19868_v32, %v3742_v26  ;;  %v3988_v36 = vmul.f32 %v19869_v30, %v3743_v35  ;;  %v19872_v32 = vrot.slane %v19808_v21, %v19680_v62  ;;  %v4282_v35 = vsel %vm4266_vm7, %v19864_v60, %v19873_v38  ;;  %3722 = vrot.lane.b32.xlu1 %v14893_v11, %s11405_s3 }
 0x2db   :  { %v3989_v51 = vmul.f32 %v19871_v58, %v3744_v40  ;;  %v6653_v30 = vmul.f32 %v6508_v5, %v6412_v37  ;;  %v6413_v28 = vsel %vm2652_vm4, %v6355_v25, %v6357_v55  ;;  %v19875_v58 = vrot.slane %v19808_v21, %v19701_v12  ;;  %7100 = vrot.lane.b32.xlu0 %v14472_v41, %s11405_s3 }
 0x2dc   :  { %v4526_v26 = vmul.f32 %v19872_v32, %v4281_v4  ;;  %v6654_v61 = vmul.f32 %v6512_v63, %v6413_v28  ;;  %v6516_v34 = vrot.slane %v19862_v2, %v19680_v62  ;;  %v6520_v5 = vrot.slane %v19862_v2, %v19682_v6  ;;  %v19876_v63 = vld [vmem:[#allocation137_spill] sm:$0xff]  ;;  %v6359_v32 = vpop.permute.xlu1 %6358  ;;  %v19879_v2 = vld [vmem:[#allocation50_spill] sm:$0xff] }
 0x2dd   :  { %v4525_v23 = vmul.f32 %v19875_v58, %v4280_v15  ;;  %v3614_v25 = vmul.f32 %v3531_v59, %v19855_v49  ;;  %v3615_v0 = vmul.f32 %v3535_v53, %v19855_v49  ;;  %v4065_v46 = vrot.slane %v3987_v52, %v11495_v8  ;;  %v19880_v53 = vld [vmem:[#allocation142_spill] sm:$0xff] }
 0x2de   :  { %v4069_v40 = vrot.slane %v3988_v36, %v11495_v8  ;;  %v4073_v60 = vrot.slane %v3989_v51, %v11495_v8  ;;  %v266_v4 = vsel %vm249_vm1, %v19877_v56, %v19876_v63  ;;  %v19878_v37 = vrot.slane %v19808_v21, %v19682_v6  ;;  %v15273_v51 = vpop.permute.xlu0 %1851  ;;  %4260 = vrot.lane.b32.xlu1 %v14893_v11, %s11407_s30 }
 0x2df   :  { %v11009_v28 = vpack.c.bf16 %v6654_v61, %v19879_v2  ;;  %v4607_v59 = vrot.slane %v4526_v26, %v11495_v8  ;;  %v11011_v58 = vpack.c.bf16 %v6653_v30, %v19880_v53  ;;  %v6414_v52 = vsel %vm2652_vm4, %v6357_v55, %v6359_v32  ;;  %19881 = vst [vmem:[#allocation117_spill] sm:$0xff] %v15273_v51  ;;  %v19882_v26 = vld [vmem:[#allocation39_spill] sm:$0xff]  ;;  %v19883_v61 = vld [vmem:[#allocation22_spill] sm:$0xff] }
 0x2e0   :  { %v4527_v15 = vmul.f32 %v19878_v37, %v4282_v35  ;;  %v6415_v36 = vsel %vm2652_vm4, %v6359_v32, %v15208_v9  ;;  %v4603_v21 = vrot.slane %v4525_v23, %v11495_v8  ;;  %v6655_v35 = vmul.f32 %v6516_v34, %v6414_v52  ;;  %6735 = vrot.lane.b32.xlu0 %v14703_v22, %s11404_s29  ;;  %v19884_v37 = vld [vmem:[#allocation141_spill] sm:$0xff]  ;;  %v19885_v2 = vld [vmem:[#allocation143_spill] sm:$0xff] }
 0x2e1   :  { %v6656_v56 = vmul.f32 %v6520_v5, %v6415_v36  ;;  %11010 = vmatprep.subr.bf16.mxu0 %v11009_v28  ;;  %v4152_v30 = vmul.f32 %v4069_v40, %v19882_v26  ;;  %v510_v55 = vmul.f32 %v19883_v61, %v266_v4  ;;  %v804_v32 = vsel %vm787_vm0, %v19817_v57, %v19884_v37  ;;  %v19886_v5 = vld [vmem:[#allocation7_spill] sm:$0xff]  ;;  %v15291_v28 = vpop.permute.xlu1 %1315  ;;  %v19888_v40 = vld [vmem:[#allocation97_spill] sm:$0xff] }
 0x2e2   :  { %v267_v11 = vsel %vm249_vm1, %v19876_v63, %v19885_v2  ;;  %11012 = vmatpush1.bf16.msra.mxu0 %v11011_v58  ;;  %v4151_v23 = vmul.f32 %v4065_v46, %v19882_v26  ;;  %v4611_v34 = vrot.slane %v4527_v15, %v11495_v8  ;;  %v11027_v53 = vpack.c.bf16 %v6655_v35, %v19886_v5  ;;  %v19889_v61 = vld [vmem:[#allocation139_spill] sm:$0xff]  ;;  %v15299_v58 = vpop.permute.xlu0 %1855 }
 0x2e3   :  { %19887 = vst [vmem:[#allocation163_spill] sm:$0xff] %v15291_v28  ;;  %v11025_v52 = vpack.c.bf16 %v6656_v56, %v19888_v40  ;;  %v3646_v4 = vadd.f32 %v3614_v25, %v3108_v16  ;;  %v4153_v36 = vmul.f32 %v4073_v60, %v19882_v26  ;;  %v4690_v57 = vmul.f32 %v4607_v59, %v19823_v43  ;;  %v19892_v16 = vld [vmem:[#allocation113_spill] sm:$0xff]  ;;  %v19893_v40 = vld [vmem:[#allocation18_spill] sm:$0xff] }
 0x2e4   :  { %v268_v63 = vsel %vm249_vm1, %v19885_v2, %v19889_v61  ;;  %19890 = vst [vmem:[#allocation160_spill] sm:$0xff] %v15299_v58  ;;  %6733 = vrot.lane.b32.xlu1 %v14600_v31, %s11404_s29  ;;  %v4689_v46 = vmul.f32 %v4603_v21, %v19823_v43  ;;  %v19891_v15 = vrot.slane %v19821_v1, %v19491_v45 }
 0x2e5   :  { %v511_v25 = vmul.f32 %v19892_v16, %v267_v11  ;;  %7104 = vrot.lane.b32.xlu0 %v14703_v22, %s11405_s3  ;;  %11026 = vmatprep.subr.bf16.mxu1 %v11025_v52  ;;  %v2320_v60 = vadd.f32 %v2288_v20, %v15177_v14  ;;  %v3647_v59 = vadd.f32 %v3615_v0, %v3109_v48  ;;  %v15317_v11 = vpop.permute.xlu1 %3714  ;;  %v19896_v16 = vld [vmem:[#allocation146_spill] sm:$0xff]  ;;  %v19897_v14 = vld [vmem:[#allocation12_spill] sm:$0xff] }
 0x2e6   :  { %v1049_v35 = vmul.f32 %v19891_v15, %v804_v32  ;;  %v4184_v56 = vadd.f32 %v4152_v30, %v3646_v4  ;;  %v601_v2 = vrot.slane %v510_v55, %v11495_v8  ;;  %11028 = vmatpush1.bf16.msra.mxu1 %v11027_v53  ;;  %v4183_v5 = vadd.f32 %v4151_v23, %v3645_v10  ;;  %v15326_v10 = vpop.permute.xlu0 %6723  ;;  %v19899_v55 = vld [vmem:[#allocation147_spill] sm:$0xff]  ;;  %v19901_v53 = vld [vmem:[#allocation176_spill] sm:$0xff] }
 0x2e7   :  { %v4691_v21 = vmul.f32 %v4611_v34, %v19823_v43  ;;  %v512_v58 = vmul.f32 %v19893_v40, %v268_v63  ;;  %v2669_v32 = vsel %vm2652_vm4, %v19830_v50, %v19894_v7  ;;  %19895 = vst [vmem:[#allocation132_spill] sm:$0xff] %v15317_v11  ;;  %v4185_v15 = vadd.f32 %v4153_v36, %v3647_v59  ;;  %v19900_v34 = vld [vmem:[#allocation8_spill] sm:$0xff]  ;;  %v19920_v11 = vld [vmem:[#allocation14_spill] sm:$0xff] }
 0x2e8   :  { %v4722_v52 = vadd.f32 %v4690_v57, %v4184_v56  ;;  %v1342_v48 = vsel %vm1325_vm2, %v19897_v14, %v19896_v16  ;;  %v15324_v20 = vrot.slane %v19840_v29, %v19682_v6  ;;  %7102 = vrot.lane.b32.xlu1 %v14600_v31, %s11405_s3  ;;  %v4721_v0 = vadd.f32 %v4689_v46, %v4183_v5  ;;  %v19902_v36 = vld [vmem:[#allocation168_spill] sm:$0xff] }
 0x2e9   :  { %v1139_v50 = vrot.slane %v1049_v35, %v11495_v8  ;;  %v605_v30 = vrot.slane %v511_v25, %v11495_v8  ;;  %v805_v23 = vsel %vm787_vm0, %v19884_v37, %v19899_v55  ;;  %2648 = vrot.lane.b32.xlu0 %v19900_v34, %s11401_s26  ;;  %v675_v29 = vmul.f32 %v601_v2, %v19633_v18  ;;  %v15350_v2 = vpop.permute.xlu1 %1853 }
 0x2ea   :  { %19898 = vst [vmem:[#allocation165_spill] sm:$0xff] %v15324_v20  ;;  %v2572_v4 = vadd.f32 %v19901_v53, %v2320_v60  ;;  %v19903_v57 = vrot.slane %v19902_v36, %v11495_v8  ;;  %v4723_v35 = vadd.f32 %v4691_v21, %v4185_v15  ;;  %v609_v25 = vrot.slane %v512_v58, %v11495_v8  ;;  %v7093_v15 = vpop.permute.xlu0 %7092  ;;  %v19907_v53 = vld [vmem:[#allocation144_spill] sm:$0xff] }
 0x2eb   :  { %v19904_v37 = vrot.slane %v19828_v19, %v19491_v45  ;;  %19905 = vst [vmem:[#allocation164_spill] sm:$0xff] %v15350_v2  ;;  %v15352_v60 = vmax.f32 %v4722_v52, 0.0  ;;  %v19906_v5 = vrot.slane %v19821_v1, %v19501_v24  ;;  %v15363_v14 = vmax.f32 %v4721_v0, 0.0  ;;  %v19912_v0 = vld [vmem:[#allocation42_spill] sm:$0xff] }
 0x2ec   :  { %v2914_v63 = vmul.f32 %v19903_v57, %v2669_v32  ;;  %6737 = vrot.lane.b32.xlu1 %v15119_v47, %s11404_s29  ;;  %v676_v52 = vmul.f32 %v605_v30, %v19633_v18  ;;  %v707_v57 = vadd.f32 %v675_v29, %v19538_v27  ;;  %v677_v30 = vmul.f32 %v609_v25, %v19633_v18 }
 0x2ed   :  { %v1587_v59 = vmul.f32 %v19904_v37, %v1342_v48  ;;  %v1050_v32 = vmul.f32 %v19906_v5, %v805_v23  ;;  %v1213_v48 = vmul.f32 %v1139_v50, %v19638_v39  ;;  %v806_v23 = vsel %vm787_vm0, %v19899_v55, %v19907_v53  ;;  %4831 = vrot.lane.b32.xlu0 %v15119_v47, %s11394_s2  ;;  %v19908_v5 = vld [vmem:[#allocation166_spill] sm:$0xff]  ;;  %v15385_v46 = vpop.permute.xlu1 %4252 }
 0x2ee   :  { %v3001_v37 = vrot.slane %v2914_v63, %v11495_v8  ;;  %v15378_v50 = vmax.f32 %v4723_v35, 0.0  ;;  %v19909_v55 = vld [vmem:[#allocation150_spill] sm:$0xff]  ;;  %19910 = vst [vmem:[#allocation129_spill] sm:$0xff] %v15385_v46  ;;  %v19911_v29 = vrot.slane %v19821_v1, %v11527_v17  ;;  %v15393_v40 = vpop.permute.xlu0 %6727  ;;  %v708_v46 = vadd.f32 %v676_v52, %v19538_v27 }
 0x2ef   :  { %v1677_v21 = vrot.slane %v1587_v59, %v11495_v8  ;;  %v3207_v56 = vsel %vm3190_vm5, %v19845_v42, %v19909_v55  ;;  %v1143_v58 = vrot.slane %v1050_v32, %v11495_v8  ;;  %v19913_v42 = vrot.slane %v19852_v13, %v19680_v62  ;;  %v19919_v32 = vld [vmem:[#allocation38_spill] sm:$0xff] }
 0x2f0   :  { %v1051_v63 = vmul.f32 %v19911_v29, %v806_v23  ;;  %7106 = vrot.lane.b32.xlu1 %v15119_v47, %s11405_s3  ;;  %v1245_v59 = vadd.f32 %v1213_v48, %v707_v57  ;;  %v19915_v23 = vrot.slane %v19852_v13, %v19701_v12  ;;  %v3078_v35 = vmul.f32 %v3001_v37, %v19316_v3  ;;  %v19918_v57 = vld [vmem:[#allocation54_spill] sm:$0xff] }
 0x2f1   :  { %v15401_v25 = vmul.f32 %v19913_v42, %v15352_v60  ;;  %5024 = vrot.lane.b32.xlu0 %v15119_v47, %s11395_s23  ;;  %v19917_v42 = vrot.slane %v19908_v5, %v11495_v8  ;;  %v1880_v52 = vsel %vm1863_vm3, %v19838_v33, %v19918_v57  ;;  %v15424_v2 = vadd.f32 %v677_v30, %v19538_v27  ;;  %v6726_v37 = vpop.permute.xlu1 %6725  ;;  %v19932_v27 = vld [vmem:[#allocation153_spill] sm:$0xff] }
 0x2f2   :  { %v15412_v29 = vmul.f32 %v19915_v23, %v15363_v14  ;;  %v1751_v28 = vmul.f32 %v1677_v21, %v19920_v11  ;;  %v19921_v23 = vld [vmem:[#allocation207_spill] sm:$0xff]  ;;  %v1147_v33 = vrot.slane %v1051_v63, %v11495_v8  ;;  %v1214_v51 = vmul.f32 %v1143_v58, %v19638_v39  ;;  %v7097_v9 = vpop.permute.xlu0 %7096  ;;  %v19927_v63 = vld [vmem:[#allocation76_spill] sm:$0xff] }
 0x2f3   :  { %19914 = vst [vmem:[#allocation133_spill] sm:$0xff] %v15401_v25  ;;  %v3452_v48 = vmul.f32 %v19917_v42, %v3207_v56  ;;  %v19922_v56 = vrot.slane %v19852_v13, %v19682_v6  ;;  %v19924_v25 = vld [vmem:[#allocation107_spill] sm:$0xff]  ;;  %v6881_v58 = vrot.slane %v19927_v63, %v19701_v12  ;;  %v15454_v20 = vadd.f32 %v3078_v35, %v2572_v4  ;;  %v19931_v4 = vld [vmem:[#allocation40_spill] sm:$0xff] }
 0x2f4   :  { %19916 = vst [vmem:[#allocation20_spill] sm:$0xff] %v15412_v29  ;;  %v7246_v21 = vrot.slane %v19924_v25, %v19517_v44  ;;  %3186 = vrot.lane.b32.xlu1 %v19900_v34, %s11404_s29  ;;  %v19925_v29 = vrot.slane %v19921_v23, %v19491_v45  ;;  %v7250_v30 = vrot.slane %v19924_v25, %v19701_v12 }
 0x2f5   :  { %v15433_v42 = vmul.f32 %v19922_v56, %v15378_v50  ;;  %v19926_v56 = vld [vmem:[#allocation53_spill] sm:$0xff]  ;;  %7469 = vrot.lane.b32.xlu0 %v14472_v41, %s11407_s30  ;;  %v3539_v3 = vrot.slane %v3452_v48, %v11495_v8  ;;  %v6877_v22 = vrot.slane %v19927_v63, %v19517_v44  ;;  %v19930_v41 = vld [vmem:[#allocation148_spill] sm:$0xff]  ;;  %v6781_v35 = vsel %vm3190_vm5, %v19931_v4, %v15326_v10  ;;  %v7095_v48 = vpop.permute.xlu1 %7094 }
 0x2f6   :  { %v2125_v13 = vmul.f32 %v19925_v29, %v1880_v52  ;;  %v6782_v29 = vsel %vm3190_vm5, %v15326_v10, %v6726_v37  ;;  %v15461_v52 = vadd.f32 %v1751_v28, %v1245_v59  ;;  %v15473_v55 = vmul.f32 %v1147_v33, %v19638_v39 }
 0x2f7   :  { %19923 = vst [vmem:[#allocation122_spill] sm:$0xff] %v15433_v42  ;;  %v7150_v42 = vsel %vm3728_vm6, %v19926_v56, %v7093_v15  ;;  %v19929_v56 = vld [vmem:[#allocation58_spill] sm:$0xff]  ;;  %v269_v28 = vsel %vm249_vm1, %v19889_v61, %v19932_v27  ;;  %v7151_v43 = vsel %vm3728_vm6, %v7093_v15, %v7095_v48  ;;  %v7023_v4 = vmul.f32 %v6881_v58, %v6782_v29 }
 0x2f8   :  { %19928 = vst [vmem:[#allocation205_spill] sm:$0xff] %v15461_v52  ;;  %v1343_v5 = vsel %vm1325_vm2, %v19896_v16, %v19929_v56  ;;  %v1344_v12 = vsel %vm1325_vm2, %v19929_v56, %v19930_v41  ;;  %v7391_v59 = vmul.f32 %v7246_v21, %v7150_v42  ;;  %v15479_v16 = vpop.permute.xlu0 %243  ;;  %4833 = vrot.lane.b32.xlu1 %v15363_v14, %s11394_s2  ;;  %v19938_v58 = vld [vmem:[#allocation170_spill] sm:$0xff] }
 0x2f9   :  { %19933 = vst [vmem:[#allocation36_spill] sm:$0xff] %v15479_v16  ;;  %v15483_v56 = vadd.f32 %v1214_v51, %v708_v46  ;;  %v2215_v10 = vrot.slane %v2125_v13, %v11495_v8  ;;  %v7392_v52 = vmul.f32 %v7250_v30, %v7151_v43  ;;  %3724 = vrot.lane.b32.xlu0 %v19900_v34, %s11405_s3  ;;  %v19936_v51 = vld [vmem:[#allocation62_spill] sm:$0xff] }
 0x2fa   :  { %v3616_v33 = vmul.f32 %v3539_v3, %v19855_v49  ;;  %v19934_v61 = vrot.slane %v19828_v19, %v19501_v24  ;;  %v19935_v42 = vrot.slane %v19828_v19, %v11527_v17  ;;  %v7022_v16 = vmul.f32 %v6877_v22, %v6781_v35  ;;  %v19937_v46 = vld [vmem:[#allocation46_spill] sm:$0xff]  ;;  %v15502_v3 = vpop.permute.xlu1 %6729  ;;  %v19941_v49 = vld [vmem:[#allocation152_spill] sm:$0xff] }
 0x2fb   :  { %v3745_v13 = vsel %vm3728_vm6, %v19937_v46, %v19936_v51  ;;  %v513_v43 = vmul.f32 %v19938_v58, %v269_v28  ;;  %v19939_v30 = vld [vmem:[#allocation66_spill] sm:$0xff]  ;;  %19940 = vst [vmem:[#allocation134_spill] sm:$0xff] %v15502_v3  ;;  %v11013_v27 = vpack.c.bf16 %v7392_v52, %v7023_v4  ;;  %v7254_v35 = vrot.slane %v19924_v25, %v19680_v62  ;;  %v19945_v4 = vld [vmem:[#allocation67_spill] sm:$0xff] }
 0x2fc   :  { %v1588_v15 = vmul.f32 %v19934_v61, %v1343_v5  ;;  %v1589_v21 = vmul.f32 %v19935_v42, %v1344_v12  ;;  %v1881_v29 = vsel %vm1863_vm3, %v19918_v57, %v19939_v30  ;;  %v1882_v5 = vsel %vm1863_vm3, %v19939_v30, %v19941_v49  ;;  %v19942_v61 = vld [vmem:[#allocation63_spill] sm:$0xff]  ;;  %v15512_v28 = vpop.permute.xlu0 %781  ;;  %5026 = vrot.lane.b32.xlu1 %v15363_v14, %s11395_s23 }
 0x2fd   :  { %v807_v12 = vsel %vm787_vm0, %v19907_v53, %v19942_v61  ;;  %v11015_v22 = vpack.c.bf16 %v7391_v59, %v7022_v16  ;;  %19943 = vst [vmem:[#allocation61_spill] sm:$0xff] %v15512_v28  ;;  %v7152_v57 = vsel %vm3728_vm6, %v7095_v48, %v7097_v9  ;;  %v6889_v52 = vrot.slane %v19927_v63, %v19682_v6 }
 0x2fe   :  { %4837 = vrot.lane.b32.xlu0 %v15378_v50, %s11394_s2  ;;  %11014 = vmatprep.subr.bf16.mxu0 %v11013_v27  ;;  %v7258_v53 = vrot.slane %v19924_v25, %v19682_v6  ;;  %v19944_v59 = vrot.slane %v19921_v23, %v19501_v24  ;;  %v4283_v42 = vsel %vm4266_vm7, %v19873_v38, %v19945_v4  ;;  %v15543_v58 = vpop.permute.xlu1 %7098 }
 0x2ff   :  { %v6885_v48 = vrot.slane %v19927_v63, %v19680_v62  ;;  %v6784_v46 = vsel %vm3190_vm5, %v15393_v40, %v15502_v3  ;;  %11016 = vmatpush1.bf16.msra.mxu0 %v11015_v22  ;;  %v1681_v27 = vrot.slane %v1588_v15, %v11495_v8  ;;  %v19946_v25 = vrot.slane %v19912_v0, %v11495_v8 }
 0x300   :  { %v2126_v16 = vmul.f32 %v19944_v59, %v1881_v29  ;;  %v19947_v29 = vrot.slane %v19921_v23, %v11527_v17  ;;  %v6783_v38 = vsel %vm3190_vm5, %v6726_v37, %v15393_v40  ;;  %19948 = vst [vmem:[#allocation65_spill] sm:$0xff] %v15543_v58  ;;  %v1685_v63 = vrot.slane %v1589_v21, %v11495_v8 }
 0x301   :  { %v3990_v30 = vmul.f32 %v19946_v25, %v3745_v13  ;;  %v19949_v22 = vrot.slane %v19821_v1, %v19517_v44  ;;  %v7393_v15 = vmul.f32 %v7254_v35, %v7152_v57  ;;  %v7153_v3 = vsel %vm3728_vm6, %v7097_v9, %v15543_v58  ;;  %v15551_v13 = vpop.permute.xlu0 %2644  ;;  %7471 = vrot.lane.b32.xlu1 %v14600_v31, %s11407_s30  ;;  %v19952_v35 = vld [vmem:[#allocation75_spill] sm:$0xff] }
 0x302   :  { %v2127_v59 = vmul.f32 %v19947_v29, %v1882_v5  ;;  %19950 = vst [vmem:[#allocation172_spill] sm:$0xff] %v15551_v13  ;;  %v2289_v5 = vmul.f32 %v2215_v10, %v19806_v54  ;;  %v19951_v40 = vrot.slane %v19919_v32, %v11495_v8  ;;  %v7025_v21 = vmul.f32 %v6889_v52, %v6784_v46  ;;  %v15569_v52 = vpop.permute.xlu1 %2640  ;;  %v19954_v46 = vld [vmem:[#allocation81_spill] sm:$0xff] }
 0x303   :  { %v1052_v28 = vmul.f32 %v19949_v22, %v807_v12  ;;  %v7394_v25 = vmul.f32 %v7258_v53, %v7153_v3  ;;  %5030 = vrot.lane.b32.xlu0 %v15378_v50, %s11395_s23  ;;  %v613_v12 = vrot.slane %v513_v43, %v11495_v8  ;;  %v2219_v9 = vrot.slane %v2126_v16, %v11495_v8 }
 0x304   :  { %v4528_v37 = vmul.f32 %v19951_v40, %v4283_v42  ;;  %v2670_v57 = vsel %vm2652_vm4, %v19894_v7, %v19952_v35  ;;  %v7024_v31 = vmul.f32 %v6885_v48, %v6783_v38  ;;  %v1752_v10 = vmul.f32 %v1681_v27, %v19920_v11  ;;  %19953 = vst [vmem:[#allocation204_spill] sm:$0xff] %v15569_v52 }
 0x305   :  { %v4077_v29 = vrot.slane %v3990_v30, %v11495_v8  ;;  %v2223_v42 = vrot.slane %v2127_v59, %v11495_v8  ;;  %v11029_v3 = vpack.c.bf16 %v7394_v25, %v7025_v21  ;;  %v1753_v53 = vmul.f32 %v1685_v63, %v19920_v11  ;;  %v15576_v7 = vpop.permute.xlu0 %1319  ;;  %4835 = vrot.lane.b32.xlu1 %v15352_v60, %s11394_s2  ;;  %v19957_v63 = vld [vmem:[#allocation96_spill] sm:$0xff]  ;;  %v19959_v21 = vld [vmem:[#allocation71_spill] sm:$0xff]  ;;  %v19961_v25 = vld [vmem:[#allocation205_spill] sm:$0xff] }
 0x306   :  { %v1151_v43 = vrot.slane %v1052_v28, %v11495_v8  ;;  %v1345_v16 = vsel %vm1325_vm2, %v19930_v41, %v19954_v46  ;;  %v11031_v22 = vpack.c.bf16 %v7393_v15, %v7024_v31  ;;  %19955 = vst [vmem:[#allocation69_spill] sm:$0xff] %v15576_v7  ;;  %v1247_v48 = vadd.f32 %v15473_v55, %v15424_v2  ;;  %v20015_v46 = vld [vmem:[#allocation93_spill] sm:$0xff] }
 0x307   :  { %v4615_v27 = vrot.slane %v4528_v37, %v11495_v8  ;;  %v19956_v30 = vrot.slane %v19902_v36, %v19491_v45  ;;  %7475 = vrot.lane.b32.xlu0 %v15119_v47, %s11407_s30  ;;  %11030 = vmatprep.subr.bf16.mxu1 %v11029_v3  ;;  %v3648_v41 = vadd.f32 %v3616_v33, %v15454_v20  ;;  %v15602_v33 = vpop.permute.xlu1 %2642 }
 0x308   :  { %v678_v28 = vmul.f32 %v613_v12, %v19633_v18  ;;  %v2290_v38 = vmul.f32 %v2219_v9, %v19806_v54  ;;  %v2671_v2 = vsel %vm2652_vm4, %v19952_v35, %v19957_v63  ;;  %11032 = vmatpush1.bf16.msra.mxu1 %v11031_v22  ;;  %v4154_v55 = vmul.f32 %v4077_v29, %v19882_v26  ;;  %v19963_v29 = vld [vmem:[#allocation47_spill] sm:$0xff] }
 0x309   :  { %v2915_v59 = vmul.f32 %v19956_v30, %v2670_v57  ;;  %v2291_v15 = vmul.f32 %v2223_v42, %v19806_v54  ;;  %v19958_v40 = vrot.slane %v19828_v19, %v19517_v44  ;;  %v2672_v20 = vsel %vm2652_vm4, %v19957_v63, %v19959_v21  ;;  %19960 = vst [vmem:[#allocation44_spill] sm:$0xff] %v15602_v33  ;;  %v15607_v31 = vpop.permute.xlu0 %3182  ;;  %v19965_v30 = vld [vmem:[#allocation92_spill] sm:$0xff] }
 0x30a   :  { %v2321_v12 = vadd.f32 %v2289_v5, %v19961_v25  ;;  %v1784_v9 = vadd.f32 %v1752_v10, %v15483_v56  ;;  %v1785_v35 = vadd.f32 %v1753_v53, %v1247_v48  ;;  %v1216_v57 = vmul.f32 %v1151_v43, %v19638_v39  ;;  %19962 = vst [vmem:[#allocation174_spill] sm:$0xff] %v15607_v31  ;;  %v19966_v5 = vld [vmem:[#allocation102_spill] sm:$0xff]  ;;  %v19967_v10 = vld [vmem:[#allocation28_spill] sm:$0xff] }
 0x30b   :  { %v1590_v37 = vmul.f32 %v19958_v40, %v1345_v16  ;;  %5028 = vrot.lane.b32.xlu1 %v15352_v60, %s11395_s23  ;;  %v4692_v42 = vmul.f32 %v4615_v27, %v19963_v29  ;;  %v3005_v3 = vrot.slane %v2915_v59, %v11495_v8  ;;  %v19964_v16 = vrot.slane %v19902_v36, %v19501_v24  ;;  %v19969_v25 = vld [vmem:[#allocation150_spill] sm:$0xff]  ;;  %v15631_v31 = vpop.permute.xlu1 %3178  ;;  %v20011_v19 = vld [vmem:[#allocation32_spill] sm:$0xff] }
 0x30c   :  { %v3209_v56 = vsel %vm3190_vm5, %v19966_v5, %v19965_v30  ;;  %5393 = vrot.lane.b32.xlu0 %v15119_v47, %s11397_s24  ;;  %v710_v53 = vadd.f32 %v678_v28, %v19967_v10  ;;  %v2322_v43 = vadd.f32 %v2290_v38, %v1784_v9  ;;  %v19968_v48 = vrot.slane %v19902_v36, %v11527_v17  ;;  %v19971_v28 = vld [vmem:[#allocation177_spill] sm:$0xff]  ;;  %v19972_v9 = vld [vmem:[#allocation166_spill] sm:$0xff]  ;;  %v20009_v10 = vld [vmem:[#allocation159_spill] sm:$0xff] }
 0x30d   :  { %v2916_v22 = vmul.f32 %v19964_v16, %v2671_v2  ;;  %v4186_v63 = vadd.f32 %v4154_v55, %v3648_v41  ;;  %v2323_v40 = vadd.f32 %v2291_v15, %v1785_v35  ;;  %v1689_v2 = vrot.slane %v1590_v37, %v11495_v8  ;;  %19970 = vst [vmem:[#allocation175_spill] sm:$0xff] %v15631_v31  ;;  %v15639_v41 = vpop.permute.xlu0 %4825  ;;  %v19976_v55 = vld [vmem:[#allocation210_spill] sm:$0xff]  ;;  %v19977_v37 = vld [vmem:[#allocation25_spill] sm:$0xff] }
 0x30e   :  { %v2917_v27 = vmul.f32 %v19968_v48, %v2672_v20  ;;  %v3208_v16 = vsel %vm3190_vm5, %v19969_v25, %v19966_v5  ;;  %v1248_v13 = vadd.f32 %v1216_v57, %v710_v53  ;;  %v2573_v38 = vadd.f32 %v19971_v28, %v2321_v12  ;;  %v19974_v48 = vld [vmem:[#allocation10_spill] sm:$0xff]  ;;  %19975 = vst [vmem:[#allocation49_spill] sm:$0xff] %v15639_v41  ;;  %v19978_v57 = vld [vmem:[#allocation88_spill] sm:$0xff] }
 0x30f   :  { %v19973_v33 = vrot.slane %v19972_v9, %v19501_v24  ;;  %7473 = vrot.lane.b32.xlu1 %v19976_v55, %s11407_s30  ;;  %v4724_v15 = vadd.f32 %v4692_v42, %v4186_v63  ;;  %v3079_v35 = vmul.f32 %v3005_v3, %v19977_v37  ;;  %v3009_v5 = vrot.slane %v2916_v22, %v11495_v8  ;;  %v19981_v42 = vld [vmem:[#allocation154_spill] sm:$0xff]  ;;  %v19982_v63 = vld [vmem:[#allocation181_spill] sm:$0xff] }
 0x310   :  { %v3746_v12 = vsel %vm3728_vm6, %v19936_v51, %v19978_v57  ;;  %5762 = vrot.lane.b32.xlu0 %v15119_v47, %s11399_s25  ;;  %v3013_v53 = vrot.slane %v2917_v27, %v11495_v8  ;;  %v19980_v25 = vrot.slane %v19972_v9, %v19491_v45  ;;  %v1883_v3 = vsel %vm1863_vm3, %v19941_v49, %v19981_v42  ;;  %v19983_v51 = vld [vmem:[#allocation84_spill] sm:$0xff]  ;;  %v15665_v27 = vpop.permute.xlu1 %3180 }
 0x311   :  { %v3454_v20 = vmul.f32 %v19973_v33, %v3209_v56  ;;  %v19979_v33 = vld [vmem:[#allocation179_spill] sm:$0xff]  ;;  %v1754_v22 = vmul.f32 %v1689_v2, %v19920_v11  ;;  %v2575_v55 = vadd.f32 %v19982_v63, %v2323_v40  ;;  %v3747_v47 = vsel %vm3728_vm6, %v19978_v57, %v19983_v51  ;;  %19984 = vst [vmem:[#allocation73_spill] sm:$0xff] %v15665_v27  ;;  %v19987_v40 = vld [vmem:[#allocation157_spill] sm:$0xff]  ;;  %v19988_v63 = vld [vmem:[#allocation90_spill] sm:$0xff]  ;;  %v15677_v57 = vpop.permute.xlu0 %5018 }
 0x312   :  { %v2574_v56 = vadd.f32 %v19979_v33, %v2322_v43  ;;  %v3453_v28 = vmul.f32 %v19980_v25, %v3208_v16  ;;  %v19985_v33 = vld [vmem:[#allocation77_spill] sm:$0xff]  ;;  %v19986_v49 = vrot.slane %v19912_v0, %v19491_v45  ;;  %v4285_v59 = vsel %vm4266_vm7, %v19988_v63, %v19987_v40  ;;  %v19997_v11 = vld [vmem:[#allocation156_spill] sm:$0xff] }
 0x313   :  { %v3210_v16 = vsel %vm3190_vm5, %v19965_v30, %v19985_v33  ;;  %v3547_v25 = vrot.slane %v3454_v20, %v11495_v8  ;;  %4262 = vrot.lane.b32.xlu1 %v19900_v34, %s11407_s30  ;;  %v10700_v43 = vld [vmem:[%s18635_s1 + $0x41] ss:$8 sm:$0xf]  ;;  %v15687_v20 = vmax.f32 %v4724_v15, 0.0  ;;  %v19989_v27 = vrot.slane %v19921_v23, %v19517_v44 }
 0x314   :  { %v3991_v2 = vmul.f32 %v19986_v49, %v3746_v12  ;;  %v10701_v30 = vld [vmem:[%s18635_s1 + $0x41] ss:$8 sm:$0xf0]  ;;  %v15689_v12 = vadd.f32 %v3079_v35, %v2573_v38  ;;  %v3080_v49 = vmul.f32 %v3009_v5, %v19977_v37  ;;  %5397 = vrot.lane.b32.xlu0 %v15352_v60, %s11397_s24  ;;  %v3081_v34 = vmul.f32 %v3013_v53, %v19977_v37 }
 0x315   :  { %v2128_v31 = vmul.f32 %v19989_v27, %v1883_v3  ;;  %v3543_v7 = vrot.slane %v3453_v28, %v11495_v8  ;;  %v19990_v52 = vrot.slane %v19912_v0, %v19501_v24  ;;  %v19991_v38 = vld [vmem:[#allocation80_spill] sm:$0xff]  ;;  %v19993_v5 = vrot.slane %v19972_v9, %v11527_v17  ;;  %v4824_v27 = vpop.permute.xlu1 %4823 }
 0x316   :  { %v15704_v35 = vrot.slane %v19991_v38, %v11495_v8  ;;  %v4284_v3 = vsel %vm4266_vm7, %v19945_v4, %v19988_v63  ;;  %v19994_v53 = vrot.slane %v19919_v32, %v19501_v24  ;;  %v15715_v23 = vor.u32 %v10701_v30, %v10700_v43 }
 0x317   :  { %v3992_v15 = vmul.f32 %v19990_v52, %v3747_v47  ;;  %v3455_v58 = vmul.f32 %v19993_v5, %v3210_v16  ;;  %v1786_v52 = vadd.f32 %v1754_v22, %v1248_v13  ;;  %v19996_v47 = vld [vmem:[#allocation24_spill] sm:$0xff]  ;;  %v3748_v16 = vsel %vm3728_vm6, %v19983_v51, %v19997_v11  ;;  %v15722_v5 = vpop.permute.xlu0 %7463  ;;  %5395 = vrot.lane.b32.xlu1 %v15363_v14, %s11397_s24 }
 0x318   :  { %19992 = vst [vmem:[#allocation130_spill] sm:$0xff] %v15704_v35  ;;  %v4530_v28 = vmul.f32 %v19994_v53, %v4285_v59  ;;  %19995 = vst [vmem:[#allocation136_spill] sm:$0xff] %v15715_v23  ;;  %v3618_v42 = vmul.f32 %v3547_v25, %v19996_v47  ;;  %v4081_v35 = vrot.slane %v3991_v2, %v11495_v8  ;;  %5766 = vrot.lane.b32.xlu0 %v15352_v60, %s11399_s25  ;;  %v19999_v13 = vld [vmem:[#allocation208_spill] sm:$0xff] }
 0x319   :  { %19998 = vst [vmem:[#allocation180_spill] sm:$0xff] %v15722_v5  ;;  %v3112_v4 = vadd.f32 %v3080_v49, %v2574_v56  ;;  %v2227_v59 = vrot.slane %v2128_v31, %v11495_v8  ;;  %v20000_v22 = vrot.slane %v19999_v13, %v11495_v8  ;;  %v3113_v51 = vadd.f32 %v3081_v34, %v2575_v55  ;;  %v5017_v55 = vpop.permute.xlu1 %5016 }
 0x31a   :  { %v3617_v2 = vmul.f32 %v3543_v7, %v19996_v47  ;;  %v4085_v63 = vrot.slane %v3992_v15, %v11495_v8  ;;  %v20002_v31 = vrot.slane %v19919_v32, %v19491_v45  ;;  %v3551_v30 = vrot.slane %v3455_v58, %v11495_v8  ;;  %v20004_v15 = vld [vmem:[#allocation158_spill] sm:$0xff] }
 0x31b   :  { %v15735_v25 = vmul.f32 %v20000_v22, %v15687_v20  ;;  %v20003_v49 = vrot.slane %v19912_v0, %v11527_v17  ;;  %v4623_v43 = vrot.slane %v4530_v28, %v11495_v8  ;;  %v5181_v22 = vrot.slane %v15715_v23, %v19491_v45  ;;  %5764 = vrot.lane.b32.xlu1 %v15363_v14, %s11399_s25 }
 0x31c   :  { %v4529_v56 = vmul.f32 %v20002_v31, %v4284_v3  ;;  %v3650_v34 = vadd.f32 %v3618_v42, %v3112_v4  ;;  %v4155_v7 = vmul.f32 %v4081_v35, %v19882_v26  ;;  %v5070_v58 = vsel %vm787_vm0, %v5017_v55, %v15677_v57  ;;  %v15755_v3 = vpop.permute.xlu0 %4827  ;;  %6370 = vrot.lane.b32.xlu0 %v15363_v14, %s11401_s26  ;;  %v20006_v42 = vld [vmem:[#allocation103_spill] sm:$0xff] }
 0x31d   :  { %20001 = vst [vmem:[#allocation135_spill] sm:$0xff] %v15735_v25  ;;  %v3993_v53 = vmul.f32 %v20003_v49, %v3748_v16  ;;  %v4286_v25 = vsel %vm4266_vm7, %v19987_v40, %v20004_v15  ;;  %20005 = vst [vmem:[#allocation138_spill] sm:$0xff] %v15755_v3  ;;  %v2292_v28 = vmul.f32 %v2227_v59, %v19806_v54  ;;  %v20007_v59 = vld [vmem:[#allocation114_spill] sm:$0xff]  ;;  %v7462_v45 = vpop.permute.xlu1 %7461 }
 0x31e   :  { %v5177_v16 = vrot.slane %v15715_v23, %v11495_v8  ;;  %v7615_v35 = vrot.slane %v20006_v42, %v19517_v44  ;;  %v7619_v40 = vrot.slane %v20006_v42, %v19974_v48  ;;  %v4156_v4 = vmul.f32 %v4085_v63, %v19882_v26  ;;  %v20010_v63 = vld [vmem:[#allocation153_spill] sm:$0xff] }
 0x31f   :  { %v4619_v31 = vrot.slane %v4529_v56, %v11495_v8  ;;  %v4877_v49 = vsel %vm249_vm1, %v4824_v27, %v15639_v41  ;;  %v5069_v54 = vsel %vm787_vm0, %v20007_v59, %v5017_v55  ;;  %v4089_v15 = vrot.slane %v3993_v53, %v11495_v8  ;;  %v20012_v41 = vld [vmem:[#allocation87_spill] sm:$0xff]  ;;  %5399 = vrot.lane.b32.xlu1 %v15378_v50, %s11397_s24 }
 0x320   :  { %v4694_v38 = vmul.f32 %v4623_v43, %v19963_v29  ;;  %v20008_v11 = vrot.slane %v19919_v32, %v11527_v17  ;;  %v5311_v39 = vmul.f32 %v5181_v22, %v5070_v58  ;;  %v270_v56 = vsel %vm249_vm1, %v20010_v63, %v20009_v10  ;;  %v15788_v43 = vpop.permute.xlu0 %5020  ;;  %6374 = vrot.lane.b32.xlu0 %v15378_v50, %s11401_s26  ;;  %v20014_v32 = vld [vmem:[#allocation127_spill] sm:$0xff] }
 0x321   :  { %v4876_v33 = vsel %vm249_vm1, %v20011_v19, %v4824_v27  ;;  %v7519_v55 = vsel %vm4266_vm7, %v20012_v41, %v7462_v45  ;;  %v7520_v53 = vsel %vm4266_vm7, %v7462_v45, %v15722_v5  ;;  %v5310_v22 = vmul.f32 %v5177_v16, %v5069_v54  ;;  %v15801_v54 = vpop.permute.xlu1 %3716 }
 0x322   :  { %v4531_v37 = vmul.f32 %v20008_v11, %v4286_v25  ;;  %v20013_v11 = vld [vmem:[#allocation185_spill] sm:$0xff]  ;;  %v7760_v58 = vmul.f32 %v7615_v35, %v7519_v55  ;;  %v7761_v59 = vmul.f32 %v7619_v40, %v7520_v53  ;;  %v3649_v19 = vadd.f32 %v3617_v2, %v15689_v12  ;;  %20016 = vst [vmem:[#allocation201_spill] sm:$0xff] %v15801_v54 }
 0x323   :  { %v4942_v25 = vmul.f32 %v4877_v49, %v20013_v11  ;;  %v3619_v41 = vmul.f32 %v3551_v30, %v19996_v47  ;;  %v4188_v27 = vadd.f32 %v4156_v4, %v3650_v34  ;;  %v4693_v45 = vmul.f32 %v4619_v31, %v19963_v29  ;;  %5768 = vrot.lane.b32.xlu1 %v15378_v50, %s11399_s25  ;;  %v20021_v31 = vld [vmem:[#allocation182_spill] sm:$0xff]  ;;  %v20039_v2 = vld [vmem:[#allocation45_spill] sm:$0xff] }
 0x324   :  { %v4627_v63 = vrot.slane %v4531_v37, %v11495_v8  ;;  %v514_v5 = vmul.f32 %v20014_v32, %v270_v56  ;;  %v4941_v3 = vmul.f32 %v4876_v33, %v20015_v46  ;;  %8299 = vmatprep.subr.mxu0 %v7761_v59  ;;  %v4187_v35 = vadd.f32 %v4155_v7, %v3649_v19  ;;  %v15803_v55 = vpop.permute.xlu0 %7465  ;;  %v20017_v37 = vld [vmem:[#allocation82_spill] sm:$0xff]  ;;  %v20024_v59 = vld [vmem:[#allocation91_spill] sm:$0xff]  ;;  %v20041_v32 = vld [vmem:[#allocation81_spill] sm:$0xff] }
 0x325   :  { %v11033_v16 = vpack.c.bf16 %v5311_v39, %v4942_v25  ;;  %v2324_v49 = vadd.f32 %v2292_v28, %v1786_v52  ;;  %v4726_v40 = vadd.f32 %v4694_v38, %v4188_v27  ;;  %8300 = vmatpush1.msra.mxu0 %v7760_v58  ;;  %v4157_v12 = vmul.f32 %v4089_v15, %v19882_v26  ;;  %v15819_v52 = vld [vmem:[%s18636_s4] sm:$0xff]  ;;  %v20035_v27 = vld [vmem:[#allocation165_spill] sm:$0xff]  ;;  %v20038_v38 = vld [vmem:[#allocation138_spill] sm:$0xff] }
 0x326   :  { %v11035_v30 = vpack.c.bf16 %v5310_v22, %v4941_v3  ;;  %6739 = vrot.lane.b32.xlu0 %v15363_v14, %s11404_s29  ;;  %v3651_v39 = vadd.f32 %v3619_v41, %v3113_v51  ;;  %v4725_v46 = vadd.f32 %v4693_v45, %v4187_v35  ;;  %10766 = vmatmul.mubr.msk.f32.vlgmr.msra.gmra.mrb[4].mxu0 %vm8122_vm8, %v15819_v52  ;;  %v20018_v51 = vld [vmem:[#allocation86_spill] sm:$0xff]  ;;  %v15827_v3 = vpop.permute.xlu1 %4829  ;;  %v20020_v28 = vmov 0.0   ;;  %v20023_v22 = vld [vmem:[#allocation29_spill] sm:$0xff] }
 0x327   :  { %11034 = vmatprep.subr.bf16.mxu0 %v11033_v16  ;;  %v4695_v34 = vmul.f32 %v4627_v63, %v19963_v29  ;;  %v617_v7 = vrot.slane %v514_v5, %v11495_v8  ;;  %20019 = vst [vmem:[#allocation162_spill] sm:$0xff] %v15827_v3  ;;  %8353 = vmatprep.mubr.f32.mxu0 %v20020_v28  ;;  %v15830_v4 = vmax.f32 %v4726_v40, 0.0  ;;  %v20025_v41 = vld [vmem:[#allocation89_spill] sm:$0xff]  ;;  %v20027_v63 = vld [vmem:[#allocation74_spill] sm:$0xff] }
 0x328   :  { %11036 = vmatpush1.bf16.msra.mxu0 %v11035_v30  ;;  %v15833_v56 = vadd.f32 %v20021_v31, %v2324_v49  ;;  %v15839_v5 = vpop.permute.xlu0 %1857  ;;  %6372 = vrot.lane.b32.xlu1 %v15352_v60, %s11401_s26  ;;  %v4189_v25 = vadd.f32 %v4157_v12, %v3651_v39  ;;  %v808_v58 = vsel %vm787_vm0, %v19942_v61, %v20023_v22  ;;  %v15853_v45 = vmax.f32 %v4725_v46, 0.0  ;;  %v20028_v12 = vld [vmem:[#allocation167_spill] sm:$0xff]  ;;  %v20031_v61 = vld [vmem:[#allocation125_spill] sm:$0xff] }
 0x329   :  { %20022 = vst [vmem:[#allocation31_spill] sm:$0xff] %v15839_v5  ;;  %v271_v19 = vsel %vm249_vm1, %v20009_v10, %v20024_v59  ;;  %v272_v16 = vsel %vm249_vm1, %v20024_v59, %v20027_v63  ;;  %v15865_v10 = vld [vmem:[%s18636_s4 + $0x8] sm:$0xff]  ;;  %v679_v40 = vmul.f32 %v617_v7, %v19633_v18  ;;  %v2673_v30 = vsel %vm2652_vm4, %v19959_v21, %v20028_v12 }
 0x32a   :  { %7108 = vrot.lane.b32.xlu0 %v15363_v14, %s11405_s3  ;;  %20026 = vst [vmem:[#allocation140_spill] sm:$0xff] %v15853_v45  ;;  %10767 = vmatmul.mubr.msk.f32.gmra.mrb[6].mxu0 %vm8122_vm8, %v15865_v10  ;;  %v4727_v49 = vadd.f32 %v4695_v34, %v4189_v25  ;;  %v5189_v39 = vrot.slane %v15715_v23, %v11527_v17  ;;  %v15875_v46 = vpop.permute.xlu1 %5022  ;;  %v20045_v54 = vld [vmem:[#allocation49_spill] sm:$0xff] }
 0x32b   :  { %20029 = vst [vmem:[#allocation137_spill] sm:$0xff] %v15875_v46  ;;  %8501 = vmatprep.mubr.f32.mxu0 %v20020_v28  ;;  %v20030_v31 = vrot.slane %v19821_v1, %v19974_v48  ;;  %v515_v35 = vmul.f32 %v20031_v61, %v271_v19  ;;  %v5072_v34 = vsel %vm787_vm0, %v15788_v43, %v15875_v46  ;;  %v20049_v46 = vld [vmem:[#allocation196_spill] sm:$0xff] }
 0x32c   :  { %v15885_v7 = vpop.permute.xlu0 %3720  ;;  %6376 = vrot.lane.b32.xlu1 %v15687_v20, %s11401_s26  ;;  %v20033_v21 = vrot.slane %v19999_v13, %v19501_v24  ;;  %v516_v11 = vmul.f32 %v20035_v27, %v272_v16  ;;  %v7627_v53 = vrot.slane %v20006_v42, %v19682_v6  ;;  %v20037_v15 = vrot.slane %v19902_v36, %v19517_v44  ;;  %v20040_v27 = vld [vmem:[#allocation178_spill] sm:$0xff] }
 0x32d   :  { %v1053_v59 = vmul.f32 %v20030_v31, %v808_v58  ;;  %20032 = vst [vmem:[#allocation131_spill] sm:$0xff] %v15885_v7  ;;  %v20036_v58 = vld [vmem:[#allocation173_spill] sm:$0xff]  ;;  %v5185_v31 = vrot.slane %v15715_v23, %v19501_v24  ;;  %v5071_v16 = vsel %vm787_vm0, %v15677_v57, %v15788_v43  ;;  %v4879_v33 = vsel %vm249_vm1, %v20038_v38, %v15827_v3 }
 0x32e   :  { %v15893_v25 = vmul.f32 %v20033_v21, %v15830_v4  ;;  %v809_v19 = vsel %vm787_vm0, %v20023_v22, %v20036_v58  ;;  %6743 = vrot.lane.b32.xlu0 %v15378_v50, %s11404_s29  ;;  %v2918_v21 = vmul.f32 %v20037_v15, %v2673_v30  ;;  %v7623_v22 = vrot.slane %v20006_v42, %v19680_v62  ;;  %v20042_v15 = vld [vmem:[#allocation180_spill] sm:$0xff]  ;;  %v15925_v43 = vpop.permute.xlu1 %7467 }
 0x32f   :  { %v810_v61 = vsel %vm787_vm0, %v20036_v58, %v20039_v2  ;;  %v7521_v30 = vsel %vm4266_vm7, %v20042_v15, %v15803_v55  ;;  %v5313_v57 = vmul.f32 %v5189_v39, %v5072_v34  ;;  %20043 = vst [vmem:[#allocation142_spill] sm:$0xff] %v15925_v43  ;;  %v1155_v42 = vrot.slane %v1053_v59, %v11495_v8  ;;  %v20047_v39 = vld [vmem:[#allocation186_spill] sm:$0xff]  ;;  %v20048_v34 = vld [vmem:[#allocation77_spill] sm:$0xff] }
 0x330   :  { %20034 = vst [vmem:[#allocation50_spill] sm:$0xff] %v15893_v25  ;;  %v1346_v25 = vsel %vm1325_vm2, %v20041_v32, %v20040_v27  ;;  %v20044_v5 = vrot.slane %v19821_v1, %v19680_v62  ;;  %v4878_v58 = vsel %vm249_vm1, %v20045_v54, %v20038_v38  ;;  %v7522_v32 = vsel %vm4266_vm7, %v15803_v55, %v15925_v43  ;;  %v15937_v3 = vpop.permute.xlu0 %4256 }
 0x331   :  { %20046 = vst [vmem:[#allocation141_spill] sm:$0xff] %v15937_v3  ;;  %6741 = vrot.lane.b32.xlu1 %v15352_v60, %s11404_s29  ;;  %v3211_v59 = vsel %vm3190_vm5, %v20048_v34, %v20047_v39  ;;  %v5312_v15 = vmul.f32 %v5185_v31, %v5071_v16  ;;  %v7763_v54 = vmul.f32 %v7627_v53, %v7522_v32  ;;  %v20051_v3 = vld [vmem:[#allocation106_spill] sm:$0xff]  ;;  %v20055_v32 = vld [vmem:[#allocation28_spill] sm:$0xff] }
 0x332   :  { %v1054_v7 = vmul.f32 %v20044_v5, %v809_v19  ;;  %v4944_v5 = vmul.f32 %v4879_v33, %v20049_v46  ;;  %7112 = vrot.lane.b32.xlu0 %v15378_v50, %s11405_s3  ;;  %v621_v38 = vrot.slane %v515_v35, %v11495_v8  ;;  %v20050_v55 = vrot.slane %v19821_v1, %v19682_v6  ;;  %v20053_v33 = vld [vmem:[#allocation193_spill] sm:$0xff]  ;;  %v15957_v16 = vpop.permute.xlu1 %3718 }
 0x333   :  { %v20052_v43 = vrot.slane %v20051_v3, %v19974_v48  ;;  %v7762_v2 = vmul.f32 %v7623_v22, %v7521_v30  ;;  %v625_v34 = vrot.slane %v516_v11, %v11495_v8  ;;  %v3017_v31 = vrot.slane %v2918_v21, %v11495_v8  ;;  %8376 = vmatprep.subr.mxu1 %v7763_v54  ;;  %v20057_v11 = vld [vmem:[#allocation5_spill] sm:$0xff] }
 0x334   :  { %v1055_v19 = vmul.f32 %v20050_v55, %v810_v61  ;;  %v4943_v46 = vmul.f32 %v4878_v58, %v20053_v33  ;;  %20054 = vst [vmem:[#allocation143_spill] sm:$0xff] %v15957_v16  ;;  %v11049_v53 = vpack.c.bf16 %v5313_v57, %v4944_v5  ;;  %v15959_v35 = vmax.f32 %v4727_v49, 0.0  ;;  %v20060_v30 = vld [vmem:[#allocation197_spill] sm:$0xff] }
 0x335   :  { %v1591_v23 = vmul.f32 %v20052_v43, %v1346_v25  ;;  %v711_v1 = vadd.f32 %v679_v40, %v20055_v32  ;;  %v20056_v61 = vrot.slane %v19972_v9, %v19517_v44  ;;  %v15965_v25 = vpop.permute.xlu0 %5385  ;;  %7110 = vrot.lane.b32.xlu1 %v15352_v60, %s11405_s3  ;;  %8377 = vmatpush1.msra.mxu1 %v7762_v2  ;;  %v20061_v43 = vld [vmem:[#allocation11_spill] sm:$0xff]  ;;  %v20062_v54 = vld [vmem:[#allocation25_spill] sm:$0xff] }
 0x336   :  { %v20058_v21 = vrot.slane %v19999_v13, %v20057_v11  ;;  %v1159_v49 = vrot.slane %v1054_v7, %v11495_v8  ;;  %v1347_v40 = vsel %vm1325_vm2, %v20040_v27, %v20060_v30  ;;  %v11051_v57 = vpack.c.bf16 %v5312_v15, %v4943_v46  ;;  %4839 = vrot.lane.b32.xlu0 %v15687_v20, %s11394_s2  ;;  %v20063_v15 = vld [vmem:[#allocation38_spill] sm:$0xff]  ;;  %v15991_v46 = vpop.permute.xlu1 %4254 }
 0x337   :  { %v3456_v55 = vmul.f32 %v20056_v61, %v3211_v59  ;;  %11050 = vmatprep.subr.bf16.mxu1 %v11049_v53  ;;  %v1217_v58 = vmul.f32 %v1155_v42, %v20061_v43  ;;  %v680_v2 = vmul.f32 %v621_v38, %v19633_v18  ;;  %v1163_v59 = vrot.slane %v1055_v19, %v11495_v8  ;;  %v20068_v61 = vld [vmem:[#allocation200_spill] sm:$0xff] }
 0x338   :  { %v15973_v22 = vmul.f32 %v20058_v21, %v15853_v45  ;;  %v1693_v5 = vrot.slane %v1591_v23, %v11495_v8  ;;  %10768 = vmatmul.mubr.msk.f32.vlgmr.msra.gmra.mrb[4].mxu1 %vm8122_vm8, %v15819_v52  ;;  %v681_v7 = vmul.f32 %v625_v34, %v19633_v18  ;;  %v3082_v27 = vmul.f32 %v3017_v31, %v20062_v54 }
 0x339   :  { %11052 = vmatpush1.bf16.msra.mxu1 %v11051_v57  ;;  %20064 = vst [vmem:[#allocation97_spill] sm:$0xff] %v15991_v46  ;;  %8430 = vmatprep.mubr.f32.mxu1 %v20020_v28  ;;  %v3555_v42 = vrot.slane %v3456_v55, %v11495_v8  ;;  %v20065_v23 = vrot.slane %v20051_v3, %v19680_v62  ;;  %v16000_v19 = vpop.permute.xlu0 %5754  ;;  %v20069_v55 = vld [vmem:[#allocation156_spill] sm:$0xff] }
 0x33a   :  { %20059 = vst [vmem:[#allocation7_spill] sm:$0xff] %v15973_v22  ;;  %6745 = vrot.lane.b32.xlu1 %v15687_v20, %s11404_s29  ;;  %v20066_v34 = vrot.slane %v19999_v13, %v11527_v17  ;;  %v1218_v53 = vmul.f32 %v1159_v49, %v20061_v43  ;;  %v3749_v21 = vsel %vm3728_vm6, %v20069_v55, %v20068_v61  ;;  %v20070_v57 = vld [vmem:[#allocation80_spill] sm:$0xff]  ;;  %v20072_v49 = vld [vmem:[#allocation14_spill] sm:$0xff] }
 0x33b   :  { %v1592_v38 = vmul.f32 %v20065_v23, %v1347_v40  ;;  %v16018_v23 = vrot.slane %v20070_v57, %v20057_v11  ;;  %5032 = vrot.lane.b32.xlu0 %v15687_v20, %s11395_s23  ;;  %v1249_v52 = vadd.f32 %v1217_v58, %v711_v1  ;;  %v1219_v33 = vmul.f32 %v1163_v59, %v20061_v43  ;;  %v10716_v55 = vld [vmem:[%s18635_s1 + $0x43] ss:$8 sm:$0xf]  ;;  %v10709_v59 = vld [vmem:[%s18635_s1 + $0x42] ss:$8 sm:$0xf0] }
 0x33c   :  { %v16008_v31 = vmul.f32 %v20066_v34, %v15959_v35  ;;  %v712_v34 = vadd.f32 %v680_v2, %v20055_v32  ;;  %v1755_v13 = vmul.f32 %v1693_v5, %v20072_v49  ;;  %v10717_v40 = vld [vmem:[%s18635_s1 + $0x43] ss:$8 sm:$0xf0]  ;;  %10769 = vmatmul.mubr.msk.f32.gmra.mrb[6].mxu1 %vm8122_vm8, %v15865_v10  ;;  %v3114_v1 = vadd.f32 %v3082_v27, %v15833_v56  ;;  %v16040_v5 = vpop.permute.xlu1 %4258 }
 0x33d   :  { %20071 = vst [vmem:[#allocation145_spill] sm:$0xff] %v16018_v23  ;;  %v20073_v58 = vld [vmem:[#allocation115_spill] sm:$0xff]  ;;  %20074 = vst [vmem:[#allocation146_spill] sm:$0xff] %v16040_v5  ;;  %8578 = vmatprep.mubr.f32.mxu1 %v20020_v28  ;;  %v3620_v22 = vmul.f32 %v3555_v42, %v19996_v47  ;;  %v1697_v46 = vrot.slane %v1592_v38, %v11495_v8  ;;  %v20075_v10 = vrot.slane %v19912_v0, %v19517_v44  ;;  %v20076_v56 = vld [vmem:[#allocation206_spill] sm:$0xff]  ;;  %v16057_v5 = vpop.permute.xlu0 %245 }
 0x33e   :  { %20067 = vst [vmem:[#allocation139_spill] sm:$0xff] %v16008_v31  ;;  %v713_v31 = vadd.f32 %v681_v7, %v20055_v32  ;;  %v1348_v2 = vsel %vm1325_vm2, %v20060_v30, %v20073_v58  ;;  %v20077_v27 = vld [vmem:[#allocation154_spill] sm:$0xff]  ;;  %20078 = vst [vmem:[#allocation12_spill] sm:$0xff] %v16057_v5  ;;  %7114 = vrot.lane.b32.xlu1 %v15687_v20, %s11405_s3  ;;  %v1250_v42 = vadd.f32 %v1218_v53, %v712_v34  ;;  %v20084_v23 = vld [vmem:[#allocation101_spill] sm:$0xff] }
 0x33f   :  { %v3994_v7 = vmul.f32 %v20075_v10, %v3749_v21  ;;  %v1884_v16 = vsel %vm1863_vm3, %v20077_v27, %v20076_v56  ;;  %v10708_v30 = vld [vmem:[%s18635_s1 + $0x42] ss:$8 sm:$0xf]  ;;  %v16063_v38 = vrot.slane %v20070_v57, %v19501_v24  ;;  %v16067_v21 = vrot.slane %v20070_v57, %v11527_v17  ;;  %7477 = vrot.lane.b32.xlu0 %v15363_v14, %s11407_s30 }
 0x340   :  { %v16069_v10 = vor.u32 %v10717_v40, %v10716_v55  ;;  %v16073_v27 = vadd.f32 %v1219_v33, %v713_v31  ;;  %v16075_v5 = vadd.f32 %v1755_v13, %v1249_v52  ;;  %v20082_v53 = vrot.slane %v20051_v3, %v19682_v6  ;;  %v20085_v32 = vld [vmem:[#allocation158_spill] sm:$0xff]  ;;  %v20087_v14 = vld [vmem:[#allocation207_spill] sm:$0xff]  ;;  %v5388_v31 = vpop.permute.xlu1 %5387 }
 0x341   :  { %20079 = vst [vmem:[#allocation147_spill] sm:$0xff] %v16063_v38  ;;  %20080 = vst [vmem:[#allocation8_spill] sm:$0xff] %v16067_v21  ;;  %v4287_v21 = vsel %vm4266_vm7, %v20085_v32, %v20084_v23  ;;  %v20086_v40 = vld [vmem:[#allocation202_spill] sm:$0xff]  ;;  %v20088_v33 = vrot.slane %v20087_v14, %v19974_v48  ;;  %v16091_v52 = vor.u32 %v10709_v59, %v10708_v30  ;;  %v16097_v32 = vpop.permute.xlu0 %5391 }
 0x342   :  { %20081 = vst [vmem:[#allocation176_spill] sm:$0xff] %v16069_v10  ;;  %v1593_v34 = vmul.f32 %v20082_v53, %v1348_v2  ;;  %v1885_v55 = vsel %vm1863_vm3, %v20076_v56, %v20086_v40  ;;  %v3652_v3 = vadd.f32 %v3620_v22, %v3114_v1  ;;  %v1756_v2 = vmul.f32 %v1697_v46, %v20072_v49  ;;  %v20091_v56 = vld [vmem:[#allocation110_spill] sm:$0xff] }
 0x343   :  { %v2129_v13 = vmul.f32 %v20088_v33, %v1884_v16  ;;  %20089 = vst [vmem:[#allocation168_spill] sm:$0xff] %v16091_v52  ;;  %v4093_v53 = vrot.slane %v3994_v7, %v11495_v8  ;;  %20090 = vst [vmem:[#allocation144_spill] sm:$0xff] %v16097_v32  ;;  %4841 = vrot.lane.b32.xlu1 %v15853_v45, %s11394_s2  ;;  %v1886_v16 = vsel %vm1863_vm3, %v20086_v40, %v20091_v56  ;;  %v20094_v33 = vld [vmem:[#allocation59_spill] sm:$0xff] }
 0x344   :  { %v5915_v59 = vrot.slane %v16069_v10, %v11495_v8  ;;  %v5550_v22 = vrot.slane %v16091_v52, %v20057_v11  ;;  %4843 = vrot.lane.b32.xlu0 %v15830_v4, %s11394_s2  ;;  %v5919_v46 = vrot.slane %v16069_v10, %v20057_v11  ;;  %v20092_v1 = vrot.slane %v20063_v15, %v19517_v44  ;;  %v20096_v15 = vld [vmem:[#allocation121_spill] sm:$0xff] }
 0x345   :  { %v20093_v30 = vrot.slane %v20087_v14, %v19680_v62  ;;  %v5807_v38 = vsel %vm1863_vm3, %v20094_v33, %v16000_v19  ;;  %v5439_v23 = vsel %vm1325_vm2, %v15965_v25, %v5388_v31  ;;  %v1701_v28 = vrot.slane %v1593_v34, %v11495_v8 }
 0x346   :  { %v4532_v7 = vmul.f32 %v20092_v1, %v4287_v21  ;;  %v2231_v0 = vrot.slane %v2129_v13, %v11495_v8  ;;  %v5546_v21 = vrot.slane %v16091_v52, %v11495_v8  ;;  %v5757_v1 = vpop.permute.xlu1 %5756  ;;  %v5438_v47 = vsel %vm1325_vm2, %v20096_v15, %v15965_v25  ;;  %v16138_v13 = vpop.permute.xlu0 %5760 }
 0x347   :  { %v2130_v40 = vmul.f32 %v20093_v30, %v1885_v55  ;;  %v4158_v55 = vmul.f32 %v4093_v53, %v19882_v26  ;;  %v20095_v30 = vrot.slane %v20087_v14, %v19682_v6  ;;  %v5808_v34 = vsel %vm1863_vm3, %v16000_v19, %v5757_v1  ;;  %20097 = vst [vmem:[#allocation54_spill] sm:$0xff] %v16138_v13  ;;  %v20098_v19 = vld [vmem:[#allocation98_spill] sm:$0xff] }
 0x348   :  { %5034 = vrot.lane.b32.xlu1 %v15853_v45, %s11395_s23  ;;  %v6048_v53 = vmul.f32 %v5915_v59, %v5807_v38  ;;  %v5680_v26 = vmul.f32 %v5550_v22, %v5439_v23  ;;  %v6049_v18 = vmul.f32 %v5919_v46, %v5808_v34  ;;  %5036 = vrot.lane.b32.xlu0 %v15830_v4, %s11395_s23  ;;  %v20099_v45 = vld [vmem:[#allocation16_spill] sm:$0xff]  ;;  %v20100_v22 = vld [vmem:[#allocation55_spill] sm:$0xff] }
 0x349   :  { %v2131_v33 = vmul.f32 %v20095_v30, %v1886_v16  ;;  %v1788_v14 = vadd.f32 %v1756_v2, %v1250_v42  ;;  %v4631_v25 = vrot.slane %v4532_v7, %v11495_v8  ;;  %v2235_v15 = vrot.slane %v2130_v40, %v11495_v8  ;;  %v20102_v7 = vld [vmem:[#allocation37_spill] sm:$0xff] }
 0x34a   :  { %v1757_v30 = vmul.f32 %v1701_v28, %v20072_v49  ;;  %v2293_v56 = vmul.f32 %v2231_v0, %v20099_v45  ;;  %v5679_v61 = vmul.f32 %v5546_v21, %v5438_v47  ;;  %v5390_v43 = vpop.permute.xlu1 %5389  ;;  %v11037_v38 = vpack.c.bf16 %v6049_v18, %v5680_v26  ;;  %v16158_v46 = vpop.permute.xlu0 %783 }
 0x34b   :  { %v4190_v23 = vadd.f32 %v4158_v55, %v3652_v3  ;;  %v2239_v59 = vrot.slane %v2131_v33, %v11495_v8  ;;  %v2674_v42 = vsel %vm2652_vm4, %v20028_v12, %v20100_v22  ;;  %v5554_v2 = vrot.slane %v16091_v52, %v19501_v24  ;;  %20101 = vst [vmem:[#allocation107_spill] sm:$0xff] %v16158_v46  ;;  %v20133_v46 = vld [vmem:[#allocation110_spill] sm:$0xff] }
 0x34c   :  { %7479 = vrot.lane.b32.xlu1 %v15352_v60, %s11407_s30  ;;  %v11039_v28 = vpack.c.bf16 %v6048_v53, %v5679_v61  ;;  %v5558_v0 = vrot.slane %v16091_v52, %v11527_v17  ;;  %7481 = vrot.lane.b32.xlu0 %v15378_v50, %s11407_s30  ;;  %v5923_v18 = vrot.slane %v16069_v10, %v19501_v24 }
 0x34d   :  { %v5927_v26 = vrot.slane %v16069_v10, %v11527_v17  ;;  %v4696_v47 = vmul.f32 %v4631_v25, %v19963_v29  ;;  %v2294_v12 = vmul.f32 %v2235_v15, %v20099_v45  ;;  %v5440_v3 = vsel %vm1325_vm2, %v5388_v31, %v5390_v43  ;;  %11038 = vmatprep.subr.bf16.mxu0 %v11037_v38 }
 0x34e   :  { %v5441_v60 = vsel %vm1325_vm2, %v5390_v43, %v16097_v32  ;;  %v1789_v61 = vadd.f32 %v1757_v30, %v16073_v27  ;;  %v2325_v50 = vadd.f32 %v2293_v56, %v16075_v5  ;;  %v2675_v40 = vsel %vm2652_vm4, %v20100_v22, %v20102_v7  ;;  %11040 = vmatpush1.bf16.msra.mxu0 %v11039_v28  ;;  %v5759_v55 = vpop.permute.xlu1 %5758  ;;  %v16189_v27 = vpop.permute.xlu0 %6362  ;;  %v10732_v30 = vld [vmem:[%s18635_s1 + $0x45] ss:$8 sm:$0xf] }
 0x34f   :  { %v2295_v33 = vmul.f32 %v2239_v59, %v20099_v45  ;;  %v20103_v31 = vrot.slane %v19902_v36, %v19974_v48  ;;  %v5809_v34 = vsel %vm1863_vm3, %v5757_v1, %v5759_v55  ;;  %v5810_v5 = vsel %vm1863_vm3, %v5759_v55, %v16138_v13  ;;  %v10733_v1 = vld [vmem:[%s18635_s1 + $0x45] ss:$8 sm:$0xf0] }
 0x350   :  { %4845 = vrot.lane.b32.xlu1 %v15959_v35, %s11394_s2  ;;  %v5681_v56 = vmul.f32 %v5554_v2, %v5440_v3  ;;  %v5682_v53 = vmul.f32 %v5558_v0, %v5441_v60  ;;  %v6050_v25 = vmul.f32 %v5923_v18, %v5809_v34  ;;  %v6051_v15 = vmul.f32 %v5927_v26, %v5810_v5  ;;  %v20105_v28 = vld [vmem:[#allocation116_spill] sm:$0xff]  ;;  %v20127_v55 = vld [vmem:[#allocation78_spill] sm:$0xff] }
 0x351   :  { %v2919_v43 = vmul.f32 %v20103_v31, %v2674_v42  ;;  %5401 = vrot.lane.b32.xlu0 %v15687_v20, %s11397_s24  ;;  %v16201_v38 = vadd.f32 %v4696_v47, %v4190_v23  ;;  %v2326_v59 = vadd.f32 %v2294_v12, %v1788_v14  ;;  %v20104_v22 = vrot.slane %v19902_v36, %v19680_v62  ;;  %v20106_v18 = vld [vmem:[#allocation108_spill] sm:$0xff]  ;;  %v20108_v47 = vld [vmem:[#allocation30_spill] sm:$0xff]  ;;  %v20109_v12 = vld [vmem:[#allocation45_spill] sm:$0xff] }
 0x352   :  { %v273_v0 = vsel %vm249_vm1, %v20027_v63, %v20105_v28  ;;  %v3212_v26 = vsel %vm3190_vm5, %v20047_v39, %v20106_v18  ;;  %v11055_v3 = vpack.c.bf16 %v6050_v25, %v5681_v56  ;;  %v16214_v60 = vpop.permute.xlu1 %2646  ;;  %v11053_v23 = vpack.c.bf16 %v6051_v15, %v5682_v53  ;;  %v16223_v34 = vpop.permute.xlu0 %1321  ;;  %v20112_v63 = vld [vmem:[#allocation183_spill] sm:$0xff]  ;;  %v20114_v56 = vld [vmem:[#allocation184_spill] sm:$0xff]  ;;  %v20115_v25 = vld [vmem:[#allocation130_spill] sm:$0xff] }
 0x353   :  { %v2920_v42 = vmul.f32 %v20104_v22, %v2675_v40  ;;  %20107 = vst [vmem:[#allocation53_spill] sm:$0xff] %v16214_v60  ;;  %v2327_v14 = vadd.f32 %v2295_v33, %v1789_v61  ;;  %v811_v40 = vsel %vm787_vm0, %v20109_v12, %v20108_v47  ;;  %v16221_v31 = vor.u32 %v10733_v1, %v10732_v30  ;;  %v20113_v61 = vld [vmem:[#allocation99_spill] sm:$0xff]  ;;  %v20131_v60 = vld [vmem:[#allocation200_spill] sm:$0xff] }
 0x354   :  { %20111 = vst [vmem:[#allocation58_spill] sm:$0xff] %v16223_v34  ;;  %5038 = vrot.lane.b32.xlu1 %v15959_v35, %s11395_s23  ;;  %v16228_v39 = vadd.f32 %v20112_v63, %v2325_v50  ;;  %v3021_v5 = vrot.slane %v2919_v43, %v11495_v8  ;;  %11054 = vmatprep.subr.bf16.mxu1 %v11053_v23  ;;  %v20118_v23 = vld [vmem:[#allocation21_spill] sm:$0xff]  ;;  %v20130_v34 = vld [vmem:[#allocation34_spill] sm:$0xff] }
 0x355   :  { %20110 = vst [vmem:[#allocation76_spill] sm:$0xff] %v16221_v31  ;;  %5770 = vrot.lane.b32.xlu0 %v15687_v20, %s11399_s25  ;;  %v16236_v53 = vadd.f32 %v20114_v56, %v2326_v59  ;;  %v517_v15 = vmul.f32 %v20115_v25, %v273_v0  ;;  %v20116_v30 = vrot.slane %v19972_v9, %v19974_v48 }
 0x356   :  { %11056 = vmatpush1.bf16.msra.mxu1 %v11055_v3  ;;  %v3025_v43 = vrot.slane %v2920_v42, %v11495_v8  ;;  %v20117_v22 = vrot.slane %v20017_v37, %v11495_v8  ;;  %v3213_v59 = vsel %vm3190_vm5, %v20106_v18, %v20118_v23  ;;  %v16253_v63 = vpop.permute.xlu1 %3184  ;;  %v20122_v3 = vld [vmem:[#allocation104_spill] sm:$0xff]  ;;  %v3083_v18 = vmul.f32 %v3021_v5, %v20062_v54 }
 0x357   :  { %v3457_v1 = vmul.f32 %v20116_v30, %v3212_v26  ;;  %20119 = vst [vmem:[#allocation148_spill] sm:$0xff] %v16253_v63  ;;  %v20120_v26 = vld [vmem:[#allocation187_spill] sm:$0xff]  ;;  %v20121_v30 = vld [vmem:[#allocation41_spill] sm:$0xff]  ;;  %v6528_v50 = vrot.slane %v16221_v31, %v20057_v11  ;;  %v629_v0 = vrot.slane %v517_v15, %v11495_v8  ;;  %v20126_v5 = vrot.slane %v19972_v9, %v19680_v62 }
 0x358   :  { %v1056_v12 = vmul.f32 %v20117_v22, %v811_v40  ;;  %v16256_v56 = vadd.f32 %v20120_v26, %v2327_v14  ;;  %v2676_v42 = vsel %vm2652_vm4, %v20102_v7, %v20121_v30  ;;  %v6524_v40 = vrot.slane %v16221_v31, %v11495_v8  ;;  %v16265_v22 = vpop.permute.xlu0 %6368  ;;  %7483 = vrot.lane.b32.xlu1 %v15687_v20, %s11407_s30  ;;  %v20125_v26 = vld [vmem:[#allocation118_spill] sm:$0xff]  ;;  %v20129_v63 = vld [vmem:[#allocation169_spill] sm:$0xff] }
 0x359   :  { %20123 = vst [vmem:[#allocation40_spill] sm:$0xff] %v16265_v22  ;;  %v16272_v14 = vrot.slane %v20070_v57, %v19517_v44  ;;  %v6416_v7 = vsel %vm2652_vm4, %v20125_v26, %v16189_v27  ;;  %5405 = vrot.lane.b32.xlu0 %v15830_v4, %s11397_s24  ;;  %v3559_v20 = vrot.slane %v3457_v1, %v11495_v8 }
 0x35a   :  { %v3458_v33 = vmul.f32 %v20126_v5, %v3213_v59  ;;  %v1349_v2 = vsel %vm1325_vm2, %v20073_v58, %v20127_v55  ;;  %v3084_v26 = vmul.f32 %v3025_v43, %v20062_v54  ;;  %v1167_v16 = vrot.slane %v1056_v12, %v11495_v8  ;;  %v6365_v1 = vpop.permute.xlu1 %6364  ;;  %v20132_v5 = vld [vmem:[#allocation119_spill] sm:$0xff] }
 0x35b   :  { %20124 = vst [vmem:[#allocation62_spill] sm:$0xff] %v16272_v14  ;;  %v20128_v21 = vrot.slane %v19902_v36, %v19682_v6  ;;  %v3214_v15 = vsel %vm3190_vm5, %v20118_v23, %v20129_v63  ;;  %v3750_v59 = vsel %vm3728_vm6, %v20131_v60, %v20130_v34  ;;  %v1887_v58 = vsel %vm1863_vm3, %v20133_v46, %v20132_v5  ;;  %v20135_v36 = vld [vmem:[#allocation140_spill] sm:$0xff] }
 0x35c   :  { %v6657_v43 = vmul.f32 %v6524_v40, %v6416_v7  ;;  %v6417_v12 = vsel %vm2652_vm4, %v16189_v27, %v6365_v1  ;;  %v16305_v32 = vpop.permute.xlu0 %1859  ;;  %5403 = vrot.lane.b32.xlu1 %v20135_v36, %s11397_s24  ;;  %v6532_v46 = vrot.slane %v16221_v31, %v19501_v24  ;;  %v6536_v60 = vrot.slane %v16221_v31, %v11527_v17  ;;  %v20137_v27 = vld [vmem:[#allocation26_spill] sm:$0xff]  ;;  %v20138_v7 = vld [vmem:[#allocation24_spill] sm:$0xff] }
 0x35d   :  { %v2921_v25 = vmul.f32 %v20128_v21, %v2676_v42  ;;  %20134 = vst [vmem:[#allocation46_spill] sm:$0xff] %v16305_v32  ;;  %v20136_v21 = vrot.slane %v20018_v51, %v11495_v8  ;;  %v6658_v42 = vmul.f32 %v6528_v50, %v6417_v12  ;;  %5774 = vrot.lane.b32.xlu0 %v15830_v4, %s11399_s25  ;;  %v20140_v50 = vld [vmem:[#allocation11_spill] sm:$0xff] }
 0x35e   :  { %v682_v40 = vmul.f32 %v629_v0, %v20137_v27  ;;  %v3621_v32 = vmul.f32 %v3559_v20, %v20138_v7  ;;  %v3563_v52 = vrot.slane %v3458_v33, %v11495_v8  ;;  %v20139_v13 = vrot.slane %v19972_v9, %v19682_v6  ;;  %v6367_v5 = vpop.permute.xlu1 %6366  ;;  %v20144_v0 = vld [vmem:[#allocation105_spill] sm:$0xff] }
 0x35f   :  { %v1594_v23 = vmul.f32 %v20136_v21, %v1349_v2  ;;  %v1220_v12 = vmul.f32 %v1167_v16, %v20140_v50  ;;  %v20141_v21 = vld [vmem:[#allocation42_spill] sm:$0xff]  ;;  %v20143_v63 = vrot.slane %v20025_v41, %v11495_v8  ;;  %v11041_v55 = vpack.c.bf16 %v6658_v42, %v20144_v0  ;;  %v20145_v33 = vld [vmem:[#allocation209_spill] sm:$0xff]  ;;  %v20150_v0 = vld [vmem:[#allocation124_spill] sm:$0xff] }
 0x360   :  { %v3459_v2 = vmul.f32 %v20139_v13, %v3214_v15  ;;  %v20142_v10 = vrot.slane %v20141_v21, %v19974_v48  ;;  %v3029_v20 = vrot.slane %v2921_v25, %v11495_v8  ;;  %v11043_v57 = vpack.c.bf16 %v6657_v43, %v20145_v33  ;;  %v16337_v16 = vpop.permute.xlu0 %6731  ;;  %5772 = vrot.lane.b32.xlu1 %v20135_v36, %s11399_s25 }
 0x361   :  { %v2132_v31 = vmul.f32 %v20143_v63, %v1887_v58  ;;  %v6418_v9 = vsel %vm2652_vm4, %v6365_v1, %v6367_v5  ;;  %v6419_v13 = vsel %vm2652_vm4, %v6367_v5, %v16265_v22  ;;  %v1705_v63 = vrot.slane %v1594_v23, %v11495_v8  ;;  %6378 = vrot.lane.b32.xlu0 %v20135_v36, %s11401_s26  ;;  %v20147_v1 = vld [vmem:[#allocation28_spill] sm:$0xff]  ;;  %v20148_v23 = vld [vmem:[#allocation123_spill] sm:$0xff] }
 0x362   :  { %v3995_v14 = vmul.f32 %v20142_v10, %v3750_v59  ;;  %v16342_v10 = vmax.f32 %v16201_v38, 0.0  ;;  %v6659_v15 = vmul.f32 %v6532_v46, %v6418_v9  ;;  %v6660_v59 = vmul.f32 %v6536_v60, %v6419_v13  ;;  %11042 = vmatprep.subr.bf16.mxu0 %v11041_v55  ;;  %v16354_v60 = vpop.permute.xlu1 %3722 }
 0x363   :  { %v3115_v25 = vadd.f32 %v3083_v18, %v16228_v39  ;;  %v714_v5 = vadd.f32 %v682_v40, %v20147_v1  ;;  %v3622_v58 = vmul.f32 %v3563_v52, %v20138_v7  ;;  %v3567_v43 = vrot.slane %v3459_v2, %v11495_v8  ;;  %11044 = vmatpush1.bf16.msra.mxu0 %v11043_v57  ;;  %v20151_v18 = vld [vmem:[#allocation95_spill] sm:$0xff] }
 0x364   :  { %20146 = vst [vmem:[#allocation66_spill] sm:$0xff] %v16342_v10  ;;  %v4097_v38 = vrot.slane %v3995_v14, %v11495_v8  ;;  %v2243_v42 = vrot.slane %v2132_v31, %v11495_v8  ;;  %v11059_v46 = vpack.c.bf16 %v6659_v15, %v20148_v23  ;;  %20149 = vst [vmem:[#allocation152_spill] sm:$0xff] %v16354_v60  ;;  %v16363_v40 = vpop.permute.xlu0 %7100  ;;  %5407 = vrot.lane.b32.xlu1 %v15959_v35, %s11397_s24  ;;  %v20156_v23 = vld [vmem:[#allocation101_spill] sm:$0xff]  ;;  %v20160_v52 = vld [vmem:[#allocation111_spill] sm:$0xff] }
 0x365   :  { %v11057_v33 = vpack.c.bf16 %v6660_v59, %v20150_v0  ;;  %v3116_v55 = vadd.f32 %v3084_v26, %v16236_v53  ;;  %v3085_v39 = vmul.f32 %v3029_v20, %v20062_v54  ;;  %v3653_v31 = vadd.f32 %v3621_v32, %v3115_v25  ;;  %v10748_v53 = vld [vmem:[%s18635_s1 + $0x47] ss:$8 sm:$0xf]  ;;  %6382 = vrot.lane.b32.xlu0 %v15959_v35, %s11401_s26 }
 0x366   :  { %v1252_v14 = vadd.f32 %v1220_v12, %v714_v5  ;;  %v1758_v2 = vmul.f32 %v1705_v63, %v20072_v49  ;;  %v10749_v26 = vld [vmem:[%s18635_s1 + $0x47] ss:$8 sm:$0xf0]  ;;  %v3623_v9 = vmul.f32 %v3567_v43, %v20138_v7  ;;  %v2296_v59 = vmul.f32 %v2243_v42, %v20099_v45  ;;  %v16398_v0 = vpop.permute.xlu1 %4260 }
 0x367   :  { %11058 = vmatprep.subr.bf16.mxu1 %v11057_v33  ;;  %v16376_v20 = vadd.f32 %v3622_v58, %v3116_v55  ;;  %v20152_v32 = vld [vmem:[#allocation27_spill] sm:$0xff]  ;;  %v20154_v25 = vld [vmem:[#allocation120_spill] sm:$0xff]  ;;  %20157 = vst [vmem:[#allocation63_spill] sm:$0xff] %v16398_v0  ;;  %v16405_v55 = vor.u32 %v10749_v26, %v10748_v53  ;;  %v20159_v13 = vrot.slane %v20141_v21, %v19680_v62  ;;  %v20162_v33 = vld [vmem:[#allocation38_spill] sm:$0xff] }
 0x368   :  { %v3751_v12 = vsel %vm3728_vm6, %v20130_v34, %v20152_v32  ;;  %11060 = vmatpush1.bf16.msra.mxu1 %v11059_v46  ;;  %v20153_v63 = vld [vmem:[#allocation39_spill] sm:$0xff]  ;;  %v3752_v5 = vsel %vm3728_vm6, %v20152_v32, %v20154_v25  ;;  %v20155_v58 = vld [vmem:[#allocation60_spill] sm:$0xff]  ;;  %v16407_v32 = vpop.permute.xlu0 %6735  ;;  %5776 = vrot.lane.b32.xlu1 %v15959_v35, %s11399_s25  ;;  %v20161_v53 = vrot.slane %v20141_v21, %v19682_v6  ;;  %v20175_v25 = vld [vmem:[#allocation126_spill] sm:$0xff] }
 0x369   :  { %v4159_v15 = vmul.f32 %v4097_v38, %v20153_v63  ;;  %v4288_v43 = vsel %vm4266_vm7, %v20156_v23, %v20155_v58  ;;  %v10740_v34 = vld [vmem:[%s18635_s1 + $0x46] ss:$8 sm:$0xf]  ;;  %v3117_v38 = vadd.f32 %v3085_v39, %v16256_v56  ;;  %20158 = vst [vmem:[#allocation67_spill] sm:$0xff] %v16405_v55  ;;  %v1790_v23 = vadd.f32 %v1758_v2, %v1252_v14 }
 0x36a   :  { %v10741_v46 = vld [vmem:[%s18635_s1 + $0x46] ss:$8 sm:$0xf0]  ;;  %v3996_v57 = vmul.f32 %v20159_v13, %v3751_v12  ;;  %v4289_v56 = vsel %vm4266_vm7, %v20155_v58, %v20160_v52  ;;  %6747 = vrot.lane.b32.xlu0 %v20135_v36, %s11404_s29  ;;  %v3997_v26 = vmul.f32 %v20161_v53, %v3752_v5  ;;  %v20163_v14 = vrot.slane %v20162_v33, %v19974_v48  ;;  %v6734_v60 = vpop.permute.xlu1 %6733 }
 0x36b   :  { %v16429_v13 = vor.u32 %v10741_v46, %v10740_v34  ;;  %v16431_v58 = vadd.f32 %v3623_v9, %v3117_v38  ;;  %v16433_v42 = vadd.f32 %v4159_v15, %v3653_v31  ;;  %v2328_v39 = vadd.f32 %v2296_v59, %v1790_v23  ;;  %v20166_v59 = vld [vmem:[#allocation65_spill] sm:$0xff]  ;;  %v20168_v34 = vld [vmem:[#allocation188_spill] sm:$0xff]  ;;  %v20170_v7 = vld [vmem:[#allocation79_spill] sm:$0xff] }
 0x36c   :  { %v4533_v2 = vmul.f32 %v20163_v14, %v4288_v43  ;;  %v20165_v21 = vrot.slane %v20162_v33, %v19680_v62  ;;  %v7262_v9 = vrot.slane %v16405_v55, %v11495_v8  ;;  %v7105_v31 = vpop.permute.xlu0 %7104  ;;  %6380 = vrot.lane.b32.xlu1 %v15830_v4, %s11401_s26  ;;  %v4101_v15 = vrot.slane %v3996_v57, %v11495_v8  ;;  %v20172_v43 = vld [vmem:[#allocation171_spill] sm:$0xff] }
 0x36d   :  { %20164 = vst [vmem:[#allocation75_spill] sm:$0xff] %v16429_v13  ;;  %v7154_v46 = vsel %vm3728_vm6, %v20166_v59, %v16363_v40  ;;  %v6897_v38 = vrot.slane %v16429_v13, %v20057_v11  ;;  %v7266_v23 = vrot.slane %v16405_v55, %v20057_v11  ;;  %v6893_v57 = vrot.slane %v16429_v13, %v11495_v8 }
 0x36e   :  { %v4534_v5 = vmul.f32 %v20165_v21, %v4289_v56  ;;  %7116 = vrot.lane.b32.xlu0 %v20135_v36, %s11405_s3  ;;  %v4105_v56 = vrot.slane %v3997_v26, %v11495_v8  ;;  %v4635_v53 = vrot.slane %v4533_v2, %v11495_v8  ;;  %v6786_v14 = vsel %vm3190_vm5, %v16337_v16, %v6734_v60  ;;  %v20167_v21 = vld [vmem:[#allocation149_spill] sm:$0xff]  ;;  %v20169_v26 = vld [vmem:[#allocation134_spill] sm:$0xff]  ;;  %v7103_v12 = vpop.permute.xlu1 %7102 }
 0x36f   :  { %v4290_v59 = vsel %vm4266_vm7, %v20160_v52, %v20167_v21  ;;  %v16468_v0 = vadd.f32 %v20168_v34, %v2328_v39  ;;  %v6785_v2 = vsel %vm3190_vm5, %v20169_v26, %v16337_v16  ;;  %v274_v45 = vsel %vm249_vm1, %v20105_v28, %v20170_v7  ;;  %v20174_v21 = vld [vmem:[#allocation145_spill] sm:$0xff] }
 0x370   :  { %v4639_v22 = vrot.slane %v4534_v5, %v11495_v8  ;;  %v7395_v49 = vmul.f32 %v7262_v9, %v7154_v46  ;;  %v7155_v52 = vsel %vm3728_vm6, %v16363_v40, %v7103_v12  ;;  %v16481_v39 = vpop.permute.xlu0 %2648  ;;  %6384 = vrot.lane.b32.xlu1 %v16342_v10, %s11401_s26  ;;  %v4160_v34 = vmul.f32 %v4101_v15, %v20153_v63 }
 0x371   :  { %20171 = vst [vmem:[#allocation96_spill] sm:$0xff] %v16481_v39  ;;  %v812_v16 = vsel %vm787_vm0, %v20108_v47, %v20172_v43  ;;  %v7027_v5 = vmul.f32 %v6897_v38, %v6786_v14  ;;  %v7396_v26 = vmul.f32 %v7266_v23, %v7155_v52  ;;  %v4161_v28 = vmul.f32 %v4105_v56, %v20153_v63  ;;  %v20176_v38 = vld [vmem:[#allocation151_spill] sm:$0xff] }
 0x372   :  { %6751 = vrot.lane.b32.xlu0 %v15959_v35, %s11404_s29  ;;  %v4697_v40 = vmul.f32 %v4635_v53, %v19963_v29  ;;  %v20173_v9 = vrot.slane %v20162_v33, %v19682_v6  ;;  %v7026_v39 = vmul.f32 %v6893_v57, %v6785_v2  ;;  %v518_v15 = vmul.f32 %v20174_v21, %v274_v45  ;;  %v16503_v14 = vpop.permute.xlu1 %6737 }
 0x373   :  { %v275_v47 = vsel %vm249_vm1, %v20170_v7, %v20175_v25  ;;  %v276_v23 = vsel %vm249_vm1, %v20175_v25, %v20176_v38  ;;  %20177 = vst [vmem:[#allocation71_spill] sm:$0xff] %v16503_v14  ;;  %v11045_v56 = vpack.c.bf16 %v7396_v26, %v7027_v5  ;;  %v4698_v53 = vmul.f32 %v4639_v22, %v19963_v29  ;;  %v20179_v22 = vld [vmem:[#allocation147_spill] sm:$0xff] }
 0x374   :  { %v4535_v46 = vmul.f32 %v20173_v9, %v4290_v59  ;;  %v20178_v33 = vrot.slane %v20017_v37, %v20057_v11  ;;  %v11047_v57 = vpack.c.bf16 %v7395_v49, %v7026_v39  ;;  %v7270_v45 = vrot.slane %v16405_v55, %v19501_v24  ;;  %v16511_v2 = vpop.permute.xlu0 %4831  ;;  %6749 = vrot.lane.b32.xlu1 %v15830_v4, %s11404_s29  ;;  %v20180_v39 = vld [vmem:[#allocation8_spill] sm:$0xff] }
 0x375   :  { %v7156_v7 = vsel %vm3728_vm6, %v7103_v12, %v7105_v31  ;;  %v6905_v25 = vrot.slane %v16429_v13, %v11527_v17  ;;  %11046 = vmatprep.subr.bf16.mxu0 %v11045_v56  ;;  %v7274_v49 = vrot.slane %v16405_v55, %v11527_v17  ;;  %v519_v52 = vmul.f32 %v20179_v22, %v275_v47  ;;  %v20182_v22 = vld [vmem:[#allocation68_spill] sm:$0xff]  ;;  %v20207_v55 = vld [vmem:[#allocation142_spill] sm:$0xff] }
 0x376   :  { %v1057_v59 = vmul.f32 %v20178_v33, %v812_v16  ;;  %7120 = vrot.lane.b32.xlu0 %v15959_v35, %s11405_s3  ;;  %v520_v16 = vmul.f32 %v20180_v39, %v276_v23  ;;  %v6901_v5 = vrot.slane %v16429_v13, %v19501_v24  ;;  %v6788_v12 = vsel %vm3190_vm5, %v16407_v32, %v16503_v14  ;;  %v16534_v47 = vpop.permute.xlu1 %7106 }
 0x377   :  { %11048 = vmatpush1.bf16.msra.mxu0 %v11047_v57  ;;  %v4192_v26 = vadd.f32 %v4160_v34, %v16376_v20  ;;  %v4643_v9 = vrot.slane %v4535_v46, %v11495_v8  ;;  %v633_v56 = vrot.slane %v518_v15, %v11495_v8  ;;  %v6787_v33 = vsel %vm3190_vm5, %v6734_v60, %v16407_v32 }
 0x378   :  { %20181 = vst [vmem:[#allocation205_spill] sm:$0xff] %v16534_v47  ;;  %v4729_v23 = vadd.f32 %v4697_v40, %v16433_v42  ;;  %v2677_v39 = vsel %vm2652_vm4, %v20121_v30, %v20182_v22  ;;  %v7397_v21 = vmul.f32 %v7270_v45, %v7156_v7  ;;  %v7157_v57 = vsel %vm3728_vm6, %v7105_v31, %v16534_v47  ;;  %v16542_v20 = vpop.permute.xlu0 %5024  ;;  %v20215_v22 = vld [vmem:[#allocation120_spill] sm:$0xff] }
 0x379   :  { %7118 = vrot.lane.b32.xlu1 %v15830_v4, %s11405_s3  ;;  %v4730_v34 = vadd.f32 %v4698_v53, %v4192_v26  ;;  %v1171_v60 = vrot.slane %v1057_v59, %v11495_v8  ;;  %v7029_v32 = vmul.f32 %v6905_v25, %v6788_v12  ;;  %v7398_v46 = vmul.f32 %v7274_v49, %v7157_v57 }
 0x37a   :  { %4847 = vrot.lane.b32.xlu0 %v16342_v10, %s11394_s2  ;;  %v637_v42 = vrot.slane %v519_v52, %v11495_v8  ;;  %v641_v30 = vrot.slane %v520_v16, %v11495_v8  ;;  %v7028_v40 = vmul.f32 %v6901_v5, %v6787_v33  ;;  %v4699_v15 = vmul.f32 %v4643_v9, %v19963_v29  ;;  %v16558_v7 = vpop.permute.xlu1 %3186  ;;  %v20188_v33 = vld [vmem:[#allocation33_spill] sm:$0xff] }
 0x37b   :  { %v683_v45 = vmul.f32 %v633_v56, %v20137_v27  ;;  %v20183_v53 = vrot.slane %v20151_v18, %v11495_v8  ;;  %20184 = vst [vmem:[#allocation47_spill] sm:$0xff] %v16558_v7  ;;  %v11061_v25 = vpack.c.bf16 %v7398_v46, %v7029_v32  ;;  %v4193_v49 = vadd.f32 %v4161_v28, %v16431_v58  ;;  %v20187_v56 = vld [vmem:[#allocation109_spill] sm:$0xff]  ;;  %v20189_v32 = vld [vmem:[#allocation80_spill] sm:$0xff] }
 0x37c   :  { %v11063_v5 = vpack.c.bf16 %v7397_v21, %v7028_v40  ;;  %v16565_v12 = vpop.permute.xlu0 %7469  ;;  %v16569_v26 = vmax.f32 %v4729_v23, 0.0  ;;  %v1221_v9 = vmul.f32 %v1171_v60, %v20140_v50  ;;  %v813_v58 = vsel %vm787_vm0, %v20172_v43, %v20187_v56  ;;  %v20199_v16 = vld [vmem:[#allocation117_spill] sm:$0xff] }
 0x37d   :  { %v2922_v59 = vmul.f32 %v20183_v53, %v2677_v39  ;;  %6753 = vrot.lane.b32.xlu1 %v16342_v10, %s11404_s29  ;;  %v16571_v39 = vmax.f32 %v4730_v34, 0.0  ;;  %11062 = vmatprep.subr.bf16.mxu1 %v11061_v25  ;;  %v684_v21 = vmul.f32 %v637_v42, %v20137_v27  ;;  %v685_v28 = vmul.f32 %v641_v30, %v20137_v27  ;;  %v10756_v42 = vld [vmem:[%s18635_s1 + $0x140] ss:$8 sm:$0xf] }
 0x37e   :  { %20185 = vst [vmem:[#allocation92_spill] sm:$0xff] %v16569_v26  ;;  %5040 = vrot.lane.b32.xlu0 %v16342_v10, %s11395_s23  ;;  %v814_v23 = vsel %vm787_vm0, %v20187_v56, %v20188_v33  ;;  %11064 = vmatpush1.bf16.msra.mxu1 %v11063_v5  ;;  %v16586_v34 = vadd.f32 %v4699_v15, %v4193_v49  ;;  %v10757_v30 = vld [vmem:[%s18635_s1 + $0x140] ss:$8 sm:$0xf0]  ;;  %v16600_v40 = vpop.permute.xlu1 %4833 }
 0x37f   :  { %20186 = vst [vmem:[#allocation102_spill] sm:$0xff] %v16571_v39  ;;  %v715_v43 = vadd.f32 %v683_v45, %v20147_v1  ;;  %v3033_v60 = vrot.slane %v2922_v59, %v11495_v8  ;;  %v16592_v46 = vrot.slane %v20189_v32, %v19974_v48  ;;  %v20191_v15 = vrot.slane %v20017_v37, %v19501_v24  ;;  %v20192_v53 = vld [vmem:[#allocation56_spill] sm:$0xff]  ;;  %v20193_v59 = vld [vmem:[#allocation78_spill] sm:$0xff] }
 0x380   :  { %v1350_v25 = vsel %vm1325_vm2, %v20193_v59, %v20192_v53  ;;  %v16610_v49 = vrot.slane %v20189_v32, %v19680_v62  ;;  %v16614_v56 = vpop.permute.xlu0 %3724  ;;  %v716_v5 = vadd.f32 %v684_v21, %v20147_v1  ;;  %v717_v31 = vadd.f32 %v685_v28, %v20147_v1  ;;  %v20200_v32 = vld [vmem:[#allocation119_spill] sm:$0xff]  ;;  %v20209_v1 = vld [vmem:[#allocation162_spill] sm:$0xff]  ;;  %v20214_v27 = vld [vmem:[#allocation132_spill] sm:$0xff] }
 0x381   :  { %20190 = vst [vmem:[#allocation150_spill] sm:$0xff] %v16592_v46  ;;  %v1058_v45 = vmul.f32 %v20191_v15, %v813_v58  ;;  %20195 = vst [vmem:[#allocation166_spill] sm:$0xff] %v16614_v56  ;;  %7122 = vrot.lane.b32.xlu1 %v16342_v10, %s11405_s3  ;;  %v16618_v57 = vadd.f32 %v1221_v9, %v715_v43  ;;  %v20196_v58 = vrot.slane %v20017_v37, %v11527_v17  ;;  %v20204_v9 = vld [vmem:[#allocation169_spill] sm:$0xff] }
 0x382   :  { %20194 = vst [vmem:[#allocation177_spill] sm:$0xff] %v16610_v49  ;;  %7485 = vrot.lane.b32.xlu0 %v20135_v36, %s11407_s30  ;;  %v16633_v43 = vor.u32 %v10757_v30, %v10756_v42  ;;  %v1888_v52 = vsel %vm1863_vm3, %v20200_v32, %v20199_v16  ;;  %v20201_v36 = vld [vmem:[#allocation136_spill] sm:$0xff]  ;;  %v16644_v56 = vpop.permute.xlu1 %5026  ;;  %v20205_v7 = vrot.slane %v20025_v41, %v20057_v11  ;;  %v20206_v46 = vld [vmem:[#allocation137_spill] sm:$0xff] }
 0x383   :  { %v1059_v15 = vmul.f32 %v20196_v58, %v814_v23  ;;  %v3086_v23 = vmul.f32 %v3033_v60, %v20062_v54  ;;  %v20198_v58 = vrot.slane %v20018_v51, %v20057_v11  ;;  %v5197_v21 = vrot.slane %v20201_v36, %v19974_v48 }
 0x384   :  { %20197 = vst [vmem:[#allocation10_spill] sm:$0xff] %v16633_v43  ;;  %v1175_v28 = vrot.slane %v1058_v45, %v11495_v8  ;;  %v5074_v30 = vsel %vm787_vm0, %v16542_v20, %v16644_v56  ;;  %v5193_v42 = vrot.slane %v20201_v36, %v19517_v44  ;;  %v7635_v60 = vrot.slane %v16633_v43, %v20057_v11 }
 0x385   :  { %v1595_v59 = vmul.f32 %v20198_v58, %v1350_v25  ;;  %v16654_v25 = vpop.permute.xlu0 %4837  ;;  %4849 = vrot.lane.b32.xlu1 %v16569_v26, %s11394_s2  ;;  %v1179_v32 = vrot.slane %v1059_v15, %v11495_v8  ;;  %v20203_v58 = vld [vmem:[#allocation128_spill] sm:$0xff]  ;;  %v2133_v49 = vmul.f32 %v20205_v7, %v1888_v52  ;;  %v5073_v15 = vsel %vm787_vm0, %v20206_v46, %v16542_v20 }
 0x386   :  { %20202 = vst [vmem:[#allocation210_spill] sm:$0xff] %v16654_v25  ;;  %v3215_v45 = vsel %vm3190_vm5, %v20204_v9, %v20203_v58  ;;  %4851 = vrot.lane.b32.xlu0 %v16571_v39, %s11394_s2  ;;  %v7631_v9 = vrot.slane %v16633_v43, %v11495_v8  ;;  %v4881_v14 = vsel %vm249_vm1, %v16511_v2, %v16600_v40  ;;  %v16686_v54 = vpop.permute.xlu1 %7471 }
 0x387   :  { %v16680_v47 = vadd.f32 %v3086_v23, %v16468_v0  ;;  %v1709_v13 = vrot.slane %v1595_v59, %v11495_v8  ;;  %v7523_v7 = vsel %vm4266_vm7, %v20207_v55, %v16565_v12  ;;  %v5315_v52 = vmul.f32 %v5197_v21, %v5074_v30  ;;  %v20211_v55 = vld [vmem:[#allocation163_spill] sm:$0xff]  ;;  %v20212_v30 = vld [vmem:[#allocation112_spill] sm:$0xff] }
 0x388   :  { %v1222_v20 = vmul.f32 %v1175_v28, %v20140_v50  ;;  %v20208_v46 = vrot.slane %v20098_v19, %v11495_v8  ;;  %v4880_v0 = vsel %vm249_vm1, %v20209_v1, %v16511_v2  ;;  %v7524_v59 = vsel %vm4266_vm7, %v16565_v12, %v16686_v54 }
 0x389   :  { %v16698_v23 = vpop.permute.xlu0 %5030  ;;  %5042 = vrot.lane.b32.xlu1 %v16569_v26, %s11395_s23  ;;  %v1351_v21 = vsel %vm1325_vm2, %v20192_v53, %v20211_v55  ;;  %v5314_v28 = vmul.f32 %v5193_v42, %v5073_v15  ;;  %v7765_v1 = vmul.f32 %v7635_v60, %v7524_v59  ;;  %v1223_v2 = vmul.f32 %v1179_v32, %v20140_v50  ;;  %v20216_v42 = vld [vmem:[#allocation198_spill] sm:$0xff] }
 0x38a   :  { %v3460_v58 = vmul.f32 %v20208_v46, %v3215_v45  ;;  %20210 = vst [vmem:[#allocation88_spill] sm:$0xff] %v16698_v23  ;;  %v4946_v45 = vmul.f32 %v4881_v14, %v20212_v30  ;;  %5044 = vrot.lane.b32.xlu0 %v16571_v39, %s11395_s23  ;;  %v2247_v12 = vrot.slane %v2133_v49, %v11495_v8  ;;  %v20213_v46 = vld [vmem:[#allocation161_spill] sm:$0xff]  ;;  %v4836_v60 = vpop.permute.xlu1 %4835  ;;  %v20217_v32 = vld [vmem:[#allocation14_spill] sm:$0xff] }
 0x38b   :  { %v1352_v11 = vsel %vm1325_vm2, %v20211_v55, %v20213_v46  ;;  %v7764_v19 = vmul.f32 %v7631_v9, %v7523_v7  ;;  %v3753_v53 = vsel %vm3728_vm6, %v20215_v22, %v20214_v27  ;;  %v4945_v15 = vmul.f32 %v4880_v0, %v20216_v42  ;;  %8453 = vmatprep.subr.mxu0 %v7765_v1  ;;  %v20228_v42 = vld [vmem:[#allocation24_spill] sm:$0xff] }
 0x38c   :  { %v11065_v59 = vpack.c.bf16 %v5315_v52, %v4946_v45  ;;  %v1759_v30 = vmul.f32 %v1709_v13, %v20217_v32  ;;  %v3571_v49 = vrot.slane %v3460_v58, %v11495_v8  ;;  %v20218_v55 = vrot.slane %v20018_v51, %v19501_v24  ;;  %v16793_v13 = vld [vmem:[%s18636_s4 + $0x8] sm:$0xff] }
 0x38d   :  { %v16724_v7 = vpop.permute.xlu0 %7475  ;;  %7487 = vrot.lane.b32.xlu1 %v15830_v4, %s11407_s30  ;;  %8454 = vmatpush1.msra.mxu0 %v7764_v19  ;;  %v16729_v22 = vmax.f32 %v16586_v34, 0.0  ;;  %v20221_v52 = vrot.slane %v20018_v51, %v11527_v17  ;;  %v11067_v58 = vpack.c.bf16 %v5314_v28, %v4945_v15  ;;  %v16740_v45 = vadd.f32 %v1223_v2, %v717_v31  ;;  %v20222_v4 = vld [vmem:[#allocation16_spill] sm:$0xff] }
 0x38e   :  { %v1596_v9 = vmul.f32 %v20218_v55, %v1351_v21  ;;  %20219 = vst [vmem:[#allocation179_spill] sm:$0xff] %v16724_v7  ;;  %7489 = vrot.lane.b32.xlu0 %v15959_v35, %s11407_s30  ;;  %11066 = vmatprep.subr.bf16.mxu0 %v11065_v59  ;;  %v16738_v21 = vadd.f32 %v1222_v20, %v716_v5  ;;  %v20225_v35 = vld [vmem:[#allocation164_spill] sm:$0xff]  ;;  %v5029_v2 = vpop.permute.xlu1 %5028  ;;  %20231 = vst [vmem:[#allocation157_spill] sm:$0xff] %v16793_v13 }
 0x38f   :  { %20220 = vst [vmem:[#allocation181_spill] sm:$0xff] %v16729_v22  ;;  %v1597_v0 = vmul.f32 %v20221_v52, %v1352_v11  ;;  %v2297_v19 = vmul.f32 %v2247_v12, %v20222_v4  ;;  %v20223_v34 = vrot.slane %v20113_v61, %v11495_v8  ;;  %v16749_v11 = vld [vmem:[%s18636_s4] sm:$0xff]  ;;  %v1889_v5 = vsel %vm1863_vm3, %v20199_v16, %v20225_v35 }
 0x390   :  { %20224 = vst [vmem:[#allocation84_spill] sm:$0xff] %v16749_v11  ;;  %10770 = vmatmul.mubr.msk.f32.vlgmr.msra.gmra.mrb[8].mxu0 %vm8122_vm8, %v16749_v11  ;;  %v20226_v31 = vld [vmem:[#allocation160_spill] sm:$0xff]  ;;  %v5205_v28 = vrot.slane %v20201_v36, %v19682_v6  ;;  %v20227_v12 = vmov 0.0   ;;  %v3624_v15 = vmul.f32 %v3571_v49, %v20228_v42  ;;  %v1713_v59 = vrot.slane %v1596_v9, %v11495_v8 }
 0x391   :  { %v3998_v1 = vmul.f32 %v20223_v34, %v3753_v53  ;;  %v1890_v20 = vsel %vm1863_vm3, %v20225_v35, %v20226_v31  ;;  %11068 = vmatpush1.bf16.msra.mxu0 %v11067_v58  ;;  %8507 = vmatprep.mubr.f32.mxu0 %v20227_v12  ;;  %v1791_v53 = vadd.f32 %v1759_v30, %v16618_v57  ;;  %v16767_v55 = vpop.permute.xlu0 %5393  ;;  %v20237_v31 = vld [vmem:[#allocation61_spill] sm:$0xff] }
 0x392   :  { %v5076_v16 = vsel %vm787_vm0, %v5029_v2, %v16698_v23  ;;  %4853 = vrot.lane.b32.xlu1 %v16729_v22, %s11394_s2  ;;  %v1717_v52 = vrot.slane %v1597_v0, %v11495_v8  ;;  %v5201_v58 = vrot.slane %v20201_v36, %v19680_v62  ;;  %5409 = vrot.lane.b32.xlu0 %v16342_v10, %s11397_s24  ;;  %v20233_v23 = vld [vmem:[#allocation149_spill] sm:$0xff] }
 0x393   :  { %v7639_v57 = vrot.slane %v16633_v43, %v19501_v24  ;;  %v7643_v30 = vrot.slane %v16633_v43, %v11527_v17  ;;  %v20229_v49 = vrot.slane %v20025_v41, %v19501_v24  ;;  %v20230_v34 = vrot.slane %v20025_v41, %v11527_v17 }
 0x394   :  { %v4883_v36 = vsel %vm249_vm1, %v4836_v60, %v16654_v25  ;;  %v5075_v35 = vsel %vm787_vm0, %v16644_v56, %v5029_v2  ;;  %10771 = vmatmul.mubr.msk.f32.gmra.mrb[10].mxu0 %vm8122_vm8, %v16793_v13  ;;  %v2329_v14 = vadd.f32 %v2297_v19, %v1791_v53  ;;  %v7474_v25 = vpop.permute.xlu1 %7473  ;;  %v20234_v56 = vld [vmem:[#allocation36_spill] sm:$0xff]  ;;  %v4882_v43 = vsel %vm249_vm1, %v16600_v40, %v4836_v60 }
 0x395   :  { %v2134_v9 = vmul.f32 %v20229_v49, %v1889_v5  ;;  %v2135_v0 = vmul.f32 %v20230_v34, %v1890_v20  ;;  %v4109_v5 = vrot.slane %v3998_v1, %v11495_v8  ;;  %v20232_v49 = vld [vmem:[#allocation129_spill] sm:$0xff]  ;;  %v5317_v34 = vmul.f32 %v5205_v28, %v5076_v16  ;;  %8655 = vmatprep.mubr.f32.mxu0 %v20227_v12  ;;  %v16811_v53 = vpop.permute.xlu0 %5762 }
 0x396   :  { %v4291_v20 = vsel %vm4266_vm7, %v20233_v23, %v20232_v49  ;;  %v277_v2 = vsel %vm249_vm1, %v20176_v38, %v20234_v56  ;;  %v7525_v19 = vsel %vm4266_vm7, %v16686_v54, %v7474_v25  ;;  %v7526_v1 = vsel %vm4266_vm7, %v7474_v25, %v16724_v7  ;;  %5046 = vrot.lane.b32.xlu1 %v16729_v22, %s11395_s23  ;;  %v20235_v23 = vld [vmem:[#allocation203_spill] sm:$0xff] }
 0x397   :  { %v4948_v28 = vmul.f32 %v4883_v36, %v20235_v23  ;;  %v5316_v16 = vmul.f32 %v5201_v58, %v5075_v35  ;;  %v7766_v41 = vmul.f32 %v7639_v57, %v7525_v19  ;;  %5778 = vrot.lane.b32.xlu0 %v16342_v10, %s11399_s25  ;;  %v7767_v38 = vmul.f32 %v7643_v30, %v7526_v1  ;;  %v20238_v57 = vld [vmem:[#allocation70_spill] sm:$0xff] }
 0x398   :  { %v1760_v40 = vmul.f32 %v1713_v59, %v20217_v32  ;;  %v1761_v54 = vmul.f32 %v1717_v52, %v20217_v32  ;;  %v2251_v60 = vrot.slane %v2134_v9, %v11495_v8  ;;  %v2255_v25 = vrot.slane %v2135_v0, %v11495_v8  ;;  %v16829_v30 = vpop.permute.xlu1 %4262  ;;  %v20240_v35 = vld [vmem:[#allocation62_spill] sm:$0xff] }
 0x399   :  { %v20236_v7 = vrot.slane %v20122_v3, %v11495_v8  ;;  %v815_v58 = vsel %vm787_vm0, %v20188_v33, %v20237_v31  ;;  %v4947_v36 = vmul.f32 %v4882_v43, %v20238_v57  ;;  %8530 = vmatprep.subr.mxu1 %v7767_v38  ;;  %20239 = vst [vmem:[#allocation90_spill] sm:$0xff] %v16829_v30  ;;  %v16835_v19 = vpop.permute.xlu0 %5397  ;;  %v20243_v38 = vld [vmem:[#allocation176_spill] sm:$0xff]  ;;  %v20250_v43 = vld [vmem:[#allocation69_spill] sm:$0xff] }
 0x39a   :  { %v11081_v59 = vpack.c.bf16 %v5317_v34, %v4948_v28  ;;  %v3656_v52 = vadd.f32 %v3624_v15, %v16680_v47  ;;  %v521_v9 = vmul.f32 %v20240_v35, %v277_v2  ;;  %7491 = vrot.lane.b32.xlu1 %v16342_v10, %s11407_s30  ;;  %8531 = vmatpush1.msra.mxu1 %v7766_v41  ;;  %v20242_v2 = vld [vmem:[#allocation189_spill] sm:$0xff]  ;;  %v20254_v10 = vld [vmem:[#allocation190_spill] sm:$0xff] }
 0x39b   :  { %v4536_v56 = vmul.f32 %v20236_v7, %v4291_v20  ;;  %v4162_v33 = vmul.f32 %v4109_v5, %v20153_v63  ;;  %v11083_v7 = vpack.c.bf16 %v5316_v16, %v4947_v36  ;;  %5413 = vrot.lane.b32.xlu0 %v16571_v39, %s11397_s24  ;;  %v1792_v47 = vadd.f32 %v1760_v40, %v16738_v21  ;;  %v20249_v16 = vld [vmem:[#allocation26_spill] sm:$0xff] }
 0x39c   :  { %11082 = vmatprep.subr.bf16.mxu1 %v11081_v59  ;;  %v2298_v15 = vmul.f32 %v2251_v60, %v20222_v4  ;;  %v20241_v20 = vrot.slane %v20017_v37, %v19517_v44  ;;  %v16850_v41 = vadd.f32 %v20242_v2, %v2329_v14  ;;  %10772 = vmatmul.mubr.msk.f32.vlgmr.msra.gmra.mrb[8].mxu1 %vm8122_vm8, %v16749_v11  ;;  %v16857_v21 = vpop.permute.xlu1 %5395  ;;  %v20247_v2 = vld [vmem:[#allocation68_spill] sm:$0xff] }
 0x39d   :  { %v1793_v5 = vadd.f32 %v1761_v54, %v16740_v45  ;;  %v2299_v1 = vmul.f32 %v2255_v25, %v20222_v4  ;;  %v4647_v23 = vrot.slane %v4536_v56, %v11495_v8  ;;  %11084 = vmatpush1.bf16.msra.mxu1 %v11083_v7  ;;  %8584 = vmatprep.mubr.f32.mxu1 %v20227_v12  ;;  %v16867_v40 = vpop.permute.xlu0 %5766  ;;  %v20244_v54 = vld [vmem:[#allocation54_spill] sm:$0xff]  ;;  %v20245_v25 = vld [vmem:[#allocation168_spill] sm:$0xff] }
 0x39e   :  { %v1060_v34 = vmul.f32 %v20241_v20, %v815_v58  ;;  %v645_v28 = vrot.slane %v521_v9, %v11495_v8  ;;  %v5931_v45 = vrot.slane %v20243_v38, %v19517_v44  ;;  %5411 = vrot.lane.b32.xlu1 %v16569_v26, %s11397_s24  ;;  %v4194_v56 = vadd.f32 %v4162_v33, %v3656_v52  ;;  %v20246_v20 = vld [vmem:[#allocation204_spill] sm:$0xff] }
 0x39f   :  { %v5811_v60 = vsel %vm1863_vm3, %v20244_v54, %v16811_v53  ;;  %v5566_v58 = vrot.slane %v20245_v25, %v19974_v48  ;;  %5782 = vrot.lane.b32.xlu0 %v16571_v39, %s11399_s25  ;;  %v5935_v57 = vrot.slane %v20243_v38, %v19974_v48  ;;  %v2330_v36 = vadd.f32 %v2298_v15, %v1792_v47  ;;  %v20248_v47 = vld [vmem:[#allocation144_spill] sm:$0xff] }
 0x3a0   :  { %v1183_v59 = vrot.slane %v1060_v34, %v11495_v8  ;;  %v5562_v9 = vrot.slane %v20245_v25, %v19517_v44  ;;  %v5443_v52 = vsel %vm1325_vm2, %v16767_v55, %v16857_v21  ;;  %10773 = vmatmul.mubr.msk.f32.gmra.mrb[10].mxu1 %vm8122_vm8, %v16793_v13  ;;  %v2331_v33 = vadd.f32 %v2299_v1, %v1793_v5  ;;  %v5765_v34 = vpop.permute.xlu1 %5764 }
 0x3a1   :  { %v4700_v7 = vmul.f32 %v4647_v23, %v19963_v29  ;;  %v2678_v54 = vsel %vm2652_vm4, %v20247_v2, %v20246_v20  ;;  %v5442_v15 = vsel %vm1325_vm2, %v20248_v47, %v16767_v55  ;;  %8732 = vmatprep.mubr.f32.mxu1 %v20227_v12  ;;  %v686_v14 = vmul.f32 %v645_v28, %v20249_v16  ;;  %v6371_v23 = vpop.permute.xlu0 %6370  ;;  %v20251_v2 = vld [vmem:[#allocation98_spill] sm:$0xff] }
 0x3a2   :  { %v1353_v0 = vsel %vm1325_vm2, %v20213_v46, %v20250_v43  ;;  %v6052_v5 = vmul.f32 %v5931_v45, %v5811_v60  ;;  %v5812_v1 = vsel %vm1863_vm3, %v16811_v53, %v5765_v34  ;;  %5780 = vrot.lane.b32.xlu1 %v16569_v26, %s11399_s25  ;;  %v5684_v35 = vmul.f32 %v5566_v58, %v5443_v52  ;;  %v20252_v45 = vld [vmem:[#allocation5_spill] sm:$0xff]  ;;  %v20256_v58 = vld [vmem:[#allocation191_spill] sm:$0xff] }
 0x3a3   :  { %v6053_v28 = vmul.f32 %v5935_v57, %v5812_v1  ;;  %6386 = vrot.lane.b32.xlu0 %v16569_v26, %s11401_s26  ;;  %v1224_v46 = vmul.f32 %v1183_v59, %v20140_v50  ;;  %v20253_v53 = vrot.slane %v20151_v18, %v20252_v45  ;;  %v16915_v30 = vadd.f32 %v20254_v10, %v2330_v36  ;;  %v20258_v1 = vld [vmem:[#allocation28_spill] sm:$0xff] }
 0x3a4   :  { %v5683_v13 = vmul.f32 %v5562_v9, %v5442_v15  ;;  %v4732_v12 = vadd.f32 %v4700_v7, %v4194_v56  ;;  %v20255_v55 = vrot.slane %v20018_v51, %v19517_v44  ;;  %v16923_v57 = vadd.f32 %v20256_v58, %v2331_v33  ;;  %v16925_v52 = vpop.permute.xlu1 %5399  ;;  %v20264_v58 = vld [vmem:[#allocation76_spill] sm:$0xff] }
 0x3a5   :  { %v2923_v60 = vmul.f32 %v20253_v53, %v2678_v54  ;;  %20257 = vst [vmem:[#allocation103_spill] sm:$0xff] %v16925_v52  ;;  %v11069_v59 = vpack.c.bf16 %v6053_v28, %v5684_v35  ;;  %v718_v11 = vadd.f32 %v686_v14, %v20258_v1  ;;  %v5939_v56 = vrot.slane %v20243_v38, %v19680_v62  ;;  %v16932_v36 = vpop.permute.xlu0 %6374  ;;  %v20262_v28 = vld [vmem:[#allocation175_spill] sm:$0xff]  ;;  %v20271_v1 = vld [vmem:[#allocation201_spill] sm:$0xff] }
 0x3a6   :  { %v16920_v47 = vmul.f32 %v20255_v55, %v1353_v0  ;;  %v11071_v10 = vpack.c.bf16 %v6052_v5, %v5683_v13  ;;  %5415 = vrot.lane.b32.xlu1 %v16729_v22, %s11397_s24  ;;  %v5813_v0 = vsel %vm1863_vm3, %v5765_v34, %v16867_v40  ;;  %v5574_v35 = vrot.slane %v20245_v25, %v19682_v6  ;;  %v20259_v34 = vld [vmem:[#allocation44_spill] sm:$0xff] }
 0x3a7   :  { %6390 = vrot.lane.b32.xlu0 %v16729_v22, %s11401_s26  ;;  %11070 = vmatprep.subr.bf16.mxu0 %v11069_v59  ;;  %v5943_v13 = vrot.slane %v20243_v38, %v19682_v6  ;;  %v16944_v14 = vadd.f32 %v1224_v46, %v718_v11  ;;  %v3037_v9 = vrot.slane %v2923_v60, %v11495_v8  ;;  %v20260_v38 = vld [vmem:[#allocation172_spill] sm:$0xff] }
 0x3a8   :  { %v5570_v33 = vrot.slane %v20245_v25, %v19680_v62  ;;  %v5445_v7 = vsel %vm1325_vm2, %v16835_v19, %v16925_v52  ;;  %11072 = vmatpush1.bf16.msra.mxu0 %v11071_v10  ;;  %v2679_v5 = vsel %vm2652_vm4, %v20246_v20, %v20259_v34  ;;  %v2680_v11 = vsel %vm2652_vm4, %v20259_v34, %v20260_v38  ;;  %v16963_v55 = vpop.permute.xlu1 %5768  ;;  %v20263_v46 = vld [vmem:[#allocation128_spill] sm:$0xff]  ;;  %v20295_v38 = vld [vmem:[#allocation146_spill] sm:$0xff] }
 0x3a9   :  { %v5444_v25 = vsel %vm1325_vm2, %v16857_v21, %v16835_v19  ;;  %20261 = vst [vmem:[#allocation114_spill] sm:$0xff] %v16963_v55  ;;  %v3216_v53 = vsel %vm3190_vm5, %v20263_v46, %v20262_v28  ;;  %v6054_v60 = vmul.f32 %v5939_v56, %v5813_v0  ;;  %v6540_v59 = vrot.slane %v20264_v58, %v19517_v44  ;;  %v16973_v10 = vpop.permute.xlu0 %6739  ;;  %v20265_v19 = vld [vmem:[#allocation40_spill] sm:$0xff]  ;;  %v20266_v0 = vld [vmem:[#allocation25_spill] sm:$0xff] }
 0x3aa   :  { %v5814_v20 = vsel %vm1863_vm3, %v16867_v40, %v16963_v55  ;;  %5784 = vrot.lane.b32.xlu1 %v16729_v22, %s11399_s25  ;;  %v6420_v21 = vsel %vm2652_vm4, %v20265_v19, %v6371_v23  ;;  %v5686_v34 = vmul.f32 %v5574_v35, %v5445_v7  ;;  %v6544_v56 = vrot.slane %v20264_v58, %v19974_v48  ;;  %v20270_v7 = vld [vmem:[#allocation73_spill] sm:$0xff] }
 0x3ab   :  { %v6055_v54 = vmul.f32 %v5943_v13, %v5814_v20  ;;  %6755 = vrot.lane.b32.xlu0 %v16569_v26, %s11404_s29  ;;  %v3087_v46 = vmul.f32 %v3037_v9, %v20266_v0  ;;  %v20267_v40 = vrot.slane %v20151_v18, %v19501_v24  ;;  %v20268_v52 = vrot.slane %v20151_v18, %v11527_v17 }
 0x3ac   :  { %v5685_v19 = vmul.f32 %v5570_v33, %v5444_v25  ;;  %v20269_v35 = vrot.slane %v20251_v2, %v20252_v45  ;;  %v3217_v20 = vsel %vm3190_vm5, %v20262_v28, %v20270_v7  ;;  %v3754_v9 = vsel %vm3728_vm6, %v20214_v27, %v20271_v1  ;;  %v6373_v51 = vpop.permute.xlu1 %6372 }
 0x3ad   :  { %v2924_v15 = vmul.f32 %v20267_v40, %v2679_v5  ;;  %v16990_v55 = vmul.f32 %v20268_v52, %v2680_v11  ;;  %v11085_v5 = vpack.c.bf16 %v6055_v54, %v5686_v34  ;;  %v6661_v50 = vmul.f32 %v6540_v59, %v6420_v21  ;;  %v17004_v11 = vpop.permute.xlu0 %7108  ;;  %v20274_v59 = vld [vmem:[#allocation143_spill] sm:$0xff] }
 0x3ae   :  { %v3461_v13 = vmul.f32 %v20269_v35, %v3216_v53  ;;  %v11087_v40 = vpack.c.bf16 %v6054_v60, %v5685_v19  ;;  %v6548_v52 = vrot.slane %v20264_v58, %v19680_v62  ;;  %v6421_v33 = vsel %vm2652_vm4, %v6371_v23, %v6373_v51  ;;  %6388 = vrot.lane.b32.xlu1 %v16571_v39, %s11401_s26  ;;  %v20279_v35 = vld [vmem:[#allocation141_spill] sm:$0xff] }
 0x3af   :  { %v17008_v25 = vmax.f32 %v4732_v12, 0.0  ;;  %v6422_v28 = vsel %vm2652_vm4, %v6373_v51, %v16932_v36  ;;  %v6662_v27 = vmul.f32 %v6544_v56, %v6421_v33  ;;  %7124 = vrot.lane.b32.xlu0 %v16569_v26, %s11405_s3  ;;  %11086 = vmatprep.subr.bf16.mxu1 %v11085_v5  ;;  %v6552_v54 = vrot.slane %v20264_v58, %v19682_v6  ;;  %v20276_v58 = vld [vmem:[#allocation97_spill] sm:$0xff] }
 0x3b0   :  { %v3119_v23 = vadd.f32 %v3087_v46, %v16850_v41  ;;  %v3041_v53 = vrot.slane %v2924_v15, %v11495_v8  ;;  %v20273_v60 = vrot.slane %v20251_v2, %v19501_v24  ;;  %v3755_v51 = vsel %vm3728_vm6, %v20271_v1, %v20274_v59  ;;  %11088 = vmatpush1.bf16.msra.mxu1 %v11087_v40  ;;  %v17031_v15 = vpop.permute.xlu1 %6376  ;;  %v20278_v46 = vld [vmem:[#allocation20_spill] sm:$0xff] }
 0x3b1   :  { %20272 = vst [vmem:[#allocation159_spill] sm:$0xff] %v17008_v25  ;;  %v3575_v21 = vrot.slane %v3461_v13, %v11495_v8  ;;  %v20275_v34 = vrot.slane %v20113_v61, %v20252_v45  ;;  %v4292_v41 = vsel %vm4266_vm7, %v20232_v49, %v20276_v58  ;;  %20277 = vst [vmem:[#allocation153_spill] sm:$0xff] %v17031_v15  ;;  %v20280_v1 = vld [vmem:[#allocation48_spill] sm:$0xff]  ;;  %v20281_v49 = vld [vmem:[#allocation174_spill] sm:$0xff] }
 0x3b2   :  { %v3462_v12 = vmul.f32 %v20273_v60, %v3217_v20  ;;  %v11073_v19 = vpack.c.bf16 %v6662_v27, %v20278_v46  ;;  %v4293_v20 = vsel %vm4266_vm7, %v20276_v58, %v20279_v35  ;;  %v11075_v5 = vpack.c.bf16 %v6661_v50, %v20280_v1  ;;  %6392 = vrot.lane.b32.xlu1 %v17008_v25, %s11401_s26  ;;  %v20285_v1 = vld [vmem:[#allocation122_spill] sm:$0xff] }
 0x3b3   :  { %v3999_v56 = vmul.f32 %v20275_v34, %v3754_v9  ;;  %v6663_v40 = vmul.f32 %v6548_v52, %v6422_v28  ;;  %v6423_v13 = vsel %vm2652_vm4, %v16932_v36, %v17031_v15  ;;  %v17041_v9 = vpop.permute.xlu0 %6743  ;;  %v3218_v33 = vsel %vm3190_vm5, %v20270_v7, %v20281_v49  ;;  %6759 = vrot.lane.b32.xlu0 %v16729_v22, %s11404_s29  ;;  %v20291_v15 = vld [vmem:[#allocation71_spill] sm:$0xff] }
 0x3b4   :  { %v20282_v27 = vrot.slane %v20113_v61, %v19501_v24  ;;  %v6664_v34 = vmul.f32 %v6552_v54, %v6423_v13  ;;  %11074 = vmatprep.subr.bf16.mxu0 %v11073_v19  ;;  %v3088_v36 = vmul.f32 %v3041_v53, %v20266_v0  ;;  %v3579_v52 = vrot.slane %v3462_v12, %v11495_v8  ;;  %v17065_v19 = vpop.permute.xlu1 %6741 }
 0x3b5   :  { %v20283_v28 = vrot.slane %v20122_v3, %v20252_v45  ;;  %11076 = vmatpush1.bf16.msra.mxu0 %v11075_v5  ;;  %v3625_v58 = vmul.f32 %v3575_v21, %v20228_v42  ;;  %v4113_v54 = vrot.slane %v3999_v56, %v11495_v8  ;;  %v20286_v53 = vrot.slane %v20251_v2, %v11527_v17  ;;  %v20288_v5 = vld [vmem:[#allocation67_spill] sm:$0xff] }
 0x3b6   :  { %v4000_v60 = vmul.f32 %v20282_v27, %v3755_v51  ;;  %v20284_v51 = vrot.slane %v20122_v3, %v19501_v24  ;;  %v11089_v13 = vpack.c.bf16 %v6664_v34, %v20285_v1  ;;  %v20287_v27 = vld [vmem:[#allocation133_spill] sm:$0xff]  ;;  %v7278_v21 = vrot.slane %v20288_v5, %v19517_v44  ;;  %v20289_v56 = vld [vmem:[#allocation75_spill] sm:$0xff]  ;;  %6757 = vrot.lane.b32.xlu1 %v16571_v39, %s11404_s29 }
 0x3b7   :  { %v4537_v7 = vmul.f32 %v20283_v28, %v4292_v41  ;;  %v17071_v12 = vmul.f32 %v20286_v53, %v3218_v33  ;;  %v11091_v41 = vpack.c.bf16 %v6663_v40, %v20287_v27  ;;  %v6913_v28 = vrot.slane %v20289_v56, %v19974_v48  ;;  %v7113_v50 = vpop.permute.xlu0 %7112  ;;  %v20290_v34 = vld [vmem:[#allocation205_spill] sm:$0xff]  ;;  %7128 = vrot.lane.b32.xlu0 %v16729_v22, %s11405_s3 }
 0x3b8   :  { %v4538_v46 = vmul.f32 %v20284_v51, %v4293_v20  ;;  %v4117_v20 = vrot.slane %v4000_v60, %v11495_v8  ;;  %v7158_v51 = vsel %vm3728_vm6, %v20290_v34, %v17004_v11  ;;  %11090 = vmatprep.subr.bf16.mxu1 %v11089_v13  ;;  %v7282_v40 = vrot.slane %v20288_v5, %v19974_v48  ;;  %v7111_v2 = vpop.permute.xlu1 %7110 }
 0x3b9   :  { %v3626_v33 = vmul.f32 %v3579_v52, %v20228_v42  ;;  %v4651_v1 = vrot.slane %v4537_v7, %v11495_v8  ;;  %v6909_v53 = vrot.slane %v20289_v56, %v19517_v44  ;;  %v6790_v60 = vsel %vm3190_vm5, %v16973_v10, %v17065_v19  ;;  %11092 = vmatpush1.bf16.msra.mxu1 %v11091_v41 }
 0x3ba   :  { %v3120_v27 = vadd.f32 %v3088_v36, %v16915_v30  ;;  %v4163_v34 = vmul.f32 %v4113_v54, %v20153_v63  ;;  %v4655_v13 = vrot.slane %v4538_v46, %v11495_v8  ;;  %v6789_v52 = vsel %vm3190_vm5, %v20291_v15, %v16973_v10  ;;  %7126 = vrot.lane.b32.xlu1 %v16571_v39, %s11405_s3  ;;  %v20292_v30 = vld [vmem:[#allocation131_spill] sm:$0xff]  ;;  %v20294_v46 = vld [vmem:[#allocation160_spill] sm:$0xff] }
 0x3bb   :  { %v3657_v7 = vadd.f32 %v3625_v58, %v3119_v23  ;;  %v3583_v49 = vrot.slane %v17071_v12, %v11495_v8  ;;  %v7399_v24 = vmul.f32 %v7278_v21, %v7158_v51  ;;  %v7159_v18 = vsel %vm3728_vm6, %v17004_v11, %v7111_v2  ;;  %v17105_v41 = vpop.permute.xlu0 %4839  ;;  %4855 = vrot.lane.b32.xlu0 %v17008_v25, %s11394_s2  ;;  %v20293_v54 = vld [vmem:[#allocation31_spill] sm:$0xff] }
 0x3bc   :  { %v3756_v36 = vsel %vm3728_vm6, %v20274_v59, %v20292_v30  ;;  %v4164_v10 = vmul.f32 %v4117_v20, %v20153_v63  ;;  %v7031_v15 = vmul.f32 %v6913_v28, %v6790_v60  ;;  %v7400_v23 = vmul.f32 %v7282_v40, %v7159_v18  ;;  %v17123_v28 = vpop.permute.xlu1 %6745 }
 0x3bd   :  { %v3658_v58 = vadd.f32 %v3626_v33, %v3120_v27  ;;  %v1891_v11 = vsel %vm1863_vm3, %v20294_v46, %v20293_v54  ;;  %v4701_v12 = vmul.f32 %v4651_v1, %v19963_v29  ;;  %v7030_v21 = vmul.f32 %v6909_v53, %v6789_v52  ;;  %20296 = vst [vmem:[#allocation32_spill] sm:$0xff] %v17123_v28 }
 0x3be   :  { %v4195_v51 = vadd.f32 %v4163_v34, %v3657_v7  ;;  %v4702_v43 = vmul.f32 %v4655_v13, %v19963_v29  ;;  %v4294_v59 = vsel %vm4266_vm7, %v20279_v35, %v20295_v38  ;;  %v11077_v18 = vpack.c.bf16 %v7400_v23, %v7031_v15  ;;  %6761 = vrot.lane.b32.xlu1 %v17008_v25, %s11404_s29  ;;  %v20300_v15 = vld [vmem:[#allocation89_spill] sm:$0xff] }
 0x3bf   :  { %v20297_v20 = vrot.slane %v20113_v61, %v11527_v17  ;;  %v11079_v33 = vpack.c.bf16 %v7399_v24, %v7030_v21  ;;  %v7286_v60 = vrot.slane %v20288_v5, %v19680_v62  ;;  %v6921_v1 = vrot.slane %v20289_v56, %v19682_v6  ;;  %v17132_v53 = vpop.permute.xlu0 %5032  ;;  %5048 = vrot.lane.b32.xlu0 %v17008_v25, %s11395_s23  ;;  %v20303_v21 = vld [vmem:[#allocation12_spill] sm:$0xff] }
 0x3c0   :  { %v4196_v35 = vadd.f32 %v4164_v10, %v3658_v58  ;;  %v7160_v27 = vsel %vm3728_vm6, %v7111_v2, %v7113_v50  ;;  %11078 = vmatprep.subr.bf16.mxu0 %v11077_v18  ;;  %v7290_v24 = vrot.slane %v20288_v5, %v19682_v6  ;;  %v4733_v34 = vadd.f32 %v4701_v12, %v4195_v51  ;;  %v20304_v51 = vld [vmem:[#allocation36_spill] sm:$0xff] }
 0x3c1   :  { %v4001_v40 = vmul.f32 %v20297_v20, %v3756_v36  ;;  %v20298_v13 = vrot.slane %v20122_v3, %v11527_v17  ;;  %v6917_v7 = vrot.slane %v20289_v56, %v19680_v62  ;;  %v6792_v36 = vsel %vm3190_vm5, %v17041_v9, %v17123_v28  ;;  %11080 = vmatpush1.bf16.msra.mxu0 %v11079_v33  ;;  %v17159_v56 = vpop.permute.xlu1 %7114 }
 0x3c2   :  { %v20299_v2 = vrot.slane %v16990_v55, %v11495_v8  ;;  %v20301_v5 = vrot.slane %v20300_v15, %v19517_v44  ;;  %v4734_v58 = vadd.f32 %v4702_v43, %v4196_v35  ;;  %v6791_v46 = vsel %vm3190_vm5, %v17065_v19, %v17041_v9  ;;  %20302 = vst [vmem:[#allocation87_spill] sm:$0xff] %v17159_v56  ;;  %v20306_v35 = vld [vmem:[#allocation13_spill] sm:$0xff] }
 0x3c3   :  { %v4539_v52 = vmul.f32 %v20298_v13, %v4294_v59  ;;  %v4121_v12 = vrot.slane %v4001_v40, %v11495_v8  ;;  %v278_v59 = vsel %vm249_vm1, %v20304_v51, %v20303_v21  ;;  %v7401_v18 = vmul.f32 %v7286_v60, %v7160_v27  ;;  %v17167_v20 = vpop.permute.xlu0 %7477  ;;  %7130 = vrot.lane.b32.xlu1 %v17008_v25, %s11405_s3  ;;  %v10702_v40 = vld [vmem:[%s18635_s1 + $0x81] ss:$8 sm:$0xf] }
 0x3c4   :  { %v3089_v10 = vmul.f32 %v20299_v2, %v20266_v0  ;;  %v2136_v23 = vmul.f32 %v20301_v5, %v1891_v11  ;;  %v7161_v55 = vsel %vm3728_vm6, %v7113_v50, %v17159_v56  ;;  %v20305_v43 = vrot.slane %v16920_v47, %v11495_v8  ;;  %v10703_v50 = vld [vmem:[%s18635_s1 + $0x81] ss:$8 sm:$0xf0]  ;;  %7493 = vrot.lane.b32.xlu0 %v16569_v26, %s11407_s30 }
 0x3c5   :  { %v3627_v19 = vmul.f32 %v3583_v49, %v20228_v42  ;;  %v7033_v11 = vmul.f32 %v6921_v1, %v6792_v36  ;;  %v7402_v33 = vmul.f32 %v7290_v24, %v7161_v55  ;;  %v17184_v60 = vmax.f32 %v4733_v34, 0.0  ;;  %v20307_v36 = vld [vmem:[#allocation150_spill] sm:$0xff]  ;;  %v17194_v5 = vpop.permute.xlu1 %4841 }
 0x3c6   :  { %v1762_v9 = vmul.f32 %v20305_v43, %v20217_v32  ;;  %v4659_v47 = vrot.slane %v4539_v52, %v11495_v8  ;;  %v279_v49 = vsel %vm249_vm1, %v20303_v21, %v20306_v35  ;;  %v7032_v1 = vmul.f32 %v6917_v7, %v6791_v46  ;;  %v20309_v7 = vld [vmem:[#allocation177_spill] sm:$0xff]  ;;  %v20311_v21 = vld [vmem:[#allocation15_spill] sm:$0xff]  ;;  %v20342_v26 = vld [vmem:[#allocation98_spill] sm:$0xff] }
 0x3c7   :  { %v2259_v27 = vrot.slane %v2136_v23, %v11495_v8  ;;  %v17191_v13 = vmax.f32 %v4734_v58, 0.0  ;;  %v522_v2 = vmul.f32 %v20307_v36, %v278_v59  ;;  %v11093_v24 = vpack.c.bf16 %v7402_v33, %v7033_v11  ;;  %v17200_v43 = vpop.permute.xlu0 %4843  ;;  %4857 = vrot.lane.b32.xlu1 %v17184_v60, %s11394_s2  ;;  %v20310_v58 = vld [vmem:[#allocation107_spill] sm:$0xff] }
 0x3c8   :  { %v3121_v51 = vadd.f32 %v3089_v10, %v16923_v57  ;;  %v4165_v34 = vmul.f32 %v4121_v12, %v20153_v63  ;;  %v11095_v55 = vpack.c.bf16 %v7401_v18, %v7032_v1  ;;  %v17198_v52 = vor.u32 %v10703_v50, %v10702_v40  ;;  %v20320_v40 = vld [vmem:[#allocation172_spill] sm:$0xff] }
 0x3c9   :  { %v523_v23 = vmul.f32 %v20309_v7, %v279_v49  ;;  %v816_v46 = vsel %vm787_vm0, %v20237_v31, %v20310_v58  ;;  %v817_v57 = vsel %vm787_vm0, %v20310_v58, %v20311_v21  ;;  %4859 = vrot.lane.b32.xlu0 %v17191_v13, %s11394_s2  ;;  %11094 = vmatprep.subr.bf16.mxu1 %v11093_v24  ;;  %v17223_v33 = vpop.permute.xlu1 %5034  ;;  %v20325_v7 = vld [vmem:[#allocation72_spill] sm:$0xff] }
 0x3ca   :  { %20308 = vst [vmem:[#allocation185_spill] sm:$0xff] %v17198_v52  ;;  %v1794_v10 = vadd.f32 %v1762_v9, %v16944_v14  ;;  %v3659_v12 = vadd.f32 %v3627_v19, %v3121_v51  ;;  %v4703_v59 = vmul.f32 %v4659_v47, %v19963_v29  ;;  %11096 = vmatpush1.bf16.msra.mxu1 %v11095_v55  ;;  %v20315_v55 = vld [vmem:[#allocation88_spill] sm:$0xff] }
 0x3cb   :  { %v2300_v11 = vmul.f32 %v2259_v27, %v20222_v4  ;;  %v649_v31 = vrot.slane %v522_v2, %v11495_v8  ;;  %v5213_v50 = vrot.slane %v17198_v52, %v20252_v45  ;;  %v20312_v9 = vrot.slane %v20017_v37, %v19974_v48  ;;  %v17234_v1 = vpop.permute.xlu0 %5036  ;;  %5050 = vrot.lane.b32.xlu1 %v17184_v60, %s11395_s23 }
 0x3cc   :  { %v4197_v14 = vadd.f32 %v4165_v34, %v3659_v12  ;;  %v20313_v47 = vrot.slane %v20017_v37, %v19680_v62  ;;  %v5078_v49 = vsel %vm787_vm0, %v17132_v53, %v17223_v33  ;;  %v653_v27 = vrot.slane %v523_v23, %v11495_v8  ;;  %v20314_v37 = vld [vmem:[#allocation10_spill] sm:$0xff]  ;;  %v20316_v12 = vld [vmem:[#allocation179_spill] sm:$0xff] }
 0x3cd   :  { %v1061_v19 = vmul.f32 %v20312_v9, %v816_v46  ;;  %v5209_v24 = vrot.slane %v17198_v52, %v11495_v8  ;;  %5052 = vrot.lane.b32.xlu0 %v17191_v13, %s11395_s23  ;;  %v7651_v51 = vrot.slane %v20314_v37, %v19974_v48  ;;  %v5077_v58 = vsel %vm787_vm0, %v20315_v55, %v17132_v53  ;;  %v20317_v55 = vld [vmem:[#allocation210_spill] sm:$0xff] }
 0x3ce   :  { %v1062_v35 = vmul.f32 %v20313_v47, %v817_v57  ;;  %v4735_v34 = vadd.f32 %v4703_v59, %v4197_v14  ;;  %v7647_v23 = vrot.slane %v20314_v37, %v19517_v44  ;;  %v4885_v46 = vsel %vm249_vm1, %v17105_v41, %v17194_v5  ;;  %v17259_v59 = vpop.permute.xlu1 %7479 }
 0x3cf   :  { %v2332_v21 = vadd.f32 %v2300_v11, %v1794_v10  ;;  %v687_v57 = vmul.f32 %v649_v31, %v20249_v16  ;;  %v7527_v9 = vsel %vm4266_vm7, %v20316_v12, %v17167_v20  ;;  %v5319_v47 = vmul.f32 %v5213_v50, %v5078_v49  ;;  %v17269_v11 = vpop.permute.xlu0 %7481  ;;  %7495 = vrot.lane.b32.xlu1 %v16571_v39, %s11407_s30  ;;  %v20318_v49 = vld [vmem:[#allocation22_spill] sm:$0xff] }
 0x3d0   :  { %v1187_v14 = vrot.slane %v1061_v19, %v11495_v8  ;;  %v1191_v53 = vrot.slane %v1062_v35, %v11495_v8  ;;  %v4884_v2 = vsel %vm249_vm1, %v20317_v55, %v17105_v41  ;;  %v7528_v10 = vsel %vm4266_vm7, %v17167_v20, %v17259_v59  ;;  %v10710_v41 = vld [vmem:[%s18635_s1 + $0x82] ss:$8 sm:$0xf] }
 0x3d1   :  { %v688_v31 = vmul.f32 %v653_v27, %v20249_v16  ;;  %v5318_v50 = vmul.f32 %v5209_v24, %v5077_v58  ;;  %v4950_v19 = vmul.f32 %v4885_v46, %v20318_v49  ;;  %7497 = vrot.lane.b32.xlu0 %v16729_v22, %s11407_s30  ;;  %v7769_v35 = vmul.f32 %v7651_v51, %v7528_v10  ;;  %v10711_v20 = vld [vmem:[%s18635_s1 + $0x82] ss:$8 sm:$0xf0] }
 0x3d2   :  { %v17283_v12 = vmax.f32 %v4735_v34, 0.0  ;;  %v20319_v55 = vld [vmem:[#allocation53_spill] sm:$0xff]  ;;  %v20321_v27 = vld [vmem:[#allocation58_spill] sm:$0xff]  ;;  %v7768_v46 = vmul.f32 %v7647_v23, %v7527_v9  ;;  %v20323_v51 = vld [vmem:[#allocation192_spill] sm:$0xff]  ;;  %v4949_v36 = vmul.f32 %v4884_v2, %v20325_v7  ;;  %v17298_v34 = vpop.permute.xlu1 %4845  ;;  %v20347_v28 = vrot.slane %v20300_v15, %v19974_v48 }
 0x3d3   :  { %v2681_v16 = vsel %vm2652_vm4, %v20320_v40, %v20319_v55  ;;  %v20322_v24 = vld [vmem:[#allocation69_spill] sm:$0xff]  ;;  %v17292_v10 = vadd.f32 %v20323_v51, %v2332_v21  ;;  %8607 = vmatprep.subr.mxu0 %v7769_v35  ;;  %20326 = vst [vmem:[#allocation93_spill] sm:$0xff] %v17298_v34  ;;  %v11097_v39 = vpack.c.bf16 %v5319_v47, %v4950_v19  ;;  %v20327_v21 = vld [vmem:[#allocation11_spill] sm:$0xff]  ;;  %v20330_v19 = vld [vmem:[#allocation86_spill] sm:$0xff] }
 0x3d4   :  { %v1354_v58 = vsel %vm1325_vm2, %v20322_v24, %v20321_v27  ;;  %v20324_v49 = vld [vmem:[#allocation17_spill] sm:$0xff]  ;;  %v1225_v9 = vmul.f32 %v1187_v14, %v20327_v21  ;;  %v1226_v24 = vmul.f32 %v1191_v53, %v20327_v21  ;;  %v17308_v51 = vor.u32 %v10711_v20, %v10710_v41  ;;  %4861 = vrot.lane.b32.xlu1 %v17283_v12, %s11394_s2  ;;  %v20328_v7 = vld [vmem:[#allocation95_spill] sm:$0xff]  ;;  %v20332_v14 = vld [vmem:[#allocation28_spill] sm:$0xff] }
 0x3d5   :  { %v1355_v18 = vsel %vm1325_vm2, %v20321_v27, %v20324_v49  ;;  %v10718_v40 = vld [vmem:[%s18635_s1 + $0x83] ss:$8 sm:$0xf]  ;;  %v17310_v27 = vpop.permute.xlu0 %5401  ;;  %8608 = vmatpush1.msra.mxu0 %v7768_v46  ;;  %v20329_v2 = vrot.slane %v20328_v7, %v19517_v44  ;;  %v20331_v35 = vrot.slane %v20330_v19, %v19974_v48  ;;  %v11099_v22 = vpack.c.bf16 %v5318_v50, %v4949_v36 }
 0x3d6   :  { %v10719_v23 = vld [vmem:[%s18635_s1 + $0x83] ss:$8 sm:$0xf0]  ;;  %5417 = vrot.lane.b32.xlu0 %v17008_v25, %s11397_s24  ;;  %11098 = vmatprep.subr.bf16.mxu0 %v11097_v39  ;;  %v719_v53 = vadd.f32 %v687_v57, %v20332_v14  ;;  %v720_v41 = vadd.f32 %v688_v31, %v20332_v14  ;;  %v20333_v20 = vrot.slane %v20330_v19, %v19680_v62  ;;  %v17339_v31 = vpop.permute.xlu1 %5038  ;;  %v20337_v50 = vmov 0.0  }
 0x3d7   :  { %v2926_v47 = vmul.f32 %v20329_v2, %v2681_v16  ;;  %v1599_v49 = vmul.f32 %v20331_v35, %v1354_v58  ;;  %v20334_v21 = vld [vmem:[#allocation84_spill] sm:$0xff]  ;;  %v17331_v16 = vor.u32 %v10719_v23, %v10718_v40  ;;  %v20335_v58 = vld [vmem:[#allocation6_spill] sm:$0xff]  ;;  %v7655_v39 = vrot.slane %v20314_v37, %v19680_v62  ;;  %20336 = vst [vmem:[#allocation82_spill] sm:$0xff] %v17339_v31  ;;  %v20341_v35 = vld [vmem:[#allocation157_spill] sm:$0xff] }
 0x3d8   :  { %v17327_v46 = vmul.f32 %v20333_v20, %v1355_v18  ;;  %10774 = vmatmul.mubr.msk.f32.vlgmr.msra.gmra.mrb[12].mxu0 %vm8122_vm8, %v20334_v21  ;;  %v5217_v36 = vrot.slane %v17198_v52, %v20335_v58  ;;  %v5221_v57 = vrot.slane %v17198_v52, %v11527_v17  ;;  %v17342_v18 = vadd.f32 %v1225_v9, %v719_v53  ;;  %v20338_v40 = vld [vmem:[#allocation148_spill] sm:$0xff]  ;;  %v20339_v23 = vld [vmem:[#allocation174_spill] sm:$0xff] }
 0x3d9   :  { %11100 = vmatpush1.bf16.msra.mxu0 %v11099_v22  ;;  %8661 = vmatprep.mubr.f32.mxu0 %v20337_v50  ;;  %v17344_v2 = vadd.f32 %v1226_v24, %v720_v41  ;;  %v3219_v19 = vsel %vm3190_vm5, %v20339_v23, %v20338_v40  ;;  %v17351_v14 = vpop.permute.xlu0 %5770  ;;  %v3049_v22 = vrot.slane %v2926_v47, %v11495_v8  ;;  %v20340_v41 = vld [vmem:[#allocation46_spill] sm:$0xff]  ;;  %v20346_v52 = vld [vmem:[#allocation152_spill] sm:$0xff] }
 0x3da   :  { %5054 = vrot.lane.b32.xlu1 %v17283_v12, %s11395_s23  ;;  %v1725_v20 = vrot.slane %v1599_v49, %v11495_v8  ;;  %v5080_v9 = vsel %vm787_vm0, %v17234_v1, %v17339_v31  ;;  %5786 = vrot.lane.b32.xlu0 %v17008_v25, %s11399_s25  ;;  %v7659_v24 = vrot.slane %v20314_v37, %v19682_v6  ;;  %v20344_v31 = vld [vmem:[#allocation19_spill] sm:$0xff] }
 0x3db   :  { %v1729_v53 = vrot.slane %v17327_v46, %v11495_v8  ;;  %v1892_v23 = vsel %vm1863_vm3, %v20293_v54, %v20340_v41  ;;  %v5079_v47 = vsel %vm787_vm0, %v17223_v33, %v17234_v1  ;;  %v5947_v49 = vrot.slane %v17331_v16, %v11495_v8  ;;  %v17388_v1 = vpop.permute.xlu1 %7483 }
 0x3dc   :  { %10775 = vmatmul.mubr.msk.f32.gmra.mrb[14].mxu0 %vm8122_vm8, %v20341_v35  ;;  %v20343_v37 = vrot.slane %v20342_v26, %v19517_v44  ;;  %v1893_v46 = vsel %vm1863_vm3, %v20340_v41, %v20344_v31  ;;  %v7529_v54 = vsel %vm4266_vm7, %v17259_v59, %v17269_v11  ;;  %v4887_v33 = vsel %vm249_vm1, %v17200_v43, %v17298_v34 }
 0x3dd   :  { %20345 = vst [vmem:[#allocation182_spill] sm:$0xff] %v17388_v1  ;;  %8809 = vmatprep.mubr.f32.mxu0 %v20337_v50  ;;  %v4886_v31 = vsel %vm249_vm1, %v17194_v5, %v17200_v43  ;;  %v5321_v41 = vmul.f32 %v5221_v57, %v5080_v9  ;;  %v7530_v59 = vsel %vm4266_vm7, %v17269_v11, %v17388_v1  ;;  %v20349_v57 = vld [vmem:[#allocation63_spill] sm:$0xff]  ;;  %v20350_v1 = vld [vmem:[#allocation18_spill] sm:$0xff] }
 0x3de   :  { %v3464_v6 = vmul.f32 %v20343_v37, %v3219_v19  ;;  %v3757_v19 = vsel %vm3728_vm6, %v20292_v30, %v20346_v52  ;;  %v17400_v37 = vpop.permute.xlu0 %5405  ;;  %7499 = vrot.lane.b32.xlu1 %v17008_v25, %s11407_s30  ;;  %v3090_v34 = vmul.f32 %v3049_v22, %v20266_v0  ;;  %v2137_v30 = vmul.f32 %v20347_v28, %v1892_v23 }
 0x3df   :  { %v5320_v56 = vmul.f32 %v5217_v36, %v5079_v47  ;;  %5421 = vrot.lane.b32.xlu0 %v17191_v13, %s11397_s24  ;;  %v7771_v5 = vmul.f32 %v7659_v24, %v7530_v59  ;;  %v20348_v43 = vrot.slane %v20300_v15, %v19680_v62  ;;  %v4295_v9 = vsel %vm4266_vm7, %v20295_v38, %v20349_v57  ;;  %v20352_v24 = vld [vmem:[#allocation113_spill] sm:$0xff]  ;;  %v17423_v15 = vpop.permute.xlu1 %5403 }
 0x3e0   :  { %v7770_v25 = vmul.f32 %v7655_v39, %v7529_v54  ;;  %v4952_v22 = vmul.f32 %v4887_v33, %v20350_v1  ;;  %v1763_v0 = vmul.f32 %v1725_v20, %v20217_v32  ;;  %v3587_v28 = vrot.slane %v3464_v6, %v11495_v8  ;;  %v20354_v1 = vld [vmem:[#allocation114_spill] sm:$0xff] }
 0x3e1   :  { %v2138_v11 = vmul.f32 %v20348_v43, %v1893_v46  ;;  %v20351_v36 = vrot.slane %v20113_v61, %v19517_v44  ;;  %v4951_v47 = vmul.f32 %v4886_v31, %v20352_v24  ;;  %8684 = vmatprep.subr.mxu1 %v7771_v5  ;;  %v5582_v46 = vrot.slane %v17308_v51, %v20252_v45  ;;  %v20355_v43 = vld [vmem:[#allocation103_spill] sm:$0xff] }
 0x3e2   :  { %v17427_v38 = vpop.permute.xlu0 %5774  ;;  %5419 = vrot.lane.b32.xlu1 %v17184_v60, %s11397_s24  ;;  %8685 = vmatpush1.msra.mxu1 %v7770_v25  ;;  %v11113_v39 = vpack.c.bf16 %v5321_v41, %v4952_v22  ;;  %v5951_v6 = vrot.slane %v17331_v16, %v20252_v45  ;;  %v20353_v20 = vrot.slane %v20122_v3, %v19517_v44 }
 0x3e3   :  { %v4002_v23 = vmul.f32 %v20351_v36, %v3757_v19  ;;  %v11115_v33 = vpack.c.bf16 %v5320_v56, %v4951_v47  ;;  %v5815_v19 = vsel %vm1863_vm3, %v20354_v1, %v17351_v14  ;;  %5790 = vrot.lane.b32.xlu0 %v17191_v13, %s11399_s25  ;;  %10776 = vmatmul.mubr.msk.f32.vlgmr.msra.gmra.mrb[12].mxu1 %vm8122_vm8, %v20334_v21 }
 0x3e4   :  { %v4540_v54 = vmul.f32 %v20353_v20, %v4295_v9  ;;  %v2263_v25 = vrot.slane %v2137_v30, %v11495_v8  ;;  %v2267_v31 = vrot.slane %v2138_v11, %v11495_v8  ;;  %v5447_v41 = vsel %vm1325_vm2, %v17310_v27, %v17423_v15  ;;  %11114 = vmatprep.subr.bf16.mxu1 %v11113_v39  ;;  %v5773_v30 = vpop.permute.xlu1 %5772  ;;  %v10734_v11 = vld [vmem:[%s18635_s1 + $0x85] ss:$8 sm:$0xf] }
 0x3e5   :  { %8738 = vmatprep.mubr.f32.mxu1 %v20337_v50  ;;  %v3122_v56 = vadd.f32 %v3090_v34, %v17292_v10  ;;  %v1764_v59 = vmul.f32 %v1729_v53, %v20217_v32  ;;  %v4125_v5 = vrot.slane %v4002_v23, %v11495_v8  ;;  %v5446_v21 = vsel %vm1325_vm2, %v20355_v43, %v17310_v27  ;;  %v10735_v9 = vld [vmem:[%s18635_s1 + $0x85] ss:$8 sm:$0xf0] }
 0x3e6   :  { %11116 = vmatpush1.bf16.msra.mxu1 %v11115_v33  ;;  %v3628_v10 = vmul.f32 %v3587_v28, %v20228_v42  ;;  %v6056_v34 = vmul.f32 %v5947_v49, %v5815_v19  ;;  %v5586_v32 = vrot.slane %v17308_v51, %v20335_v58  ;;  %v5816_v53 = vsel %vm1863_vm3, %v17351_v14, %v5773_v30  ;;  %v17466_v27 = vpop.permute.xlu0 %6378 }
 0x3e7   :  { %5788 = vrot.lane.b32.xlu1 %v17184_v60, %s11399_s25  ;;  %v4663_v22 = vrot.slane %v4540_v54, %v11495_v8  ;;  %v5688_v36 = vmul.f32 %v5582_v46, %v5447_v41  ;;  %v6057_v23 = vmul.f32 %v5951_v6, %v5816_v53  ;;  %6394 = vrot.lane.b32.xlu0 %v17184_v60, %s11401_s26  ;;  %v10751_v53 = vld [vmem:[%s18635_s1 + $0x87] ss:$8 sm:$0xf0] }
 0x3e8   :  { %10777 = vmatmul.mubr.msk.f32.gmra.mrb[14].mxu1 %vm8122_vm8, %v20341_v35  ;;  %v2301_v49 = vmul.f32 %v2263_v25, %v20222_v4  ;;  %v2302_v28 = vmul.f32 %v2267_v31, %v20222_v4  ;;  %v20356_v14 = vrot.slane %v17308_v51, %v11495_v8  ;;  %v17480_v47 = vor.u32 %v10735_v9, %v10734_v11  ;;  %v17486_v20 = vpop.permute.xlu1 %5407 }
 0x3e9   :  { %8886 = vmatprep.mubr.f32.mxu1 %v20337_v50  ;;  %v1795_v46 = vadd.f32 %v1763_v0, %v17342_v18  ;;  %v1796_v39 = vadd.f32 %v1764_v59, %v17344_v2  ;;  %v4166_v6 = vmul.f32 %v4125_v5, %v20153_v63  ;;  %v11101_v35 = vpack.c.bf16 %v6057_v23, %v5688_v36  ;;  %v10742_v0 = vld [vmem:[%s18635_s1 + $0x86] ss:$8 sm:$0xf] }
 0x3ea   :  { %v5687_v24 = vmul.f32 %v20356_v14, %v5446_v21  ;;  %v3660_v54 = vadd.f32 %v3628_v10, %v3122_v56  ;;  %v5955_v4 = vrot.slane %v17331_v16, %v20335_v58  ;;  %v5590_v1 = vrot.slane %v17308_v51, %v11527_v17  ;;  %v17492_v19 = vpop.permute.xlu0 %6382  ;;  %v10743_v18 = vld [vmem:[%s18635_s1 + $0x86] ss:$8 sm:$0xf0] }
 0x3eb   :  { %5423 = vrot.lane.b32.xlu1 %v17283_v12, %s11397_s24  ;;  %v4704_v2 = vmul.f32 %v4663_v22, %v19963_v29  ;;  %v5817_v25 = vsel %vm1863_vm3, %v5773_v30, %v17427_v38  ;;  %6398 = vrot.lane.b32.xlu0 %v17283_v12, %s11401_s26  ;;  %v5959_v31 = vrot.slane %v17331_v16, %v11527_v17  ;;  %v20357_v21 = vld [vmem:[#allocation96_spill] sm:$0xff] }
 0x3ec   :  { %v11103_v33 = vpack.c.bf16 %v6056_v34, %v5687_v24  ;;  %11102 = vmatprep.subr.bf16.mxu0 %v11101_v35  ;;  %v17509_v41 = vadd.f32 %v2301_v49, %v1795_v46  ;;  %v17511_v56 = vadd.f32 %v2302_v28, %v1796_v39  ;;  %v6556_v59 = vrot.slane %v17480_v47, %v11495_v8  ;;  %v17524_v9 = vpop.permute.xlu1 %5776  ;;  %v10750_v34 = vld [vmem:[%s18635_s1 + $0x87] ss:$8 sm:$0xf] }
 0x3ed   :  { %v5449_v5 = vsel %vm1325_vm2, %v17400_v37, %v17486_v20  ;;  %v4198_v43 = vadd.f32 %v4166_v6, %v3660_v54  ;;  %v2682_v30 = vsel %vm2652_vm4, %v20319_v55, %v20357_v21  ;;  %v5448_v11 = vsel %vm1325_vm2, %v17423_v15, %v17400_v37  ;;  %v20358_v49 = vld [vmem:[#allocation153_spill] sm:$0xff] }
 0x3ee   :  { %11104 = vmatpush1.bf16.msra.mxu0 %v11103_v33  ;;  %v17526_v10 = vor.u32 %v10743_v18, %v10742_v0  ;;  %v6058_v22 = vmul.f32 %v5955_v4, %v5817_v25  ;;  %v5818_v55 = vsel %vm1863_vm3, %v17427_v38, %v17524_v9  ;;  %v17537_v36 = vpop.permute.xlu0 %6747  ;;  %v6560_v37 = vrot.slane %v17480_v47, %v20252_v45  ;;  %v20359_v38 = vld [vmem:[#allocation35_spill] sm:$0xff] }
 0x3ef   :  { %5792 = vrot.lane.b32.xlu1 %v17283_v12, %s11399_s25  ;;  %v6564_v15 = vrot.slane %v17480_v47, %v20335_v58  ;;  %v4736_v23 = vadd.f32 %v4704_v2, %v4198_v43  ;;  %v6424_v28 = vsel %vm2652_vm4, %v20358_v49, %v17466_v27  ;;  %v5690_v14 = vmul.f32 %v5590_v1, %v5449_v5  ;;  %v20361_v33 = vld [vmem:[#allocation47_spill] sm:$0xff] }
 0x3f0   :  { %v6059_v24 = vmul.f32 %v5959_v31, %v5818_v55  ;;  %6763 = vrot.lane.b32.xlu0 %v17184_v60, %s11404_s29  ;;  %v2683_v46 = vsel %vm2652_vm4, %v20357_v21, %v20359_v38  ;;  %v20360_v39 = vrot.slane %v20328_v7, %v19974_v48  ;;  %v5689_v35 = vmul.f32 %v5586_v32, %v5448_v11  ;;  %v20362_v1 = vld [vmem:[#allocation43_spill] sm:$0xff]  ;;  %v6381_v18 = vpop.permute.xlu1 %6380  ;;  %v20363_v31 = vld [vmem:[#allocation166_spill] sm:$0xff] }
 0x3f1   :  { %v17556_v54 = vor.u32 %v10751_v53, %v10750_v34  ;;  %v3220_v4 = vsel %vm3190_vm5, %v20338_v40, %v20361_v33  ;;  %v3221_v0 = vsel %vm3190_vm5, %v20361_v33, %v20362_v1  ;;  %v6568_v25 = vrot.slane %v17480_v47, %v11527_v17  ;;  %v20366_v55 = vld [vmem:[#allocation51_spill] sm:$0xff] }
 0x3f2   :  { %v2927_v6 = vmul.f32 %v20360_v39, %v2682_v30  ;;  %v11117_v2 = vpack.c.bf16 %v6059_v24, %v5690_v14  ;;  %v3758_v5 = vsel %vm3728_vm6, %v20346_v52, %v20363_v31  ;;  %v11119_v32 = vpack.c.bf16 %v6058_v22, %v5689_v35  ;;  %v17571_v30 = vpop.permute.xlu0 %7116  ;;  %v20369_v14 = vld [vmem:[#allocation90_spill] sm:$0xff]  ;;  %v20372_v33 = vld [vmem:[#allocation135_spill] sm:$0xff] }
 0x3f3   :  { %v6665_v43 = vmul.f32 %v6556_v59, %v6424_v28  ;;  %v6425_v21 = vsel %vm2652_vm4, %v17466_v27, %v6381_v18  ;;  %6396 = vrot.lane.b32.xlu1 %v17191_v13, %s11401_s26  ;;  %v20364_v40 = vrot.slane %v20328_v7, %v19680_v62  ;;  %v6426_v34 = vsel %vm2652_vm4, %v6381_v18, %v17492_v19 }
 0x3f4   :  { %v6666_v53 = vmul.f32 %v6560_v37, %v6425_v21  ;;  %7132 = vrot.lane.b32.xlu0 %v17184_v60, %s11405_s3  ;;  %11118 = vmatprep.subr.bf16.mxu1 %v11117_v2  ;;  %v17582_v52 = vmax.f32 %v4736_v23, 0.0  ;;  %v3053_v27 = vrot.slane %v2927_v6, %v11495_v8  ;;  %v20365_v59 = vrot.slane %v20342_v26, %v19974_v48  ;;  %v17600_v38 = vpop.permute.xlu1 %6384  ;;  %v20371_v6 = vld [vmem:[#allocation57_spill] sm:$0xff] }
 0x3f5   :  { %v2928_v11 = vmul.f32 %v20364_v40, %v2683_v46  ;;  %v3759_v7 = vsel %vm3728_vm6, %v20363_v31, %v20366_v55  ;;  %11120 = vmatpush1.bf16.msra.mxu1 %v11119_v32  ;;  %v20367_v37 = vrot.slane %v20342_v26, %v19680_v62  ;;  %v20368_v28 = vrot.slane %v20113_v61, %v19974_v48  ;;  %v20370_v46 = vld [vmem:[#allocation7_spill] sm:$0xff] }
 0x3f6   :  { %v3465_v22 = vmul.f32 %v20365_v59, %v3220_v4  ;;  %v4296_v24 = vsel %vm4266_vm7, %v20349_v57, %v20369_v14  ;;  %v11105_v39 = vpack.c.bf16 %v6666_v53, %v20370_v46  ;;  %v4297_v35 = vsel %vm4266_vm7, %v20369_v14, %v20371_v6  ;;  %v20378_v59 = vld [vmem:[#allocation25_spill] sm:$0xff] }
 0x3f7   :  { %v3466_v49 = vmul.f32 %v20367_v37, %v3221_v0  ;;  %v4003_v23 = vmul.f32 %v20368_v28, %v3758_v5  ;;  %v11107_v4 = vpack.c.bf16 %v6665_v43, %v20372_v33  ;;  %v6667_v26 = vmul.f32 %v6564_v15, %v6426_v34  ;;  %v17610_v0 = vpop.permute.xlu0 %6751  ;;  %6400 = vrot.lane.b32.xlu1 %v17582_v52, %s11401_s26  ;;  %v20374_v15 = vld [vmem:[#allocation194_spill] sm:$0xff]  ;;  %v20377_v34 = vld [vmem:[#allocation139_spill] sm:$0xff] }
 0x3f8   :  { %v6427_v1 = vsel %vm2652_vm4, %v17492_v19, %v17600_v38  ;;  %v3057_v57 = vrot.slane %v2928_v11, %v11495_v8  ;;  %v20373_v18 = vrot.slane %v20113_v61, %v19680_v62  ;;  %6767 = vrot.lane.b32.xlu0 %v17283_v12, %s11404_s29  ;;  %11106 = vmatprep.subr.bf16.mxu0 %v11105_v39 }
 0x3f9   :  { %v6668_v31 = vmul.f32 %v6568_v25, %v6427_v1  ;;  %v2585_v5 = vadd.f32 %v20374_v15, %v17509_v41  ;;  %v3591_v19 = vrot.slane %v3465_v22, %v11495_v8  ;;  %v20375_v32 = vrot.slane %v20122_v3, %v19974_v48  ;;  %11108 = vmatpush1.bf16.msra.mxu0 %v11107_v4  ;;  %v6750_v41 = vpop.permute.xlu1 %6749  ;;  %v20382_v1 = vld [vmem:[#allocation32_spill] sm:$0xff] }
 0x3fa   :  { %v4004_v2 = vmul.f32 %v20373_v18, %v3759_v7  ;;  %v7294_v21 = vrot.slane %v17556_v54, %v11495_v8  ;;  %v3595_v61 = vrot.slane %v3466_v49, %v11495_v8  ;;  %v20376_v25 = vrot.slane %v20122_v3, %v19680_v62  ;;  %v20379_v7 = vld [vmem:[#allocation50_spill] sm:$0xff] }
 0x3fb   :  { %v4541_v43 = vmul.f32 %v20375_v32, %v4296_v24  ;;  %v6929_v11 = vrot.slane %v17526_v10, %v20252_v45  ;;  %v11121_v53 = vpack.c.bf16 %v6668_v31, %v20377_v34  ;;  %v3091_v22 = vmul.f32 %v3053_v27, %v20378_v59  ;;  %v7121_v28 = vpop.permute.xlu0 %7120  ;;  %6765 = vrot.lane.b32.xlu1 %v17191_v13, %s11404_s29  ;;  %v20380_v24 = vld [vmem:[#allocation87_spill] sm:$0xff] }
 0x3fc   :  { %v4542_v40 = vmul.f32 %v20376_v25, %v4297_v35  ;;  %v4129_v55 = vrot.slane %v4003_v23, %v11495_v8  ;;  %v11123_v37 = vpack.c.bf16 %v6667_v26, %v20379_v7  ;;  %v7298_v3 = vrot.slane %v17556_v54, %v20252_v45  ;;  %7136 = vrot.lane.b32.xlu0 %v17283_v12, %s11405_s3  ;;  %v20381_v35 = vld [vmem:[#allocation195_spill] sm:$0xff] }
 0x3fd   :  { %v3092_v49 = vmul.f32 %v3057_v57, %v20378_v59  ;;  %v4133_v14 = vrot.slane %v4004_v2, %v11495_v8  ;;  %v7162_v46 = vsel %vm3728_vm6, %v20380_v24, %v17571_v30  ;;  %11122 = vmatprep.subr.bf16.mxu1 %v11121_v53  ;;  %v3629_v27 = vmul.f32 %v3591_v19, %v20228_v42  ;;  %v7119_v18 = vpop.permute.xlu1 %7118 }
 0x3fe   :  { %v4667_v23 = vrot.slane %v4541_v43, %v11495_v8  ;;  %v6925_v39 = vrot.slane %v17526_v10, %v11495_v8  ;;  %v6794_v6 = vsel %vm3190_vm5, %v17537_v36, %v6750_v41  ;;  %11124 = vmatpush1.bf16.msra.mxu1 %v11123_v37  ;;  %v2586_v33 = vadd.f32 %v20381_v35, %v17511_v56 }
 0x3ff   :  { %v3630_v4 = vmul.f32 %v3595_v61, %v20228_v42  ;;  %v4671_v26 = vrot.slane %v4542_v40, %v11495_v8  ;;  %v6793_v57 = vsel %vm3190_vm5, %v20382_v1, %v17537_v36  ;;  %v3123_v2 = vadd.f32 %v3091_v22, %v2585_v5  ;;  %v17665_v32 = vpop.permute.xlu0 %4847  ;;  %7134 = vrot.lane.b32.xlu1 %v17191_v13, %s11405_s3 }
 0x400   :  { %v4167_v31 = vmul.f32 %v4129_v55, %v20153_v63  ;;  %v7403_v15 = vmul.f32 %v7294_v21, %v7162_v46  ;;  %v7163_v19 = vsel %vm3728_vm6, %v17571_v30, %v7119_v18  ;;  %v3124_v42 = vadd.f32 %v3092_v49, %v2586_v33  ;;  %4863 = vrot.lane.b32.xlu0 %v17582_v52, %s11394_s2 }
 0x401   :  { %v4168_v56 = vmul.f32 %v4133_v14, %v20153_v63  ;;  %v7035_v43 = vmul.f32 %v6929_v11, %v6794_v6  ;;  %v7404_v61 = vmul.f32 %v7298_v3, %v7163_v19  ;;  %v3661_v36 = vadd.f32 %v3629_v27, %v3123_v2  ;;  %v17674_v40 = vpop.permute.xlu1 %6753 }
 0x402   :  { %v4705_v5 = vmul.f32 %v4667_v23, %v19963_v29  ;;  %v7034_v21 = vmul.f32 %v6925_v39, %v6793_v57  ;;  %v3662_v25 = vadd.f32 %v3630_v4, %v3124_v42  ;;  %v4706_v30 = vmul.f32 %v4671_v26, %v19963_v29 }
 0x403   :  { %v11109_v34 = vpack.c.bf16 %v7404_v61, %v7035_v43  ;;  %v4199_v53 = vadd.f32 %v4167_v31, %v3661_v36  ;;  %v7302_v63 = vrot.slane %v17556_v54, %v20335_v58  ;;  %v6937_v11 = vrot.slane %v17526_v10, %v11527_v17  ;;  %v5041_v22 = vpop.permute.xlu0 %5040  ;;  %6769 = vrot.lane.b32.xlu1 %v17582_v52, %s11404_s29  ;;  %v20384_v36 = vld [vmem:[#allocation82_spill] sm:$0xff] }
 0x404   :  { %v11111_v59 = vpack.c.bf16 %v7403_v15, %v7034_v21  ;;  %v4200_v55 = vadd.f32 %v4168_v56, %v3662_v25  ;;  %v7164_v7 = vsel %vm3728_vm6, %v7119_v18, %v7121_v28  ;;  %5056 = vrot.lane.b32.xlu0 %v17582_v52, %s11395_s23  ;;  %v7306_v29 = vrot.slane %v17556_v54, %v11527_v17  ;;  %v20383_v15 = vld [vmem:[#allocation185_spill] sm:$0xff]  ;;  %v20385_v25 = vld [vmem:[#allocation182_spill] sm:$0xff] }
 0x405   :  { %11110 = vmatprep.subr.bf16.mxu0 %v11109_v34  ;;  %v4737_v37 = vadd.f32 %v4705_v5, %v4199_v53  ;;  %v6933_v3 = vrot.slane %v17526_v10, %v20335_v58  ;;  %v6796_v49 = vsel %vm3190_vm5, %v17610_v0, %v17674_v40  ;;  %v6795_v24 = vsel %vm3190_vm5, %v6750_v41, %v17610_v0  ;;  %v17694_v46 = vpop.permute.xlu1 %7122  ;;  %v10758_v0 = vld [vmem:[%s18635_s1 + $0x180] ss:$8 sm:$0xf] }
 0x406   :  { %11112 = vmatpush1.bf16.msra.mxu0 %v11111_v59  ;;  %v4738_v14 = vadd.f32 %v4706_v30, %v4200_v55  ;;  %v7405_v27 = vmul.f32 %v7302_v63, %v7164_v7  ;;  %v7165_v23 = vsel %vm3728_vm6, %v7121_v28, %v17694_v46  ;;  %v7037_v6 = vmul.f32 %v6937_v11, %v6796_v49  ;;  %v10759_v28 = vld [vmem:[%s18635_s1 + $0x180] ss:$8 sm:$0xf0] }
 0x407   :  { %v7486_v39 = vpop.permute.xlu0 %7485  ;;  %7138 = vrot.lane.b32.xlu1 %v17582_v52, %s11405_s3  ;;  %v7406_v35 = vmul.f32 %v7306_v29, %v7165_v23  ;;  %v17702_v33 = vmax.f32 %v4737_v37, 0.0  ;;  %v7036_v4 = vmul.f32 %v6933_v3, %v6795_v24  ;;  %v17718_v2 = vor.u32 %v10759_v28, %v10758_v0  ;;  %v20386_v59 = vld [vmem:[#allocation93_spill] sm:$0xff]  ;;  %v20387_v3 = vld [vmem:[#allocation127_spill] sm:$0xff] }
 0x408   :  { %7501 = vrot.lane.b32.xlu0 %v17184_v60, %s11407_s30  ;;  %v17707_v41 = vmax.f32 %v4738_v14, 0.0  ;;  %v5229_v19 = vrot.slane %v20383_v15, %v19974_v48  ;;  %v5225_v56 = vrot.slane %v20383_v15, %v19517_v44  ;;  %v5081_v5 = vsel %vm787_vm0, %v20384_v36, %v5041_v22  ;;  %v20388_v14 = vld [vmem:[#allocation170_spill] sm:$0xff] }
 0x409   :  { %v17712_v26 = vpop.permute.xlu1 %4849  ;;  %v11125_v1 = vpack.c.bf16 %v7406_v35, %v7037_v6  ;;  %v11127_v57 = vpack.c.bf16 %v7405_v27, %v7036_v4  ;;  %v7667_v61 = vrot.slane %v17718_v2, %v20252_v45  ;;  %v7663_v21 = vrot.slane %v17718_v2, %v11495_v8  ;;  %v17759_v6 = vld [vmem:[%s18636_s4] sm:$0xff] }
 0x40a   :  { %v7531_v30 = vsel %vm4266_vm7, %v20385_v25, %v7486_v39  ;;  %v4889_v34 = vsel %vm249_vm1, %v17665_v32, %v17712_v26  ;;  %v4888_v63 = vsel %vm249_vm1, %v20386_v59, %v17665_v32  ;;  %v20389_v4 = vld [vmem:[#allocation4_spill] sm:$0xff]  ;;  %v20390_v59 = vld [vmem:[#allocation165_spill] sm:$0xff] }
 0x40b   :  { %v4852_v18 = vpop.permute.xlu0 %4851  ;;  %4865 = vrot.lane.b32.xlu1 %v17702_v33, %s11394_s2  ;;  %11126 = vmatprep.subr.bf16.mxu1 %v11125_v1  ;;  %v7772_v37 = vmul.f32 %v7663_v21, %v7531_v30  ;;  %v4954_v49 = vmul.f32 %v4889_v34, %v20387_v3  ;;  %v4953_v24 = vmul.f32 %v4888_v63, %v20388_v14 }
 0x40c   :  { %4867 = vrot.lane.b32.xlu0 %v17707_v41, %s11394_s2  ;;  %11128 = vmatpush1.bf16.msra.mxu1 %v11127_v57  ;;  %v5237_v0 = vrot.slane %v20383_v15, %v20389_v4  ;;  %v5233_v1 = vrot.slane %v20383_v15, %v19680_v62  ;;  %v7671_v15 = vrot.slane %v17718_v2, %v20335_v58 }
 0x40d   :  { %v5043_v31 = vpop.permute.xlu1 %5042  ;;  %v4890_v21 = vsel %vm249_vm1, %v17712_v26, %v4852_v18  ;;  %v5967_v14 = vrot.slane %v17331_v16, %v19974_v48 }
 0x40e   :  { %v5082_v43 = vsel %vm787_vm0, %v5041_v22, %v5043_v31  ;;  %v5322_v22 = vmul.f32 %v5225_v56, %v5081_v5  ;;  %v17781_v56 = vld [vmem:[%s18636_s4 + $0x8] sm:$0xff] }
 0x40f   :  { %v5045_v42 = vpop.permute.xlu0 %5044  ;;  %5058 = vrot.lane.b32.xlu1 %v17702_v33, %s11395_s23  ;;  %v5323_v11 = vmul.f32 %v5229_v19, %v5082_v43  ;;  %v7675_v19 = vrot.slane %v17718_v2, %v11527_v17 }
 0x410   :  { %7505 = vrot.lane.b32.xlu0 %v17283_v12, %s11407_s30  ;;  %v5083_v43 = vsel %vm787_vm0, %v5043_v31, %v5045_v42 }
 0x411   :  { %v7488_v53 = vpop.permute.xlu1 %7487  ;;  %v11129_v23 = vpack.c.bf16 %v5323_v11, %v4954_v49  ;;  %v20391_v11 = vld [vmem:[#allocation125_spill] sm:$0xff]  ;;  %v20392_v49 = vld [vmem:[#allocation52_spill] sm:$0xff] }
 0x412   :  { %v7532_v55 = vsel %vm4266_vm7, %v7486_v39, %v7488_v53  ;;  %v11131_v39 = vpack.c.bf16 %v5322_v22, %v4953_v24  ;;  %v5594_v24 = vrot.slane %v17308_v51, %v19517_v44 }
 0x413   :  { %v7490_v7 = vpop.permute.xlu0 %7489  ;;  %7503 = vrot.lane.b32.xlu1 %v17191_v13, %s11407_s30  ;;  %v7773_v29 = vmul.f32 %v7667_v61, %v7532_v55  ;;  %v4955_v55 = vmul.f32 %v4890_v21, %v20391_v11  ;;  %v20393_v11 = vld [vmem:[#allocation208_spill] sm:$0xff] }
 0x414   :  { %5425 = vrot.lane.b32.xlu0 %v17582_v52, %s11397_s24  ;;  %v7533_v61 = vsel %vm4266_vm7, %v7488_v53, %v7490_v7 }
 0x415   :  { %8761 = vmatprep.subr.mxu0 %v7773_v29  ;;  %v17750_v27 = vpop.permute.xlu1 %4853  ;;  %v7774_v53 = vmul.f32 %v7671_v15, %v7533_v61  ;;  %v17834_v61 = vpop.f32.mrb[0].mxu0 }
 0x416   :  { %8762 = vmatpush1.msra.mxu0 %v7772_v37  ;;  %v4891_v36 = vsel %vm249_vm1, %v4852_v18, %v17750_v27  ;;  %v5963_v18 = vrot.slane %v17331_v16, %v19517_v44 }
 0x417   :  { %v5410_v32 = vpop.permute.xlu0 %5409  ;;  %5060 = vrot.lane.b32.xlu1 %v17707_v41, %s11395_s23  ;;  %10778 = vmatmul.mubr.msk.f32.vlgmr.msra.gmra.mrb[16].mxu0 %vm8122_vm8, %v17759_v6  ;;  %v4956_v63 = vmul.f32 %v4891_v36, %v20390_v59  ;;  %v5971_v36 = vrot.slane %v17331_v16, %v19680_v62 }
 0x418   :  { %5794 = vrot.lane.b32.xlu0 %v17582_v52, %s11399_s25  ;;  %11130 = vmatprep.subr.bf16.mxu0 %v11129_v23 }
 0x419   :  { %8815 = vmatprep.mubr.f32.mxu0 %v20337_v50  ;;  %11132 = vmatpush1.bf16.msra.mxu0 %v11131_v39  ;;  %v17764_v35 = vpop.permute.xlu1 %5046 }
 0x41a   :  { %v5084_v57 = vsel %vm787_vm0, %v5045_v42, %v17764_v35  ;;  %v5324_v42 = vmul.f32 %v5233_v1, %v5083_v43 }
 0x41b   :  { %v5779_v28 = vpop.permute.xlu0 %5778  ;;  %7507 = vrot.lane.b32.xlu1 %v17582_v52, %s11407_s30  ;;  %10779 = vmatmul.mubr.msk.f32.gmra.mrb[18].mxu0 %vm8122_vm8, %v17781_v56  ;;  %v5325_v25 = vmul.f32 %v5237_v0, %v5084_v57 }
 0x41c   :  { %5429 = vrot.lane.b32.xlu0 %v17707_v41, %s11397_s24  ;;  %8963 = vmatprep.mubr.f32.mxu0 %v20337_v50  ;;  %v11147_v37 = vpack.c.bf16 %v5324_v42, %v4955_v55  ;;  %v5819_v3 = vsel %vm1863_vm3, %v17524_v9, %v5779_v28  ;;  %v5450_v9 = vsel %vm1325_vm2, %v17486_v20, %v5410_v32 }
 0x41d   :  { %v17792_v5 = vpop.permute.xlu1 %7491  ;;  %v11145_v29 = vpack.c.bf16 %v5325_v25, %v4956_v63  ;;  %v6060_v0 = vmul.f32 %v5963_v18, %v5819_v3  ;;  %v5691_v15 = vmul.f32 %v5594_v24, %v5450_v9  ;;  %v5975_v42 = vrot.slane %v17331_v16, %v20389_v4  ;;  %v17858_v18 = vpop.f32.mrb[1].mxu0 }
 0x41e   :  { %v7534_v30 = vsel %vm4266_vm7, %v7490_v7, %v17792_v5  ;;  %v5598_v7 = vrot.slane %v17308_v51, %v19974_v48  ;;  %v6207_v55 = vrot.slane %v20393_v11, %v19974_v48  ;;  %v6572_v16 = vrot.slane %v17480_v47, %v19517_v44  ;;  %v17876_v24 = vpop.f32.mrb[2].mxu0 }
 0x41f   :  { %v5414_v31 = vpop.permute.xlu0 %5413  ;;  %5427 = vrot.lane.b32.xlu1 %v17702_v33, %s11397_s24  ;;  %v7775_v34 = vmul.f32 %v7675_v19, %v7534_v30  ;;  %v5606_v30 = vrot.slane %v17308_v51, %v20389_v4  ;;  %20394 = vst [vmem:[#allocation29_spill] sm:$0xff] %v17876_v24  ;;  %v6203_v9 = vrot.slane %v20393_v11, %v19517_v44 }
 0x420   :  { %6402 = vrot.lane.b32.xlu0 %v17702_v33, %s11401_s26 }
 0x421   :  { %8838 = vmatprep.subr.mxu1 %v7775_v34  ;;  %v5412_v26 = vpop.permute.xlu1 %5411  ;;  %v5602_v34 = vrot.slane %v17308_v51, %v19680_v62 }
 0x422   :  { %8839 = vmatpush1.msra.mxu1 %v7774_v53  ;;  %v5451_v23 = vsel %vm1325_vm2, %v5410_v32, %v5412_v26  ;;  %v5452_v59 = vsel %vm1325_vm2, %v5412_v26, %v5414_v31 }
 0x423   :  { %v5783_v22 = vpop.permute.xlu0 %5782  ;;  %5796 = vrot.lane.b32.xlu1 %v17702_v33, %s11399_s25  ;;  %10780 = vmatmul.mubr.msk.f32.vlgmr.msra.gmra.mrb[16].mxu1 %vm8122_vm8, %v17759_v6  ;;  %v5692_v19 = vmul.f32 %v5598_v7, %v5451_v23  ;;  %v5693_v23 = vmul.f32 %v5602_v34, %v5452_v59 }
 0x424   :  { %6406 = vrot.lane.b32.xlu0 %v20392_v49, %s11401_s26  ;;  %11146 = vmatprep.subr.bf16.mxu1 %v11145_v29 }
 0x425   :  { %8892 = vmatprep.mubr.f32.mxu1 %v20337_v50  ;;  %11148 = vmatpush1.bf16.msra.mxu1 %v11147_v37  ;;  %v5781_v39 = vpop.permute.xlu1 %5780 }
 0x426   :  { %v5820_v1 = vsel %vm1863_vm3, %v5779_v28, %v5781_v39  ;;  %v11135_v28 = vpack.c.bf16 %v6060_v0, %v5691_v15  ;;  %v5821_v25 = vsel %vm1863_vm3, %v5781_v39, %v5783_v22  ;;  %v17882_v39 = vpop.f32.mrb[3].mxu0  ;;  %v6215_v15 = vrot.slane %v20393_v11, %v20389_v4 }
 0x427   :  { %v6387_v57 = vpop.permute.xlu0 %6386  ;;  %5798 = vrot.lane.b32.xlu1 %v17707_v41, %s11399_s25  ;;  %v6061_v43 = vmul.f32 %v5967_v14, %v5820_v1  ;;  %10781 = vmatmul.mubr.msk.f32.gmra.mrb[18].mxu1 %vm8122_vm8, %v17781_v56  ;;  %v6062_v7 = vmul.f32 %v5971_v36, %v5821_v25  ;;  %v6576_v14 = vrot.slane %v17480_v47, %v19974_v48  ;;  %v17896_v34 = vpop.f32.mrb[4].mxu0 }
 0x428   :  { %6773 = vrot.lane.b32.xlu0 %v17707_v41, %s11404_s29  ;;  %9040 = vmatprep.mubr.f32.mxu1 %v20337_v50  ;;  %v6428_v26 = vsel %vm2652_vm4, %v17600_v38, %v6387_v57  ;;  %20395 = vst [vmem:[#allocation91_spill] sm:$0xff] %v17882_v39  ;;  %v6580_v25 = vrot.slane %v17480_v47, %v19680_v62 }
 0x429   :  { %v17832_v20 = vpop.permute.xlu1 %5415  ;;  %v11133_v32 = vpack.c.bf16 %v6061_v43, %v5692_v19  ;;  %v20397_v19 = vld [vmem:[#allocation92_spill] sm:$0xff]  ;;  %v6669_v36 = vmul.f32 %v6572_v16, %v6428_v26  ;;  %v20399_v16 = vld [vmem:[#allocation66_spill] sm:$0xff]  ;;  %v6211_v26 = vrot.slane %v20393_v11, %v19680_v62 }
 0x42a   :  { %v5453_v53 = vsel %vm1325_vm2, %v5414_v31, %v17832_v20  ;;  %v17868_v31 = vpop.f32.mrb[0].mxu1  ;;  %v6301_v43 = vmul.f32 %v6207_v55, %v20397_v19  ;;  %v6584_v55 = vrot.slane %v17480_v47, %v20389_v4 }
 0x42b   :  { %v17838_v21 = vpop.permute.xlu0 %6390  ;;  %6404 = vrot.lane.b32.xlu1 %v17707_v41, %s11401_s26  ;;  %11134 = vmatprep.subr.bf16.mxu0 %v11133_v32  ;;  %v5694_v37 = vmul.f32 %v5606_v30, %v5453_v53 }
 0x42c   :  { %7142 = vrot.lane.b32.xlu0 %v17707_v41, %s11405_s3  ;;  %11136 = vmatpush1.bf16.msra.mxu0 %v11135_v28  ;;  %v11151_v28 = vpack.c.bf16 %v6062_v7, %v5693_v23  ;;  %v17904_v7 = vpop.f32.mrb[5].mxu0 }
 0x42d   :  { %v17854_v63 = vpop.permute.xlu1 %5784 }
 0x42e   :  { %v5822_v51 = vsel %vm1863_vm3, %v5783_v22, %v17854_v63  ;;  %v17878_v22 = vpop.f32.mrb[1].mxu1 }
 0x42f   :  { %v17864_v29 = vpop.permute.xlu0 %6755  ;;  %6771 = vrot.lane.b32.xlu1 %v17702_v33, %s11404_s29  ;;  %v6063_v3 = vmul.f32 %v5975_v42, %v5822_v51  ;;  %v17884_v0 = vpop.f32.mrb[2].mxu1  ;;  %v6300_v51 = vmul.f32 %v6203_v9, %v20399_v16  ;;  %v20404_v16 = vld [vmem:[#allocation181_spill] sm:$0xff] }
 0x430   :  { %7144 = vrot.lane.b32.xlu0 %v20392_v49, %s11405_s3  ;;  %20396 = vst [vmem:[#allocation74_spill] sm:$0xff] %v17884_v0  ;;  %v17889_v32 = vpop.f32.mrb[3].mxu1 }
 0x431   :  { %v6389_v38 = vpop.permute.xlu1 %6388  ;;  %v11149_v1 = vpack.c.bf16 %v6063_v3, %v5694_v37  ;;  %20398 = vst [vmem:[#allocation167_spill] sm:$0xff] %v17889_v32  ;;  %v8110_v37 = vld [vmem:[%s18637_s5] sm:$0xff]  ;;  %v17914_v3 = vpop.f32.mrb[6].mxu0 }
 0x432   :  { %v6429_v30 = vsel %vm2652_vm4, %v6387_v57, %v6389_v38  ;;  %v6430_v53 = vsel %vm2652_vm4, %v6389_v38, %v17838_v21  ;;  %v17906_v57 = vpop.f32.mrb[4].mxu1  ;;  %20400 = vst [vmem:[#allocation173_spill] sm:$0xff] %v17914_v3  ;;  %v17920_v38 = vpop.f32.mrb[7].mxu0  ;;  %v6303_v3 = vmul.f32 %v6215_v15, %v20404_v16  ;;  %v6945_v15 = vrot.slane %v17526_v10, %v19974_v48 }
 0x433   :  { %v7125_v42 = vpop.permute.xlu0 %7124  ;;  %7140 = vrot.lane.b32.xlu1 %v17702_v33, %s11405_s3  ;;  %v6670_v59 = vmul.f32 %v6576_v14, %v6429_v30  ;;  %11150 = vmatprep.subr.bf16.mxu1 %v11149_v1  ;;  %v17916_v14 = vpop.f32.mrb[5].mxu1  ;;  %20402 = vst [vmem:[#allocation178_spill] sm:$0xff] %v17920_v38  ;;  %v11139_v1 = vpack.c.bf16 %v6669_v36, %v6300_v51 }
 0x434   :  { %7511 = vrot.lane.b32.xlu0 %v17707_v41, %s11407_s30  ;;  %11152 = vmatpush1.bf16.msra.mxu1 %v11151_v28  ;;  %20401 = vst [vmem:[#allocation138_spill] sm:$0xff] %v17916_v14  ;;  %v6671_v19 = vmul.f32 %v6580_v25, %v6430_v53  ;;  %v17927_v28 = vpop.f32.mrb[6].mxu1 }
 0x435   :  { %v17918_v23 = vpop.permute.xlu1 %6392  ;;  %v11137_v47 = vpack.c.bf16 %v6670_v59, %v6301_v43  ;;  %20403 = vst [vmem:[#allocation81_spill] sm:$0xff] %v17927_v28  ;;  %v17930_v43 = vpop.f32.mrb[7].mxu1  ;;  %v20406_v59 = vld [vmem:[#allocation102_spill] sm:$0xff] }
 0x436   :  { %v6431_v11 = vsel %vm2652_vm4, %v17838_v21, %v17918_v23  ;;  %20405 = vst [vmem:[#allocation180_spill] sm:$0xff] %v17930_v43  ;;  %v6302_v36 = vmul.f32 %v6211_v26, %v20406_v59  ;;  %v7310_v21 = vrot.slane %v17556_v54, %v19517_v44  ;;  %v7314_v26 = vrot.slane %v17556_v54, %v19974_v48  ;;  %v8111_v59 = vld [vmem:[%s18637_s5 + $0x8] sm:$0xff]  ;;  %s11411_s5 = smov 64  }
 0x437   :  { %v6760_v9 = vpop.permute.xlu0 %6759  ;;  %6775 = vrot.lane.b32.xlu1 %v20392_v49, %s11404_s29  ;;  %v6672_v30 = vmul.f32 %v6584_v55, %v6431_v11  ;;  %11138 = vmatprep.subr.bf16.mxu0 %v11137_v47  ;;  %v7166_v55 = vsel %vm3728_vm6, %v17694_v46, %v7125_v42  ;;  %v6797_v47 = vsel %vm3190_vm5, %v17674_v40, %v17864_v29 }
 0x438   :  { %8114 = vperm.xlu0 %11311, %v8110_v37   ;;  %11140 = vmatpush1.bf16.msra.mxu0 %v11139_v1  ;;  %v11155_v51 = vpack.c.bf16 %v6671_v19, %v6302_v36  ;;  %v6941_v37 = vrot.slane %v17526_v10, %v19517_v44  ;;  %v7407_v46 = vmul.f32 %v7310_v21, %v7166_v55 }
 0x439   :  { %v6758_v25 = vpop.permute.xlu1 %6757  ;;  %v11153_v53 = vpack.c.bf16 %v6672_v30, %v6303_v3  ;;  %v7318_v40 = vrot.slane %v17556_v54, %v19680_v62  ;;  %v6953_v21 = vrot.slane %v17526_v10, %v20389_v4  ;;  %v7322_v55 = vrot.slane %v17556_v54, %v20389_v4  ;;  %v10704_v54 = vld [vmem:[%s18635_s1 + $0xc1] ss:$8 sm:$0xf] }
 0x43a   :  { %v6798_v3 = vsel %vm3190_vm5, %v17864_v29, %v6758_v25  ;;  %v7038_v36 = vmul.f32 %v6941_v37, %v6797_v47  ;;  %v6799_v37 = vsel %vm3190_vm5, %v6758_v25, %v6760_v9 }
 0x43b   :  { %v7129_v38 = vpop.permute.xlu0 %7128  ;;  %7509 = vrot.lane.b32.xlu1 %v17702_v33, %s11407_s30  ;;  %11154 = vmatprep.subr.bf16.mxu1 %v11153_v53  ;;  %v7039_v30 = vmul.f32 %v6945_v15, %v6798_v3  ;;  %v6949_v15 = vrot.slane %v17526_v10, %v19680_v62  ;;  %v10705_v10 = vld [vmem:[%s18635_s1 + $0xc1] ss:$8 sm:$0xf0] }
 0x43c   :  { %11156 = vmatpush1.bf16.msra.mxu1 %v11155_v51  ;;  %v11143_v43 = vpack.c.bf16 %v7407_v46, %v7038_v36 }
 0x43d   :  { %v7127_v1 = vpop.permute.xlu1 %7126 }
 0x43e   :  { %v7167_v19 = vsel %vm3728_vm6, %v7125_v42, %v7127_v1  ;;  %v7168_v42 = vsel %vm3728_vm6, %v7127_v1, %v7129_v38 }
 0x43f   :  { %v4856_v11 = vpop.permute.xlu0 %4855  ;;  %7513 = vrot.lane.b32.xlu1 %v20392_v49, %s11407_s30  ;;  %v7408_v16 = vmul.f32 %v7314_v26, %v7167_v19  ;;  %v7409_v47 = vmul.f32 %v7318_v40, %v7168_v42 }
 0x441   :  { %v17956_v53 = vpop.permute.xlu1 %6761  ;;  %v11141_v51 = vpack.c.bf16 %v7408_v16, %v7039_v30 }
 0x442   :  { %v6800_v26 = vsel %vm3190_vm5, %v6760_v9, %v17956_v53 }
 0x443   :  { %v5049_v29 = vpop.permute.xlu0 %5048  ;;  %8119 = vperm.xlu1 %11314, %v8111_v59   ;;  %11142 = vmatprep.subr.bf16.mxu0 %v11141_v51  ;;  %v7041_v19 = vmul.f32 %v6953_v21, %v6800_v26  ;;  %v17980_v59 = vor.u32 %v10705_v10, %v10704_v54  ;;  %v7679_v26 = vrot.slane %v17718_v2, %v19517_v44 }
 0x444   :  { %11144 = vmatpush1.bf16.msra.mxu0 %v11143_v43  ;;  %v7040_v43 = vmul.f32 %v6949_v15, %v6799_v37  ;;  %v7683_v15 = vrot.slane %v17718_v2, %v19974_v48 }
 0x445   :  { %v17970_v3 = vpop.permute.xlu1 %7130  ;;  %v5241_v40 = vrot.slane %v17980_v59, %v11495_v8 }
 0x446   :  { %v7169_v1 = vsel %vm3728_vm6, %v7129_v38, %v17970_v3  ;;  %v11159_v25 = vpack.c.bf16 %v7409_v47, %v7040_v43  ;;  %v5245_v38 = vrot.slane %v17980_v59, %v20252_v45  ;;  %v4892_v47 = vsel %vm249_vm1, %v17750_v27, %v4856_v11 }
 0x447   :  { %v7494_v46 = vpop.permute.xlu0 %7493  ;;  %v7410_v30 = vmul.f32 %v7322_v55, %v7169_v1  ;;  %v5085_v55 = vsel %vm787_vm0, %v17764_v35, %v5049_v29 }
 0x448   :  { %v7535_v1 = vsel %vm4266_vm7, %v17792_v5, %v7494_v46  ;;  %v5326_v10 = vmul.f32 %v5241_v40, %v5085_v55  ;;  %v5253_v5 = vrot.slane %v17980_v59, %v11527_v17  ;;  %v7691_v55 = vrot.slane %v17718_v2, %v20389_v4 }
 0x449   :  { %v4858_v16 = vpop.permute.xlu1 %4857  ;;  %v11157_v9 = vpack.c.bf16 %v7410_v30, %v7041_v19  ;;  %v7776_v32 = vmul.f32 %v7679_v26, %v7535_v1 }
 0x44a   :  { %v4893_v37 = vsel %vm249_vm1, %v4856_v11, %v4858_v16 }
 0x44b   :  { %v4860_v36 = vpop.permute.xlu0 %4859  ;;  %11158 = vmatprep.subr.bf16.mxu1 %v11157_v9 }
 0x44c   :  { %11160 = vmatpush1.bf16.msra.mxu1 %v11159_v25  ;;  %v20408_v25 = vld [vmem:[#allocation130_spill] sm:$0xff] }
 0x44d   :  { %v5051_v51 = vpop.permute.xlu1 %5050  ;;  %v4957_v28 = vmul.f32 %v4892_v47, %v20408_v25  ;;  %v10713_v47 = vld [vmem:[%s18635_s1 + $0xc2] ss:$8 sm:$0xf0] }
 0x44e   :  { %v5086_v42 = vsel %vm787_vm0, %v5049_v29, %v5051_v51  ;;  %v20407_v29 = vld [vmem:[#allocation145_spill] sm:$0xff] }
 0x44f   :  { %v5053_v21 = vpop.permute.xlu0 %5052  ;;  %v5327_v19 = vmul.f32 %v5245_v38, %v5086_v42  ;;  %v4958_v43 = vmul.f32 %v4893_v37, %v20407_v29  ;;  %v11163_v27 = vpack.c.bf16 %v5326_v10, %v4957_v28  ;;  %v5249_v38 = vrot.slane %v17980_v59, %v20335_v58  ;;  %v10721_v42 = vld [vmem:[%s18635_s1 + $0xc3] ss:$8 sm:$0xf0]  ;;  %v10712_v37 = vld [vmem:[%s18635_s1 + $0xc2] ss:$8 sm:$0xf] }
 0x451   :  { %v7496_v54 = vpop.permute.xlu1 %7495  ;;  %v11161_v39 = vpack.c.bf16 %v5327_v19, %v4958_v43  ;;  %v20410_v43 = vld [vmem:[#allocation147_spill] sm:$0xff] }
 0x452   :  { %v7536_v30 = vsel %vm4266_vm7, %v7494_v46, %v7496_v54 }
 0x453   :  { %v7498_v35 = vpop.permute.xlu0 %7497  ;;  %v7777_v9 = vmul.f32 %v7683_v15, %v7536_v30  ;;  %v7687_v15 = vrot.slane %v17718_v2, %v19680_v62 }
 0x454   :  { %v7537_v26 = vsel %vm4266_vm7, %v7496_v54, %v7498_v35 }
 0x455   :  { %8915 = vmatprep.subr.mxu0 %v7777_v9  ;;  %v18001_v0 = vpop.permute.xlu1 %4861  ;;  %v7778_v25 = vmul.f32 %v7687_v15, %v7537_v26 }
 0x456   :  { %8916 = vmatpush1.msra.mxu0 %v7776_v32  ;;  %v5087_v32 = vsel %vm787_vm0, %v5051_v51, %v5053_v21  ;;  %v4895_v51 = vsel %vm249_vm1, %v4860_v36, %v18001_v0 }
 0x457   :  { %v5418_v11 = vpop.permute.xlu0 %5417  ;;  %10782 = vmatmul.mubr.msk.f32.vlgmr.msra.gmra.mrb[20].mxu0 %vm8122_vm8, %v17759_v6  ;;  %11162 = vmatprep.subr.bf16.mxu0 %v11161_v39  ;;  %v10720_v39 = vld [vmem:[%s18635_s1 + $0xc3] ss:$8 sm:$0xf]  ;;  %v5328_v2 = vmul.f32 %v5249_v38, %v5087_v32 }
 0x458   :  { %11164 = vmatpush1.bf16.msra.mxu0 %v11163_v27  ;;  %8969 = vmatprep.mubr.f32.mxu0 %v20337_v50  ;;  %v18040_v10 = vor.u32 %v10721_v42, %v10720_v39  ;;  %v18046_v27 = vor.u32 %v10713_v47, %v10712_v37  ;;  %v10736_v37 = vld [vmem:[%s18635_s1 + $0xc5] ss:$8 sm:$0xf] }
 0x459   :  { %v18008_v46 = vpop.permute.xlu1 %5054 }
 0x45a   :  { %v5088_v28 = vsel %vm787_vm0, %v5053_v21, %v18008_v46  ;;  %v4894_v21 = vsel %vm249_vm1, %v4858_v16, %v4860_v36  ;;  %v20409_v36 = vld [vmem:[#allocation8_spill] sm:$0xff]  ;;  %v5979_v38 = vrot.slane %v18040_v10, %v11495_v8  ;;  %v5614_v39 = vrot.slane %v18046_v27, %v20252_v45 }
 0x45b   :  { %v5787_v40 = vpop.permute.xlu0 %5786  ;;  %10783 = vmatmul.mubr.msk.f32.gmra.mrb[22].mxu0 %vm8122_vm8, %v17781_v56  ;;  %v5329_v1 = vmul.f32 %v5253_v5, %v5088_v28  ;;  %v4960_v54 = vmul.f32 %v4895_v51, %v20409_v36  ;;  %v4959_v9 = vmul.f32 %v4894_v21, %v20410_v43  ;;  %v5983_v42 = vrot.slane %v18040_v10, %v20252_v45 }
 0x45c   :  { %9117 = vmatprep.mubr.f32.mxu0 %v20337_v50 }
 0x45d   :  { %v18038_v19 = vpop.permute.xlu1 %7499  ;;  %v11177_v5 = vpack.c.bf16 %v5329_v1, %v4960_v54  ;;  %v11179_v28 = vpack.c.bf16 %v5328_v2, %v4959_v9  ;;  %v10729_v54 = vld [vmem:[%s18635_s1 + $0xc4] ss:$8 sm:$0xf0] }
 0x45e   :  { %v7538_v30 = vsel %vm4266_vm7, %v7498_v35, %v18038_v19  ;;  %v5823_v35 = vsel %vm1863_vm3, %v17854_v63, %v5787_v40  ;;  %v5454_v63 = vsel %vm1325_vm2, %v17832_v20, %v5418_v11 }
 0x45f   :  { %v5422_v16 = vpop.permute.xlu0 %5421  ;;  %v7779_v29 = vmul.f32 %v7691_v55, %v7538_v30  ;;  %v5610_v55 = vrot.slane %v18046_v27, %v11495_v8  ;;  %v6064_v21 = vmul.f32 %v5979_v38, %v5823_v35  ;;  %v10737_v30 = vld [vmem:[%s18635_s1 + $0xc5] ss:$8 sm:$0xf0]  ;;  %v5622_v35 = vrot.slane %v18046_v27, %v11527_v17 }
 0x461   :  { %8992 = vmatprep.subr.mxu1 %v7779_v29  ;;  %v5420_v24 = vpop.permute.xlu1 %5419  ;;  %v5695_v20 = vmul.f32 %v5610_v55, %v5454_v63  ;;  %v5618_v55 = vrot.slane %v18046_v27, %v20335_v58 }
 0x462   :  { %8993 = vmatpush1.msra.mxu1 %v7778_v25  ;;  %v5455_v15 = vsel %vm1325_vm2, %v5418_v11, %v5420_v24  ;;  %v5987_v25 = vrot.slane %v18040_v10, %v20335_v58 }
 0x463   :  { %v5791_v32 = vpop.permute.xlu0 %5790  ;;  %10784 = vmatmul.mubr.msk.f32.vlgmr.msra.gmra.mrb[20].mxu1 %vm8122_vm8, %v17759_v6  ;;  %11178 = vmatprep.subr.bf16.mxu1 %v11177_v5  ;;  %v5696_v1 = vmul.f32 %v5614_v39, %v5455_v15  ;;  %v18073_v36 = vpop.f32.mrb[8].mxu0  ;;  %v11167_v9 = vpack.c.bf16 %v6064_v21, %v5695_v20  ;;  %v18088_v5 = vor.u32 %v10737_v30, %v10736_v37 }
 0x464   :  { %11180 = vmatpush1.bf16.msra.mxu1 %v11179_v28  ;;  %9046 = vmatprep.mubr.f32.mxu1 %v20337_v50  ;;  %20411 = vst [vmem:[#allocation49_spill] sm:$0xff] %v18073_v36  ;;  %v18076_v11 = vpop.f32.mrb[9].mxu0  ;;  %v5991_v39 = vrot.slane %v18040_v10, %v11527_v17 }
 0x465   :  { %v5789_v51 = vpop.permute.xlu1 %5788  ;;  %20412 = vst [vmem:[#allocation186_spill] sm:$0xff] %v18076_v11  ;;  %v6596_v11 = vrot.slane %v18088_v5, %v20335_v58 }
 0x466   :  { %v5824_v26 = vsel %vm1863_vm3, %v5787_v40, %v5789_v51  ;;  %v10728_v40 = vld [vmem:[%s18635_s1 + $0xc4] ss:$8 sm:$0xf]  ;;  %v5825_v38 = vsel %vm1863_vm3, %v5789_v51, %v5791_v32  ;;  %v5456_v51 = vsel %vm1325_vm2, %v5420_v24, %v5422_v16  ;;  %v6592_v24 = vrot.slane %v18088_v5, %v20252_v45 }
 0x467   :  { %v6395_v47 = vpop.permute.xlu0 %6394  ;;  %v6065_v2 = vmul.f32 %v5983_v42, %v5824_v26  ;;  %10785 = vmatmul.mubr.msk.f32.gmra.mrb[22].mxu1 %vm8122_vm8, %v17781_v56  ;;  %v18095_v42 = vpop.f32.mrb[10].mxu0  ;;  %v18099_v15 = vor.u32 %v10729_v54, %v10728_v40  ;;  %v6066_v37 = vmul.f32 %v5987_v25, %v5825_v38 }
 0x468   :  { %9194 = vmatprep.mubr.f32.mxu1 %v20337_v50  ;;  %20413 = vst [vmem:[#allocation77_spill] sm:$0xff] %v18095_v42  ;;  %v18103_v21 = vpop.f32.mrb[11].mxu0  ;;  %v6432_v40 = vsel %vm2652_vm4, %v17918_v23, %v6395_v47 }
 0x469   :  { %v18084_v29 = vpop.permute.xlu1 %5423  ;;  %v11165_v43 = vpack.c.bf16 %v6065_v2, %v5696_v1  ;;  %20414 = vst [vmem:[#allocation196_spill] sm:$0xff] %v18103_v21  ;;  %v6588_v1 = vrot.slane %v18088_v5, %v11495_v8  ;;  %v6223_v20 = vrot.slane %v18099_v15, %v20252_v45 }
 0x46a   :  { %v5457_v63 = vsel %vm1325_vm2, %v5422_v16, %v18084_v29  ;;  %v5697_v16 = vmul.f32 %v5618_v55, %v5456_v51  ;;  %v10753_v51 = vld [vmem:[%s18635_s1 + $0xc7] ss:$8 sm:$0xf0] }
 0x46b   :  { %v6399_v28 = vpop.permute.xlu0 %6398  ;;  %11166 = vmatprep.subr.bf16.mxu0 %v11165_v43  ;;  %v5698_v54 = vmul.f32 %v5622_v35, %v5457_v63  ;;  %v6673_v42 = vmul.f32 %v6588_v1, %v6432_v40  ;;  %v10752_v35 = vld [vmem:[%s18635_s1 + $0xc7] ss:$8 sm:$0xf]  ;;  %v6305_v1 = vmul.f32 %v6223_v20, %v17184_v60 }
 0x46c   :  { %11168 = vmatpush1.bf16.msra.mxu0 %v11167_v9  ;;  %v6219_v9 = vrot.slane %v18099_v15, %v11495_v8  ;;  %v11183_v21 = vpack.c.bf16 %v6066_v37, %v5697_v16  ;;  %v6600_v37 = vrot.slane %v18088_v5, %v11527_v17  ;;  %v10745_v16 = vld [vmem:[%s18635_s1 + $0xc6] ss:$8 sm:$0xf0] }
 0x46d   :  { %v18106_v26 = vpop.permute.xlu1 %5792 }
 0x46e   :  { %v5826_v2 = vsel %vm1863_vm3, %v5791_v32, %v18106_v26  ;;  %v6231_v32 = vrot.slane %v18099_v15, %v11527_v17 }
 0x46f   :  { %v6764_v30 = vpop.permute.xlu0 %6763  ;;  %v6067_v43 = vmul.f32 %v5991_v39, %v5826_v2  ;;  %v18135_v2 = vpop.f32.mrb[8].mxu1 }
 0x470   :  { %20415 = vst [vmem:[#allocation106_spill] sm:$0xff] %v18135_v2 }
 0x471   :  { %v6397_v25 = vpop.permute.xlu1 %6396  ;;  %v11181_v38 = vpack.c.bf16 %v6067_v43, %v5698_v54  ;;  %v6227_v54 = vrot.slane %v18099_v15, %v20335_v58  ;;  %v18140_v43 = vpop.f32.mrb[9].mxu1 }
 0x472   :  { %v6433_v23 = vsel %vm2652_vm4, %v6395_v47, %v6397_v25  ;;  %v6434_v55 = vsel %vm2652_vm4, %v6397_v25, %v6399_v28  ;;  %v20416_v47 = vld [vmem:[#allocation159_spill] sm:$0xff]  ;;  %20417 = vst [vmem:[#allocation193_spill] sm:$0xff] %v18140_v43  ;;  %v6307_v43 = vmul.f32 %v6231_v32, %v17283_v12 }
 0x473   :  { %v7133_v39 = vpop.permute.xlu0 %7132  ;;  %v6674_v63 = vmul.f32 %v6592_v24, %v6433_v23  ;;  %11182 = vmatprep.subr.bf16.mxu1 %v11181_v38  ;;  %v6304_v40 = vmul.f32 %v6219_v9, %v20416_v47  ;;  %v10744_v24 = vld [vmem:[%s18635_s1 + $0xc6] ss:$8 sm:$0xf]  ;;  %v6675_v38 = vmul.f32 %v6596_v11, %v6434_v55  ;;  %v18150_v9 = vor.u32 %v10753_v51, %v10752_v35  ;;  %v18155_v2 = vpop.f32.mrb[10].mxu1 }
 0x474   :  { %11184 = vmatpush1.bf16.msra.mxu1 %v11183_v21  ;;  %v18157_v36 = vor.u32 %v10745_v16, %v10744_v24  ;;  %v6306_v14 = vmul.f32 %v6227_v54, %v17191_v13  ;;  %v7170_v51 = vsel %vm3728_vm6, %v17970_v3, %v7133_v39 }
 0x475   :  { %v18148_v25 = vpop.permute.xlu1 %6400  ;;  %v11169_v60 = vpack.c.bf16 %v6674_v63, %v6305_v1  ;;  %v11171_v20 = vpack.c.bf16 %v6673_v42, %v6304_v40  ;;  %v18160_v63 = vpop.f32.mrb[11].mxu1  ;;  %v7330_v13 = vrot.slane %v18150_v9, %v20252_v45 }
 0x476   :  { %v6435_v21 = vsel %vm2652_vm4, %v6399_v28, %v18148_v25  ;;  %20418 = vst [vmem:[#allocation197_spill] sm:$0xff] %v18160_v63  ;;  %v11187_v35 = vpack.c.bf16 %v6675_v38, %v6306_v14  ;;  %v7326_v28 = vrot.slane %v18150_v9, %v11495_v8  ;;  %v6961_v12 = vrot.slane %v18157_v36, %v20252_v45 }
 0x477   :  { %v6768_v23 = vpop.permute.xlu0 %6767  ;;  %v6676_v47 = vmul.f32 %v6600_v37, %v6435_v21  ;;  %11170 = vmatprep.subr.bf16.mxu0 %v11169_v60  ;;  %v6957_v32 = vrot.slane %v18157_v36, %v11495_v8  ;;  %v6801_v14 = vsel %vm3190_vm5, %v17956_v53, %v6764_v30  ;;  %v7334_v21 = vrot.slane %v18150_v9, %v20335_v58 }
 0x478   :  { %11172 = vmatpush1.bf16.msra.mxu0 %v11171_v20  ;;  %v7411_v40 = vmul.f32 %v7326_v28, %v7170_v51  ;;  %v6969_v53 = vrot.slane %v18157_v36, %v11527_v17 }
 0x479   :  { %v6766_v11 = vpop.permute.xlu1 %6765  ;;  %v11185_v42 = vpack.c.bf16 %v6676_v47, %v6307_v43  ;;  %v7042_v16 = vmul.f32 %v6957_v32, %v6801_v14 }
 0x47a   :  { %v6802_v37 = vsel %vm3190_vm5, %v6764_v30, %v6766_v11  ;;  %v7338_v30 = vrot.slane %v18150_v9, %v11527_v17  ;;  %v6803_v28 = vsel %vm3190_vm5, %v6766_v11, %v6768_v23 }
 0x47b   :  { %v7137_v55 = vpop.permute.xlu0 %7136  ;;  %11186 = vmatprep.subr.bf16.mxu1 %v11185_v42  ;;  %v7043_v43 = vmul.f32 %v6961_v12, %v6802_v37  ;;  %v11175_v38 = vpack.c.bf16 %v7411_v40, %v7042_v16  ;;  %v10760_v40 = vld [vmem:[%s18635_s1 + $0x1c0] ss:$8 sm:$0xf] }
 0x47c   :  { %11188 = vmatpush1.bf16.msra.mxu1 %v11187_v35 }
 0x47d   :  { %v7135_v1 = vpop.permute.xlu1 %7134 }
 0x47e   :  { %v7171_v3 = vsel %vm3728_vm6, %v7133_v39, %v7135_v1  ;;  %v7172_v42 = vsel %vm3728_vm6, %v7135_v1, %v7137_v55  ;;  %v6965_v39 = vrot.slane %v18157_v36, %v20335_v58 }
 0x47f   :  { %v4864_v54 = vpop.permute.xlu0 %4863  ;;  %v7412_v24 = vmul.f32 %v7330_v13, %v7171_v3  ;;  %v7413_v12 = vmul.f32 %v7334_v21, %v7172_v42  ;;  %v10761_v3 = vld [vmem:[%s18635_s1 + $0x1c0] ss:$8 sm:$0xf0] }
 0x480   :  { %v7044_v1 = vmul.f32 %v6965_v39, %v6803_v28  ;;  %v18200_v16 = vor.u32 %v10761_v3, %v10760_v40  ;;  %v4896_v28 = vsel %vm249_vm1, %v18001_v0, %v4864_v54  ;;  %v20420_v3 = vld [vmem:[#allocation62_spill] sm:$0xff] }
 0x481   :  { %v18176_v60 = vpop.permute.xlu1 %6769  ;;  %v11173_v20 = vpack.c.bf16 %v7412_v24, %v7043_v43 }
 0x482   :  { %v6804_v35 = vsel %vm3190_vm5, %v6768_v23, %v18176_v60  ;;  %v11191_v11 = vpack.c.bf16 %v7413_v12, %v7044_v1  ;;  %v7695_v39 = vrot.slane %v18200_v16, %v11495_v8 }
 0x483   :  { %v5057_v47 = vpop.permute.xlu0 %5056  ;;  %11174 = vmatprep.subr.bf16.mxu0 %v11173_v20  ;;  %v7045_v37 = vmul.f32 %v6969_v53, %v6804_v35 }
 0x484   :  { %11176 = vmatpush1.bf16.msra.mxu0 %v11175_v38  ;;  %v5257_v38 = vrot.slane %v17980_v59, %v19517_v44  ;;  %v5089_v53 = vsel %vm787_vm0, %v18008_v46, %v5057_v47 }
 0x485   :  { %v18190_v51 = vpop.permute.xlu1 %7138 }
 0x486   :  { %v7173_v13 = vsel %vm3728_vm6, %v7137_v55, %v18190_v51  ;;  %v5261_v55 = vrot.slane %v17980_v59, %v19974_v48 }
 0x487   :  { %v7502_v32 = vpop.permute.xlu0 %7501  ;;  %v7414_v14 = vmul.f32 %v7338_v30, %v7173_v13  ;;  %v7699_v30 = vrot.slane %v18200_v16, %v20252_v45 }
 0x488   :  { %v7539_v12 = vsel %vm4266_vm7, %v18038_v19, %v7502_v32  ;;  %v5265_v19 = vrot.slane %v17980_v59, %v19680_v62 }
 0x489   :  { %v4866_v43 = vpop.permute.xlu1 %4865  ;;  %v11189_v23 = vpack.c.bf16 %v7414_v14, %v7045_v37  ;;  %v5330_v14 = vmul.f32 %v5257_v38, %v5089_v53  ;;  %v7780_v8 = vmul.f32 %v7695_v39, %v7539_v12  ;;  %v7707_v53 = vrot.slane %v18200_v16, %v11527_v17 }
 0x48a   :  { %v4897_v35 = vsel %vm249_vm1, %v4864_v54, %v4866_v43 }
 0x48b   :  { %v4868_v24 = vpop.permute.xlu0 %4867  ;;  %11190 = vmatprep.subr.bf16.mxu1 %v11189_v23  ;;  %v4961_v23 = vmul.f32 %v4896_v28, %v20420_v3 }
 0x48c   :  { %11192 = vmatpush1.bf16.msra.mxu1 %v11191_v11  ;;  %v5269_v11 = vrot.slane %v17980_v59, %v20389_v4  ;;  %v7703_v59 = vrot.slane %v18200_v16, %v20335_v58 }
 0x48d   :  { %v5059_v20 = vpop.permute.xlu1 %5058  ;;  %v11195_v63 = vpack.c.bf16 %v5330_v14, %v4961_v23 }
 0x48e   :  { %v5090_v21 = vsel %vm787_vm0, %v5057_v47, %v5059_v20  ;;  %v20419_v47 = vld [vmem:[#allocation150_spill] sm:$0xff] }
 0x48f   :  { %v7506_v42 = vpop.permute.xlu0 %7505  ;;  %v5331_v13 = vmul.f32 %v5261_v55, %v5090_v21  ;;  %v4962_v40 = vmul.f32 %v4897_v35, %v20419_v47  ;;  %v20421_v55 = vld [vmem:[#allocation155_spill] sm:$0xff]  ;;  %v4898_v35 = vsel %vm249_vm1, %v4866_v43, %v4868_v24  ;;  %v5995_v43 = vrot.slane %v18040_v10, %v19517_v44 }
 0x491   :  { %v7504_v37 = vpop.permute.xlu1 %7503  ;;  %v11193_v54 = vpack.c.bf16 %v5331_v13, %v4962_v40 }
 0x492   :  { %v7540_v1 = vsel %vm4266_vm7, %v7502_v32, %v7504_v37 }
 0x493   :  { %v5426_v46 = vpop.permute.xlu0 %5425  ;;  %v7781_v45 = vmul.f32 %v7699_v30, %v7540_v1  ;;  %v20422_v30 = vld [vmem:[#allocation100_spill] sm:$0xff]  ;;  %v20423_v1 = vld [vmem:[#allocation85_spill] sm:$0xff] }
 0x494   :  { %v4899_v39 = vsel %vm249_vm1, %v4868_v24, %v20422_v30  ;;  %vm9544_vm1 = vcmask 72704  }
 0x495   :  { %9069 = vmatprep.subr.mxu0 %v7781_v45  ;;  %v5061_v0 = vpop.permute.xlu1 %5060  ;;  %v4964_v47 = vmul.f32 %v4899_v39, %v20423_v1  ;;  %v6003_v39 = vrot.slane %v18040_v10, %v19680_v62 }
 0x496   :  { %v5092_v32 = vsel %vm787_vm0, %v5061_v0, %v20421_v55  ;;  %9070 = vmatpush1.msra.mxu0 %v7780_v8  ;;  %v5091_v21 = vsel %vm787_vm0, %v5059_v20, %v5061_v0  ;;  %v7541_v20 = vsel %vm4266_vm7, %v7504_v37, %v7506_v42  ;;  %v5630_v0 = vrot.slane %v18046_v27, %v19974_v48 }
 0x497   :  { %v5795_v38 = vpop.permute.xlu0 %5794  ;;  %10786 = vmatmul.mubr.msk.f32.vlgmr.msra.gmra.mrb[24].mxu0 %vm8122_vm8, %v17759_v6  ;;  %11194 = vmatprep.subr.bf16.mxu0 %v11193_v54  ;;  %v5333_v28 = vmul.f32 %v5269_v11, %v5092_v32  ;;  %v5332_v13 = vmul.f32 %v5265_v19, %v5091_v21  ;;  %v7782_v45 = vmul.f32 %v7703_v59, %v7541_v20 }
 0x498   :  { %11196 = vmatpush1.bf16.msra.mxu0 %v11195_v63  ;;  %9123 = vmatprep.mubr.f32.mxu0 %v20337_v50  ;;  %v20424_v63 = vld [vmem:[#allocation177_spill] sm:$0xff]  ;;  %v5827_v23 = vsel %vm1863_vm3, %v18106_v26, %v5795_v38  ;;  %v5458_v11 = vsel %vm1325_vm2, %v18084_v29, %v5426_v46  ;;  %v5999_v54 = vrot.slane %v18040_v10, %v19974_v48 }
 0x499   :  { %v18239_v12 = vpop.permute.xlu1 %7507  ;;  %v4963_v40 = vmul.f32 %v4898_v35, %v20424_v63  ;;  %v11209_v37 = vpack.c.bf16 %v5333_v28, %v4964_v47  ;;  %v6247_v26 = vrot.slane %v18099_v15, %v20389_v4  ;;  %v6068_v55 = vmul.f32 %v5995_v43, %v5827_v23  ;;  %v20425_v35 = vld [vmem:[#allocation64_spill] sm:$0xff] }
 0x49a   :  { %v7542_v17 = vsel %vm4266_vm7, %v7506_v42, %v18239_v12  ;;  %v5626_v42 = vrot.slane %v18046_v27, %v19517_v44  ;;  %v5638_v29 = vrot.slane %v18046_v27, %v20389_v4  ;;  %v5634_v32 = vrot.slane %v18046_v27, %v19680_v62 }
 0x49b   :  { %v5430_v14 = vpop.permute.xlu0 %5429  ;;  %10787 = vmatmul.mubr.msk.f32.gmra.mrb[26].mxu0 %vm8122_vm8, %v17781_v56  ;;  %v7783_v58 = vmul.f32 %v7707_v53, %v7542_v17  ;;  %v11211_v3 = vpack.c.bf16 %v5332_v13, %v4963_v40  ;;  %v6616_v21 = vrot.slane %v18088_v5, %v20389_v4  ;;  %v6007_v59 = vrot.slane %v18040_v10, %v20389_v4  ;;  %v20426_v17 = vld [vmem:[#allocation199_spill] sm:$0xff] }
 0x49c   :  { %9271 = vmatprep.mubr.f32.mxu0 %v20337_v50  ;;  %v5699_v53 = vmul.f32 %v5626_v42, %v5458_v11  ;;  %v5461_v20 = vsel %vm1325_vm2, %v5430_v14, %v20425_v35  ;;  %v6243_v47 = vrot.slane %v18099_v15, %v19680_v62  ;;  %v6239_v10 = vrot.slane %v18099_v15, %v19974_v48 }
 0x49d   :  { %9146 = vmatprep.subr.mxu1 %v7783_v58  ;;  %v5428_v24 = vpop.permute.xlu1 %5427  ;;  %v6612_v40 = vrot.slane %v18088_v5, %v19680_v62 }
 0x49e   :  { %9147 = vmatpush1.msra.mxu1 %v7782_v45  ;;  %v5459_v19 = vsel %vm1325_vm2, %v5426_v46, %v5428_v24  ;;  %v5460_v28 = vsel %vm1325_vm2, %v5428_v24, %v5430_v14  ;;  %v11199_v14 = vpack.c.bf16 %v6068_v55, %v5699_v53  ;;  %v5702_v45 = vmul.f32 %v5638_v29, %v5461_v20 }
 0x49f   :  { %v6403_v8 = vpop.permute.xlu0 %6402  ;;  %10788 = vmatmul.mubr.msk.f32.vlgmr.msra.gmra.mrb[24].mxu1 %vm8122_vm8, %v17759_v6  ;;  %11210 = vmatprep.subr.bf16.mxu1 %v11209_v37  ;;  %v5700_v27 = vmul.f32 %v5630_v0, %v5459_v19  ;;  %v5701_v43 = vmul.f32 %v5634_v32, %v5460_v28  ;;  %v20427_v37 = vld [vmem:[#allocation9_spill] sm:$0xff]  ;;  %v6235_v19 = vrot.slane %v18099_v15, %v19517_v44 }
 0x4a0   :  { %11212 = vmatpush1.bf16.msra.mxu1 %v11211_v3  ;;  %9200 = vmatprep.mubr.f32.mxu1 %v20337_v50  ;;  %v6436_v23 = vsel %vm2652_vm4, %v18148_v25, %v6403_v8  ;;  %v6311_v32 = vmul.f32 %v6247_v26, %v20392_v49  ;;  %v6310_v53 = vmul.f32 %v6243_v47, %v17707_v41 }
 0x4a1   :  { %v5797_v6 = vpop.permute.xlu1 %5796  ;;  %v6309_v15 = vmul.f32 %v6239_v10, %v17702_v33  ;;  %v6308_v28 = vmul.f32 %v6235_v19, %v17582_v52 }
 0x4a2   :  { %v5828_v46 = vsel %vm1863_vm3, %v5795_v38, %v5797_v6  ;;  %v6604_v38 = vrot.slane %v18088_v5, %v19517_v44 }
 0x4a3   :  { %v6407_v30 = vpop.permute.xlu0 %6406  ;;  %v6069_v13 = vmul.f32 %v5999_v54, %v5828_v46  ;;  %10789 = vmatmul.mubr.msk.f32.gmra.mrb[26].mxu1 %vm8122_vm8, %v17781_v56  ;;  %v6608_v56 = vrot.slane %v18088_v5, %v19974_v48 }
 0x4a4   :  { %v6472_v1 = vsel %vm2652_vm4, %v6407_v30, %v20426_v17  ;;  %9348 = vmatprep.mubr.f32.mxu1 %v20337_v50  ;;  %v7342_v17 = vrot.slane %v18150_v9, %v19517_v44 }
 0x4a5   :  { %v5799_v58 = vpop.permute.xlu1 %5798  ;;  %v11197_v63 = vpack.c.bf16 %v6069_v13, %v5700_v27  ;;  %v6680_v11 = vmul.f32 %v6616_v21, %v6472_v1  ;;  %v7346_v1 = vrot.slane %v18150_v9, %v19974_v48 }
 0x4a6   :  { %v5829_v24 = vsel %vm1863_vm3, %v5797_v6, %v5799_v58  ;;  %v5830_v42 = vsel %vm1863_vm3, %v5799_v58, %v20427_v37  ;;  %v6677_v6 = vmul.f32 %v6604_v38, %v6436_v23  ;;  %v20428_v23 = vld [vmem:[#allocation83_spill] sm:$0xff] }
 0x4a7   :  { %v18298_v3 = vpop.permute.xlu0 %6773  ;;  %v6070_v0 = vmul.f32 %v6003_v39, %v5829_v24  ;;  %v6071_v54 = vmul.f32 %v6007_v59, %v5830_v42  ;;  %11198 = vmatprep.subr.bf16.mxu0 %v11197_v63  ;;  %v11217_v35 = vpack.c.bf16 %v6680_v11, %v6311_v32  ;;  %v6981_v63 = vrot.slane %v18157_v36, %v19680_v62 }
 0x4a8   :  { %11200 = vmatpush1.bf16.msra.mxu0 %v11199_v14  ;;  %v11203_v13 = vpack.c.bf16 %v6677_v6, %v6308_v28  ;;  %v7350_v14 = vrot.slane %v18150_v9, %v19680_v62 }
 0x4a9   :  { %v11215_v5 = vpack.c.bf16 %v6070_v0, %v5701_v43  ;;  %v6405_v55 = vpop.permute.xlu1 %6404  ;;  %v11213_v29 = vpack.c.bf16 %v6071_v54, %v5702_v45  ;;  %v7711_v54 = vrot.slane %v18200_v16, %v19517_v44 }
 0x4aa   :  { %v6437_v46 = vsel %vm2652_vm4, %v6403_v8, %v6405_v55  ;;  %v6438_v25 = vsel %vm2652_vm4, %v6405_v55, %v6407_v30  ;;  %v6973_v8 = vrot.slane %v18157_v36, %v19517_v44  ;;  %v6977_v30 = vrot.slane %v18157_v36, %v19974_v48 }
 0x4ab   :  { %v7143_v21 = vpop.permute.xlu0 %7142  ;;  %v6678_v39 = vmul.f32 %v6608_v56, %v6437_v46  ;;  %v6679_v59 = vmul.f32 %v6612_v40, %v6438_v25  ;;  %11214 = vmatprep.subr.bf16.mxu1 %v11213_v29  ;;  %v8657_v20 = vpop.f32.mrb[12].mxu0  ;;  %v6985_v56 = vrot.slane %v18157_v36, %v20389_v4  ;;  %v7715_v36 = vrot.slane %v18200_v16, %v19974_v48  ;;  %v20429_v46 = vld [vmem:[#allocation23_spill] sm:$0xff] }
 0x4ac   :  { %11216 = vmatpush1.bf16.msra.mxu1 %v11215_v5  ;;  %v8659_v27 = vpop.f32.mrb[13].mxu0  ;;  %v7723_v29 = vrot.slane %v18200_v16, %v20389_v4  ;;  %vm9547_vm4 = vcmask 80896  }
 0x4ad   :  { %v11219_v49 = vpack.c.bf16 %v6679_v59, %v6310_v53  ;;  %11218 = vmatprep.subr.bf16.mxu1 %v11217_v35  ;;  %v6772_v26 = vpop.permute.xlu1 %6771  ;;  %v11201_v41 = vpack.c.bf16 %v6678_v39, %v6309_v15 }
 0x4ae   :  { %v6805_v33 = vsel %vm3190_vm5, %v18176_v60, %v6772_v26  ;;  %v6806_v52 = vsel %vm3190_vm5, %v6772_v26, %v18298_v3  ;;  %v7354_v60 = vrot.slane %v18150_v9, %v20389_v4 }
 0x4af   :  { %v7145_v38 = vpop.permute.xlu0 %7144  ;;  %11202 = vmatprep.subr.bf16.mxu0 %v11201_v41  ;;  %v18322_v47 = vpop.f32.mrb[14].mxu0  ;;  %v7046_v40 = vmul.f32 %v6973_v8, %v6805_v33  ;;  %v7047_v45 = vmul.f32 %v6977_v30, %v6806_v52 }
 0x4b0   :  { %11204 = vmatpush1.bf16.msra.mxu0 %v11203_v13  ;;  %11220 = vmatpush1.bf16.msra.mxu1 %v11219_v49  ;;  %v18324_v10 = vpop.f32.mrb[15].mxu0  ;;  %v7176_v42 = vsel %vm3728_vm6, %v7143_v21, %v7145_v38  ;;  %v7210_v9 = vsel %vm3728_vm6, %v7145_v38, %v20428_v23 }
 0x4b1   :  { %v7141_v58 = vpop.permute.xlu1 %7140  ;;  %v7417_v32 = vmul.f32 %v7350_v14, %v7176_v42  ;;  %v7418_v6 = vmul.f32 %v7354_v60, %v7210_v9 }
 0x4b2   :  { %v7174_v43 = vsel %vm3728_vm6, %v18190_v51, %v7141_v58  ;;  %v7175_v24 = vsel %vm3728_vm6, %v7141_v58, %v7143_v21  ;;  %v7719_v51 = vrot.slane %v18200_v16, %v19680_v62  ;;  %vm9556_vm6 = vcmask 105472  }
 0x4b3   :  { %v7512_v37 = vpop.permute.xlu0 %7511  ;;  %v7415_v11 = vmul.f32 %v7342_v17, %v7174_v43  ;;  %v7416_v0 = vmul.f32 %v7346_v1, %v7175_v24 }
 0x4b5   :  { %v11207_v19 = vpack.c.bf16 %v7415_v11, %v7046_v40  ;;  %v6776_v5 = vpop.permute.xlu1 %6775  ;;  %v11205_v55 = vpack.c.bf16 %v7416_v0, %v7047_v45  ;;  %v20430_v45 = vld [vmem:[#allocation138_spill] sm:$0xff] }
 0x4b6   :  { %v6807_v53 = vsel %vm3190_vm5, %v18298_v3, %v6776_v5  ;;  %v6841_v44 = vsel %vm3190_vm5, %v6776_v5, %v20429_v46  ;;  %v8734_v48 = vpop.f32.mrb[12].mxu1  ;;  %vm9553_vm5 = vcmask 97280  }
 0x4b7   :  { %v18352_v25 = vpop.permute.xlu0 %8114  ;;  %v7048_v21 = vmul.f32 %v6981_v63, %v6807_v53  ;;  %v7049_v39 = vmul.f32 %v6985_v56, %v6841_v44  ;;  %v8736_v35 = vpop.f32.mrb[13].mxu1  ;;  %11206 = vmatprep.subr.bf16.mxu0 %v11205_v55  ;;  %v20432_v55 = vld [vmem:[#allocation49_spill] sm:$0xff]  ;;  %v20434_v53 = vld [vmem:[#allocation106_spill] sm:$0xff] }
 0x4b8   :  { %v8658_v59 = vadd.f32 %v8657_v20, %v18352_v25  ;;  %v8660_v62 = vadd.f32 %v8659_v27, %v18352_v25  ;;  %v8735_v4 = vadd.f32 %v8734_v48, %v18352_v25  ;;  %v8737_v16 = vadd.f32 %v8736_v35, %v18352_v25  ;;  %11208 = vmatpush1.bf16.msra.mxu0 %v11207_v19  ;;  %v20436_v48 = vld [vmem:[#allocation91_spill] sm:$0xff] }
 0x4b9   :  { %v8273_v3 = vadd.f32 %v17868_v31, %v18352_v25  ;;  %v8275_v15 = vadd.f32 %v17878_v22, %v18352_v25  ;;  %v11223_v28 = vpack.c.bf16 %v7417_v32, %v7048_v21  ;;  %v7510_v41 = vpop.permute.xlu1 %7509  ;;  %v11221_v20 = vpack.c.bf16 %v7418_v6, %v7049_v39  ;;  %v20433_v32 = vld [vmem:[#allocation186_spill] sm:$0xff] }
 0x4ba   :  { %v9373_v49 = vmax.f32 %v8658_v59, 0.0  ;;  %v9374_v26 = vmax.f32 %v8660_v62, 0.0  ;;  %v9375_v13 = vmax.f32 %v8735_v4, 0.0  ;;  %v9376_v27 = vmax.f32 %v8737_v16, 0.0  ;;  %v11390_v59 = vld [vmem:[%s18636_s4 + $0x8] sm:$0xff] }
 0x4bb   :  { %v7543_v8 = vsel %vm4266_vm7, %v18239_v12, %v7510_v41  ;;  %v7544_v30 = vsel %vm4266_vm7, %v7510_v41, %v7512_v37  ;;  %v8740_v38 = vpop.f32.mrb[14].mxu1  ;;  %11222 = vmatprep.subr.bf16.mxu1 %v11221_v20  ;;  %v9363_v17 = vmax.f32 %v8273_v3, 0.0  ;;  %v9364_v14 = vmax.f32 %v8275_v15, 0.0  ;;  %v20437_v4 = vld [vmem:[#allocation193_spill] sm:$0xff] }
 0x4bc   :  { %v18365_v33 = vadd.f32 %v9374_v26, %v9373_v49  ;;  %v7784_v52 = vmul.f32 %v7711_v54, %v7543_v8  ;;  %v7785_v31 = vmul.f32 %v7715_v36, %v7544_v30  ;;  %v8742_v22 = vpop.f32.mrb[15].mxu1  ;;  %v18367_v1 = vadd.f32 %v9376_v27, %v9375_v13  ;;  %11224 = vmatpush1.bf16.msra.mxu1 %v11223_v28 }
 0x4bd   :  { %v8196_v60 = vadd.f32 %v17834_v61, %v18352_v25  ;;  %v8198_v12 = vadd.f32 %v17858_v18, %v18352_v25  ;;  %v7514_v58 = vpop.permute.xlu1 %7513  ;;  %v8350_v63 = vadd.f32 %v17896_v34, %v18352_v25  ;;  %v8352_v56 = vadd.f32 %v17904_v7, %v18352_v25  ;;  %v20431_v18 = vld [vmem:[#allocation94_spill] sm:$0xff]  ;;  %v11389_v34 = vld [vmem:[%s18636_s4] sm:$0xff] }
 0x4be   :  { %9223 = vmatprep.subr.mxu0 %v7785_v31  ;;  %v8427_v40 = vadd.f32 %v17906_v57, %v18352_v25  ;;  %v8429_v43 = vadd.f32 %v20430_v45, %v18352_v25  ;;  %v9431_v24 = vadd.f32 %v9364_v14, %v9363_v17  ;;  %v7545_v23 = vsel %vm4266_vm7, %v7512_v37, %v7514_v58  ;;  %v20438_v31 = vld [vmem:[#allocation74_spill] sm:$0xff] }
 0x4bf   :  { %v9361_v42 = vmax.f32 %v8196_v60, 0.0  ;;  %v9362_v61 = vmax.f32 %v8198_v12, 0.0  ;;  %9224 = vmatpush1.msra.mxu0 %v7784_v52  ;;  %v7579_v9 = vsel %vm4266_vm7, %v7514_v58, %v20431_v18  ;;  %v7786_v11 = vmul.f32 %v7719_v51, %v7545_v23  ;;  %v20439_v12 = vld [vmem:[#allocation167_spill] sm:$0xff] }
 0x4c0   :  { %10790 = vmatmul.mubr.msk.f32.vlgmr.msra.gmra.mrb[28].mxu0 %vm8122_vm8, %v11389_v34  ;;  %v9365_v7 = vmax.f32 %v8350_v63, 0.0  ;;  %v9366_v57 = vmax.f32 %v8352_v56, 0.0  ;;  %9432 = vadd.xlane.f32.xlu0 %v9431_v24  ;;  %v7787_v54 = vmul.f32 %v7723_v29, %v7579_v9  ;;  %v9367_v36 = vmax.f32 %v8427_v40, 0.0  ;;  %v20435_v29 = vld [vmem:[#allocation29_spill] sm:$0xff]  ;;  %v20441_v56 = vld [vmem:[#allocation178_spill] sm:$0xff] }
 0x4c1   :  { %v9425_v0 = vadd.f32 %v9362_v61, %v9361_v42  ;;  %9277 = vmatprep.mubr.f32.mxu0 %v20337_v50  ;;  %v9368_v37 = vmax.f32 %v8429_v43, 0.0  ;;  %v8504_v51 = vadd.f32 %v20432_v55, %v18352_v25  ;;  %v8506_v6 = vadd.f32 %v20433_v32, %v18352_v25  ;;  %v20442_v24 = vld [vmem:[#allocation81_spill] sm:$0xff]  ;;  %v20443_v61 = vld [vmem:[#allocation180_spill] sm:$0xff] }
 0x4c2   :  { %v9437_v19 = vadd.f32 %v9366_v57, %v9365_v7  ;;  %v18389_v5 = vpop.permute.xlu1 %8119  ;;  %v8581_v46 = vadd.f32 %v20434_v53, %v18352_v25  ;;  %9300 = vmatprep.subr.mxu1 %v7787_v54  ;;  %v8583_v16 = vadd.f32 %v20437_v4, %v18352_v25  ;;  %v20445_v7 = vld [vmem:[#allocation196_spill] sm:$0xff]  ;;  %v20446_v32 = vld [vmem:[#allocation197_spill] sm:$0xff]  ;;  %vm9559_vm7 = vcmask 113664  }
 0x4c3   :  { %9426 = vadd.xlane.f32.xlu1 %v9425_v0  ;;  %v8202_v44 = vadd.f32 %v20435_v29, %v18389_v5  ;;  %v8204_v21 = vadd.f32 %v20436_v48, %v18389_v5  ;;  %v9443_v39 = vadd.f32 %v9368_v37, %v9367_v36  ;;  %9301 = vmatpush1.msra.mxu1 %v7786_v11  ;;  %v9369_v62 = vmax.f32 %v8504_v51, 0.0  ;;  %v20444_v11 = vld [vmem:[#allocation77_spill] sm:$0xff] }
 0x4c4   :  { %10791 = vmatmul.mubr.msk.f32.gmra.mrb[30].mxu0 %vm8122_vm8, %v11390_v59  ;;  %v9370_v35 = vmax.f32 %v8506_v6, 0.0  ;;  %v9371_v3 = vmax.f32 %v8581_v46, 0.0  ;;  %9438 = vadd.xlane.f32.xlu0 %v9437_v19  ;;  %v8664_v49 = vadd.f32 %v18322_v47, %v18389_v5  ;;  %v8666_v26 = vadd.f32 %v18324_v10, %v18389_v5 }
 0x4c5   :  { %10792 = vmatmul.mubr.msk.f32.vlgmr.msra.gmra.mrb[28].mxu1 %vm8122_vm8, %v11389_v34  ;;  %v9393_v15 = vmax.f32 %v8202_v44, 0.0  ;;  %v9394_v28 = vmax.f32 %v8204_v21, 0.0  ;;  %v9372_v20 = vmax.f32 %v8583_v16, 0.0  ;;  %v8741_v13 = vadd.f32 %v8740_v38, %v18389_v5  ;;  %v20440_v38 = vld [vmem:[#allocation173_spill] sm:$0xff] }
 0x4c6   :  { %9354 = vmatprep.mubr.f32.mxu1 %v20337_v50  ;;  %v9449_v41 = vadd.f32 %v9370_v35, %v9369_v62  ;;  %v8743_v27 = vadd.f32 %v8742_v22, %v18389_v5  ;;  %v9405_v30 = vmax.f32 %v8664_v49, 0.0  ;;  %v9406_v52 = vmax.f32 %v8666_v26, 0.0 }
 0x4c7   :  { %v9428_v8 = vadd.f32 %v9394_v28, %v9393_v15  ;;  %v8279_v17 = vadd.f32 %v20438_v31, %v18389_v5  ;;  %v9455_v14 = vadd.f32 %v9372_v20, %v9371_v3  ;;  %v9407_v60 = vmax.f32 %v8741_v13, 0.0 }
 0x4c8   :  { %v9408_v47 = vmax.f32 %v8743_v27, 0.0  ;;  %v8281_v10 = vadd.f32 %v20439_v12, %v18389_v5  ;;  %v9464_v58 = vadd.f32 %v9406_v52, %v9405_v30  ;;  %v8356_v22 = vadd.f32 %v20440_v38, %v18389_v5 }
 0x4c9   :  { %10793 = vmatmul.mubr.msk.f32.gmra.mrb[30].mxu1 %vm8122_vm8, %v11390_v59  ;;  %9429 = vadd.xlane.f32.xlu1 %v9428_v8  ;;  %v9395_v63 = vmax.f32 %v8279_v17, 0.0  ;;  %v8358_v40 = vadd.f32 %v20441_v56, %v18389_v5  ;;  %v8433_v42 = vadd.f32 %v20442_v24, %v18389_v5  ;;  %v8435_v23 = vadd.f32 %v20443_v61, %v18389_v5 }
 0x4ca   :  { %v9470_v45 = vadd.f32 %v9408_v47, %v9407_v60  ;;  %v9396_v43 = vmax.f32 %v8281_v10, 0.0  ;;  %v9397_v18 = vmax.f32 %v8356_v22, 0.0  ;;  %v8510_v34 = vadd.f32 %v20444_v11, %v18389_v5 }
 0x4cb   :  { %v9398_v9 = vmax.f32 %v8358_v40, 0.0  ;;  %v8512_v57 = vadd.f32 %v20445_v7, %v18389_v5  ;;  %v9399_v54 = vmax.f32 %v8433_v42, 0.0  ;;  %v9400_v36 = vmax.f32 %v8435_v23, 0.0 }
 0x4cc   :  { %v9434_v0 = vadd.f32 %v9396_v43, %v9395_v63  ;;  %v8587_v37 = vadd.f32 %v18155_v2, %v18389_v5  ;;  %v9401_v55 = vmax.f32 %v8510_v34, 0.0  ;;  %v8589_v6 = vadd.f32 %v20446_v32, %v18389_v5 }
 0x4cd   :  { %9444 = vadd.xlane.f32.xlu1 %v9443_v39  ;;  %v9440_v19 = vadd.f32 %v9398_v9, %v9397_v18  ;;  %v9402_v51 = vmax.f32 %v8512_v57, 0.0  ;;  %v9446_v53 = vadd.f32 %v9400_v36, %v9399_v54  ;;  %vm11410_vm8 = vmmov 0  }
 0x4ce   :  { %9435 = vadd.xlane.f32.xlu0 %v9434_v0  ;;  %v9403_v46 = vmax.f32 %v8587_v37, 0.0  ;;  %v9404_v44 = vmax.f32 %v8589_v6, 0.0  ;;  %10878 = vmatprep.mubr.msk.f32.mxu1 %vm11410_vm8, %v20337_v50 }
 0x4cf   :  { %v9452_v29 = vadd.f32 %v9402_v51, %v9401_v55 }
 0x4d0   :  { %v9458_v48 = vadd.f32 %v9404_v44, %v9403_v46 }
 0x4d1   :  { %9450 = vadd.xlane.f32.xlu1 %v9449_v41 }
 0x4d2   :  { %9441 = vadd.xlane.f32.xlu0 %v9440_v19 }
 0x4d5   :  { %9456 = vadd.xlane.f32.xlu1 %v9455_v14 }
 0x4d6   :  { %9447 = vadd.xlane.f32.xlu0 %v9446_v53 }
 0x4d9   :  { %9462 = vadd.xlane.f32.xlu1 %v18365_v33 }
 0x4da   :  { %9453 = vadd.xlane.f32.xlu0 %v9452_v29 }
 0x4dd   :  { %9468 = vadd.xlane.f32.xlu1 %v18367_v1 }
 0x4de   :  { %9459 = vadd.xlane.f32.xlu0 %v9458_v48 }
 0x4e2   :  { %9465 = vadd.xlane.f32.xlu0 %v9464_v58 }
 0x4e6   :  { %9471 = vadd.xlane.f32.xlu0 %v9470_v45 }
 0x4ea   :  { %v8811_v2 = vpop.f32.mrb[16].mxu0 }
 0x4eb   :  { %v8812_v21 = vadd.f32 %v8811_v2, %v18352_v25  ;;  %v8813_v39 = vpop.f32.mrb[17].mxu0 }
 0x4ec   :  { %v8814_v59 = vadd.f32 %v8813_v39, %v18352_v25 }
 0x4ed   :  { %v9377_v62 = vmax.f32 %v8812_v21, 0.0 }
 0x4ee   :  { %v9378_v35 = vmax.f32 %v8814_v59, 0.0  ;;  %v8817_v4 = vpop.f32.mrb[18].mxu0 }
 0x4ef   :  { %v8818_v16 = vadd.f32 %v8817_v4, %v18389_v5  ;;  %v8819_v3 = vpop.f32.mrb[19].mxu0 }
 0x4f0   :  { %v9473_v15 = vadd.f32 %v9378_v35, %v9377_v62  ;;  %v8820_v33 = vadd.f32 %v8819_v3, %v18389_v5 }
 0x4f1   :  { %v9409_v28 = vmax.f32 %v8818_v16, 0.0 }
 0x4f2   :  { %9474 = vadd.xlane.f32.xlu1 %v9473_v15  ;;  %v9410_v1 = vmax.f32 %v8820_v33, 0.0 }
 0x4f4   :  { %v9476_v49 = vadd.f32 %v9410_v1, %v9409_v28 }
 0x4f6   :  { %v8888_v26 = vpop.f32.mrb[16].mxu1  ;;  %9477 = vadd.xlane.f32.xlu0 %v9476_v49 }
 0x4f7   :  { %v8889_v41 = vadd.f32 %v8888_v26, %v18352_v25  ;;  %v8890_v20 = vpop.f32.mrb[17].mxu1 }
 0x4f8   :  { %v8891_v13 = vadd.f32 %v8890_v20, %v18352_v25 }
 0x4f9   :  { %v9379_v27 = vmax.f32 %v8889_v41, 0.0 }
 0x4fa   :  { %v9380_v8 = vmax.f32 %v8891_v13, 0.0  ;;  %v8894_v30 = vpop.f32.mrb[18].mxu1 }
 0x4fb   :  { %v8895_v52 = vadd.f32 %v8894_v30, %v18389_v5  ;;  %v8896_v31 = vpop.f32.mrb[19].mxu1 }
 0x4fc   :  { %v9479_v17 = vadd.f32 %v9380_v8, %v9379_v27  ;;  %v8897_v14 = vadd.f32 %v8896_v31, %v18389_v5 }
 0x4fd   :  { %v9411_v60 = vmax.f32 %v8895_v52, 0.0 }
 0x4fe   :  { %9480 = vadd.xlane.f32.xlu1 %v9479_v17  ;;  %v9412_v47 = vmax.f32 %v8897_v14, 0.0 }
 0x500   :  { %v9482_v12 = vadd.f32 %v9412_v47, %v9411_v60 }
 0x502   :  { %9483 = vadd.xlane.f32.xlu0 %v9482_v12 }
 0x52a   :  { %v8965_v10 = vpop.f32.mrb[20].mxu0 }
 0x52b   :  { %v8966_v58 = vadd.f32 %v8965_v10, %v18352_v25  ;;  %v8967_v63 = vpop.f32.mrb[21].mxu0 }
 0x52c   :  { %v8968_v38 = vadd.f32 %v8967_v63, %v18352_v25 }
 0x52d   :  { %v9381_v22 = vmax.f32 %v8966_v58, 0.0 }
 0x52e   :  { %v9382_v56 = vmax.f32 %v8968_v38, 0.0  ;;  %v8971_v40 = vpop.f32.mrb[22].mxu0 }
 0x52f   :  { %v8972_v45 = vadd.f32 %v8971_v40, %v18389_v5  ;;  %v8973_v43 = vpop.f32.mrb[23].mxu0 }
 0x530   :  { %v9485_v24 = vadd.f32 %v9382_v56, %v9381_v22  ;;  %v8974_v42 = vadd.f32 %v8973_v43, %v18389_v5 }
 0x531   :  { %v9413_v61 = vmax.f32 %v8972_v45, 0.0 }
 0x532   :  { %v9414_v23 = vmax.f32 %v8974_v42, 0.0  ;;  %9486 = vadd.xlane.f32.xlu1 %v9485_v24 }
 0x534   :  { %v9488_v18 = vadd.f32 %v9414_v23, %v9413_v61 }
 0x536   :  { %v9042_v9 = vpop.f32.mrb[20].mxu1  ;;  %9489 = vadd.xlane.f32.xlu0 %v9488_v18 }
 0x537   :  { %v9043_v11 = vadd.f32 %v9042_v9, %v18352_v25  ;;  %v9044_v34 = vpop.f32.mrb[21].mxu1 }
 0x538   :  { %v9045_v7 = vadd.f32 %v9044_v34, %v18352_v25 }
 0x539   :  { %v9383_v57 = vmax.f32 %v9043_v11, 0.0 }
 0x53a   :  { %v9384_v0 = vmax.f32 %v9045_v7, 0.0  ;;  %v9048_v54 = vpop.f32.mrb[22].mxu1 }
 0x53b   :  { %v9049_v36 = vadd.f32 %v9048_v54, %v18389_v5  ;;  %v9050_v37 = vpop.f32.mrb[23].mxu1 }
 0x53c   :  { %v9491_v19 = vadd.f32 %v9384_v0, %v9383_v57  ;;  %v9051_v55 = vadd.f32 %v9050_v37, %v18389_v5 }
 0x53d   :  { %v9415_v51 = vmax.f32 %v9049_v36, 0.0 }
 0x53e   :  { %v9416_v32 = vmax.f32 %v9051_v55, 0.0  ;;  %9492 = vadd.xlane.f32.xlu1 %v9491_v19  ;;  %v9599_v19 = vld [vmem:[%s18638_s6 + $0x8] sm:$0xff]  ;;  %v11409_v55 = vmov 0.0|0.0  }
 0x53f   :  { %11229 = vmatprep.subr.bf16.mxu1 %v11409_v55 }
 0x540   :  { %v9494_v6 = vadd.f32 %v9416_v32, %v9415_v51  ;;  %v9689_v32 = vld [vmem:[%s18639_s7 + $0x8] sm:$0xff] }
 0x542   :  { %9495 = vadd.xlane.f32.xlu0 %v9494_v6 }
 0x56a   :  { %v9119_v53 = vpop.f32.mrb[24].mxu0 }
 0x56b   :  { %v9120_v46 = vadd.f32 %v9119_v53, %v18352_v25  ;;  %v9121_v29 = vpop.f32.mrb[25].mxu0  ;;  %v9433_v53 = vpop.xlane.xlu0 %9432 }
 0x56c   :  { %v9122_v44 = vadd.f32 %v9121_v29, %v18352_v25 }
 0x56d   :  { %v9385_v48 = vmax.f32 %v9120_v46, 0.0 }
 0x56e   :  { %v9386_v2 = vmax.f32 %v9122_v44, 0.0  ;;  %v9125_v21 = vpop.f32.mrb[26].mxu0  ;;  %v9427_v44 = vpop.xlane.xlu1 %9426 }
 0x56f   :  { %v9126_v39 = vadd.f32 %v9125_v21, %v18389_v5  ;;  %v9127_v59 = vpop.f32.mrb[27].mxu0  ;;  %v9439_v46 = vpop.xlane.xlu0 %9438 }
 0x570   :  { %v9497_v62 = vadd.f32 %v9386_v2, %v9385_v48  ;;  %v9128_v35 = vadd.f32 %v9127_v59, %v18389_v5 }
 0x571   :  { %v9417_v4 = vmax.f32 %v9126_v39, 0.0 }
 0x572   :  { %v9418_v16 = vmax.f32 %v9128_v35, 0.0  ;;  %v9196_v3 = vpop.f32.mrb[24].mxu1  ;;  %9498 = vadd.xlane.f32.xlu1 %v9497_v62  ;;  %v9430_v48 = vpop.xlane.xlu1 %9429 }
 0x573   :  { %v9197_v15 = vadd.f32 %v9196_v3, %v18352_v25  ;;  %v9198_v33 = vpop.f32.mrb[25].mxu1  ;;  %v9436_v29 = vpop.xlane.xlu0 %9435 }
 0x574   :  { %v9500_v28 = vadd.f32 %v9418_v16, %v9417_v4  ;;  %v9199_v1 = vadd.f32 %v9198_v33, %v18352_v25 }
 0x575   :  { %v9387_v49 = vmax.f32 %v9197_v15, 0.0 }
 0x576   :  { %v9388_v26 = vmax.f32 %v9199_v1, 0.0  ;;  %v9202_v41 = vpop.f32.mrb[26].mxu1  ;;  %9501 = vadd.xlane.f32.xlu0 %v9500_v28  ;;  %v9445_v21 = vpop.xlane.xlu1 %9444 }
 0x577   :  { %v9203_v20 = vadd.f32 %v9202_v41, %v18389_v5  ;;  %v9204_v13 = vpop.f32.mrb[27].mxu1  ;;  %v9442_v2 = vpop.xlane.xlu0 %9441 }
 0x578   :  { %v9503_v27 = vadd.f32 %v9388_v26, %v9387_v49  ;;  %v9205_v8 = vadd.f32 %v9204_v13, %v18389_v5  ;;  %v9522_v26 = vsel %vm1863_vm3, %v9430_v48, %v9436_v29  ;;  %v9690_v29 = vld [vmem:[%s18639_s7 + $0x10] sm:$0xff] }
 0x579   :  { %v9419_v30 = vmax.f32 %v9203_v20, 0.0  ;;  %v9525_v41 = vsel %vm9523_vm9, %v9522_v26, %v9442_v2 }
 0x57a   :  { %v9420_v52 = vmax.f32 %v9205_v8, 0.0  ;;  %9504 = vadd.xlane.f32.xlu1 %v9503_v27  ;;  %v9451_v59 = vpop.xlane.xlu1 %9450 }
 0x57b   :  { %v9448_v39 = vpop.xlane.xlu0 %9447 }
 0x57c   :  { %v9506_v31 = vadd.f32 %v9420_v52, %v9419_v30  ;;  %v9528_v27 = vsel %vm9526_vm10, %v9525_v41, %v9448_v39 }
 0x57e   :  { %9507 = vadd.xlane.f32.xlu0 %v9506_v31  ;;  %v9457_v35 = vpop.xlane.xlu1 %9456  ;;  %v9521_v31 = vsel %vm1863_vm3, %v9427_v44, %v9433_v53  ;;  %vm9550_vm3 = vcmask 89088   ;;  %v9691_v44 = vld [vmem:[%s18639_s7 + $0x18] sm:$0xff] }
 0x57f   :  { %v9454_v62 = vpop.xlane.xlu0 %9453  ;;  %v18506_v2 = vpack.c.bf16 %v9691_v44, %v9690_v29 }
 0x580   :  { %v9531_v30 = vsel %vm9529_vm11, %v9528_v27, %v9454_v62 }
 0x582   :  { %v9463_v16 = vpop.xlane.xlu1 %9462 }
 0x583   :  { %v9460_v4 = vpop.xlane.xlu0 %9459 }
 0x586   :  { %v9469_v15 = vpop.xlane.xlu1 %9468 }
 0x587   :  { %v9466_v3 = vpop.xlane.xlu0 %9465 }
 0x58a   :  { %v9475_v28 = vpop.xlane.xlu1 %9474 }
 0x58b   :  { %v9472_v33 = vpop.xlane.xlu0 %9471 }
 0x58e   :  { %v9481_v49 = vpop.xlane.xlu1 %9480 }
 0x58f   :  { %v9478_v1 = vpop.xlane.xlu0 %9477 }
 0x593   :  { %v9273_v17 = vpop.f32.mrb[28].mxu0  ;;  %v9484_v20 = vpop.xlane.xlu0 %9483 }
 0x594   :  { %v9274_v14 = vadd.f32 %v9273_v17, %v18352_v25  ;;  %v9275_v60 = vpop.f32.mrb[29].mxu0  ;;  %v9534_v17 = vsel %vm9532_vm12, %v9531_v30, %v9460_v4 }
 0x595   :  { %v9276_v47 = vadd.f32 %v9275_v60, %v18352_v25  ;;  %v9524_v60 = vsel %vm9523_vm9, %v9521_v31, %v9439_v46 }
 0x596   :  { %v9389_v12 = vmax.f32 %v9274_v14, 0.0 }
 0x597   :  { %v9390_v10 = vmax.f32 %v9276_v47, 0.0  ;;  %v9279_v58 = vpop.f32.mrb[30].mxu0  ;;  %v9527_v47 = vsel %vm9526_vm10, %v9524_v60, %v9445_v21 }
 0x598   :  { %v9280_v63 = vadd.f32 %v9279_v58, %v18389_v5  ;;  %v9350_v38 = vpop.f32.mrb[28].mxu1  ;;  %v9281_v22 = vpop.f32.mrb[31].mxu0  ;;  %v9537_v58 = vsel %vm9535_vm13, %v9534_v17, %v9466_v3 }
 0x599   :  { %v9509_v56 = vadd.f32 %v9390_v10, %v9389_v12  ;;  %v9351_v40 = vadd.f32 %v9350_v38, %v18352_v25  ;;  %v9282_v45 = vadd.f32 %v9281_v22, %v18389_v5  ;;  %v9352_v43 = vpop.f32.mrb[29].mxu1  ;;  %v9530_v10 = vsel %vm9529_vm11, %v9527_v47, %v9451_v59 }
 0x59a   :  { %v9421_v24 = vmax.f32 %v9280_v63, 0.0  ;;  %v9353_v42 = vadd.f32 %v9352_v43, %v18352_v25  ;;  %v9598_v25 = vld [vmem:[%s18638_s6] sm:$0xff]  ;;  %v9533_v63 = vsel %vm9532_vm12, %v9530_v10, %v9457_v35 }
 0x59b   :  { %v9391_v61 = vmax.f32 %v9351_v40, 0.0  ;;  %v9422_v23 = vmax.f32 %v9282_v45, 0.0  ;;  %9510 = vadd.xlane.f32.xlu1 %v9509_v56  ;;  %v11225_v51 = vpack.c.bf16 %v9599_v19, %v9598_v25  ;;  %v9536_v22 = vsel %vm9535_vm13, %v9533_v63, %v9463_v16  ;;  %v10794_v35 = vld [vmem:[%s18640_s8] ss:$0 sm:$0xff]  ;;  %s11412_s8 = smov 32  }
 0x59c   :  { %v9392_v18 = vmax.f32 %v9353_v42, 0.0  ;;  %v9356_v9 = vpop.f32.mrb[30].mxu1  ;;  %v9539_v56 = vsel %vm9538_vm14, %v9536_v22, %v9469_v15  ;;  %v9540_v40 = vsel %vm9538_vm14, %v9537_v58, %v9472_v33 }
 0x59d   :  { %v9512_v11 = vadd.f32 %v9422_v23, %v9421_v24  ;;  %v9357_v34 = vadd.f32 %v9356_v9, %v18389_v5  ;;  %v9358_v7 = vpop.f32.mrb[31].mxu1  ;;  %11226 = vmatprep.subr.bf16.mxu0 %v11225_v51  ;;  %v9542_v43 = vsel %vm9541_vm15, %v9539_v56, %v9475_v28 }
 0x59e   :  { %v9515_v57 = vadd.f32 %v9392_v18, %v9391_v61  ;;  %v9359_v0 = vadd.f32 %v9358_v7, %v18389_v5  ;;  %v9688_v5 = vld [vmem:[%s18639_s7] sm:$0xff]  ;;  %11228 = vmatpush3.bf16.msra.mxu0 %v11225_v51  ;;  %v9545_v24 = vsel %vm9544_vm1, %v9542_v43, %v9481_v49  ;;  %v9543_v61 = vsel %vm9541_vm15, %v9540_v40, %v9478_v1 }
 0x59f   :  { %v9423_v54 = vmax.f32 %v9357_v34, 0.0  ;;  %9513 = vadd.xlane.f32.xlu0 %v9512_v11  ;;  %v18483_v6 = vpack.c.bf16 %v9689_v32, %v9688_v5  ;;  %11235 = vmatprep.subr.bf16.mxu0 %v11409_v55  ;;  %v9546_v34 = vsel %vm9544_vm1, %v9543_v61, %v9484_v20 }
 0x5a0   :  { %v9424_v36 = vmax.f32 %v9359_v0, 0.0  ;;  %9516 = vadd.xlane.f32.xlu1 %v9515_v57 }
 0x5a1   :  { %11231 = vmatpush3.bf16.msra.mxu1 %v18483_v6 }
 0x5a2   :  { %v9518_v37 = vadd.f32 %v9424_v36, %v9423_v54  ;;  %11232 = vmatprep.subr.bf16.mxu1 %v11409_v55 }
 0x5a4   :  { %9519 = vadd.xlane.f32.xlu1 %v9518_v37 }
 0x5a5   :  { %11234 = vmatpush3.bf16.msra.mxu1 %v18506_v2 }
 0x5a6   :  { %11241 = vmatprep.subr.bf16.mxu1 %v11409_v55 }
 0x5a8   :  { %10879 = vmatmul.mubr.f32.vlgmr.msra.gmra.mrb[32].mxu1 %v20337_v50 }
 0x5a9   :  { %11243 = vmatpush3.bf16.msra.mxu1 %v18483_v6  ;;  %10900 = vmatprep.mubr.msk.f32.mxu1 %vm11410_vm8, %v20337_v50 }
 0x5aa   :  { %11244 = vmatprep.subr.bf16.mxu1 %v11409_v55 }
 0x5ad   :  { %11246 = vmatpush3.bf16.msra.mxu1 %v18506_v2 }
 0x5ae   :  { %11253 = vmatprep.subr.bf16.mxu1 %v11409_v55 }
 0x5bf   :  { %v9487_v13 = vpop.xlane.xlu1 %9486 }
 0x5c0   :  { %v9548_v23 = vsel %vm9547_vm4, %v9545_v24, %v9487_v13 }
 0x5c3   :  { %v9490_v52 = vpop.xlane.xlu0 %9489 }
 0x5c4   :  { %v9549_v57 = vsel %vm9547_vm4, %v9546_v34, %v9490_v52 }
 0x5cb   :  { %v9493_v8 = vpop.xlane.xlu1 %9492 }
 0x5cc   :  { %v9551_v18 = vsel %vm9550_vm3, %v9548_v23, %v9493_v8 }
 0x5cf   :  { %v9496_v12 = vpop.xlane.xlu0 %9495 }
 0x5d0   :  { %v9552_v36 = vsel %vm9550_vm3, %v9549_v57, %v9496_v12 }
 0x5ff   :  { %v9499_v14 = vpop.xlane.xlu1 %9498 }
 0x600   :  { %v9554_v11 = vsel %vm9553_vm5, %v9551_v18, %v9499_v14 }
 0x603   :  { %v9502_v45 = vpop.xlane.xlu0 %9501 }
 0x604   :  { %v9555_v19 = vsel %vm9553_vm5, %v9552_v36, %v9502_v45 }
 0x607   :  { %v9505_v38 = vpop.xlane.xlu1 %9504 }
 0x608   :  { %v9557_v7 = vsel %vm9556_vm6, %v9554_v11, %v9505_v38 }
 0x60b   :  { %v9508_v9 = vpop.xlane.xlu0 %9507 }
 0x60c   :  { %v9558_v51 = vsel %vm9556_vm6, %v9555_v19, %v9508_v9 }
 0x628   :  { %v9511_v42 = vpop.xlane.xlu1 %9510 }
 0x629   :  { %v9560_v0 = vsel %vm9559_vm7, %v9557_v7, %v9511_v42 }
 0x62c   :  { %v9514_v37 = vpop.xlane.xlu0 %9513 }
 0x62d   :  { %v9517_v54 = vpop.xlane.xlu1 %9516  ;;  %v9561_v32 = vsel %vm9559_vm7, %v9558_v51, %v9514_v37 }
 0x62e   :  { %v9562_v25 = vsel %vm1325_vm2, %v9560_v0, %v9517_v54 }
 0x62f   :  { %v9564_v5 = vmul.f32 0.00390625, %v9562_v25 }
 0x631   :  { %9566 = vxpose.xlu0.b32.start [1/2] (short) (narrow) %v9564_v5, 16  ;;  %v9520_v53 = vpop.xlane.xlu1 %9519 }
 0x632   :  { %v9563_v46 = vsel %vm1325_vm2, %v9561_v32, %v9520_v53  ;;  %vm10622_vm2 = vcmask 1024  }
 0x633   :  { %v9565_v48 = vmul.f32 0.00390625, %v9563_v46 }
 0x635   :  { %9567 = vxpose.xlu0.b32.end [2/2] (short) (narrow) %v9565_v48, 16 }
 0x67b   :  { %v9762_v59 = vpop.f32.mrb[32].mxu1 }
 0x67c   :  { %v10880_v62 = vpop.f32.mrb[33].mxu1 }
 0x6b1   :  { %v9582_v21 = vpop.trf.xlu0 }
 0x6b2   :  { %10867 = vmatprep.mubr.msk.f32.mxu0 %vm787_vm0, %v9582_v21 }
 0x6b5   :  { %v9583_v39 = vpop.trf.xlu0 }
 0x6b6   :  { %10868 = vmatmul.mubr.msk.f32.vlgmr.msra.gmra.mrb[32].mxu0 %vm787_vm0, %v9583_v39  ;;  %vm9692_vm0 = vcmask 261120  }
 0x6b7   :  { %11237 = vmatpush3.bf16.msra.mxu0 %v18483_v6  ;;  %10889 = vmatprep.mubr.msk.f32.mxu0 %vm11410_vm8, %v20337_v50 }
 0x6b8   :  { %11238 = vmatprep.subr.bf16.mxu0 %v11409_v55 }
 0x6bb   :  { %11240 = vmatpush3.bf16.msra.mxu0 %v18506_v2 }
 0x6bc   :  { %11247 = vmatprep.subr.bf16.mxu0 %v11409_v55 }
 0x789   :  { %v10869_v4 = vpop.f32.mrb[32].mxu0 }
 0x78a   :  { %v18530_v16 = vadd.f32 %v10869_v4, %v10794_v35  ;;  %v9679_v3 = vpop.f32.mrb[33].mxu0 }
 0x78b   :  { %v18532_v15 = vadd.f32 %v10794_v35, %v9679_v3 }
 0x78d   :  { %v9766_v33 = vadd.f32 %v9762_v59, %v18532_v15 }
 0x78f   :  { %11315 = vtanh.f32 %v9766_v33  ;;  %v10797_v1 = vmul.f32 -1.442695, %v9766_v33 }
 0x791   :  { %11317 = vpow2.f32 %v10797_v1 }
 0x799   :  { %v11316_v28 = vpop.eup %11315 }
 0x79a   :  { %9776 = vrot.lane.b32.xlu1 %v11316_v28, %s11411_s5 }
 0x79b   :  { %v11318_v49 = vpop.eup %11317 }
 0x79c   :  { %v9770_v26 = vadd.f32 1.0, %v11318_v49 }
 0x79e   :  { %11319 = vrcp.f32 %v9770_v26 }
 0x7a8   :  { %v11320_v41 = vpop.eup %11319 }
 0x7a9   :  { %v9774_v27 = vmul.f32 0.0, %v11320_v41 }
 0x80c   :  { %v9777_v20 = vpop.permute.xlu1 %9776 }
 0x80d   :  { %v9779_v13 = vmul.f32 %v11320_v41, %v9777_v20 }
 0x80f   :  { %9781 = vrot.lane.b32.xlu1 %v9779_v13, %s11412_s8 }
 0x881   :  { %v9782_v8 = vpop.permute.xlu1 %9781 }
 0x882   :  { %v9784_v30 = vadd.f32 %v9782_v8, %v9774_v27 }
 0x884   :  { %11321 = vtanh.f32 %v9784_v30  ;;  %v9878_v43 = vrot.slane %v9784_v30, 6 }
 0x88e   :  { %v11322_v52 = vpop.eup %11321 }
 0x88f   :  { %9787 = vrot.lane.b32.xlu1 %v11322_v52, %s11411_s5 }
 0x901   :  { %v9788_v31 = vpop.permute.xlu1 %9787 }
 0x902   :  { %v9790_v17 = vmul.f32 %v11320_v41, %v9788_v31 }
 0x904   :  { %9792 = vrot.lane.b32.xlu1 %v9790_v17, %s11412_s8 }
 0x976   :  { %v9793_v14 = vpop.permute.xlu1 %9792 }
 0x977   :  { %10890 = vmatmul.mubr.msk.f32.vlgmr.msra.gmra.mrb[34].mxu0 %vm9692_vm0, %v9793_v14 }
 0x978   :  { %11249 = vmatpush3.bf16.msra.mxu0 %v18483_v6  ;;  %10911 = vmatprep.mubr.msk.f32.mxu0 %vm11410_vm8, %v20337_v50 }
 0x979   :  { %11250 = vmatprep.subr.bf16.mxu0 %v11409_v55 }
 0x97c   :  { %11252 = vmatpush3.bf16.msra.mxu0 %v18506_v2 }
 0x97d   :  { %11259 = vmatprep.subr.bf16.mxu0 %v11409_v55 }
 0xa4a   :  { %v9862_v60 = vpop.f32.mrb[34].mxu0 }
 0xa4b   :  { %v9867_v47 = vrot.slane %v9862_v60, 6  ;;  %v10891_v12 = vpop.f32.mrb[35].mxu0 }
 0xa4d   :  { %v9869_v10 = vadd.f32 %v9867_v47, %v18532_v15 }
 0xa4f   :  { %11323 = vtanh.f32 %v9869_v10  ;;  %v10799_v63 = vmul.f32 -1.442695, %v9869_v10 }
 0xa51   :  { %11325 = vpow2.f32 %v10799_v63 }
 0xa59   :  { %v11324_v58 = vpop.eup %11323 }
 0xa5a   :  { %9882 = vrot.lane.b32.xlu1 %v11324_v58, %s11411_s5 }
 0xa5b   :  { %v11326_v38 = vpop.eup %11325 }
 0xa5c   :  { %v9873_v22 = vadd.f32 1.0, %v11326_v38 }
 0xa5e   :  { %11327 = vrcp.f32 %v9873_v22 }
 0xa68   :  { %v11328_v56 = vpop.eup %11327 }
 0xa69   :  { %v9880_v24 = vmul.f32 %v11328_v56, %v9878_v43 }
 0xacc   :  { %v9883_v40 = vpop.permute.xlu1 %9882 }
 0xacd   :  { %v9885_v45 = vmul.f32 %v11328_v56, %v9883_v40 }
 0xacf   :  { %9887 = vrot.lane.b32.xlu1 %v9885_v45, %s11412_s8 }
 0xb41   :  { %v9888_v42 = vpop.permute.xlu1 %9887 }
 0xb42   :  { %v9890_v61 = vadd.f32 %v9888_v42, %v9880_v24 }
 0xb44   :  { %11329 = vtanh.f32 %v9890_v61  ;;  %v9985_v53 = vrot.slane %v9890_v61, 6 }
 0xb4e   :  { %v11330_v23 = vpop.eup %11329 }
 0xb4f   :  { %9893 = vrot.lane.b32.xlu1 %v11330_v23, %s11411_s5 }
 0xbc1   :  { %v9894_v18 = vpop.permute.xlu1 %9893 }
 0xbc2   :  { %v9896_v9 = vmul.f32 %v11328_v56, %v9894_v18 }
 0xbc4   :  { %v9898_v11 = vrot.slane %v9896_v9, 2 }
 0xbc6   :  { %9899 = vrot.lane.b32.xlu1 %v9898_v11, %s11412_s8 }
 0xc38   :  { %v9900_v34 = vpop.permute.xlu1 %9899 }
 0xc39   :  { %10901 = vmatmul.mubr.msk.f32.vlgmr.msra.gmra.mrb[34].mxu1 %vm9692_vm0, %v9900_v34 }
 0xc3a   :  { %11255 = vmatpush3.bf16.msra.mxu1 %v18483_v6  ;;  %10922 = vmatprep.mubr.msk.f32.mxu1 %vm11410_vm8, %v20337_v50 }
 0xc3b   :  { %11256 = vmatprep.subr.bf16.mxu1 %v11409_v55 }
 0xc3e   :  { %11258 = vmatpush3.bf16.msra.mxu1 %v18506_v2 }
 0xc3f   :  { %11265 = vmatprep.subr.bf16.mxu1 %v11409_v55 }
 0xd0c   :  { %v9969_v7 = vpop.f32.mrb[34].mxu1 }
 0xd0d   :  { %v9974_v57 = vrot.slane %v9969_v7, 4  ;;  %v10902_v0 = vpop.f32.mrb[35].mxu1 }
 0xd0f   :  { %v9976_v54 = vadd.f32 %v9974_v57, %v18532_v15 }
 0xd11   :  { %11331 = vtanh.f32 %v9976_v54  ;;  %v10801_v37 = vmul.f32 -1.442695, %v9976_v54 }
 0xd13   :  { %11333 = vpow2.f32 %v10801_v37 }
 0xd1b   :  { %v11332_v36 = vpop.eup %11331 }
 0xd1c   :  { %9989 = vrot.lane.b32.xlu1 %v11332_v36, %s11411_s5 }
 0xd1d   :  { %v11334_v25 = vpop.eup %11333 }
 0xd1e   :  { %v9980_v19 = vadd.f32 1.0, %v11334_v25 }
 0xd20   :  { %11335 = vrcp.f32 %v9980_v19 }
 0xd2a   :  { %v11336_v5 = vpop.eup %11335 }
 0xd2b   :  { %v9987_v46 = vmul.f32 %v11336_v5, %v9985_v53 }
 0xd8e   :  { %v9990_v51 = vpop.permute.xlu1 %9989 }
 0xd8f   :  { %v9992_v32 = vmul.f32 %v11336_v5, %v9990_v51 }
 0xd91   :  { %9994 = vrot.lane.b32.xlu0 %v9992_v32, %s11412_s8 }
 0xe03   :  { %v9995_v29 = vpop.permute.xlu0 %9994 }
 0xe04   :  { %v9997_v44 = vadd.f32 %v9995_v29, %v9987_v46 }
 0xe06   :  { %11337 = vtanh.f32 %v9997_v44  ;;  %v10092_v27 = vrot.slane %v9997_v44, 6 }
 0xe10   :  { %v11338_v48 = vpop.eup %11337 }
 0xe11   :  { %10000 = vrot.lane.b32.xlu1 %v11338_v48, %s11411_s5 }
 0xe83   :  { %v10001_v21 = vpop.permute.xlu1 %10000 }
 0xe84   :  { %v10003_v39 = vmul.f32 %v11336_v5, %v10001_v21 }
 0xe86   :  { %v10005_v59 = vrot.slane %v10003_v39, 4 }
 0xe88   :  { %10006 = vrot.lane.b32.xlu1 %v10005_v59, %s11412_s8 }
 0xefa   :  { %v10007_v62 = vpop.permute.xlu1 %10006 }
 0xefb   :  { %10912 = vmatmul.mubr.msk.f32.vlgmr.msra.gmra.mrb[36].mxu0 %vm9692_vm0, %v10007_v62 }
 0xefc   :  { %11261 = vmatpush3.bf16.msra.mxu0 %v18483_v6  ;;  %10933 = vmatprep.mubr.msk.f32.mxu0 %vm11410_vm8, %v20337_v50 }
 0xefd   :  { %11262 = vmatprep.subr.bf16.mxu0 %v11409_v55 }
 0xf00   :  { %11264 = vmatpush3.bf16.msra.mxu0 %v18506_v2 }
 0xf01   :  { %11271 = vmatprep.subr.bf16.mxu0 %v11409_v55 }
 0xfce   :  { %v10076_v35 = vpop.f32.mrb[36].mxu0 }
 0xfcf   :  { %v10081_v4 = vrot.slane %v10076_v35, 2  ;;  %v10913_v3 = vpop.f32.mrb[37].mxu0 }
 0xfd1   :  { %v10083_v33 = vadd.f32 %v10081_v4, %v18532_v15 }
 0xfd3   :  { %11339 = vtanh.f32 %v10083_v33  ;;  %v10803_v1 = vmul.f32 -1.442695, %v10083_v33 }
 0xfd5   :  { %11341 = vpow2.f32 %v10803_v1 }
 0xfdd   :  { %v11340_v28 = vpop.eup %11339 }
 0xfde   :  { %10096 = vrot.lane.b32.xlu1 %v11340_v28, %s11411_s5 }
 0xfdf   :  { %v11342_v49 = vpop.eup %11341 }
 0xfe0   :  { %v10087_v26 = vadd.f32 1.0, %v11342_v49 }
 0xfe2   :  { %11343 = vrcp.f32 %v10087_v26 }
 0xfec   :  { %v11344_v41 = vpop.eup %11343 }
 0xfed   :  { %v10094_v8 = vmul.f32 %v11344_v41, %v10092_v27 }
0x1050   :  { %v10097_v20 = vpop.permute.xlu1 %10096 }
0x1051   :  { %v10099_v13 = vmul.f32 %v11344_v41, %v10097_v20 }
0x1053   :  { %10101 = vrot.lane.b32.xlu1 %v10099_v13, %s11412_s8 }
0x10c5   :  { %v10102_v30 = vpop.permute.xlu1 %10101 }
0x10c6   :  { %v10104_v52 = vadd.f32 %v10102_v30, %v10094_v8 }
0x10c8   :  { %11345 = vtanh.f32 %v10104_v52  ;;  %v10196_v43 = vrot.slane %v10104_v52, 6 }
0x10d2   :  { %v11346_v15 = vpop.eup %11345 }
0x10d3   :  { %10107 = vrot.lane.b32.xlu1 %v11346_v15, %s11411_s5 }
0x1145   :  { %v10108_v31 = vpop.permute.xlu1 %10107 }
0x1146   :  { %v10110_v17 = vmul.f32 %v11344_v41, %v10108_v31 }
0x1148   :  { %v10112_v14 = vrot.slane %v10110_v17, 6 }
0x114a   :  { %10113 = vrot.lane.b32.xlu1 %v10112_v14, %s11412_s8 }
0x11bc   :  { %v10114_v60 = vpop.permute.xlu1 %10113 }
0x11bd   :  { %10923 = vmatmul.mubr.msk.f32.vlgmr.msra.gmra.mrb[36].mxu1 %vm9692_vm0, %v10114_v60 }
0x11be   :  { %11267 = vmatpush3.bf16.msra.mxu1 %v18483_v6  ;;  %10944 = vmatprep.mubr.msk.f32.mxu1 %vm11410_vm8, %v20337_v50 }
0x11bf   :  { %11268 = vmatprep.subr.bf16.mxu1 %v11409_v55 }
0x11c2   :  { %11270 = vmatpush3.bf16.msra.mxu1 %v18506_v2 }
0x11c3   :  { %11277 = vmatprep.subr.bf16.mxu1 %v11409_v55 }
0x1290   :  { %v10183_v47 = vpop.f32.mrb[36].mxu1 }
0x1291   :  { %v10187_v12 = vadd.f32 %v10183_v47, %v18530_v16  ;;  %v10924_v10 = vpop.f32.mrb[37].mxu1 }
0x1293   :  { %11347 = vtanh.f32 %v10187_v12  ;;  %v10805_v63 = vmul.f32 -1.442695, %v10187_v12 }
0x1295   :  { %11349 = vpow2.f32 %v10805_v63 }
0x129d   :  { %v11348_v58 = vpop.eup %11347 }
0x129e   :  { %10200 = vrot.lane.b32.xlu1 %v11348_v58, %s11411_s5 }
0x129f   :  { %v11350_v38 = vpop.eup %11349 }
0x12a0   :  { %v10191_v22 = vadd.f32 1.0, %v11350_v38 }
0x12a2   :  { %11351 = vrcp.f32 %v10191_v22 }
0x12ac   :  { %v11352_v56 = vpop.eup %11351 }
0x12ad   :  { %v10198_v24 = vmul.f32 %v11352_v56, %v10196_v43 }
0x1310   :  { %v10201_v40 = vpop.permute.xlu1 %10200 }
0x1311   :  { %v10203_v45 = vmul.f32 %v11352_v56, %v10201_v40 }
0x1313   :  { %10205 = vrot.lane.b32.xlu1 %v10203_v45, %s11412_s8 }
0x1385   :  { %v10206_v42 = vpop.permute.xlu1 %10205 }
0x1386   :  { %v10208_v61 = vadd.f32 %v10206_v42, %v10198_v24  ;;  %v10536_v24 = vld [vmem:[%s18641_s9 + $0x8] sm:$0xff]  ;;  %v10537_v42 = vld [vmem:[%s18641_s9 + $0x10] sm:$0xff] }
0x1388   :  { %11353 = vtanh.f32 %v10208_v61 }
0x1392   :  { %v11354_v23 = vpop.eup %11353 }
0x1393   :  { %10211 = vrot.lane.b32.xlu1 %v11354_v23, %s11411_s5  ;;  %v10538_v23 = vld [vmem:[%s18641_s9 + $0x18] sm:$0xff] }
0x1405   :  { %v10212_v18 = vpop.permute.xlu1 %10211 }
0x1406   :  { %v10214_v9 = vmul.f32 %v11352_v56, %v10212_v18  ;;  %v11281_v18 = vpack.c.bf16 %v10538_v23, %v10537_v42 }
0x1408   :  { %10216 = vrot.lane.b32.xlu1 %v10214_v9, %s11412_s8 }
0x147a   :  { %v10217_v11 = vpop.permute.xlu1 %10216 }
0x147b   :  { %10934 = vmatmul.mubr.msk.f32.vlgmr.msra.gmra.mrb[38].mxu0 %vm9692_vm0, %v10217_v11  ;;  %v16_v11 = vstv %s18642_s10 }
0x147c   :  { %11273 = vmatpush3.bf16.msra.mxu0 %v18483_v6  ;;  %10955 = vmatprep.mubr.msk.f32.mxu0 %vm11410_vm8, %v20337_v50  ;;  %17 = vst [vmem:[#allocation3] sm:$0x1] %v16_v11 }
0x147d   :  { %11274 = vmatprep.subr.bf16.mxu0 %v11409_v55 }
0x1480   :  { %11276 = vmatpush3.bf16.msra.mxu0 %v18506_v2  ;;  %v10302_v2 = vrot.slane %v10208_v61, 6 }
0x154e   :  { %v10286_v34 = vpop.f32.mrb[38].mxu0 }
0x154f   :  { %v10291_v7 = vrot.slane %v10286_v34, 6  ;;  %v10935_v57 = vpop.f32.mrb[39].mxu0 }
0x1551   :  { %v10293_v0 = vadd.f32 %v10291_v7, %v18530_v16 }
0x1553   :  { %11355 = vtanh.f32 %v10293_v0  ;;  %v10807_v36 = vmul.f32 -1.442695, %v10293_v0 }
0x1555   :  { %11357 = vpow2.f32 %v10807_v36 }
0x155d   :  { %v11356_v54 = vpop.eup %11355 }
0x155e   :  { %10306 = vrot.lane.b32.xlu0 %v11356_v54, %s11411_s5  ;;  %v10812_v54 = vld [vmem:[#allocation3] ss:$0 sm:$0xff] }
0x155f   :  { %v11358_v37 = vpop.eup %11357 }
0x1560   :  { %v10297_v6 = vadd.f32 1.0, %v11358_v37 }
0x1562   :  { %11359 = vrcp.f32 %v10297_v6 }
0x156c   :  { %v11360_v25 = vpop.eup %11359 }
0x156d   :  { %v10304_v51 = vmul.f32 %v11360_v25, %v10302_v2 }
0x15d0   :  { %v10307_v19 = vpop.permute.xlu0 %10306 }
0x15d1   :  { %v10309_v5 = vmul.f32 %v11360_v25, %v10307_v19 }
0x15d3   :  { %10311 = vrot.lane.b32.xlu1 %v10309_v5, %s11412_s8 }
0x1645   :  { %v10312_v32 = vpop.permute.xlu1 %10311 }
0x1646   :  { %v10314_v53 = vadd.f32 %v10312_v32, %v10304_v51 }
0x1648   :  { %11361 = vtanh.f32 %v10314_v53 }
0x1652   :  { %v11362_v46 = vpop.eup %11361 }
0x1653   :  { %10317 = vrot.lane.b32.xlu0 %v11362_v46, %s11411_s5 }
0x16c5   :  { %v10318_v29 = vpop.permute.xlu0 %10317 }
0x16c6   :  { %v10320_v44 = vmul.f32 %v11360_v25, %v10318_v29 }
0x16c8   :  { %v10322_v48 = vrot.slane %v10320_v44, 2 }
0x16ca   :  { %10323 = vrot.lane.b32.xlu1 %v10322_v48, %s11412_s8 }
0x173c   :  { %v10324_v21 = vpop.permute.xlu1 %10323 }
0x173d   :  { %10945 = vmatmul.mubr.msk.f32.vlgmr.msra.gmra.mrb[38].mxu1 %vm9692_vm0, %v10324_v21 }
0x173e   :  { %10966 = vmatprep.mubr.msk.f32.mxu1 %vm11410_vm8, %v20337_v50  ;;  %v10409_v50 = vrot.slane %v10314_v53, 6 }
0x1810   :  { %v10393_v39 = vpop.f32.mrb[38].mxu1 }
0x1811   :  { %v10398_v59 = vrot.slane %v10393_v39, 4  ;;  %v10946_v62 = vpop.f32.mrb[39].mxu1 }
0x1813   :  { %v10400_v35 = vadd.f32 %v10398_v59, %v18530_v16 }
0x1815   :  { %11363 = vtanh.f32 %v10400_v35  ;;  %v10809_v3 = vmul.f32 -1.442695, %v10400_v35 }
0x1817   :  { %11365 = vpow2.f32 %v10809_v3 }
0x181f   :  { %v11364_v4 = vpop.eup %11363 }
0x1820   :  { %10413 = vrot.lane.b32.xlu0 %v11364_v4, %s11411_s5 }
0x1821   :  { %v11366_v33 = vpop.eup %11365 }
0x1822   :  { %v10404_v28 = vadd.f32 1.0, %v11366_v33 }
0x1824   :  { %11367 = vrcp.f32 %v10404_v28 }
0x182e   :  { %v11368_v1 = vpop.eup %11367 }
0x182f   :  { %v10411_v41 = vmul.f32 %v11368_v1, %v10409_v50 }
0x1892   :  { %v10414_v49 = vpop.permute.xlu0 %10413 }
0x1893   :  { %v10416_v26 = vmul.f32 %v11368_v1, %v10414_v49 }
0x1895   :  { %10418 = vrot.lane.b32.xlu1 %v10416_v26, %s11412_s8 }
0x1907   :  { %v10419_v20 = vpop.permute.xlu1 %10418 }
0x1908   :  { %v10421_v13 = vadd.f32 %v10419_v20, %v10411_v41 }
0x190a   :  { %11369 = vtanh.f32 %v10421_v13  ;;  %v10516_v56 = vrot.slane %v10421_v13, 6 }
0x1914   :  { %v11370_v27 = vpop.eup %11369 }
0x1915   :  { %10424 = vrot.lane.b32.xlu0 %v11370_v27, %s11411_s5 }
0x1987   :  { %v10425_v8 = vpop.permute.xlu0 %10424 }
0x1988   :  { %v10427_v30 = vmul.f32 %v11368_v1, %v10425_v8 }
0x198a   :  { %v10429_v52 = vrot.slane %v10427_v30, 4 }
0x198c   :  { %10430 = vrot.lane.b32.xlu1 %v10429_v52, %s11412_s8 }
0x19fe   :  { %v10431_v15 = vpop.permute.xlu1 %10430 }
0x19ff   :  { %10956 = vmatmul.mubr.msk.f32.vlgmr.msra.gmra.mrb[40].mxu0 %vm9692_vm0, %v10431_v15 }
0x1ad2   :  { %v10500_v31 = vpop.f32.mrb[40].mxu0 }
0x1ad3   :  { %v10505_v17 = vrot.slane %v10500_v31, 2  ;;  %v10957_v14 = vpop.f32.mrb[41].mxu0 }
0x1ad5   :  { %v10507_v60 = vadd.f32 %v10505_v17, %v18530_v16  ;;  %v10535_v16 = vld [vmem:[%s18641_s9] sm:$0xff] }
0x1ad6   :  { %v11278_v61 = vpack.c.bf16 %v10536_v24, %v10535_v16 }
0x1ad7   :  { %11371 = vtanh.f32 %v10507_v60  ;;  %v10811_v12 = vmul.f32 -1.442695, %v10507_v60 }
0x1ad8   :  { %11279 = vmatpush3.bf16.msra.mxu1 %v11278_v61 }
0x1ad9   :  { %11373 = vpow2.f32 %v10811_v12  ;;  %11280 = vmatprep.subr.bf16.mxu1 %v11409_v55 }
0x1adc   :  { %11282 = vmatpush3.bf16.msra.mxu1 %v11281_v18 }
0x1ae1   :  { %v11372_v47 = vpop.eup %11371 }
0x1ae2   :  { %10520 = vrot.lane.b32.xlu0 %v11372_v47, %s11411_s5 }
0x1ae3   :  { %v11374_v10 = vpop.eup %11373 }
0x1ae4   :  { %v10511_v58 = vadd.f32 1.0, %v11374_v10 }
0x1ae6   :  { %11375 = vrcp.f32 %v10511_v58 }
0x1af0   :  { %v11376_v63 = vpop.eup %11375 }
0x1af1   :  { %v10518_v40 = vmul.f32 %v11376_v63, %v10516_v56 }
0x1b54   :  { %v10521_v38 = vpop.permute.xlu0 %10520 }
0x1b55   :  { %v10523_v22 = vmul.f32 %v11376_v63, %v10521_v38 }
0x1b57   :  { %10525 = vrot.lane.b32.xlu1 %v10523_v22, %s11412_s8 }
0x1bc9   :  { %v10526_v45 = vpop.permute.xlu1 %10525 }
0x1bca   :  { %v10528_v43 = vadd.f32 %v10526_v45, %v10518_v40 }
0x1bcc   :  { %11377 = vtanh.f32 %v10528_v43 }
0x1bd6   :  { %v11378_v9 = vpop.eup %11377 }
0x1bd7   :  { %10531 = vrot.lane.b32.xlu0 %v11378_v9, %s11411_s5 }
0x1c49   :  { %v10532_v34 = vpop.permute.xlu0 %10531 }
0x1c4a   :  { %v10534_v7 = vmul.f32 %v11376_v63, %v10532_v34 }
0x1c4c   :  { %v10547_v57 = vrot.slane %v10534_v7, 6 }
0x1c4e   :  { %10548 = vrot.lane.b32.xlu1 %v10547_v57, %s11412_s8 }
0x1cc0   :  { %v10549_v0 = vpop.permute.xlu1 %10548 }
0x1cc1   :  { %10967 = vmatmul.mubr.msk.f32.vlgmr.msra.gmra.mrb[40].mxu1 %vm9692_vm0, %v10549_v0 }
0x1d94   :  { %v10618_v36 = vpop.f32.mrb[40].mxu1 }
0x1d95   :  { %v10619_v55 = vadd.f32 %v10812_v54, %v10618_v36  ;;  %v10968_v37 = vpop.f32.mrb[41].mxu1 }
0x1d97   :  { %10623 = vst.msk [vmem:[%s18643_s11] sm:$0x3] %vm10622_vm2, %v10619_v55 }

</bundles_post_ra>
